<compile_context>
chip_gen: v7x
topology: tpu7x:2x2x1
jax: 0.10.0
libtpu: 0.0.40
codegen_flags: <defaults>
</compile_context>

<pallas_src>
import math

import jax
import jax.numpy as jnp
from jax import lax
from jax.experimental import pallas as pl
from jax.experimental.pallas import tpu as pltpu

# ----------------------------- config -----------------------------------
D_MODEL = 32
N_HEADS = 4
D_FF = 2 * D_MODEL          # EncoderLayer default: d_ff = 2 * d_model
LAYER_NAMES = ["self", "cross", "self", "cross"]
LN_EPS = 1e-5               # nn.LayerNorm default
ATTN_EPS = 1e-6             # LinearAttention eps

# constant operands: wq, bq, wkv, bkv, wo, w1, b1, w2, vecs, mask2, eye_c, eye_l
N_CONST_OPS = 12


# --------------------------- in-kernel math -------------------------------
def _elu_plus_one(t):
    # elu(t) + 1
    return jnp.where(t > 0, t + 1.0, jnp.exp(t))


def _layer_norm(t, gamma, beta):
    # single-pass stats, variance clamped at 0 (f32 cancellation safety)
    mu = jnp.mean(t, axis=-1, keepdims=True)
    var = jnp.maximum(jnp.mean(t * t, axis=-1, keepdims=True) - mu * mu, 0.0)
    return (t - mu) * lax.rsqrt(var + LN_EPS) * gamma + beta


def _tn_transpose(x, eye_rows):
    """(R, C) -> (C, R) via an MXU 'tn' dot against the (R, R) identity.

    Uses the transposed-LHS dot_general form (contract dim 0 of both operands),
    a proven Mosaic lowering; avoids vector transposes of (R, C<128) shapes.
    """
    return lax.dot_general(x, eye_rows, (((0,), (0,)), ((), ())),
                           preferred_element_type=jnp.float32)


def _to_token_major(cl, eye_c, B):
    """(B, C, L) channel-major block -> (B*L, C) token-major activations."""
    slabs = [_tn_transpose(cl[b], eye_c) for b in range(B)]
    return slabs[0] if B == 1 else jnp.concatenate(slabs, axis=0)


def _encoder_layer_body(x, src, B, L, S, wq, bq, wkv, bkv, wo, w1, b1, w2,
                        vecs, mask2):
    """One post-norm encoder layer on f32 activations.

    x:   (B*L, D) f32        src: (B*S, D) f32 or None (self-attention)
    wq (D, D) bf16, bq (1, D) f32, wkv (D, 2D) bf16, bkv (1, 2D) f32,
    wo (D, D) bf16, w1 (D, DF) bf16, b1 (1, DF) f32, w2 (DF, D) bf16,
    vecs (6, D) f32 = [bo, b2, g1, be1, g2, be2], mask2 (D, 2D) f32.
    """
    D = x.shape[-1]
    bo, b2 = vecs[0:1], vecs[1:2]
    g1, be1 = vecs[2:3], vecs[3:4]
    g2, be2 = vecs[4:5], vecs[5:6]

    xb = x.astype(jnp.bfloat16)
    sb = xb if src is None else src.astype(jnp.bfloat16)

    q = jnp.dot(xb, wq, preferred_element_type=jnp.float32) + bq       # (B*L, D)
    kv = jnp.dot(sb, wkv, preferred_element_type=jnp.float32) + bkv    # (B*S, 2D)

    qp = _elu_plus_one(q).astype(jnp.bfloat16)                         # (B*L, D)
    kp = _elu_plus_one(kv[:, :D]).astype(jnp.bfloat16)                 # (B*S, D)
    v_aug = jnp.concatenate(
        [kv[:, D:].astype(jnp.bfloat16),
         jnp.ones((B * S, D), jnp.bfloat16)], axis=1)                  # (B*S, 2D)

    # Per-batch linear-attention core (all heads at once), statically unrolled.
    #   kv_aug = [ Kpᵀ·V | ksum broadcast across lanes ]   (D, 2D), f32 acc
    #   rhs    = kv_aug * [mask | mask]                    (D, 2D)
    #   out2   = Qp @ rhs   ->  num | denom in one matmul  (L, 2D)
    attn_slabs = []
    for b in range(B):
        kp_b = kp[b * S:(b + 1) * S]
        va_b = v_aug[b * S:(b + 1) * S]
        kv_aug = lax.dot_general(kp_b, va_b, (((0,), (0,)), ((), ())),
                                 preferred_element_type=jnp.float32)   # (D, 2D)
        rhs = (kv_aug * mask2).astype(jnp.bfloat16)                    # (D, 2D)
        out2 = jnp.dot(qp[b * L:(b + 1) * L], rhs,
                       preferred_element_type=jnp.float32)             # (L, 2D)
        num, den = out2[:, :D], out2[:, D:]
        attn_slabs.append(num * pl.reciprocal(den + ATTN_EPS, approx=True))
    attn = attn_slabs[0] if B == 1 else jnp.concatenate(attn_slabs, axis=0)

    # output projection + residual + LN1
    attn = jnp.dot(attn.astype(jnp.bfloat16), wo,
                   preferred_element_type=jnp.float32) + bo
    xn = _layer_norm(x + attn, g1, be1)

    # feed-forward (relu) + residual + LN2
    y = jnp.dot(xn.astype(jnp.bfloat16), w1, preferred_element_type=jnp.float32) + b1
    y = jnp.maximum(y, 0.0)
    y = jnp.dot(y.astype(jnp.bfloat16), w2, preferred_element_type=jnp.float32) + b2
    return _layer_norm(xn + y, g2, be2)


# --------------------------- fused Pallas kernel ---------------------------
def _build_fused_kernel(plan, n_refs, B, L, src_lens):
    """plan: list per layer: {'source': 'self' | ref_index, 'emit': out_index | None}."""

    def kernel(*args):
        x_ref = args[0]
        ref_refs = args[1:1 + n_refs]
        (wq_ref, bq_ref, wkv_ref, bkv_ref, wo_ref, w1_ref, b1_ref, w2_ref,
         vecs_ref, mask2_ref, eye_c_ref,
         eye_l_ref) = args[1 + n_refs:1 + n_refs + N_CONST_OPS]
        out_refs = args[1 + n_refs + N_CONST_OPS:]

        eye_c = eye_c_ref[...]        # (C, C) f32
        eye_l = eye_l_ref[...]        # (L, L) f32
        mask2 = mask2_ref[...]        # (C, 2C) f32

        # channel-major (B, C, L) -> token-major (B*L, C), once per call
        x = _to_token_major(x_ref[...], eye_c, B)

        for li, entry in enumerate(plan):              # statically unrolled layers
            if entry["source"] == "self":
                src, S = None, L
            else:
                j = entry["source"]
                S = src_lens[j]
                src = _to_token_major(ref_refs[j][...], eye_c, B)
            x = _encoder_layer_body(
                x, src, B, L, S,
                wq_ref[li], bq_ref[li], wkv_ref[li], bkv_ref[li],
                wo_ref[li], w1_ref[li], b1_ref[li], w2_ref[li],
                vecs_ref[li], mask2)
            if entry["emit"] is not None:
                oref = out_refs[entry["emit"]]         # block (B, C, L)
                for b in range(B):
                    # lane-dense (C, L) store: full-width vst, no vst.msk
                    oref[b] = _tn_transpose(x[b * L:(b + 1) * L],
                                            eye_l).astype(oref.dtype)

    return kernel


def _const_block_spec(arr):
    ndim = arr.ndim
    return pl.BlockSpec(arr.shape, lambda n, _nd=ndim: (0,) * _nd)


def _pack_params(params_list):
    """Pack per-layer params into stacked operands (weights bf16, vectors f32)."""
    bf = jnp.bfloat16
    wq = jnp.stack([p["wq"] for p in params_list]).astype(bf)           # (nl, D, D)
    bq = jnp.stack([p["bq"] for p in params_list])                      # (nl, 1, D)
    wkv = jnp.stack([jnp.concatenate([p["wk"], p["wv"]], axis=1)
                     for p in params_list]).astype(bf)                  # (nl, D, 2D)
    bkv = jnp.stack([jnp.concatenate([p["bk"], p["bv"]], axis=1)
                     for p in params_list])                             # (nl, 1, 2D)
    wo = jnp.stack([p["wo"] for p in params_list]).astype(bf)           # (nl, D, D)
    w1 = jnp.stack([p["w1"] for p in params_list]).astype(bf)           # (nl, D, DF)
    b1 = jnp.stack([p["b1"] for p in params_list])                      # (nl, 1, DF)
    w2 = jnp.stack([p["w2"] for p in params_list]).astype(bf)           # (nl, DF, D)
    vecs = jnp.stack([jnp.concatenate([p["bo"], p["b2"], p["g1"],
                                       p["be1"], p["g2"], p["be2"]], axis=0)
                      for p in params_list])                            # (nl, 6, D)
    return (wq, bq, wkv, bkv, wo, w1, b1, w2, vecs)


def _head_mask2(d_model, n_heads):
    dk = d_model // n_heads
    idx = jnp.arange(d_model)
    mask = (idx[:, None] // dk == idx[None, :] // dk).astype(jnp.float32)
    return jnp.concatenate([mask, mask], axis=1)                        # (D, 2D)


def _batch_tile(N):
    """Batch elements processed per grid step.

    Fold the whole batch into one grid step on single-TC chips (v5e/v6e) so
    projections/FFN run at M=N*L rows with one step of pipeline overhead;
    keep per-batch grid steps on multi-TC chips (v7x) so 'parallel' shards
    the batch across TensorCores.
    """
    try:
        kind = (jax.devices()[0].device_kind or "").lower()
    except Exception:
        kind = ""
    single_tc = any(t in kind for t in
                    ("v5e", "v5 lite", "v5lite", "v6e", "v6 lite", "v6lite"))
    return N if (single_tc or N == 1) else 1


def fused_pass(x_ncl, refs_ncl, params_list, plan):
    """Run a whole FMT pass (all layers) in a single pallas_call.

    x_ncl: (N, C, L) f32 primary stream (channel-major, lane-dense L);
    refs_ncl: list of (N, C, S) f32 cross sources.
    Returns a tuple of (N, C, L) outputs in emit order.
    """
    N, C, L = x_ncl.shape
    n_out = sum(1 for e in plan if e["emit"] is not None)

    consts = _pack_params(params_list) + (
        _head_mask2(C, N_HEADS),
        jnp.eye(C, dtype=jnp.float32),
        jnp.eye(L, dtype=jnp.float32),
    )
    assert len(consts) == N_CONST_OPS

    B = _batch_tile(N)
    grid = (N // B,)
    src_lens = [r.shape[2] for r in refs_ncl]

    in_specs = [pl.BlockSpec((B, C, L), lambda n: (n, 0, 0))]
    in_specs += [pl.BlockSpec((B, C, r.shape[2]), lambda n: (n, 0, 0))
                 for r in refs_ncl]
    in_specs += [_const_block_spec(w) for w in consts]

    out_shape = tuple(jax.ShapeDtypeStruct((N, C, L), x_ncl.dtype)
                      for _ in range(n_out))
    out_specs = tuple(pl.BlockSpec((B, C, L), lambda n: (n, 0, 0))
                      for _ in range(n_out))

    outs = pl.pallas_call(
        _build_fused_kernel(plan, len(refs_ncl), B, L, src_lens),
        out_shape=out_shape,
        grid=grid,
        in_specs=in_specs,
        out_specs=out_specs,
        compiler_params=pltpu.CompilerParams(
            dimension_semantics=("parallel",)),
    )(x_ncl, *refs_ncl, *consts)
    return outs if isinstance(outs, tuple) else (outs,)


# ---------------------- parameter initialization -------------------------
def _xavier_uniform(key, fan_in, fan_out):
    bound = math.sqrt(6.0 / (fan_in + fan_out))
    return jax.random.uniform(key, (fan_in, fan_out), jnp.float32, -bound, bound)


def init_layer_params(key, d_model, d_ff):
    keys = jax.random.split(key, 6)
    return {
        "wq": _xavier_uniform(keys[0], d_model, d_model),
        "bq": jnp.zeros((1, d_model), jnp.float32),
        "wk": _xavier_uniform(keys[1], d_model, d_model),
        "bk": jnp.zeros((1, d_model), jnp.float32),
        "wv": _xavier_uniform(keys[2], d_model, d_model),
        "bv": jnp.zeros((1, d_model), jnp.float32),
        "wo": _xavier_uniform(keys[3], d_model, d_model),
        "bo": jnp.zeros((1, d_model), jnp.float32),
        "w1": _xavier_uniform(keys[4], d_model, d_ff),
        "b1": jnp.zeros((1, d_ff), jnp.float32),
        "w2": _xavier_uniform(keys[5], d_ff, d_model),
        "b2": jnp.zeros((1, d_model), jnp.float32),
        "g1": jnp.ones((1, d_model), jnp.float32),
        "be1": jnp.zeros((1, d_model), jnp.float32),
        "g2": jnp.ones((1, d_model), jnp.float32),
        "be2": jnp.zeros((1, d_model), jnp.float32),
    }


# ----------------------- wrapper-side plumbing ----------------------------
def position_encoding_sine(d_model, H, W):
    """LoFTR-style 2D sinusoidal positional encoding, shape (1, C, H, W)."""
    y_pos = jnp.cumsum(jnp.ones((H, W), jnp.float32), axis=0)  # 1..H
    x_pos = jnp.cumsum(jnp.ones((H, W), jnp.float32), axis=1)  # 1..W
    div_term = jnp.exp(jnp.arange(0, d_model // 2, 2, dtype=jnp.float32)
                       * (-math.log(10000.0) / (d_model // 2)))
    div = div_term[:, None, None]                              # (C/4, 1, 1)
    pe = jnp.zeros((d_model, H, W), jnp.float32)
    pe = pe.at[0::4].set(jnp.sin(x_pos[None] * div))
    pe = pe.at[1::4].set(jnp.cos(x_pos[None] * div))
    pe = pe.at[2::4].set(jnp.sin(y_pos[None] * div))
    pe = pe.at[3::4].set(jnp.cos(y_pos[None] * div))
    return pe[None]                                            # (1, C, H, W)


def fmt_forward(layers_params, layer_names, ref_feature=None, src_feature=None,
                feat="ref"):
    """Mirrors FMT.forward; each pass is one fused pallas_call.

    All NCHW <-> (N, C, L) conversions are pure reshapes (lane-dense kernel I/O).
    """
    if feat == "ref":
        N, C, H, W = ref_feature.shape
        assert C == D_MODEL
        pe = position_encoding_sine(C, H, W)
        x = (ref_feature + pe).reshape(N, C, H * W)            # pure reshape
        plan, params_used, n_emitted = [], [], 0
        for params, name in zip(layers_params, layer_names):
            if name == "self":
                plan.append({"source": "self", "emit": n_emitted})
                n_emitted += 1
                params_used.append(params)
        outs = fused_pass(x, [], params_used, plan)
        return [o.reshape(N, C, H, W) for o in outs]
    elif feat == "src":
        N, C, H, W = src_feature.shape
        assert C == D_MODEL and ref_feature[0].shape[1] == D_MODEL
        refs_ncl = [r.reshape(r.shape[0], r.shape[1], r.shape[2] * r.shape[3])
                    for r in ref_feature]
        pe = position_encoding_sine(C, H, W)
        s = (src_feature + pe).reshape(N, C, H * W)
        plan, params_used = [], []
        for i, (params, name) in enumerate(zip(layers_params, layer_names)):
            if name == "self":
                plan.append({"source": "self", "emit": None})
            elif name == "cross":
                plan.append({"source": i // 2, "emit": None})
            else:
                raise KeyError(name)
            params_used.append(params)
        plan[-1]["emit"] = 0
        outs = fused_pass(s, refs_ncl, params_used, plan)
        # use the src feature's H (review correctness fix)
        return outs[0].reshape(N, C, H, W)
    else:
        raise ValueError("Wrong feature name")


# ----------------------- pure-JAX f32 reference ---------------------------
def _nchw_to_nlc(x):
    N, C, H, W = x.shape
    return jnp.transpose(x.reshape(N, C, H * W), (0, 2, 1))


def _nlc_to_nchw(x, H):
    N, L, C = x.shape
    return jnp.transpose(x, (0, 2, 1)).reshape(N, C, H, L // H)


def _encoder_layer_ref(x, src, p):
    N, L, D = x.shape
    S = src.shape[1]
    H = N_HEADS
    dk = D // H
    q = (x @ p["wq"] + p["bq"]).reshape(N, L, H, dk)
    k = (src @ p["wk"] + p["bk"]).reshape(N, S, H, dk)
    v = (src @ p["wv"] + p["bv"]).reshape(N, S, H, dk)
    Q = jax.nn.elu(q) + 1.0
    K = jax.nn.elu(k) + 1.0
    KV = jnp.einsum('nshd,nshm->nhmd', K, v)
    Z = 1.0 / (jnp.einsum('nlhd,nhd->nlh', Q, K.sum(axis=1)) + ATTN_EPS)
    attn = jnp.einsum('nlhd,nhmd,nlh->nlhm', Q, KV, Z).reshape(N, L, D)
    attn = attn @ p["wo"] + p["bo"]

    def ln(t, g, b):
        mu = t.mean(axis=-1, keepdims=True)
        var = ((t - mu) ** 2).mean(axis=-1, keepdims=True)
        return (t - mu) / jnp.sqrt(var + LN_EPS) * g + b

    xn = ln(x + attn, p["g1"], p["be1"])
    y = jnp.maximum(xn @ p["w1"] + p["b1"], 0.0)
    y = y @ p["w2"] + p["b2"]
    return ln(xn + y, p["g2"], p["be2"])


def fmt_forward_ref(layers_params, layer_names, ref_feature=None, src_feature=None,
                    feat="ref"):
    if feat == "ref":
        N, C, H, W = ref_feature.shape
        pe = position_encoding_sine(C, H, W)
        x = _nchw_to_nlc(ref_feature + pe)
        out = []
        for params, name in zip(layers_params, layer_names):
            if name == "self":
                x = _encoder_layer_ref(x, x, params)
                out.append(_nlc_to_nchw(x, H))
        return out
    else:
        H = src_feature.shape[2]
        refs = [_nchw_to_nlc(r) for r in ref_feature]
        pe = position_encoding_sine(src_feature.shape[1], H, src_feature.shape[3])
        s = _nchw_to_nlc(src_feature + pe)
        for i, (params, name) in enumerate(zip(layers_params, layer_names)):
            if name == "self":
                s = _encoder_layer_ref(s, s, params)
            else:
                s = _encoder_layer_ref(s, refs[i // 2], params)
        return _nlc_to_nchw(s, H)


# ------------------------------ main -------------------------------------
if __name__ == "__main__":
    key = jax.random.PRNGKey(0)
    k_ref, k_src, k_params = jax.random.split(key, 3)

    N, C, H, W = 2, D_MODEL, 16, 16
    ref_feature = jax.random.normal(k_ref, (N, C, H, W), jnp.float32)
    src_feature = jax.random.normal(k_src, (N, C, H, W), jnp.float32)

    layer_keys = jax.random.split(k_params, len(LAYER_NAMES))
    layers_params = [init_layer_params(k, D_MODEL, D_FF) for k in layer_keys]

    # Pallas: 'ref' pass (self layers only), then 'src' pass (self/cross).
    ref_list = fmt_forward(layers_params, LAYER_NAMES,
                           ref_feature=ref_feature, feat="ref")
    ref_list = [jax.block_until_ready(r) for r in ref_list]
    src_out = fmt_forward(layers_params, LAYER_NAMES,
                          ref_feature=ref_list, src_feature=src_feature,
                          feat="src")
    src_out = jax.block_until_ready(src_out)

    # Pure-JAX f32 reference (end-to-end, its own ref list).
    ref_list_f32 = fmt_forward_ref(layers_params, LAYER_NAMES,
                                   ref_feature=ref_feature, feat="ref")
    src_out_f32 = fmt_forward_ref(layers_params, LAYER_NAMES,
                                  ref_feature=ref_list_f32,
                                  src_feature=src_feature, feat="src")

    assert all(r.shape == (N, C, H, W) for r in ref_list)
    assert src_out.shape == (N, C, H, W)
    assert all(bool(jnp.all(jnp.isfinite(r))) for r in ref_list)
    assert bool(jnp.all(jnp.isfinite(src_out)))

    # bf16 matmul operands (f32 accumulate) + approx reciprocal -> small drift
    # vs the f32 reference; loose tolerance still catches real math errors.
    err_ref = max(float(jnp.max(jnp.abs(a - b)))
                  for a, b in zip(ref_list, ref_list_f32))
    err_src = float(jnp.max(jnp.abs(src_out - src_out_f32)))
    assert err_ref < 0.2 and err_src < 0.2, (err_ref, err_src)

    print("KERNEL_OK")
</pallas_src>

<mosaic_0001>
module attributes {stable_mosaic.version = 11 : i64} {
  func.func @kernel(%arg0: i32, %arg1: memref<1x32x256xf32, #tpu.memory_space<vmem>>, %arg2: memref<2x32x32xbf16, #tpu.memory_space<vmem>>, %arg3: memref<2x1x32xf32, #tpu.memory_space<vmem>>, %arg4: memref<2x32x64xbf16, #tpu.memory_space<vmem>>, %arg5: memref<2x1x64xf32, #tpu.memory_space<vmem>>, %arg6: memref<2x32x32xbf16, #tpu.memory_space<vmem>>, %arg7: memref<2x32x64xbf16, #tpu.memory_space<vmem>>, %arg8: memref<2x1x64xf32, #tpu.memory_space<vmem>>, %arg9: memref<2x64x32xbf16, #tpu.memory_space<vmem>>, %arg10: memref<2x6x32xf32, #tpu.memory_space<vmem>>, %arg11: memref<32x64xf32, #tpu.memory_space<vmem>>, %arg12: memref<32x32xf32, #tpu.memory_space<vmem>>, %arg13: memref<256x256xf32, #tpu.memory_space<vmem>>, %arg14: memref<1x32x256xf32, #tpu.memory_space<vmem>>, %arg15: memref<1x32x256xf32, #tpu.memory_space<vmem>>) attributes {dimension_semantics = [#tpu.dimension_semantics<parallel>], iteration_bounds = array<i64: 2>, scalar_prefetch = 0 : i64, scratch_operands = 0 : i64, tpu.core_type = #tpu.core_type<tc>, window_params = [{transform_indices = @transform_0, window_bounds = array<i64: 1, 32, 256>}, {pipeline_mode = #tpu.pipeline_mode<synchronous>, transform_indices = @transform_1, window_bounds = array<i64: 2, 32, 32>}, {pipeline_mode = #tpu.pipeline_mode<synchronous>, transform_indices = @transform_2, window_bounds = array<i64: 2, 1, 32>}, {pipeline_mode = #tpu.pipeline_mode<synchronous>, transform_indices = @transform_3, window_bounds = array<i64: 2, 32, 64>}, {pipeline_mode = #tpu.pipeline_mode<synchronous>, transform_indices = @transform_4, window_bounds = array<i64: 2, 1, 64>}, {pipeline_mode = #tpu.pipeline_mode<synchronous>, transform_indices = @transform_5, window_bounds = array<i64: 2, 32, 32>}, {pipeline_mode = #tpu.pipeline_mode<synchronous>, transform_indices = @transform_6, window_bounds = array<i64: 2, 32, 64>}, {pipeline_mode = #tpu.pipeline_mode<synchronous>, transform_indices = @transform_7, window_bounds = array<i64: 2, 1, 64>}, {pipeline_mode = #tpu.pipeline_mode<synchronous>, transform_indices = @transform_8, window_bounds = array<i64: 2, 64, 32>}, {pipeline_mode = #tpu.pipeline_mode<synchronous>, transform_indices = @transform_9, window_bounds = array<i64: 2, 6, 32>}, {pipeline_mode = #tpu.pipeline_mode<synchronous>, transform_indices = @transform_10, window_bounds = array<i64: 32, 64>}, {pipeline_mode = #tpu.pipeline_mode<synchronous>, transform_indices = @transform_11, window_bounds = array<i64: 32, 32>}, {pipeline_mode = #tpu.pipeline_mode<synchronous>, transform_indices = @transform_12, window_bounds = array<i64: 256, 256>}, {transform_indices = @transform_13, window_bounds = array<i64: 1, 32, 256>}, {transform_indices = @transform_14, window_bounds = array<i64: 1, 32, 256>}]} {
    %c0 = arith.constant 0 : index
    %c0_0 = arith.constant 0 : index
    %0 = vector.load %arg12[%c0, %c0_0] : memref<32x32xf32, #tpu.memory_space<vmem>>, vector<32x32xf32>
    %c0_1 = arith.constant 0 : index
    %c0_2 = arith.constant 0 : index
    %1 = vector.load %arg13[%c0_1, %c0_2] : memref<256x256xf32, #tpu.memory_space<vmem>>, vector<256x256xf32>
    %c0_3 = arith.constant 0 : index
    %c0_4 = arith.constant 0 : index
    %2 = vector.load %arg11[%c0_3, %c0_4] : memref<32x64xf32, #tpu.memory_space<vmem>>, vector<32x64xf32>
    %c0_5 = arith.constant 0 : index
    %c0_6 = arith.constant 0 : index
    %c0_7 = arith.constant 0 : index
    %3 = vector.load %arg1[%c0_5, %c0_6, %c0_7] : memref<1x32x256xf32, #tpu.memory_space<vmem>>, vector<1x32x256xf32>
    %4 = vector.shape_cast %3 : vector<1x32x256xf32> to vector<32x256xf32>
    %cst = arith.constant dense<0.000000e+00> : vector<256x32xf32>
    %5 = tpu.matmul %4, %0, %cst {dimension_numbers = #tpu.dot_dimension_numbers<[0], [0], [1], [1], [0, 1, 1, 1], [], []>} : vector<32x256xf32>, vector<32x32xf32>, vector<256x32xf32> -> vector<256x32xf32>
    %c0_8 = arith.constant 0 : index
    %c0_9 = arith.constant 0 : index
    %c0_10 = arith.constant 0 : index
    %6 = vector.load %arg2[%c0_8, %c0_9, %c0_10] : memref<2x32x32xbf16, #tpu.memory_space<vmem>>, vector<1x32x32xbf16>
    %7 = vector.shape_cast %6 : vector<1x32x32xbf16> to vector<32x32xbf16>
    %c0_11 = arith.constant 0 : index
    %c0_12 = arith.constant 0 : index
    %c0_13 = arith.constant 0 : index
    %8 = vector.load %arg3[%c0_11, %c0_12, %c0_13] : memref<2x1x32xf32, #tpu.memory_space<vmem>>, vector<1x1x32xf32>
    %9 = vector.shape_cast %8 : vector<1x1x32xf32> to vector<1x32xf32>
    %c0_14 = arith.constant 0 : index
    %c0_15 = arith.constant 0 : index
    %c0_16 = arith.constant 0 : index
    %10 = vector.load %arg4[%c0_14, %c0_15, %c0_16] : memref<2x32x64xbf16, #tpu.memory_space<vmem>>, vector<1x32x64xbf16>
    %11 = vector.shape_cast %10 : vector<1x32x64xbf16> to vector<32x64xbf16>
    %c0_17 = arith.constant 0 : index
    %c0_18 = arith.constant 0 : index
    %c0_19 = arith.constant 0 : index
    %12 = vector.load %arg5[%c0_17, %c0_18, %c0_19] : memref<2x1x64xf32, #tpu.memory_space<vmem>>, vector<1x1x64xf32>
    %13 = vector.shape_cast %12 : vector<1x1x64xf32> to vector<1x64xf32>
    %c0_20 = arith.constant 0 : index
    %c0_21 = arith.constant 0 : index
    %c0_22 = arith.constant 0 : index
    %14 = vector.load %arg6[%c0_20, %c0_21, %c0_22] : memref<2x32x32xbf16, #tpu.memory_space<vmem>>, vector<1x32x32xbf16>
    %15 = vector.shape_cast %14 : vector<1x32x32xbf16> to vector<32x32xbf16>
    %c0_23 = arith.constant 0 : index
    %c0_24 = arith.constant 0 : index
    %c0_25 = arith.constant 0 : index
    %16 = vector.load %arg7[%c0_23, %c0_24, %c0_25] : memref<2x32x64xbf16, #tpu.memory_space<vmem>>, vector<1x32x64xbf16>
    %17 = vector.shape_cast %16 : vector<1x32x64xbf16> to vector<32x64xbf16>
    %c0_26 = arith.constant 0 : index
    %c0_27 = arith.constant 0 : index
    %c0_28 = arith.constant 0 : index
    %18 = vector.load %arg8[%c0_26, %c0_27, %c0_28] : memref<2x1x64xf32, #tpu.memory_space<vmem>>, vector<1x1x64xf32>
    %19 = vector.shape_cast %18 : vector<1x1x64xf32> to vector<1x64xf32>
    %c0_29 = arith.constant 0 : index
    %c0_30 = arith.constant 0 : index
    %c0_31 = arith.constant 0 : index
    %20 = vector.load %arg9[%c0_29, %c0_30, %c0_31] : memref<2x64x32xbf16, #tpu.memory_space<vmem>>, vector<1x64x32xbf16>
    %21 = vector.shape_cast %20 : vector<1x64x32xbf16> to vector<64x32xbf16>
    %c0_32 = arith.constant 0 : index
    %c0_33 = arith.constant 0 : index
    %c0_34 = arith.constant 0 : index
    %22 = vector.load %arg10[%c0_32, %c0_33, %c0_34] : memref<2x6x32xf32, #tpu.memory_space<vmem>>, vector<1x6x32xf32>
    %23 = vector.shape_cast %22 : vector<1x6x32xf32> to vector<6x32xf32>
    %24 = vector.extract_strided_slice %23 {offsets = [0, 0], sizes = [1, 32], strides = [1, 1]} : vector<6x32xf32> to vector<1x32xf32>
    %25 = vector.extract_strided_slice %23 {offsets = [1, 0], sizes = [1, 32], strides = [1, 1]} : vector<6x32xf32> to vector<1x32xf32>
    %26 = vector.extract_strided_slice %23 {offsets = [2, 0], sizes = [1, 32], strides = [1, 1]} : vector<6x32xf32> to vector<1x32xf32>
    %27 = vector.extract_strided_slice %23 {offsets = [3, 0], sizes = [1, 32], strides = [1, 1]} : vector<6x32xf32> to vector<1x32xf32>
    %28 = vector.extract_strided_slice %23 {offsets = [4, 0], sizes = [1, 32], strides = [1, 1]} : vector<6x32xf32> to vector<1x32xf32>
    %29 = vector.extract_strided_slice %23 {offsets = [5, 0], sizes = [1, 32], strides = [1, 1]} : vector<6x32xf32> to vector<1x32xf32>
    %30 = arith.truncf %5 : vector<256x32xf32> to vector<256x32xbf16>
    %cst_35 = arith.constant dense<0.000000e+00> : vector<256x32xf32>
    %31 = tpu.matmul %30, %7, %cst_35 {dimension_numbers = #tpu.dot_dimension_numbers<[1], [0], [0], [1], [0, 0, 1, 1], [], []>} : vector<256x32xbf16>, vector<32x32xbf16>, vector<256x32xf32> -> vector<256x32xf32>
    %32 = vector.broadcast %9 : vector<1x32xf32> to vector<256x32xf32>
    %33 = arith.addf %31, %32 : vector<256x32xf32>
    %cst_36 = arith.constant dense<0.000000e+00> : vector<256x64xf32>
    %34 = tpu.matmul %30, %11, %cst_36 {dimension_numbers = #tpu.dot_dimension_numbers<[1], [0], [0], [1], [0, 0, 1, 1], [], []>} : vector<256x32xbf16>, vector<32x64xbf16>, vector<256x64xf32> -> vector<256x64xf32>
    %35 = vector.broadcast %13 : vector<1x64xf32> to vector<256x64xf32>
    %36 = arith.addf %34, %35 : vector<256x64xf32>
    %cst_37 = arith.constant 0.000000e+00 : f32
    %37 = vector.broadcast %cst_37 : f32 to vector<256x32xf32>
    %38 = arith.cmpf ogt, %33, %37 : vector<256x32xf32>
    %cst_38 = arith.constant 1.000000e+00 : f32
    %39 = vector.broadcast %cst_38 : f32 to vector<256x32xf32>
    %40 = arith.addf %33, %39 : vector<256x32xf32>
    %41 = math.exp %33 : vector<256x32xf32>
    %42 = arith.select %38, %40, %41 : vector<256x32xi1>, vector<256x32xf32>
    %43 = arith.truncf %42 : vector<256x32xf32> to vector<256x32xbf16>
    %44 = vector.extract_strided_slice %36 {offsets = [0, 0], sizes = [256, 32], strides = [1, 1]} : vector<256x64xf32> to vector<256x32xf32>
    %cst_39 = arith.constant 0.000000e+00 : f32
    %45 = vector.broadcast %cst_39 : f32 to vector<256x32xf32>
    %46 = arith.cmpf ogt, %44, %45 : vector<256x32xf32>
    %cst_40 = arith.constant 1.000000e+00 : f32
    %47 = vector.broadcast %cst_40 : f32 to vector<256x32xf32>
    %48 = arith.addf %44, %47 : vector<256x32xf32>
    %49 = math.exp %44 : vector<256x32xf32>
    %50 = arith.select %46, %48, %49 : vector<256x32xi1>, vector<256x32xf32>
    %51 = arith.truncf %50 : vector<256x32xf32> to vector<256x32xbf16>
    %52 = vector.extract_strided_slice %36 {offsets = [0, 32], sizes = [256, 32], strides = [1, 1]} : vector<256x64xf32> to vector<256x32xf32>
    %53 = arith.truncf %52 : vector<256x32xf32> to vector<256x32xbf16>
    %cst_41 = arith.constant 1.000000e+00 : bf16
    %54 = vector.broadcast %cst_41 : bf16 to vector<256x32xbf16>
    %55 = tpu.concatenate %53, %54 in 1 : vector<256x32xbf16>, vector<256x32xbf16> -> vector<256x64xbf16>
    %cst_42 = arith.constant dense<0.000000e+00> : vector<32x64xf32>
    %56 = tpu.matmul %51, %55, %cst_42 {dimension_numbers = #tpu.dot_dimension_numbers<[0], [0], [1], [1], [0, 1, 1, 1], [], []>} : vector<256x32xbf16>, vector<256x64xbf16>, vector<32x64xf32> -> vector<32x64xf32>
    %57 = arith.mulf %56, %2 : vector<32x64xf32>
    %58 = arith.truncf %57 : vector<32x64xf32> to vector<32x64xbf16>
    %cst_43 = arith.constant dense<0.000000e+00> : vector<256x64xf32>
    %59 = tpu.matmul %43, %58, %cst_43 {dimension_numbers = #tpu.dot_dimension_numbers<[1], [0], [0], [1], [0, 0, 1, 1], [], []>} : vector<256x32xbf16>, vector<32x64xbf16>, vector<256x64xf32> -> vector<256x64xf32>
    %60 = vector.extract_strided_slice %59 {offsets = [0, 0], sizes = [256, 32], strides = [1, 1]} : vector<256x64xf32> to vector<256x32xf32>
    %61 = vector.extract_strided_slice %59 {offsets = [0, 32], sizes = [256, 32], strides = [1, 1]} : vector<256x64xf32> to vector<256x32xf32>
    %cst_44 = arith.constant 9.99999997E-7 : f32
    %62 = vector.broadcast %cst_44 : f32 to vector<256x32xf32>
    %63 = arith.addf %61, %62 : vector<256x32xf32>
    %64 = tpu.reciprocal %63 {approx = true} : vector<256x32xf32> -> vector<256x32xf32>
    %65 = arith.mulf %60, %64 : vector<256x32xf32>
    %66 = arith.truncf %65 : vector<256x32xf32> to vector<256x32xbf16>
    %cst_45 = arith.constant dense<0.000000e+00> : vector<256x32xf32>
    %67 = tpu.matmul %66, %15, %cst_45 {dimension_numbers = #tpu.dot_dimension_numbers<[1], [0], [0], [1], [0, 0, 1, 1], [], []>} : vector<256x32xbf16>, vector<32x32xbf16>, vector<256x32xf32> -> vector<256x32xf32>
    %68 = vector.broadcast %24 : vector<1x32xf32> to vector<256x32xf32>
    %69 = arith.addf %67, %68 : vector<256x32xf32>
    %70 = arith.addf %5, %69 : vector<256x32xf32>
    %cst_46 = arith.constant dense<0.000000e+00> : vector<256xf32>
    %71 = vector.multi_reduction <add>, %70, %cst_46 [1] : vector<256x32xf32> to vector<256xf32>
    %72 = vector.shape_cast %71 : vector<256xf32> to vector<256x1xf32>
    %cst_47 = arith.constant 3.200000e+01 : f32
    %73 = vector.broadcast %cst_47 : f32 to vector<256x1xf32>
    %74 = arith.divf %72, %73 : vector<256x1xf32>
    %75 = arith.mulf %70, %70 : vector<256x32xf32>
    %cst_48 = arith.constant dense<0.000000e+00> : vector<256xf32>
    %76 = vector.multi_reduction <add>, %75, %cst_48 [1] : vector<256x32xf32> to vector<256xf32>
    %77 = vector.shape_cast %76 : vector<256xf32> to vector<256x1xf32>
    %cst_49 = arith.constant 3.200000e+01 : f32
    %78 = vector.broadcast %cst_49 : f32 to vector<256x1xf32>
    %79 = arith.divf %77, %78 : vector<256x1xf32>
    %80 = arith.mulf %74, %74 : vector<256x1xf32>
    %81 = arith.subf %79, %80 : vector<256x1xf32>
    %cst_50 = arith.constant 0.000000e+00 : f32
    %82 = vector.broadcast %cst_50 : f32 to vector<256x1xf32>
    %83 = arith.maximumf %81, %82 : vector<256x1xf32>
    %84 = vector.broadcast %74 : vector<256x1xf32> to vector<256x32xf32>
    %85 = arith.subf %70, %84 : vector<256x32xf32>
    %cst_51 = arith.constant 9.99999974E-6 : f32
    %86 = vector.broadcast %cst_51 : f32 to vector<256x1xf32>
    %87 = arith.addf %83, %86 : vector<256x1xf32>
    %88 = math.rsqrt %87 : vector<256x1xf32>
    %89 = vector.broadcast %88 : vector<256x1xf32> to vector<256x32xf32>
    %90 = arith.mulf %85, %89 : vector<256x32xf32>
    %91 = vector.broadcast %26 : vector<1x32xf32> to vector<256x32xf32>
    %92 = arith.mulf %90, %91 : vector<256x32xf32>
    %93 = vector.broadcast %27 : vector<1x32xf32> to vector<256x32xf32>
    %94 = arith.addf %92, %93 : vector<256x32xf32>
    %95 = arith.truncf %94 : vector<256x32xf32> to vector<256x32xbf16>
    %cst_52 = arith.constant dense<0.000000e+00> : vector<256x64xf32>
    %96 = tpu.matmul %95, %17, %cst_52 {dimension_numbers = #tpu.dot_dimension_numbers<[1], [0], [0], [1], [0, 0, 1, 1], [], []>} : vector<256x32xbf16>, vector<32x64xbf16>, vector<256x64xf32> -> vector<256x64xf32>
    %97 = vector.broadcast %19 : vector<1x64xf32> to vector<256x64xf32>
    %98 = arith.addf %96, %97 : vector<256x64xf32>
    %cst_53 = arith.constant 0.000000e+00 : f32
    %99 = vector.broadcast %cst_53 : f32 to vector<256x64xf32>
    %100 = arith.maximumf %98, %99 : vector<256x64xf32>
    %101 = arith.truncf %100 : vector<256x64xf32> to vector<256x64xbf16>
    %cst_54 = arith.constant dense<0.000000e+00> : vector<256x32xf32>
    %102 = tpu.matmul %101, %21, %cst_54 {dimension_numbers = #tpu.dot_dimension_numbers<[1], [0], [0], [1], [0, 0, 1, 1], [], []>} : vector<256x64xbf16>, vector<64x32xbf16>, vector<256x32xf32> -> vector<256x32xf32>
    %103 = vector.broadcast %25 : vector<1x32xf32> to vector<256x32xf32>
    %104 = arith.addf %102, %103 : vector<256x32xf32>
    %105 = arith.addf %94, %104 : vector<256x32xf32>
    %cst_55 = arith.constant dense<0.000000e+00> : vector<256xf32>
    %106 = vector.multi_reduction <add>, %105, %cst_55 [1] : vector<256x32xf32> to vector<256xf32>
    %107 = vector.shape_cast %106 : vector<256xf32> to vector<256x1xf32>
    %cst_56 = arith.constant 3.200000e+01 : f32
    %108 = vector.broadcast %cst_56 : f32 to vector<256x1xf32>
    %109 = arith.divf %107, %108 : vector<256x1xf32>
    %110 = arith.mulf %105, %105 : vector<256x32xf32>
    %cst_57 = arith.constant dense<0.000000e+00> : vector<256xf32>
    %111 = vector.multi_reduction <add>, %110, %cst_57 [1] : vector<256x32xf32> to vector<256xf32>
    %112 = vector.shape_cast %111 : vector<256xf32> to vector<256x1xf32>
    %cst_58 = arith.constant 3.200000e+01 : f32
    %113 = vector.broadcast %cst_58 : f32 to vector<256x1xf32>
    %114 = arith.divf %112, %113 : vector<256x1xf32>
    %115 = arith.mulf %109, %109 : vector<256x1xf32>
    %116 = arith.subf %114, %115 : vector<256x1xf32>
    %cst_59 = arith.constant 0.000000e+00 : f32
    %117 = vector.broadcast %cst_59 : f32 to vector<256x1xf32>
    %118 = arith.maximumf %116, %117 : vector<256x1xf32>
    %119 = vector.broadcast %109 : vector<256x1xf32> to vector<256x32xf32>
    %120 = arith.subf %105, %119 : vector<256x32xf32>
    %cst_60 = arith.constant 9.99999974E-6 : f32
    %121 = vector.broadcast %cst_60 : f32 to vector<256x1xf32>
    %122 = arith.addf %118, %121 : vector<256x1xf32>
    %123 = math.rsqrt %122 : vector<256x1xf32>
    %124 = vector.broadcast %123 : vector<256x1xf32> to vector<256x32xf32>
    %125 = arith.mulf %120, %124 : vector<256x32xf32>
    %126 = vector.broadcast %28 : vector<1x32xf32> to vector<256x32xf32>
    %127 = arith.mulf %125, %126 : vector<256x32xf32>
    %128 = vector.broadcast %29 : vector<1x32xf32> to vector<256x32xf32>
    %129 = arith.addf %127, %128 : vector<256x32xf32>
    %cst_61 = arith.constant dense<0.000000e+00> : vector<32x256xf32>
    %130 = tpu.matmul %129, %1, %cst_61 {dimension_numbers = #tpu.dot_dimension_numbers<[0], [0], [1], [1], [0, 1, 1, 1], [], []>} : vector<256x32xf32>, vector<256x256xf32>, vector<32x256xf32> -> vector<32x256xf32>
    %c0_62 = arith.constant 0 : index
    %c0_63 = arith.constant 0 : index
    %c0_64 = arith.constant 0 : index
    %131 = vector.load %arg14[%c0_62, %c0_63, %c0_64] : memref<1x32x256xf32, #tpu.memory_space<vmem>>, vector<1x32x256xf32>
    %132 = vector.shape_cast %131 : vector<1x32x256xf32> to vector<32x256xf32>
    %133 = vector.shape_cast %130 : vector<32x256xf32> to vector<1x32x256xf32>
    tpu.vector_store %arg14[%c0_62, %c0_63, %c0_64], %133 {strides = array<i32>} : memref<1x32x256xf32, #tpu.memory_space<vmem>>, vector<1x32x256xf32>,
    %c1 = arith.constant 1 : index
    %c0_65 = arith.constant 0 : index
    %c0_66 = arith.constant 0 : index
    %134 = vector.load %arg2[%c1, %c0_65, %c0_66] : memref<2x32x32xbf16, #tpu.memory_space<vmem>>, vector<1x32x32xbf16>
    %135 = vector.shape_cast %134 : vector<1x32x32xbf16> to vector<32x32xbf16>
    %c1_67 = arith.constant 1 : index
    %c0_68 = arith.constant 0 : index
    %c0_69 = arith.constant 0 : index
    %136 = vector.load %arg3[%c1_67, %c0_68, %c0_69] : memref<2x1x32xf32, #tpu.memory_space<vmem>>, vector<1x1x32xf32>
    %137 = vector.shape_cast %136 : vector<1x1x32xf32> to vector<1x32xf32>
    %c1_70 = arith.constant 1 : index
    %c0_71 = arith.constant 0 : index
    %c0_72 = arith.constant 0 : index
    %138 = vector.load %arg4[%c1_70, %c0_71, %c0_72] : memref<2x32x64xbf16, #tpu.memory_space<vmem>>, vector<1x32x64xbf16>
    %139 = vector.shape_cast %138 : vector<1x32x64xbf16> to vector<32x64xbf16>
    %c1_73 = arith.constant 1 : index
    %c0_74 = arith.constant 0 : index
    %c0_75 = arith.constant 0 : index
    %140 = vector.load %arg5[%c1_73, %c0_74, %c0_75] : memref<2x1x64xf32, #tpu.memory_space<vmem>>, vector<1x1x64xf32>
    %141 = vector.shape_cast %140 : vector<1x1x64xf32> to vector<1x64xf32>
    %c1_76 = arith.constant 1 : index
    %c0_77 = arith.constant 0 : index
    %c0_78 = arith.constant 0 : index
    %142 = vector.load %arg6[%c1_76, %c0_77, %c0_78] : memref<2x32x32xbf16, #tpu.memory_space<vmem>>, vector<1x32x32xbf16>
    %143 = vector.shape_cast %142 : vector<1x32x32xbf16> to vector<32x32xbf16>
    %c1_79 = arith.constant 1 : index
    %c0_80 = arith.constant 0 : index
    %c0_81 = arith.constant 0 : index
    %144 = vector.load %arg7[%c1_79, %c0_80, %c0_81] : memref<2x32x64xbf16, #tpu.memory_space<vmem>>, vector<1x32x64xbf16>
    %145 = vector.shape_cast %144 : vector<1x32x64xbf16> to vector<32x64xbf16>
    %c1_82 = arith.constant 1 : index
    %c0_83 = arith.constant 0 : index
    %c0_84 = arith.constant 0 : index
    %146 = vector.load %arg8[%c1_82, %c0_83, %c0_84] : memref<2x1x64xf32, #tpu.memory_space<vmem>>, vector<1x1x64xf32>
    %147 = vector.shape_cast %146 : vector<1x1x64xf32> to vector<1x64xf32>
    %c1_85 = arith.constant 1 : index
    %c0_86 = arith.constant 0 : index
    %c0_87 = arith.constant 0 : index
    %148 = vector.load %arg9[%c1_85, %c0_86, %c0_87] : memref<2x64x32xbf16, #tpu.memory_space<vmem>>, vector<1x64x32xbf16>
    %149 = vector.shape_cast %148 : vector<1x64x32xbf16> to vector<64x32xbf16>
    %c1_88 = arith.constant 1 : index
    %c0_89 = arith.constant 0 : index
    %c0_90 = arith.constant 0 : index
    %150 = vector.load %arg10[%c1_88, %c0_89, %c0_90] : memref<2x6x32xf32, #tpu.memory_space<vmem>>, vector<1x6x32xf32>
    %151 = vector.shape_cast %150 : vector<1x6x32xf32> to vector<6x32xf32>
    %152 = vector.extract_strided_slice %151 {offsets = [0, 0], sizes = [1, 32], strides = [1, 1]} : vector<6x32xf32> to vector<1x32xf32>
    %153 = vector.extract_strided_slice %151 {offsets = [1, 0], sizes = [1, 32], strides = [1, 1]} : vector<6x32xf32> to vector<1x32xf32>
    %154 = vector.extract_strided_slice %151 {offsets = [2, 0], sizes = [1, 32], strides = [1, 1]} : vector<6x32xf32> to vector<1x32xf32>
    %155 = vector.extract_strided_slice %151 {offsets = [3, 0], sizes = [1, 32], strides = [1, 1]} : vector<6x32xf32> to vector<1x32xf32>
    %156 = vector.extract_strided_slice %151 {offsets = [4, 0], sizes = [1, 32], strides = [1, 1]} : vector<6x32xf32> to vector<1x32xf32>
    %157 = vector.extract_strided_slice %151 {offsets = [5, 0], sizes = [1, 32], strides = [1, 1]} : vector<6x32xf32> to vector<1x32xf32>
    %158 = arith.truncf %129 : vector<256x32xf32> to vector<256x32xbf16>
    %cst_91 = arith.constant dense<0.000000e+00> : vector<256x32xf32>
    %159 = tpu.matmul %158, %135, %cst_91 {dimension_numbers = #tpu.dot_dimension_numbers<[1], [0], [0], [1], [0, 0, 1, 1], [], []>} : vector<256x32xbf16>, vector<32x32xbf16>, vector<256x32xf32> -> vector<256x32xf32>
    %160 = vector.broadcast %137 : vector<1x32xf32> to vector<256x32xf32>
    %161 = arith.addf %159, %160 : vector<256x32xf32>
    %cst_92 = arith.constant dense<0.000000e+00> : vector<256x64xf32>
    %162 = tpu.matmul %158, %139, %cst_92 {dimension_numbers = #tpu.dot_dimension_numbers<[1], [0], [0], [1], [0, 0, 1, 1], [], []>} : vector<256x32xbf16>, vector<32x64xbf16>, vector<256x64xf32> -> vector<256x64xf32>
    %163 = vector.broadcast %141 : vector<1x64xf32> to vector<256x64xf32>
    %164 = arith.addf %162, %163 : vector<256x64xf32>
    %cst_93 = arith.constant 0.000000e+00 : f32
    %165 = vector.broadcast %cst_93 : f32 to vector<256x32xf32>
    %166 = arith.cmpf ogt, %161, %165 : vector<256x32xf32>
    %cst_94 = arith.constant 1.000000e+00 : f32
    %167 = vector.broadcast %cst_94 : f32 to vector<256x32xf32>
    %168 = arith.addf %161, %167 : vector<256x32xf32>
    %169 = math.exp %161 : vector<256x32xf32>
    %170 = arith.select %166, %168, %169 : vector<256x32xi1>, vector<256x32xf32>
    %171 = arith.truncf %170 : vector<256x32xf32> to vector<256x32xbf16>
    %172 = vector.extract_strided_slice %164 {offsets = [0, 0], sizes = [256, 32], strides = [1, 1]} : vector<256x64xf32> to vector<256x32xf32>
    %cst_95 = arith.constant 0.000000e+00 : f32
    %173 = vector.broadcast %cst_95 : f32 to vector<256x32xf32>
    %174 = arith.cmpf ogt, %172, %173 : vector<256x32xf32>
    %cst_96 = arith.constant 1.000000e+00 : f32
    %175 = vector.broadcast %cst_96 : f32 to vector<256x32xf32>
    %176 = arith.addf %172, %175 : vector<256x32xf32>
    %177 = math.exp %172 : vector<256x32xf32>
    %178 = arith.select %174, %176, %177 : vector<256x32xi1>, vector<256x32xf32>
    %179 = arith.truncf %178 : vector<256x32xf32> to vector<256x32xbf16>
    %180 = vector.extract_strided_slice %164 {offsets = [0, 32], sizes = [256, 32], strides = [1, 1]} : vector<256x64xf32> to vector<256x32xf32>
    %181 = arith.truncf %180 : vector<256x32xf32> to vector<256x32xbf16>
    %cst_97 = arith.constant 1.000000e+00 : bf16
    %182 = vector.broadcast %cst_97 : bf16 to vector<256x32xbf16>
    %183 = tpu.concatenate %181, %182 in 1 : vector<256x32xbf16>, vector<256x32xbf16> -> vector<256x64xbf16>
    %cst_98 = arith.constant dense<0.000000e+00> : vector<32x64xf32>
    %184 = tpu.matmul %179, %183, %cst_98 {dimension_numbers = #tpu.dot_dimension_numbers<[0], [0], [1], [1], [0, 1, 1, 1], [], []>} : vector<256x32xbf16>, vector<256x64xbf16>, vector<32x64xf32> -> vector<32x64xf32>
    %185 = arith.mulf %184, %2 : vector<32x64xf32>
    %186 = arith.truncf %185 : vector<32x64xf32> to vector<32x64xbf16>
    %cst_99 = arith.constant dense<0.000000e+00> : vector<256x64xf32>
    %187 = tpu.matmul %171, %186, %cst_99 {dimension_numbers = #tpu.dot_dimension_numbers<[1], [0], [0], [1], [0, 0, 1, 1], [], []>} : vector<256x32xbf16>, vector<32x64xbf16>, vector<256x64xf32> -> vector<256x64xf32>
    %188 = vector.extract_strided_slice %187 {offsets = [0, 0], sizes = [256, 32], strides = [1, 1]} : vector<256x64xf32> to vector<256x32xf32>
    %189 = vector.extract_strided_slice %187 {offsets = [0, 32], sizes = [256, 32], strides = [1, 1]} : vector<256x64xf32> to vector<256x32xf32>
    %cst_100 = arith.constant 9.99999997E-7 : f32
    %190 = vector.broadcast %cst_100 : f32 to vector<256x32xf32>
    %191 = arith.addf %189, %190 : vector<256x32xf32>
    %192 = tpu.reciprocal %191 {approx = true} : vector<256x32xf32> -> vector<256x32xf32>
    %193 = arith.mulf %188, %192 : vector<256x32xf32>
    %194 = arith.truncf %193 : vector<256x32xf32> to vector<256x32xbf16>
    %cst_101 = arith.constant dense<0.000000e+00> : vector<256x32xf32>
    %195 = tpu.matmul %194, %143, %cst_101 {dimension_numbers = #tpu.dot_dimension_numbers<[1], [0], [0], [1], [0, 0, 1, 1], [], []>} : vector<256x32xbf16>, vector<32x32xbf16>, vector<256x32xf32> -> vector<256x32xf32>
    %196 = vector.broadcast %152 : vector<1x32xf32> to vector<256x32xf32>
    %197 = arith.addf %195, %196 : vector<256x32xf32>
    %198 = arith.addf %129, %197 : vector<256x32xf32>
    %cst_102 = arith.constant dense<0.000000e+00> : vector<256xf32>
    %199 = vector.multi_reduction <add>, %198, %cst_102 [1] : vector<256x32xf32> to vector<256xf32>
    %200 = vector.shape_cast %199 : vector<256xf32> to vector<256x1xf32>
    %cst_103 = arith.constant 3.200000e+01 : f32
    %201 = vector.broadcast %cst_103 : f32 to vector<256x1xf32>
    %202 = arith.divf %200, %201 : vector<256x1xf32>
    %203 = arith.mulf %198, %198 : vector<256x32xf32>
    %cst_104 = arith.constant dense<0.000000e+00> : vector<256xf32>
    %204 = vector.multi_reduction <add>, %203, %cst_104 [1] : vector<256x32xf32> to vector<256xf32>
    %205 = vector.shape_cast %204 : vector<256xf32> to vector<256x1xf32>
    %cst_105 = arith.constant 3.200000e+01 : f32
    %206 = vector.broadcast %cst_105 : f32 to vector<256x1xf32>
    %207 = arith.divf %205, %206 : vector<256x1xf32>
    %208 = arith.mulf %202, %202 : vector<256x1xf32>
    %209 = arith.subf %207, %208 : vector<256x1xf32>
    %cst_106 = arith.constant 0.000000e+00 : f32
    %210 = vector.broadcast %cst_106 : f32 to vector<256x1xf32>
    %211 = arith.maximumf %209, %210 : vector<256x1xf32>
    %212 = vector.broadcast %202 : vector<256x1xf32> to vector<256x32xf32>
    %213 = arith.subf %198, %212 : vector<256x32xf32>
    %cst_107 = arith.constant 9.99999974E-6 : f32
    %214 = vector.broadcast %cst_107 : f32 to vector<256x1xf32>
    %215 = arith.addf %211, %214 : vector<256x1xf32>
    %216 = math.rsqrt %215 : vector<256x1xf32>
    %217 = vector.broadcast %216 : vector<256x1xf32> to vector<256x32xf32>
    %218 = arith.mulf %213, %217 : vector<256x32xf32>
    %219 = vector.broadcast %154 : vector<1x32xf32> to vector<256x32xf32>
    %220 = arith.mulf %218, %219 : vector<256x32xf32>
    %221 = vector.broadcast %155 : vector<1x32xf32> to vector<256x32xf32>
    %222 = arith.addf %220, %221 : vector<256x32xf32>
    %223 = arith.truncf %222 : vector<256x32xf32> to vector<256x32xbf16>
    %cst_108 = arith.constant dense<0.000000e+00> : vector<256x64xf32>
    %224 = tpu.matmul %223, %145, %cst_108 {dimension_numbers = #tpu.dot_dimension_numbers<[1], [0], [0], [1], [0, 0, 1, 1], [], []>} : vector<256x32xbf16>, vector<32x64xbf16>, vector<256x64xf32> -> vector<256x64xf32>
    %225 = vector.broadcast %147 : vector<1x64xf32> to vector<256x64xf32>
    %226 = arith.addf %224, %225 : vector<256x64xf32>
    %cst_109 = arith.constant 0.000000e+00 : f32
    %227 = vector.broadcast %cst_109 : f32 to vector<256x64xf32>
    %228 = arith.maximumf %226, %227 : vector<256x64xf32>
    %229 = arith.truncf %228 : vector<256x64xf32> to vector<256x64xbf16>
    %cst_110 = arith.constant dense<0.000000e+00> : vector<256x32xf32>
    %230 = tpu.matmul %229, %149, %cst_110 {dimension_numbers = #tpu.dot_dimension_numbers<[1], [0], [0], [1], [0, 0, 1, 1], [], []>} : vector<256x64xbf16>, vector<64x32xbf16>, vector<256x32xf32> -> vector<256x32xf32>
    %231 = vector.broadcast %153 : vector<1x32xf32> to vector<256x32xf32>
    %232 = arith.addf %230, %231 : vector<256x32xf32>
    %233 = arith.addf %222, %232 : vector<256x32xf32>
    %cst_111 = arith.constant dense<0.000000e+00> : vector<256xf32>
    %234 = vector.multi_reduction <add>, %233, %cst_111 [1] : vector<256x32xf32> to vector<256xf32>
    %235 = vector.shape_cast %234 : vector<256xf32> to vector<256x1xf32>
    %cst_112 = arith.constant 3.200000e+01 : f32
    %236 = vector.broadcast %cst_112 : f32 to vector<256x1xf32>
    %237 = arith.divf %235, %236 : vector<256x1xf32>
    %238 = arith.mulf %233, %233 : vector<256x32xf32>
    %cst_113 = arith.constant dense<0.000000e+00> : vector<256xf32>
    %239 = vector.multi_reduction <add>, %238, %cst_113 [1] : vector<256x32xf32> to vector<256xf32>
    %240 = vector.shape_cast %239 : vector<256xf32> to vector<256x1xf32>
    %cst_114 = arith.constant 3.200000e+01 : f32
    %241 = vector.broadcast %cst_114 : f32 to vector<256x1xf32>
    %242 = arith.divf %240, %241 : vector<256x1xf32>
    %243 = arith.mulf %237, %237 : vector<256x1xf32>
    %244 = arith.subf %242, %243 : vector<256x1xf32>
    %cst_115 = arith.constant 0.000000e+00 : f32
    %245 = vector.broadcast %cst_115 : f32 to vector<256x1xf32>
    %246 = arith.maximumf %244, %245 : vector<256x1xf32>
    %247 = vector.broadcast %237 : vector<256x1xf32> to vector<256x32xf32>
    %248 = arith.subf %233, %247 : vector<256x32xf32>
    %cst_116 = arith.constant 9.99999974E-6 : f32
    %249 = vector.broadcast %cst_116 : f32 to vector<256x1xf32>
    %250 = arith.addf %246, %249 : vector<256x1xf32>
    %251 = math.rsqrt %250 : vector<256x1xf32>
    %252 = vector.broadcast %251 : vector<256x1xf32> to vector<256x32xf32>
    %253 = arith.mulf %248, %252 : vector<256x32xf32>
    %254 = vector.broadcast %156 : vector<1x32xf32> to vector<256x32xf32>
    %255 = arith.mulf %253, %254 : vector<256x32xf32>
    %256 = vector.broadcast %157 : vector<1x32xf32> to vector<256x32xf32>
    %257 = arith.addf %255, %256 : vector<256x32xf32>
    %cst_117 = arith.constant dense<0.000000e+00> : vector<32x256xf32>
    %258 = tpu.matmul %257, %1, %cst_117 {dimension_numbers = #tpu.dot_dimension_numbers<[0], [0], [1], [1], [0, 1, 1, 1], [], []>} : vector<256x32xf32>, vector<256x256xf32>, vector<32x256xf32> -> vector<32x256xf32>
    %c0_118 = arith.constant 0 : index
    %c0_119 = arith.constant 0 : index
    %c0_120 = arith.constant 0 : index
    %259 = vector.load %arg15[%c0_118, %c0_119, %c0_120] : memref<1x32x256xf32, #tpu.memory_space<vmem>>, vector<1x32x256xf32>
    %260 = vector.shape_cast %259 : vector<1x32x256xf32> to vector<32x256xf32>
    %261 = vector.shape_cast %258 : vector<32x256xf32> to vector<1x32x256xf32>
    tpu.vector_store %arg15[%c0_118, %c0_119, %c0_120], %261 {strides = array<i32>} : memref<1x32x256xf32, #tpu.memory_space<vmem>>, vector<1x32x256xf32>,
    return
  }
  func.func @transform_0(%arg0: i32) -> (i32, i32, i32) {
    %c0_i32 = arith.constant 0 : i32
    %c0_i32_0 = arith.constant 0 : i32
    %c0_i32_1 = arith.constant 0 : i32
    return %arg0, %c0_i32, %c0_i32_0 : i32, i32, i32
  }
  func.func @transform_1(%arg0: i32) -> (i32, i32, i32) {
    %c0_i32 = arith.constant 0 : i32
    %c0_i32_0 = arith.constant 0 : i32
    %c0_i32_1 = arith.constant 0 : i32
    %c0_i32_2 = arith.constant 0 : i32
    return %c0_i32, %c0_i32_0, %c0_i32_1 : i32, i32, i32
  }
  func.func @transform_2(%arg0: i32) -> (i32, i32, i32) {
    %c0_i32 = arith.constant 0 : i32
    %c0_i32_0 = arith.constant 0 : i32
    %c0_i32_1 = arith.constant 0 : i32
    %c0_i32_2 = arith.constant 0 : i32
    return %c0_i32, %c0_i32_0, %c0_i32_1 : i32, i32, i32
  }
  func.func @transform_3(%arg0: i32) -> (i32, i32, i32) {
    %c0_i32 = arith.constant 0 : i32
    %c0_i32_0 = arith.constant 0 : i32
    %c0_i32_1 = arith.constant 0 : i32
    %c0_i32_2 = arith.constant 0 : i32
    return %c0_i32, %c0_i32_0, %c0_i32_1 : i32, i32, i32
  }
  func.func @transform_4(%arg0: i32) -> (i32, i32, i32) {
    %c0_i32 = arith.constant 0 : i32
    %c0_i32_0 = arith.constant 0 : i32
    %c0_i32_1 = arith.constant 0 : i32
    %c0_i32_2 = arith.constant 0 : i32
    return %c0_i32, %c0_i32_0, %c0_i32_1 : i32, i32, i32
  }
  func.func @transform_5(%arg0: i32) -> (i32, i32, i32) {
    %c0_i32 = arith.constant 0 : i32
    %c0_i32_0 = arith.constant 0 : i32
    %c0_i32_1 = arith.constant 0 : i32
    %c0_i32_2 = arith.constant 0 : i32
    return %c0_i32, %c0_i32_0, %c0_i32_1 : i32, i32, i32
  }
  func.func @transform_6(%arg0: i32) -> (i32, i32, i32) {
    %c0_i32 = arith.constant 0 : i32
    %c0_i32_0 = arith.constant 0 : i32
    %c0_i32_1 = arith.constant 0 : i32
    %c0_i32_2 = arith.constant 0 : i32
    return %c0_i32, %c0_i32_0, %c0_i32_1 : i32, i32, i32
  }
  func.func @transform_7(%arg0: i32) -> (i32, i32, i32) {
    %c0_i32 = arith.constant 0 : i32
    %c0_i32_0 = arith.constant 0 : i32
    %c0_i32_1 = arith.constant 0 : i32
    %c0_i32_2 = arith.constant 0 : i32
    return %c0_i32, %c0_i32_0, %c0_i32_1 : i32, i32, i32
  }
  func.func @transform_8(%arg0: i32) -> (i32, i32, i32) {
    %c0_i32 = arith.constant 0 : i32
    %c0_i32_0 = arith.constant 0 : i32
    %c0_i32_1 = arith.constant 0 : i32
    %c0_i32_2 = arith.constant 0 : i32
    return %c0_i32, %c0_i32_0, %c0_i32_1 : i32, i32, i32
  }
  func.func @transform_9(%arg0: i32) -> (i32, i32, i32) {
    %c0_i32 = arith.constant 0 : i32
    %c0_i32_0 = arith.constant 0 : i32
    %c0_i32_1 = arith.constant 0 : i32
    %c0_i32_2 = arith.constant 0 : i32
    return %c0_i32, %c0_i32_0, %c0_i32_1 : i32, i32, i32
  }
  func.func @transform_10(%arg0: i32) -> (i32, i32) {
    %c0_i32 = arith.constant 0 : i32
    %c0_i32_0 = arith.constant 0 : i32
    %c0_i32_1 = arith.constant 0 : i32
    return %c0_i32, %c0_i32_0 : i32, i32
  }
  func.func @transform_11(%arg0: i32) -> (i32, i32) {
    %c0_i32 = arith.constant 0 : i32
    %c0_i32_0 = arith.constant 0 : i32
    %c0_i32_1 = arith.constant 0 : i32
    return %c0_i32, %c0_i32_0 : i32, i32
  }
  func.func @transform_12(%arg0: i32) -> (i32, i32) {
    %c0_i32 = arith.constant 0 : i32
    %c0_i32_0 = arith.constant 0 : i32
    %c0_i32_1 = arith.constant 0 : i32
    return %c0_i32, %c0_i32_0 : i32, i32
  }
  func.func @transform_13(%arg0: i32) -> (i32, i32, i32) {
    %c0_i32 = arith.constant 0 : i32
    %c0_i32_0 = arith.constant 0 : i32
    %c0_i32_1 = arith.constant 0 : i32
    return %arg0, %c0_i32, %c0_i32_0 : i32, i32, i32
  }
  func.func @transform_14(%arg0: i32) -> (i32, i32, i32) {
    %c0_i32 = arith.constant 0 : i32
    %c0_i32_0 = arith.constant 0 : i32
    %c0_i32_1 = arith.constant 0 : i32
    return %arg0, %c0_i32, %c0_i32_0 : i32, i32, i32
  }
}

</mosaic_0001>

<bundles_post_ra>
// kernel: tpu_custom_call.1
= control target key start
LH: loop header
LB: loop body
LE: loop exit
PB: predicated region body
PF: predicated region fallthrough
CT: control target
= control target key end

     0   :  { %s16420_s0 = inlined_call_operand.hbm [shape: f32[2,32,256], index: 0, kind: input, shape index: {}]   ;;  %s16421_s1 = inlined_call_operand.vmem [shape: bf16[2,32,32], index: 1, kind: input, shape index: {}]   ;;  %s16422_s2 = inlined_call_operand.hbm [shape: f32[2,1,32], index: 2, kind: input, shape index: {}]   ;;  %s16423_s3 = inlined_call_operand.vmem [shape: bf16[2,32,64], index: 3, kind: input, shape index: {}]   ;;  %s16424_s4 = inlined_call_operand.hbm [shape: f32[2,1,64], index: 4, kind: input, shape index: {}]   ;;  %s16425_s5 = inlined_call_operand.vmem [shape: bf16[2,32,32], index: 5, kind: input, shape index: {}]   ;;  %s16426_s6 = inlined_call_operand.hbm [shape: bf16[2,32,64], index: 6, kind: input, shape index: {}]   ;;  %s16427_s7 = inlined_call_operand.hbm [shape: f32[2,1,64], index: 7, kind: input, shape index: {}]   ;;  %s16428_s8 = inlined_call_operand.vmem [shape: bf16[2,64,32], index: 8, kind: input, shape index: {}]   ;;  %s16429_s9 = inlined_call_operand.vmem [shape: f32[2,6,32], index: 9, kind: input, shape index: {}]   ;;  %s16430_s10 = inlined_call_operand.vmem [shape: f32[32,64], index: 10, kind: input, shape index: {}]   ;;  %s16431_s11 = inlined_call_operand.hbm [shape: f32[32,32], index: 11, kind: input, shape index: {}]   ;;  %s16432_s12 = inlined_call_operand.hbm [shape: f32[256,256], index: 12, kind: input, shape index: {}]   ;;  %s16433_s13 = inlined_call_operand.hbm [shape: f32[2,32,256], index: 13, kind: output, shape index: {0}]   ;;  %s16434_s14 = inlined_call_operand.hbm [shape: f32[2,32,256], index: 14, kind: output, shape index: {1}]  }
   0x1   :  { %16589 = sst [smem:[#allocation106_spill]] %s16420_s0 }
   0x2   :  { %16590 = sst [smem:[#allocation107_spill]] %s16421_s1 }
   0x3   :  { %16591 = sst [smem:[#allocation108_spill]] %s16422_s2 }
   0x4   :  { %16592 = sst [smem:[#allocation109_spill]] %s16423_s3 }
   0x5   :  { %16593 = sst [smem:[#allocation110_spill]] %s16425_s5 }
   0x6   :  { %16594 = sst [smem:[#allocation111_spill]] %s16426_s6 }
   0x7   :  { %16595 = sst [smem:[#allocation112_spill]] %s16428_s8 }
   0x8   :  { %16596 = sst [smem:[#allocation113_spill]] %s16429_s9 }
   0x9   :  { %16597 = sst [smem:[#allocation114_spill]] %s16430_s10 }
   0xa   :  { %16598 = sst [smem:[#allocation115_spill]] %s16433_s13 }
   0xb   :  { %16599 = sst [smem:[#allocation116_spill]] %s16434_s14 }
   0xc   :  { %20 = vsyncpa [#allocation3], 0 }
   0xd   :  { %22 = vsyncpa [#allocation3 + $0x1], 0 }
   0xe   :  { %23 = vsyncpa [#allocation6], 0 }
   0xf   :  { %24 = vsyncpa [#allocation9], 0 }
  0x10   :  { %25 = vsyncpa [#allocation12], 0 }
  0x11   :  { %26 = vsyncpa [#allocation4], 0 }
  0x12   :  { %28 = vsyncpa [#allocation4 + $0x1], 0 }
  0x13   :  { %29 = vsyncpa [#allocation16], 0 }
  0x14   :  { %31 = vsyncpa [#allocation16 + $0x1], 0  ;;  %s11006_s29 = smov 0   ;;  %s11008_s30 = smov 0  }
  0x15   :  { %s11010_s15 = smov 0   ;;  %s11012_s16 = smov 0  }
  0x16 LB: > { %s10912_s17 = smov [#allocation5]   ;;  %s11027_s19 = sadd.s32 4294967295, %s10910_s16   ;;  %s10910_s16 = sphi %s11012_s16, %s17363_s16   ;;  %s10906_s15 = sphi %s11010_s15, %s17362_s15   ;;  %s10902_s30 = sphi %s11008_s30, %s17361_s30   ;;  %s10898_s29 = sphi %s11006_s29, %s17360_s29  }
  0x17   : > { %s387_s18 = sshll.u32 %s10912_s17, 4  ;;  %p8454_p0 = scmp.ge.s32.totalorder %s10910_s16, 1  ;;  %s11032_s18 = int_to_ptr.vmem [resolvable:$true] %s387_s18 }
  0x18   : > { %p16443_p1 = scmp.eq.s32.totalorder %s11027_s19, 0  ;;  %p372_p2 = scmp.lt.s32.totalorder %s10910_s16, 3 }
  0x19   : > { %s10913_s21 = smov [#allocation8]   ;;  %s10914_s24 = smov [#allocation11]  }
  0x1a   : > { %p11034_p3 = pnand %p8454_p0, %p372_p2  ;;  %s419_s22 = sshll.u32 %s10913_s21, 4  ;;  %s11047_s22 = int_to_ptr.vmem [resolvable:$true] %s419_s22 }
  0x1b   : > { %s11049_s25 = sshll.u32 %s10914_s24, 4  ;;  %s16602_s2 = sld [smem:[#allocation108_spill]]  ;;  %s455_s25 = int_to_ptr.vmem [resolvable:$true] %s11049_s25 }
  0x1c   : > { %s16600_s20 = scalar_select %p11034_p3, 1, 0 }
  0x1d   : > { %p9735_p5 = pneg %p11034_p3 }
  0x1f   : > { %p11043_p6 = pnand %p9735_p5, %p16443_p1 }
  0x21   : > { %s10602_s28 = scalar_lea.hbm %s16602_s2, 32  ;;  %p11059_p8 = pneg %p11043_p6 }
  0x22   : > { %p10603_p7 = scmp.ne.s32.totalorder %s16602_s2, %s10602_s28  ;;  %p10609_p11 = scmp.lt.u32.totalorder %s10602_s28, %s16602_s2 }
  0x24   : > { %p10605_p9 = pnand %p11059_p8, %p10603_p7 }
  0x26   : > { %p10606_p10 = pneg %p10605_p9 }
  0x28   : > { %p10611_p12 = pnand %p10609_p11, %p10606_p10 }
  0x2a   : > { %10614 = shalt.err (!%p10611_p12)
}
  0x2b   : > { %s10615_s14 = scalar_lea.vmem %s11032_s18, 32  ;;  %p10623_p5 = scmp.lt.s32.totalorder %s11032_s18, %s11032_s18 }
  0x2c   : > { %p10616_p13 = scmp.ne.s32.totalorder %s11032_s18, %s10615_s14  ;;  %p10624_p4 = scmp.lt.s32.totalorder %s10615_s14, %s10615_s14 }
  0x2e   : > { %p10618_p0 = pnand %p10616_p13, %p11059_p8  ;;  %p10625_p7 = por %p10624_p4, %p10623_p5 }
  0x30   : > { %p10619_p2 = pneg %p10618_p0 }
  0x32   : > { %p10626_p9 = pnand %p10625_p7, %p10619_p2 }
  0x34   : > { %10629 = shalt.err (!%p10626_p9)
}
  0x35   : > { %s16441_s26 = smov 16   ;;  %s16445_s13 = smov 1  }
  0x36   : > { %9738 = dma.hbm_to_vmem [thread:$0]  (!%p11043_p6), %s16602_s2, 32, %s11032_s18, [#allocation6], %s16441_s26, %s16441_s26, %s16445_s13  }
  0x37   : > { %s16604_s6 = sld [smem:[#allocation111_spill]] }
  0x3d   : > { %s10630_s14 = scalar_lea.hbm %s16604_s6, 512 }
  0x3e   : > { %p10631_p4 = scmp.ne.s32.totalorder %s16604_s6, %s10630_s14  ;;  %p10637_p12 = scmp.lt.u32.totalorder %s10630_s14, %s16604_s6 }
  0x40   : > { %p10633_p10 = pnand %p10631_p4, %p11059_p8 }
  0x42   : > { %p10634_p11 = pneg %p10633_p10 }
  0x44   : > { %p10639_p13 = pnand %p10637_p12, %p10634_p11 }
  0x46   : > { %10642 = shalt.err (!%p10639_p13)
}
  0x47   : > { %s10643_s18 = scalar_lea.vmem %s11047_s22, 512  ;;  %p10651_p7 = scmp.lt.s32.totalorder %s11047_s22, %s11047_s22 }
  0x48   : > { %p10644_p0 = scmp.ne.s32.totalorder %s11047_s22, %s10643_s18  ;;  %p10652_p9 = scmp.lt.s32.totalorder %s10643_s18, %s10643_s18 }
  0x4a   : > { %p10646_p2 = pnand %p10644_p0, %p11059_p8  ;;  %p10653_p4 = por %p10652_p9, %p10651_p7 }
  0x4c   : > { %p10647_p5 = pneg %p10646_p2 }
  0x4e   : > { %p10654_p10 = pnand %p10653_p4, %p10647_p5 }
  0x50   : > { %10657 = shalt.err (!%p10654_p10)
}
  0x51   : > { %s10917_s8 = smov 64   ;;  %s10918_s5 = smov 4  }
  0x52   : > { %9744 = dma.hbm_to_vmem [thread:$0]  (!%p11043_p6), %s16604_s6, 512, %s11047_s22, [#allocation9], %s10917_s8, %s10917_s8, %s10918_s5  }
  0x53   : > { %s10658_s17 = scalar_lea.hbm %s16431_s11, 512 }
  0x54   : > { %p10659_p11 = scmp.ne.s32.totalorder %s16431_s11, %s10658_s17  ;;  %p10665_p0 = scmp.lt.u32.totalorder %s10658_s17, %s16431_s11 }
  0x56   : > { %p10661_p12 = pnand %p10659_p11, %p11059_p8 }
  0x58   : > { %p10662_p13 = pneg %p10661_p12 }
  0x5a   : > { %p10667_p2 = pnand %p10665_p0, %p10662_p13 }
  0x5c   : > { %10670 = shalt.err (!%p10667_p2)
}
  0x5d   : > { %s10671_s9 = scalar_lea.vmem %s455_s25, 512  ;;  %p10679_p4 = scmp.lt.s32.totalorder %s455_s25, %s455_s25 }
  0x5e   : > { %p10672_p5 = scmp.ne.s32.totalorder %s455_s25, %s10671_s9  ;;  %p10680_p10 = scmp.lt.s32.totalorder %s10671_s9, %s10671_s9 }
  0x60   : > { %p10674_p7 = pnand %p10672_p5, %p11059_p8  ;;  %p10681_p1 = por %p10680_p10, %p10679_p4 }
  0x62   : > { %p10675_p9 = pneg %p10674_p7 }
  0x64   : > { %p10682_p3 = pnand %p10681_p1, %p10675_p9 }
  0x66   : > { %10685 = shalt.err (!%p10682_p3)
}
  0x67   : > { %s10919_s22 = smov 128   ;;  %s10920_s8 = smov 8  }
  0x68   : > { %9750 = dma.hbm_to_vmem [thread:$0]  (!%p11043_p6), %s16431_s11, 512, %s455_s25, [#allocation12], %s10919_s22, %s10919_s22, %s10920_s8  }
  0x69   : > { %s10921_s10 = smov [#allocation7]   ;;  %s10922_s28 = smov [#allocation10]  }
  0x6a   : > { %s403_s27 = sshll.u32 %s10921_s10, 4  ;;  %s432_s17 = sshll.u32 %s10922_s28, 4  ;;  %s404_s27 = int_to_ptr.vmem [resolvable:$true] %s403_s27  ;;  %s433_s17 = int_to_ptr.vmem [resolvable:$true] %s432_s17 }
  0x6b   : > { %s10686_s18 = scalar_lea.hbm %s16424_s4, 32 }
  0x6c   : > { %p10687_p1 = scmp.ne.s32.totalorder %s16424_s4, %s10686_s18  ;;  %p10693_p12 = scmp.lt.u32.totalorder %s10686_s18, %s16424_s4 }
  0x6e   : > { %p10689_p3 = pnand %p10687_p1, %p11059_p8 }
  0x70   : > { %p10690_p11 = pneg %p10689_p3 }
  0x72   : > { %p10695_p13 = pnand %p10693_p12, %p10690_p11 }
  0x74   : > { %10698 = shalt.err (!%p10695_p13)
}
  0x75   : > { %s10699_s25 = scalar_lea.vmem %s404_s27, 32  ;;  %p10707_p7 = scmp.lt.s32.totalorder %s404_s27, %s404_s27 }
  0x76   : > { %p10700_p0 = scmp.ne.s32.totalorder %s404_s27, %s10699_s25  ;;  %p10708_p9 = scmp.lt.s32.totalorder %s10699_s25, %s10699_s25 }
  0x78   : > { %p10702_p2 = pnand %p10700_p0, %p11059_p8  ;;  %p10709_p4 = por %p10708_p9, %p10707_p7 }
  0x7a   : > { %p10703_p5 = pneg %p10702_p2 }
  0x7c   : > { %p10710_p10 = pnand %p10709_p4, %p10703_p5 }
  0x7e   : > { %10713 = shalt.err (!%p10710_p10)
}
  0x7f   : > { %s16605_s13 = smov 1   ;;  %s16606_s22 = smov 16  }
  0x80   : > { %9741 = dma.hbm_to_vmem [thread:$0]  (!%p11043_p6), %s16424_s4, 32, %s404_s27, [#allocation6], %s16606_s22, %s16606_s22, %s16605_s13  }
  0x81   : > { %s10714_s5 = scalar_lea.hbm %s16427_s7, 32 }
  0x82   : > { %p10715_p1 = scmp.ne.s32.totalorder %s16427_s7, %s10714_s5  ;;  %p10721_p12 = scmp.lt.u32.totalorder %s10714_s5, %s16427_s7 }
  0x84   : > { %p10717_p3 = pnand %p10715_p1, %p11059_p8 }
  0x86   : > { %p10718_p11 = pneg %p10717_p3 }
  0x88   : > { %p10723_p13 = pnand %p10721_p12, %p10718_p11 }
  0x8a   : > { %10726 = shalt.err (!%p10723_p13)
}
  0x8b   : > { %s10727_s18 = scalar_lea.vmem %s433_s17, 32  ;;  %p10735_p7 = scmp.lt.s32.totalorder %s433_s17, %s433_s17 }
  0x8c   : > { %p10728_p0 = scmp.ne.s32.totalorder %s433_s17, %s10727_s18  ;;  %p10736_p9 = scmp.lt.s32.totalorder %s10727_s18, %s10727_s18 }
  0x8e   : > { %p10730_p2 = pnand %p10728_p0, %p11059_p8  ;;  %p10737_p4 = por %p10736_p9, %p10735_p7 }
  0x90   : > { %p10731_p5 = pneg %p10730_p2 }
  0x92   : > { %p10738_p10 = pnand %p10737_p4, %p10731_p5 }
  0x94   : > { %10741 = shalt.err (!%p10738_p10)
}
  0x95   : > { %9747 = dma.hbm_to_vmem [thread:$0]  (!%p11043_p6), %s16427_s7, 32, %s433_s17, [#allocation9], %s16606_s22, %s16606_s22, %s16605_s13  }
  0x96   : > { %s10923_s25 = smov [#allocation13]   ;;  %s10742_s26 = scalar_lea.hbm %s16432_s12, 8192 }
  0x97   : > { %s467_s2 = sshll.u32 %s10923_s25, 4  ;;  %p10743_p1 = scmp.ne.s32.totalorder %s16432_s12, %s10742_s26  ;;  %s468_s2 = int_to_ptr.vmem [resolvable:$true] %s467_s2 }
  0x98   : > { %p10749_p12 = scmp.lt.u32.totalorder %s10742_s26, %s16432_s12 }
  0x99   : > { %p10745_p3 = pnand %p10743_p1, %p11059_p8 }
  0x9b   : > { %p10746_p11 = pneg %p10745_p3 }
  0x9d   : > { %p10751_p13 = pnand %p10749_p12, %p10746_p11 }
  0x9f   : > { %10754 = shalt.err (!%p10751_p13)
}
  0xa0   : > { %s10755_s17 = scalar_lea.vmem %s468_s2, 8192  ;;  %p10763_p7 = scmp.lt.s32.totalorder %s468_s2, %s468_s2 }
  0xa1   : > { %p10756_p0 = scmp.ne.s32.totalorder %s468_s2, %s10755_s17  ;;  %p10764_p9 = scmp.lt.s32.totalorder %s10755_s17, %s10755_s17 }
  0xa3   : > { %p10758_p2 = pnand %p10756_p0, %p11059_p8  ;;  %p10765_p4 = por %p10764_p9, %p10763_p7 }
  0xa5   : > { %p10759_p5 = pneg %p10758_p2 }
  0xa7   : > { %p10766_p10 = pnand %p10765_p4, %p10759_p5 }
  0xa9   : > { %10769 = shalt.err (!%p10766_p10)
}
  0xaa   : > { %s10924_s13 = smov 256   ;;  %s8453_s23 = sadd.s32 4294967294, %s10910_s16  }
  0xab   : > { %9753 = dma.hbm_to_vmem [thread:$0]  (!%p11043_p6), %s16432_s12, 8192, %s468_s2, [#allocation12], %s10924_s13, %s10924_s13, %s16606_s22  }
  0xac   : > { %s11190_s21 = sadd.s32 1, %s10910_s16   ;;  %s44_s27 = sadd.s32 1, %s10906_s15 }
  0xad   : > { %s41_s9 = ssub.s32 %s10910_s16, %s11190_s21  ;;  %p51_p8 = scmp.ne.s32.totalorder %s10906_s15, %s10902_s30 }
  0xae   : > { %p42_p1 = scmp.eq.s32.totalorder %s41_s9, 0  ;;  %p52_p3 = scmp.eq.s32.totalorder %s10910_s16, 0 }
  0xaf   : > { %p57_p11 = scmp.ne.s32.totalorder %s10902_s30, %s10898_s29  ;;  %p333_p12 = scmp.eq.s32.totalorder %s11027_s19, 1 }
  0xb0   : > { %s11202_s25 = scalar_select %p42_p1, %s10906_s15, %s44_s27  }
  0xb1   : > { %p53_p13 = por %p52_p3, %p51_p8  ;;  %p16607_p0 = scmp.eq.s32.totalorder %s11027_s19, 0 }
  0xb2   : > { %p11210_p6 = por %p333_p12, %p51_p8  ;;  %p339_p5 = scmp.eq.s32.totalorder %s8453_s23, 1 }
  0xb3   : > { %p11206_p2 = por %p16607_p0, %p57_p11  ;;  %p9771_p7 = scmp.lt.s32.totalorder %s10910_s16, 2 }
  0xb4   : > { %s16609_s2 = scalar_select %p11210_p6, 1, 0 }
  0xb5   : > { %s481_s8 = sand.u32 1, %s10906_s15   ;;  %p11216_p9 = por %p339_p5, %p57_p11 }
  0xb6   : > { %s8462_s5 = sshll.u32 %s481_s8, 6  ;;  %s8758_s10 = sshll.u32 %s10910_s16, 10 }
  0xb7   : > { %s16610_s26 = scalar_select %p11216_p9, 1, 0 }
  0xb8   : > { %s16611_s0 = sld [smem:[#allocation106_spill]]  ;;  %s485_s14 = scalar_lea.vmem [#allocation2], %s8462_s5 }
  0xb9   : > { %s492_s18 = sshll.u32 %s485_s14, 4  ;;  %p11226_p4 = pnand %p9771_p7, %p53_p13  ;;  %s11230_s18 = int_to_ptr.vmem [resolvable:$true] %s492_s18 }
  0xba   : > { %s11232_s27 = scalar_lea.sflag [#allocation3], %s481_s8 }
  0xbb   : > { %p10772_p8 = pneg %p11226_p4 }
  0xbe   : > { %s11224_s17 = scalar_lea.hbm %s16611_s0, %s8758_s10  ;;  %s10775_s28 = scalar_lea.hbm %s16611_s0, 2048 }
  0xbf   : > { %s10770_s9 = scalar_lea.hbm %s11224_s17, 1024  ;;  %p10776_p11 = scmp.lt.u32.totalorder %s11224_s17, %s16611_s0 }
  0xc0   : > { %p10771_p10 = scmp.ne.s32.totalorder %s11224_s17, %s10770_s9  ;;  %p10777_p12 = scmp.lt.u32.totalorder %s10775_s28, %s10770_s9 }
  0xc1   : > { %p10779_p0 = scmp.lt.u32.totalorder %s10770_s9, %s11224_s17 }
  0xc2   : > { %p10773_p1 = pnand %p10772_p8, %p10771_p10  ;;  %p10778_p13 = por %p10777_p12, %p10776_p11 }
  0xc4   : > { %p10774_p3 = pneg %p10773_p1  ;;  %p10780_p5 = por %p10779_p0, %p10778_p13 }
  0xc6   : > { %p10781_p7 = pnand %p10780_p5, %p10774_p3 }
  0xc8   : > { %10784 = shalt.err (!%p10781_p7)
}
  0xc9   : > { %s10785_s8 = scalar_lea.vmem %s11230_s18, 1024  ;;  %s10925_s5 = smov [#allocation2]  }
  0xca   : > { %p10786_p10 = scmp.ne.s32.totalorder %s11230_s18, %s10785_s8  ;;  %s10790_s10 = sshll.u32 %s10925_s5, 4  ;;  %s10791_s10 = int_to_ptr.vmem [resolvable:$false] %s10790_s10 }
  0xcb   : > { %s10792_s24 = scalar_lea.vmem %s10791_s10, 2048  ;;  %p10793_p6 = scmp.lt.s32.totalorder %s11230_s18, %s10791_s10 }
  0xcc   : > { %p10788_p1 = pnand %p10786_p10, %p10772_p8  ;;  %p10794_p11 = scmp.lt.s32.totalorder %s10792_s24, %s10785_s8 }
  0xce   : > { %p10789_p9 = pneg %p10788_p1  ;;  %p10795_p12 = por %p10794_p11, %p10793_p6 }
  0xd0   : > { %p10796_p13 = pnand %p10795_p12, %p10789_p9 }
  0xd2   : > { %10799 = shalt.err (!%p10796_p13)
}
  0xd3   : > { %9757 = dma.hbm_to_vmem [thread:$0]  (!%p11226_p4), %s11224_s17, 1024, %s11230_s18, %s11232_s27, %s10924_s13, %s10924_s13, %s16606_s22  }
  0xd4   : > { %p16613_p8 = scmp.ne.s32.totalorder %s16600_s20, 0 }
  0xd6   : > { %504 = sbr.rel (%p16613_p8) target bundleno = 5182 (0x143e), region = 72 }
  0xdd   : > { %s11266_s9 = sand.u32 1, %s10902_s30  }
  0xde   : > { %s11269_s28 = sshll.u32 %s11266_s9, 6  ;;  %s507_s23 = scalar_lea.sflag [#allocation3], %s11266_s9 }
  0xdf   : > { %s510_s14 = scalar_lea.vmem [#allocation2], %s11269_s28 }
  0xe0   : > { %10873 = dma.done.wait (%p11206_p2), %s507_s23, 1024  }
  0xe1   : > { %10875 = vsyncadd (%p11206_p2), %s507_s23, 4294966272  ;;  %p16614_p6 = scmp.eq.s32.totalorder %s11027_s19, 0 }
  0xe3   : > { %10877 = dma.done.wait (%p16614_p6), [#allocation6], 64   ;;  %p16615_p9 = pmov %p16614_p6 }
  0xe4   : > { %p16616_p4 = pmov %p16614_p6 }
  0xe5   : > { %10879 = vsyncadd (%p16615_p9), [#allocation6], 4294967232 }
  0xe6   : > { %10881 = dma.done.wait (%p16616_p4), [#allocation9], 544   ;;  %p16617_p3 = pmov %p16616_p4 }
  0xe8   : > { %10883 = vsyncadd (%p16617_p3), [#allocation9], 4294966752  ;;  %p16618_p0 = pmov %p16617_p3 }
  0xea   : > { %10885 = dma.done.wait (%p16618_p0), [#allocation12], 8704   ;;  %p16619_p5 = pmov %p16618_p0 }
  0xeb   : > { %v658_v0 = vld [vmem:[%s510_s14] sm:$0xff]  ;;  %v659_v1 = vld [vmem:[%s510_s14 + $0x8] sm:$0xff]  ;;  %v660_v2 = vld [vmem:[%s510_s14 + $0x10] sm:$0xff]  ;;  %s16620_s3 = sld [smem:[#allocation109_spill]]  ;;  %vm16513_vm0 = vcmask 261120   ;;  %s16621_s1 = sld [smem:[#allocation107_spill]] }
  0xec   : > { %10887 = vsyncadd (%p16619_p5), [#allocation12], 4294958592  ;;  %666 = vxpose.xlu0.b32.start [1/4] (short) %v658_v0, 128  ;;  %698 = vxpose.xlu1.b32.start [1/4] (short) %v659_v1, 128  ;;  %v661_v3 = vld [vmem:[%s510_s14 + $0x18] sm:$0xff]  ;;  %v586_v4 = vld [vmem:[#allocation11] sm:$0xff]  ;;  %s10926_s5 = smov 96   ;;  %s16779_s23 = sld [smem:[#allocation114_spill]] }
  0xed   : > { %v587_v5 = vld [vmem:[#allocation11 + $0x8] sm:$0xff]  ;;  %v588_v6 = vld [vmem:[#allocation11 + $0x10] sm:$0xff]  ;;  %v589_v7 = vld [vmem:[#allocation11 + $0x18] sm:$0xff]  ;;  %s16803_s8 = sld [smem:[#allocation110_spill]]  ;;  %s16820_s22 = sld [smem:[#allocation113_spill]] }
  0xee   : > { %v662_v8 = vld [vmem:[%s510_s14 + $0x20] sm:$0xff]  ;;  %v9569_v9 = vpack.c.bf16 %v587_v5, %v586_v4  ;;  %v9573_v10 = vpack.c.bf16 %v589_v7, %v588_v6  ;;  %v663_v11 = vld [vmem:[%s510_s14 + $0x28] sm:$0xff]  ;;  %v664_v12 = vld [vmem:[%s510_s14 + $0x30] sm:$0xff]  ;;  %s16913_s17 = sld [smem:[#allocation112_spill]]  ;;  %s14397_s18 = scalar_lea.vmem [#allocation14], %s11269_s28 }
  0xef   : > { %v665_v13 = vld [vmem:[%s510_s14 + $0x38] sm:$0xff]  ;;  %s8275_s10 = sshll.u32 %s14397_s18, 4  ;;  %s16586_s24 = sshll.u32 %s11027_s19, 10  ;;  %s16328_s10 = int_to_ptr.vmem [resolvable:$true] %s8275_s10 }
  0xf0   : > { %667 = vxpose.xlu0.b32.cont [2/4] (short) %v660_v2, 128  ;;  %699 = vxpose.xlu1.b32.cont [2/4] (short) %v661_v3, 128  ;;  %s10800_s27 = scalar_lea.vmem %s16328_s10, 1024  ;;  %p17352_p7 = scmp.ne.s32.totalorder %s16609_s2, 0 }
  0xf1   : > { %9570 = vmatprep.subr.bf16.mxu0 %v9569_v9  ;;  %v9932_v14 = vld [vmem:[%s16620_s3] sm:$0xff]   ;;  %v9934_v48 = vld [vmem:[%s16621_s1 + $0x8] sm:$0xff]   ;;  %p10801_p2 = scmp.ne.s32.totalorder %s16328_s10, %s10800_s27  ;;  %s10927_s0 = smov [#allocation14]  }
  0xf2   : > { %9572 = vmatpush3.bf16.msra.mxu0 %v9569_v9  ;;  %v9933_v46 = vld [vmem:[%s16621_s1] sm:$0xff]   ;;  %v9935_v49 = vld [vmem:[%s16620_s3 + $0x8] sm:$0xff]  }
  0xf3   : > { %9574 = vmatprep.subr.bf16.mxu0 %v9573_v10  ;;  %9129 = vmatprep.subr.bf16.mxu1 %v9933_v46  ;;  %p10802_p10 = pnand %p10801_p2, %p17352_p7 }
  0xf4   : > { %668 = vxpose.xlu0.b32.cont [3/4] (short) %v662_v8, 128  ;;  %700 = vxpose.xlu1.b32.cont [3/4] (short) %v663_v11, 128 }
  0xf5   : > { %9130 = vmatpush3.bf16.msra.mxu1 %v9933_v46  ;;  %p10803_p1 = pneg %p10802_p10 }
  0xf6   : > { %9576 = vmatpush3.bf16.msra.mxu0 %v9573_v10  ;;  %9131 = vmatprep.subr.bf16.mxu1 %v9934_v48 }
  0xf7   : > { %9165 = vmatprep.subr.bf16.mxu0 %v9932_v14 }
  0xf8   : > { %669 = vxpose.xlu0.b32.end [4/4] (short) %v664_v12, 128  ;;  %701 = vxpose.xlu1.b32.end [4/4] (short) %v665_v13, 128 }
  0xf9   : > { %9132 = vmatpush3.bf16.msra.mxu1 %v9934_v48 }
 0x16c   : > { %v682_v15 = vpop.trf.xlu0  ;;  %v714_v16 = vpop.trf.xlu1 }
 0x16d   : > { %9081 = vmatprep.mubr.msk.f32.mxu0 %vm16513_vm0, %v682_v15 }
 0x170   : > { %v683_v17 = vpop.trf.xlu0  ;;  %v715_v18 = vpop.trf.xlu1 }
 0x171   : > { %9082 = vmatmul.mubr.msk.f32.vlgmr.msra.gmra.mrb[0].mxu0 %vm16513_vm0, %v683_v17 }
 0x172   : > { %9166 = vmatpush3.bf16.msra.mxu0 %v9932_v14 }
 0x173   : > { %9167 = vmatprep.subr.bf16.mxu0 %v9935_v49 }
 0x174   : > { %v684_v19 = vpop.trf.xlu0  ;;  %v716_v21 = vpop.trf.xlu1 }
 0x175   : > { %9084 = vmatprep.mubr.msk.f32.mxu0 %vm16513_vm0, %v684_v19 }
 0x176   : > { %9168 = vmatpush3.bf16.msra.mxu0 %v9935_v49 }
 0x178   : > { %v685_v20 = vpop.trf.xlu0  ;;  %v717_v23 = vpop.trf.xlu1 }
 0x179   : > { %9085 = vmatmul.mubr.msk.f32.gmra.mrb[2].mxu0 %vm16513_vm0, %v685_v20 }
 0x17c   : > { %v686_v22 = vpop.trf.xlu0  ;;  %v718_v26 = vpop.trf.xlu1 }
 0x17d   : > { %9087 = vmatprep.mubr.msk.f32.mxu0 %vm16513_vm0, %v686_v22 }
 0x180   : > { %v687_v24 = vpop.trf.xlu0  ;;  %v719_v28 = vpop.trf.xlu1 }
 0x181   : > { %9088 = vmatmul.mubr.msk.f32.gmra.mrb[4].mxu0 %vm16513_vm0, %v687_v24 }
 0x184   : > { %v688_v25 = vpop.trf.xlu0  ;;  %v720_v31 = vpop.trf.xlu1 }
 0x185   : > { %9090 = vmatprep.mubr.msk.f32.mxu0 %vm16513_vm0, %v688_v25 }
 0x188   : > { %v689_v27 = vpop.trf.xlu0  ;;  %v721_v33 = vpop.trf.xlu1 }
 0x189   : > { %9091 = vmatmul.mubr.msk.f32.gmra.mrb[6].mxu0 %vm16513_vm0, %v689_v27 }
 0x18c   : > { %v690_v29 = vpop.trf.xlu0  ;;  %v722_v36 = vpop.trf.xlu1 }
 0x18d   : > { %9093 = vmatprep.mubr.msk.f32.mxu0 %vm16513_vm0, %v690_v29 }
 0x190   : > { %v691_v30 = vpop.trf.xlu0  ;;  %v723_v38 = vpop.trf.xlu1 }
 0x191   : > { %9094 = vmatmul.mubr.msk.f32.gmra.mrb[8].mxu0 %vm16513_vm0, %v691_v30 }
 0x194   : > { %v692_v32 = vpop.trf.xlu0  ;;  %v724_v41 = vpop.trf.xlu1 }
 0x195   : > { %9096 = vmatprep.mubr.msk.f32.mxu0 %vm16513_vm0, %v692_v32 }
 0x198   : > { %v693_v34 = vpop.trf.xlu0  ;;  %v725_v42 = vpop.trf.xlu1 }
 0x199   : > { %9097 = vmatmul.mubr.msk.f32.gmra.mrb[10].mxu0 %vm16513_vm0, %v693_v34  ;;  %v11461_v34 = vld [vmem:[#allocation5] ss:$0 sm:$0xff] }
 0x19c   : > { %v694_v35 = vpop.trf.xlu0  ;;  %v726_v43 = vpop.trf.xlu1 }
 0x19d   : > { %9099 = vmatprep.mubr.msk.f32.mxu0 %vm16513_vm0, %v694_v35 }
 0x1a0   : > { %v695_v37 = vpop.trf.xlu0  ;;  %v727_v44 = vpop.trf.xlu1 }
 0x1a1   : > { %9100 = vmatmul.mubr.msk.f32.gmra.mrb[12].mxu0 %vm16513_vm0, %v695_v37  ;;  %v11463_v37 = vld [vmem:[#allocation7] ss:$0 sm:$0xff] }
 0x1a4   : > { %v696_v39 = vpop.trf.xlu0  ;;  %v728_v45 = vpop.trf.xlu1 }
 0x1a5   : > { %9102 = vmatprep.mubr.msk.f32.mxu0 %vm16513_vm0, %v696_v39 }
 0x1a8   : > { %v697_v40 = vpop.trf.xlu0  ;;  %v729_v47 = vpop.trf.xlu1 }
 0x1a9   : > { %9103 = vmatmul.mubr.msk.f32.gmra.mrb[14].mxu0 %vm16513_vm0, %v697_v40 }
 0x1aa   : > { %9105 = vmatprep.mubr.msk.f32.mxu0 %vm16513_vm0, %v714_v16 }
 0x1ad   : > { %9106 = vmatmul.mubr.msk.f32.gmra.mrb[16].mxu0 %vm16513_vm0, %v715_v18 }
 0x1ae   : > { %9108 = vmatprep.mubr.msk.f32.mxu0 %vm16513_vm0, %v716_v21 }
 0x1b1   : > { %9109 = vmatmul.mubr.msk.f32.gmra.mrb[18].mxu0 %vm16513_vm0, %v717_v23 }
 0x1b2   : > { %9111 = vmatprep.mubr.msk.f32.mxu0 %vm16513_vm0, %v718_v26 }
 0x1b5   : > { %9112 = vmatmul.mubr.msk.f32.gmra.mrb[20].mxu0 %vm16513_vm0, %v719_v28 }
 0x1b6   : > { %9114 = vmatprep.mubr.msk.f32.mxu0 %vm16513_vm0, %v720_v31 }
 0x1b9   : > { %9115 = vmatmul.mubr.msk.f32.gmra.mrb[22].mxu0 %vm16513_vm0, %v721_v33 }
 0x1ba   : > { %9117 = vmatprep.mubr.msk.f32.mxu0 %vm16513_vm0, %v722_v36 }
 0x1bd   : > { %9118 = vmatmul.mubr.msk.f32.gmra.mrb[24].mxu0 %vm16513_vm0, %v723_v38 }
 0x1be   : > { %9120 = vmatprep.mubr.msk.f32.mxu0 %vm16513_vm0, %v724_v41 }
 0x1c1   : > { %9121 = vmatmul.mubr.msk.f32.gmra.mrb[26].mxu0 %vm16513_vm0, %v725_v42 }
 0x1c2   : > { %9123 = vmatprep.mubr.msk.f32.mxu0 %vm16513_vm0, %v726_v43 }
 0x1c5   : > { %9124 = vmatmul.mubr.msk.f32.gmra.mrb[28].mxu0 %vm16513_vm0, %v727_v44 }
 0x1c6   : > { %9126 = vmatprep.mubr.msk.f32.mxu0 %vm16513_vm0, %v728_v45 }
 0x1c9   : > { %9127 = vmatmul.mubr.msk.f32.gmra.mrb[30].mxu0 %vm16513_vm0, %v729_v47 }
 0x244   : > { %v11333_v50 = vpop.f32.mrb[0].mxu0 }
 0x245   : > { %16622 = vst [vmem:[#allocation23_spill] sm:$0xff] %v11333_v50  ;;  %v11335_v51 = vpop.f32.mrb[1].mxu0 }
 0x246   : > { %16623 = vst [vmem:[#allocation24_spill] sm:$0xff] %v11335_v51  ;;  %v1080_v52 = vpack.c.bf16 %v11333_v50, %v11335_v51 }
 0x248   : > { %9133 = vmatprep.mubr.msk.bf16.mxu1 %vm16513_vm0, %v1080_v52  ;;  %9169 = vmatprep.mubr.msk.bf16.mxu0 %vm16513_vm0, %v1080_v52 }
 0x24c   : > { %v11341_v53 = vpop.f32.mrb[2].mxu0 }
 0x24d   : > { %16624 = vst [vmem:[#allocation25_spill] sm:$0xff] %v11341_v53  ;;  %v11343_v54 = vpop.f32.mrb[3].mxu0 }
 0x24e   : > { %16625 = vst [vmem:[#allocation26_spill] sm:$0xff] %v11343_v54  ;;  %v1081_v55 = vpack.c.bf16 %v11341_v53, %v11343_v54 }
 0x250   : > { %9134 = vmatmul.mubr.msk.bf16.vlgmr.msra.gmra.mrb[0].mxu1 %vm16513_vm0, %v1081_v55  ;;  %9170 = vmatmul.mubr.msk.bf16.vlgmr.msra.gmra.mrb[32].mxu0 %vm16513_vm0, %v1081_v55 }
 0x254   : > { %v11349_v56 = vpop.f32.mrb[4].mxu0 }
 0x255   : > { %16626 = vst [vmem:[#allocation27_spill] sm:$0xff] %v11349_v56  ;;  %v11351_v57 = vpop.f32.mrb[5].mxu0 }
 0x256   : > { %16627 = vst [vmem:[#allocation28_spill] sm:$0xff] %v11351_v57  ;;  %v1082_v58 = vpack.c.bf16 %v11349_v56, %v11351_v57 }
 0x258   : > { %9137 = vmatprep.mubr.msk.bf16.mxu1 %vm16513_vm0, %v1082_v58  ;;  %9173 = vmatprep.mubr.msk.bf16.mxu0 %vm16513_vm0, %v1082_v58 }
 0x25c   : > { %v11357_v59 = vpop.f32.mrb[6].mxu0 }
 0x25d   : > { %16628 = vst [vmem:[#allocation29_spill] sm:$0xff] %v11357_v59  ;;  %v11359_v60 = vpop.f32.mrb[7].mxu0 }
 0x25e   : > { %16629 = vst [vmem:[#allocation30_spill] sm:$0xff] %v11359_v60  ;;  %v1083_v61 = vpack.c.bf16 %v11357_v59, %v11359_v60 }
 0x260   : > { %9138 = vmatmul.mubr.msk.bf16.gmra.mrb[4].mxu1 %vm16513_vm0, %v1083_v61  ;;  %9174 = vmatmul.mubr.msk.bf16.gmra.mrb[36].mxu0 %vm16513_vm0, %v1083_v61 }
 0x264   : > { %v11365_v62 = vpop.f32.mrb[8].mxu0 }
 0x265   : > { %16630 = vst [vmem:[#allocation31_spill] sm:$0xff] %v11365_v62  ;;  %v11367_v63 = vpop.f32.mrb[9].mxu0 }
 0x266   : > { %16631 = vst [vmem:[#allocation32_spill] sm:$0xff] %v11367_v63  ;;  %v1084_v0 = vpack.c.bf16 %v11365_v62, %v11367_v63 }
 0x268   : > { %9141 = vmatprep.mubr.msk.bf16.mxu1 %vm16513_vm0, %v1084_v0  ;;  %9177 = vmatprep.mubr.msk.bf16.mxu0 %vm16513_vm0, %v1084_v0 }
 0x26c   : > { %v11373_v1 = vpop.f32.mrb[10].mxu0 }
 0x26d   : > { %16632 = vst [vmem:[#allocation33_spill] sm:$0xff] %v11373_v1  ;;  %v11375_v2 = vpop.f32.mrb[11].mxu0 }
 0x26e   : > { %16633 = vst [vmem:[#allocation34_spill] sm:$0xff] %v11375_v2  ;;  %v1085_v3 = vpack.c.bf16 %v11373_v1, %v11375_v2 }
 0x270   : > { %9142 = vmatmul.mubr.msk.bf16.gmra.mrb[8].mxu1 %vm16513_vm0, %v1085_v3  ;;  %9178 = vmatmul.mubr.msk.bf16.gmra.mrb[40].mxu0 %vm16513_vm0, %v1085_v3 }
 0x274   : > { %v11381_v4 = vpop.f32.mrb[12].mxu0 }
 0x275   : > { %16634 = vst [vmem:[#allocation35_spill] sm:$0xff] %v11381_v4  ;;  %v11383_v5 = vpop.f32.mrb[13].mxu0 }
 0x276   : > { %16635 = vst [vmem:[#allocation36_spill] sm:$0xff] %v11383_v5  ;;  %v1086_v6 = vpack.c.bf16 %v11381_v4, %v11383_v5 }
 0x278   : > { %9145 = vmatprep.mubr.msk.bf16.mxu1 %vm16513_vm0, %v1086_v6  ;;  %9181 = vmatprep.mubr.msk.bf16.mxu0 %vm16513_vm0, %v1086_v6 }
 0x27c   : > { %v11389_v7 = vpop.f32.mrb[14].mxu0 }
 0x27d   : > { %16636 = vst [vmem:[#allocation37_spill] sm:$0xff] %v11389_v7  ;;  %v11391_v8 = vpop.f32.mrb[15].mxu0 }
 0x27e   : > { %16637 = vst [vmem:[#allocation38_spill] sm:$0xff] %v11391_v8  ;;  %v1087_v9 = vpack.c.bf16 %v11389_v7, %v11391_v8 }
 0x280   : > { %v11395_v10 = vpop.f32.mrb[16].mxu0  ;;  %9146 = vmatmul.mubr.msk.bf16.gmra.mrb[12].mxu1 %vm16513_vm0, %v1087_v9  ;;  %9182 = vmatmul.mubr.msk.bf16.gmra.mrb[44].mxu0 %vm16513_vm0, %v1087_v9 }
 0x281   : > { %16638 = vst [vmem:[#allocation39_spill] sm:$0xff] %v11395_v10  ;;  %v11399_v11 = vpop.f32.mrb[17].mxu0 }
 0x282   : > { %16639 = vst [vmem:[#allocation40_spill] sm:$0xff] %v11399_v11  ;;  %v1088_v12 = vpack.c.bf16 %v11395_v10, %v11399_v11 }
 0x284   : > { %v11403_v13 = vpop.f32.mrb[18].mxu0  ;;  %9149 = vmatprep.mubr.msk.bf16.mxu1 %vm16513_vm0, %v1088_v12  ;;  %9185 = vmatprep.mubr.msk.bf16.mxu0 %vm16513_vm0, %v1088_v12 }
 0x285   : > { %16640 = vst [vmem:[#allocation41_spill] sm:$0xff] %v11403_v13  ;;  %v11407_v14 = vpop.f32.mrb[19].mxu0 }
 0x286   : > { %16641 = vst [vmem:[#allocation42_spill] sm:$0xff] %v11407_v14  ;;  %v1089_v15 = vpack.c.bf16 %v11403_v13, %v11407_v14 }
 0x288   : > { %v11411_v16 = vpop.f32.mrb[20].mxu0  ;;  %9150 = vmatmul.mubr.msk.bf16.gmra.mrb[16].mxu1 %vm16513_vm0, %v1089_v15  ;;  %9186 = vmatmul.mubr.msk.bf16.gmra.mrb[48].mxu0 %vm16513_vm0, %v1089_v15 }
 0x289   : > { %16642 = vst [vmem:[#allocation43_spill] sm:$0xff] %v11411_v16  ;;  %v11415_v17 = vpop.f32.mrb[21].mxu0 }
 0x28a   : > { %16643 = vst [vmem:[#allocation44_spill] sm:$0xff] %v11415_v17  ;;  %v1090_v18 = vpack.c.bf16 %v11411_v16, %v11415_v17 }
 0x28c   : > { %v11419_v19 = vpop.f32.mrb[22].mxu0  ;;  %9153 = vmatprep.mubr.msk.bf16.mxu1 %vm16513_vm0, %v1090_v18  ;;  %9189 = vmatprep.mubr.msk.bf16.mxu0 %vm16513_vm0, %v1090_v18 }
 0x28d   : > { %16644 = vst [vmem:[#allocation45_spill] sm:$0xff] %v11419_v19  ;;  %v11423_v20 = vpop.f32.mrb[23].mxu0 }
 0x28e   : > { %16645 = vst [vmem:[#allocation46_spill] sm:$0xff] %v11423_v20  ;;  %v1091_v21 = vpack.c.bf16 %v11419_v19, %v11423_v20 }
 0x290   : > { %v11427_v22 = vpop.f32.mrb[24].mxu0  ;;  %9154 = vmatmul.mubr.msk.bf16.gmra.mrb[20].mxu1 %vm16513_vm0, %v1091_v21  ;;  %9190 = vmatmul.mubr.msk.bf16.gmra.mrb[52].mxu0 %vm16513_vm0, %v1091_v21 }
 0x291   : > { %16646 = vst [vmem:[#allocation47_spill] sm:$0xff] %v11427_v22  ;;  %v11431_v23 = vpop.f32.mrb[25].mxu0 }
 0x292   : > { %16647 = vst [vmem:[#allocation48_spill] sm:$0xff] %v11431_v23  ;;  %v1092_v24 = vpack.c.bf16 %v11427_v22, %v11431_v23 }
 0x294   : > { %v11435_v25 = vpop.f32.mrb[26].mxu0  ;;  %9157 = vmatprep.mubr.msk.bf16.mxu1 %vm16513_vm0, %v1092_v24  ;;  %9193 = vmatprep.mubr.msk.bf16.mxu0 %vm16513_vm0, %v1092_v24 }
 0x295   : > { %16648 = vst [vmem:[#allocation49_spill] sm:$0xff] %v11435_v25  ;;  %v11439_v26 = vpop.f32.mrb[27].mxu0 }
 0x296   : > { %16649 = vst [vmem:[#allocation50_spill] sm:$0xff] %v11439_v26  ;;  %v1093_v27 = vpack.c.bf16 %v11435_v25, %v11439_v26 }
 0x298   : > { %9158 = vmatmul.mubr.msk.bf16.gmra.mrb[24].mxu1 %vm16513_vm0, %v1093_v27  ;;  %9194 = vmatmul.mubr.msk.bf16.gmra.mrb[56].mxu0 %vm16513_vm0, %v1093_v27  ;;  %v11445_v28 = vpop.f32.mrb[28].mxu0 }
 0x299   : > { %16650 = vst [vmem:[#allocation51_spill] sm:$0xff] %v11445_v28  ;;  %v11447_v29 = vpop.f32.mrb[29].mxu0 }
 0x29a   : > { %16651 = vst [vmem:[#allocation52_spill] sm:$0xff] %v11447_v29  ;;  %v1094_v30 = vpack.c.bf16 %v11445_v28, %v11447_v29 }
 0x29c   : > { %v11451_v31 = vpop.f32.mrb[30].mxu0  ;;  %9161 = vmatprep.mubr.msk.bf16.mxu1 %vm16513_vm0, %v1094_v30  ;;  %9197 = vmatprep.mubr.msk.bf16.mxu0 %vm16513_vm0, %v1094_v30 }
 0x29d   : > { %16652 = vst [vmem:[#allocation53_spill] sm:$0xff] %v11451_v31  ;;  %v11455_v32 = vpop.f32.mrb[31].mxu0 }
 0x29e   : > { %16653 = vst [vmem:[#allocation54_spill] sm:$0xff] %v11455_v32  ;;  %v1095_v33 = vpack.c.bf16 %v11451_v31, %v11455_v32 }
 0x2a0   : > { %9162 = vmatmul.mubr.msk.bf16.gmra.mrb[28].mxu1 %vm16513_vm0, %v1095_v33  ;;  %9198 = vmatmul.mubr.msk.bf16.gmra.mrb[60].mxu0 %vm16513_vm0, %v1095_v33 }
 0x323   : > { %v9135_v35 = vpop.f32.mrb[0].mxu1  ;;  %v9171_v36 = vpop.f32.mrb[32].mxu0 }
 0x324   : > { %v1205_v38 = vadd.f32 %v9135_v35, %v11461_v34  ;;  %v1196_v39 = vpop.f32.mrb[1].mxu1  ;;  %v1375_v40 = vpop.f32.mrb[33].mxu0  ;;  %v11467_v43 = vadd.f32 %v9171_v36, %v11463_v37 }
 0x325   : > { %v9136_v41 = vpop.f32.mrb[2].mxu1  ;;  %v9172_v42 = vpop.f32.mrb[34].mxu0  ;;  %v11470_v46 = vadd.f32 %v11461_v34, %v1196_v39  ;;  %v11473_v48 = vadd.f32 %v11463_v37, %v1375_v40 }
 0x326   : > { %v1199_v44 = vpop.f32.mrb[3].mxu1  ;;  %v1570_v45 = vmul.f32 1.442695, %v1205_v38  ;;  %v1378_v47 = vpop.f32.mrb[35].mxu0  ;;  %v1208_v49 = vadd.f32 %v9136_v41, %v11461_v34  ;;  %v1746_v55 = vmul.f32 1.442695, %v11467_v43  ;;  %v11481_v58 = vadd.f32 %v9172_v42, %v11463_v37 }
 0x327   : > { %v11477_v52 = vadd.f32 %v11461_v34, %v1199_v44  ;;  %v11484_v61 = vadd.f32 %v11463_v37, %v1378_v47  ;;  %v1566_v0 = vmul.f32 1.442695, %v11470_v46  ;;  %v1742_v6 = vmul.f32 1.442695, %v11473_v48 }
 0x328   : > { %9956 = vpow2.f32 %v1570_v45  ;;  %v1572_v3 = vmul.f32 1.442695, %v1208_v49  ;;  %v1748_v12 = vmul.f32 1.442695, %v11481_v58  ;;  %v1855_v15 = vpack.c.bf16 %v11481_v58, %v11467_v43 }
 0x329   : > { %v1568_v9 = vmul.f32 1.442695, %v11477_v52  ;;  %v1854_v18 = vpack.c.bf16 %v11484_v61, %v11473_v48  ;;  %v1744_v21 = vmul.f32 1.442695, %v11484_v61  ;;  %vm1504_vm1 = vcmp.gt.f32.partialorder %v1205_v38, 0.0 }
 0x32a   : > { %9958 = vpow2.f32 %v1572_v3  ;;  %1888 = vrot.lane.b32.xlu1 %v1855_v15, %s10926_s5  ;;  %v1536_v40 = vadd.f32 1.0, %v1205_v38  ;;  %vm1680_vm2 = vcmp.gt.f32.partialorder %v11467_v43, 0.0  ;;  %v1712_v45 = vadd.f32 1.0, %v11467_v43 }
 0x32b   : > { %9960 = vpow2.f32 %v1746_v55  ;;  %v1537_v47 = vadd.f32 1.0, %v1208_v49  ;;  %vm1502_vm3 = vcmp.gt.f32.partialorder %v11470_v46, 0.0  ;;  %vm1505_vm4 = vcmp.gt.f32.partialorder %v1208_v49, 0.0 }
 0x32c   : > { %9962 = vpow2.f32 %v1566_v0  ;;  %vm1681_vm5 = vcmp.gt.f32.partialorder %v11481_v58, 0.0  ;;  %vm1678_vm6 = vcmp.gt.f32.partialorder %v11473_v48, 0.0  ;;  %v1713_v38 = vadd.f32 1.0, %v11481_v58 }
 0x32d   : > { %9964 = vpow2.f32 %v1568_v9  ;;  %vm1503_vm7 = vcmp.gt.f32.partialorder %v11477_v52, 0.0  ;;  %v1711_v22 = vadd.f32 1.0, %v11484_v61  ;;  %vm1679_vm8 = vcmp.gt.f32.partialorder %v11484_v61, 0.0 }
 0x32e   : > { %9966 = vpow2.f32 %v1742_v6  ;;  %1886 = vrot.lane.b32.xlu1 %v1854_v18, %s10926_s5  ;;  %v1534_v6 = vadd.f32 1.0, %v11470_v46 }
 0x32f   : > { %9968 = vpow2.f32 %v1748_v12 }
 0x330   : > { %9970 = vpow2.f32 %v1744_v21  ;;  %v1710_v21 = vadd.f32 1.0, %v11473_v48 }
 0x332   : > { %v9957_v39 = vpop.eup %9956 }
 0x333   : > { %v9139_v24 = vpop.f32.mrb[4].mxu1  ;;  %v9175_v27 = vpop.f32.mrb[36].mxu0  ;;  %v11515_v18 = vsel %vm1504_vm1, %v1536_v40, %v9957_v39  ;;  %v1535_v39 = vadd.f32 1.0, %v11477_v52 }
 0x334   : > { %v11498_v30 = vadd.f32 %v9139_v24, %v11461_v34  ;;  %v11501_v33 = vadd.f32 %v9175_v27, %v11463_v37  ;;  %v1212_v35 = vpop.f32.mrb[5].mxu1  ;;  %v1391_v36 = vpop.f32.mrb[37].mxu0  ;;  %16654 = vst [vmem:[#allocation55_spill] sm:$0xff] %v11515_v18 }
 0x335   : > { %v11504_v41 = vadd.f32 %v11461_v34, %v1212_v35  ;;  %v9140_v42 = vpop.f32.mrb[6].mxu1  ;;  %v9176_v44 = vpop.f32.mrb[38].mxu0  ;;  %v11509_v55 = vadd.f32 %v11463_v37, %v1391_v36 }
 0x336   : > { %v1215_v0 = vpop.f32.mrb[7].mxu1  ;;  %v9959_v3 = vpop.eup %9958  ;;  %v1578_v9 = vmul.f32 1.442695, %v11498_v30  ;;  %v1754_v27 = vmul.f32 1.442695, %v11501_v33  ;;  %v11533_v36 = vadd.f32 %v9176_v44, %v11463_v37  ;;  %vm1508_vm9 = vcmp.gt.f32.partialorder %v11498_v30, 0.0 }
 0x337   : > { %v1394_v12 = vpop.f32.mrb[39].mxu0  ;;  %v9961_v15 = vpop.eup %9960  ;;  %v11518_v24 = vsel %vm1505_vm4, %v1537_v47, %v9959_v3  ;;  %v1574_v49 = vmul.f32 1.442695, %v11504_v41  ;;  %v1750_v40 = vmul.f32 1.442695, %v11509_v55  ;;  %v11530_v47 = vadd.f32 %v9140_v42, %v11461_v34 }
 0x338   : > { %16655 = vst [vmem:[#allocation56_spill] sm:$0xff] %v11518_v24  ;;  %v9963_v35 = vpop.eup %9962  ;;  %9972 = vpow2.f32 %v1578_v9  ;;  %v11536_v31 = vadd.f32 %v11461_v34, %v1215_v0  ;;  %v11539_v29 = vadd.f32 %v11463_v37, %v1394_v12  ;;  %v11549_v0 = vsel %vm1680_vm2, %v1712_v45, %v9961_v15 }
 0x339   : > { %v9965_v28 = vpop.eup %9964  ;;  %9974 = vpow2.f32 %v1754_v27  ;;  %v1580_v44 = vmul.f32 1.442695, %v11530_v47  ;;  %16657 = vst [vmem:[#allocation58_spill] sm:$0xff] %v11549_v0  ;;  %v11553_v9 = vsel %vm1502_vm3, %v1534_v6, %v9963_v35  ;;  %v1857_v43 = vpack.c.bf16 %v11533_v36, %v11501_v33 }
 0x33a   : > { %v9967_v3 = vpop.eup %9966  ;;  %v11544_v25 = vsel %vm1503_vm7, %v1535_v39, %v9965_v28  ;;  %9976 = vpow2.f32 %v1574_v49  ;;  %16658 = vst [vmem:[#allocation59_spill] sm:$0xff] %v11553_v9  ;;  %v1576_v52 = vmul.f32 1.442695, %v11536_v31  ;;  %v1756_v28 = vmul.f32 1.442695, %v11533_v36 }
 0x33b   : > { %v9969_v32 = vpop.eup %9968  ;;  %16656 = vst [vmem:[#allocation57_spill] sm:$0xff] %v11544_v25  ;;  %9978 = vpow2.f32 %v1750_v40  ;;  %v11558_v61 = vsel %vm1678_vm6, %v1710_v21, %v9967_v3  ;;  %v1752_v12 = vmul.f32 1.442695, %v11539_v29  ;;  %v1856_v45 = vpack.c.bf16 %v11539_v29, %v11509_v55  ;;  %1892 = vrot.lane.b32.xlu0 %v1857_v43, %s10926_s5 }
 0x33c   : > { %v9971_v42 = vpop.eup %9970  ;;  %9980 = vpow2.f32 %v1576_v52  ;;  %v11570_v6 = vsel %vm1681_vm5, %v1713_v38, %v9969_v32  ;;  %vm1684_vm10 = vcmp.gt.f32.partialorder %v11501_v33, 0.0  ;;  %vm1506_vm11 = vcmp.gt.f32.partialorder %v11504_v41, 0.0 }
 0x33d   : > { %v11566_v46 = vsel %vm1679_vm8, %v1711_v22, %v9971_v42  ;;  %16659 = vst [vmem:[#allocation60_spill] sm:$0xff] %v11570_v6  ;;  %9982 = vpow2.f32 %v1580_v44  ;;  %v1540_v42 = vadd.f32 1.0, %v11498_v30  ;;  %vm1682_vm12 = vcmp.gt.f32.partialorder %v11509_v55, 0.0 }
 0x33e   : > { %9984 = vpow2.f32 %v1752_v12  ;;  %v1538_v12 = vadd.f32 1.0, %v11504_v41  ;;  %v1714_v43 = vadd.f32 1.0, %v11509_v55  ;;  %vm1509_vm13 = vcmp.gt.f32.partialorder %v11530_v47, 0.0 }
 0x33f   : > { %9986 = vpow2.f32 %v1756_v28  ;;  %1890 = vrot.lane.b32.xlu0 %v1856_v45, %s10926_s5  ;;  %v1716_v28 = vadd.f32 1.0, %v11501_v33  ;;  %v1541_v45 = vadd.f32 1.0, %v11530_v47  ;;  %vm1685_vm14 = vcmp.gt.f32.partialorder %v11533_v36, 0.0 }
 0x340   : > { %v1717_v16 = vadd.f32 1.0, %v11533_v36  ;;  %v1539_v19 = vadd.f32 1.0, %v11536_v31  ;;  %vm1507_vm15 = vcmp.gt.f32.partialorder %v11536_v31, 0.0  ;;  %vm1683_vm1 = vcmp.gt.f32.partialorder %v11539_v29, 0.0 }
 0x342   : > { %v9973_v32 = vpop.eup %9972 }
 0x343   : > { %v9143_v22 = vpop.f32.mrb[8].mxu1  ;;  %v9179_v27 = vpop.f32.mrb[40].mxu0 }
 0x344   : > { %v1228_v35 = vpop.f32.mrb[9].mxu1  ;;  %v1407_v58 = vpop.f32.mrb[41].mxu0  ;;  %v11592_v21 = vadd.f32 %v9143_v22, %v11461_v34  ;;  %v11595_v15 = vadd.f32 %v9179_v27, %v11463_v37  ;;  %v11610_v22 = vsel %vm1508_vm9, %v1540_v42, %v9973_v32  ;;  %v1715_v27 = vadd.f32 1.0, %v11539_v29 }
 0x345   : > { %v9144_v49 = vpop.f32.mrb[10].mxu1  ;;  %v9180_v38 = vpop.f32.mrb[42].mxu0  ;;  %v11603_v17 = vadd.f32 %v11461_v34, %v1228_v35  ;;  %16660 = vst [vmem:[#allocation61_spill] sm:$0xff] %v11610_v22 }
 0x346   : > { %v9975_v39 = vpop.eup %9974  ;;  %v1231_v40 = vpop.f32.mrb[11].mxu1  ;;  %v11598_v23 = vadd.f32 %v9180_v38, %v11463_v37  ;;  %v1586_v29 = vmul.f32 1.442695, %v11592_v21  ;;  %v1762_v32 = vmul.f32 1.442695, %v11595_v15  ;;  %vm1512_vm2 = vcmp.gt.f32.partialorder %v11592_v21, 0.0 }
 0x347   : > { %v9977_v3 = vpop.eup %9976  ;;  %v1410_v44 = vpop.f32.mrb[43].mxu0  ;;  %v11626_v30 = vsel %vm1684_vm10, %v1716_v28, %v9975_v39  ;;  %v11658_v55 = vadd.f32 %v11461_v34, %v1231_v40  ;;  %vm1688_vm3 = vcmp.gt.f32.partialorder %v11595_v15, 0.0  ;;  %vm1510_vm4 = vcmp.gt.f32.partialorder %v11603_v17, 0.0 }
 0x348   : > { %v9979_v52 = vpop.eup %9978  ;;  %v11606_v20 = vadd.f32 %v11463_v37, %v1410_v44  ;;  %v11617_v13 = vsel %vm1506_vm11, %v1538_v12, %v9977_v3  ;;  %v11622_v44 = vadd.f32 %v11463_v37, %v1407_v58  ;;  %16663 = vst [vmem:[#allocation64_spill] sm:$0xff] %v11626_v30  ;;  %v1859_v41 = vpack.c.bf16 %v11598_v23, %v11595_v15 }
 0x349   : > { %v9981_v48 = vpop.eup %9980  ;;  %16661 = vst [vmem:[#allocation62_spill] sm:$0xff] %v11617_v13  ;;  %v11641_v33 = vsel %vm1682_vm12, %v1714_v43, %v9979_v52  ;;  %9988 = vpow2.f32 %v1586_v29  ;;  %v1584_v40 = vmul.f32 1.442695, %v11658_v55  ;;  %v1544_v29 = vadd.f32 1.0, %v11592_v21 }
 0x34a   : > { %v9983_v26 = vpop.eup %9982  ;;  %v11619_v35 = vsel %vm1507_vm15, %v1539_v19, %v9981_v48  ;;  %v1582_v19 = vmul.f32 1.442695, %v11603_v17  ;;  %v1858_v48 = vpack.c.bf16 %v11606_v20, %v11622_v44  ;;  %16665 = vst [vmem:[#allocation66_spill] sm:$0xff] %v11641_v33  ;;  %1896 = vrot.lane.b32.xlu0 %v1859_v41, %s10926_s5  ;;  %9990 = vpow2.f32 %v1762_v32 }
 0x34b   : > { %v9985_v10 = vpop.eup %9984  ;;  %16662 = vst [vmem:[#allocation63_spill] sm:$0xff] %v11619_v35  ;;  %v11630_v31 = vsel %vm1509_vm13, %v1541_v45, %v9983_v26  ;;  %v11646_v26 = vadd.f32 %v9144_v49, %v11461_v34  ;;  %v1758_v32 = vmul.f32 1.442695, %v11622_v44  ;;  %v1720_v41 = vadd.f32 1.0, %v11595_v15 }
 0x34c   : > { %v9987_v38 = vpop.eup %9986  ;;  %16664 = vst [vmem:[#allocation65_spill] sm:$0xff] %v11630_v31  ;;  %v11643_v58 = vsel %vm1683_vm1, %v1715_v27, %v9985_v10  ;;  %9992 = vpow2.f32 %v1582_v19  ;;  %v1764_v19 = vmul.f32 1.442695, %v11598_v23  ;;  %v1542_v3 = vadd.f32 1.0, %v11603_v17 }
 0x34d   : > { %16666 = vst [vmem:[#allocation67_spill] sm:$0xff] %v11643_v58  ;;  %v11653_v39 = vsel %vm1685_vm14, %v1717_v16, %v9987_v38  ;;  %v1588_v16 = vmul.f32 1.442695, %v11646_v26  ;;  %v1760_v10 = vmul.f32 1.442695, %v11606_v20  ;;  %vm1513_vm5 = vcmp.gt.f32.partialorder %v11646_v26, 0.0 }
 0x34e   : > { %16667 = vst [vmem:[#allocation68_spill] sm:$0xff] %v11653_v39  ;;  %1894 = vrot.lane.b32.xlu0 %v1858_v48, %s10926_s5  ;;  %v11698_v7 = vadd.f32 1.0, %v11598_v23  ;;  %vm1511_vm6 = vcmp.gt.f32.partialorder %v11658_v55, 0.0  ;;  %v11709_v2 = vadd.f32 1.0, %v11606_v20 }
 0x34f   : > { %9994 = vpow2.f32 %v1588_v16  ;;  %v11686_v16 = vadd.f32 1.0, %v11622_v44 }
 0x350   : > { %9996 = vpow2.f32 %v1584_v40 }
 0x351   : > { %9998 = vpow2.f32 %v1758_v32  ;;  %v1543_v32 = vadd.f32 1.0, %v11658_v55 }
 0x352   : > { %10000 = vpow2.f32 %v1764_v19 }
 0x353   : > { %v9147_v42 = vpop.f32.mrb[12].mxu1  ;;  %v9183_v52 = vpop.f32.mrb[44].mxu0 }
 0x354   : > { %v1244_v36 = vpop.f32.mrb[13].mxu1  ;;  %v1423_v28 = vpop.f32.mrb[45].mxu0  ;;  %v11668_v45 = vadd.f32 %v9147_v42, %v11461_v34  ;;  %v11690_v47 = vadd.f32 %v9183_v52, %v11463_v37 }
 0x355   : > { %v9148_v12 = vpop.f32.mrb[14].mxu1  ;;  %v9184_v43 = vpop.f32.mrb[46].mxu0  ;;  %v11679_v42 = vadd.f32 %v11461_v34, %v1244_v36  ;;  %v1545_v36 = vadd.f32 1.0, %v11646_v26  ;;  %v11702_v52 = vadd.f32 %v11463_v37, %v1423_v28 }
 0x356   : > { %v1247_v27 = vpop.f32.mrb[15].mxu1  ;;  %v1426_v38 = vpop.f32.mrb[47].mxu0  ;;  %v1594_v48 = vmul.f32 1.442695, %v11668_v45  ;;  %v11682_v49 = vadd.f32 %v9184_v43, %v11463_v37  ;;  %v11695_v43 = vadd.f32 %v9148_v12, %v11461_v34  ;;  %v1770_v19 = vmul.f32 1.442695, %v11690_v47 }
 0x357   : > { %v9989_v14 = vpop.eup %9988  ;;  %v1590_v62 = vmul.f32 1.442695, %v11679_v42  ;;  %v11713_v28 = vadd.f32 %v11461_v34, %v1247_v27  ;;  %v11721_v60 = vadd.f32 %v11463_v37, %v1426_v38  ;;  %v1548_v21 = vadd.f32 1.0, %v11668_v45 }
 0x358   : > { %v9991_v4 = vpop.eup %9990  ;;  %10002 = vpow2.f32 %v1594_v48  ;;  %v1861_v12 = vpack.c.bf16 %v11682_v49, %v11690_v47  ;;  %v11717_v48 = vsel %vm1512_vm2, %v1544_v29, %v9989_v14  ;;  %v1596_v57 = vmul.f32 1.442695, %v11695_v43 }
 0x359   : > { %v9993_v8 = vpop.eup %9992  ;;  %10004 = vpow2.f32 %v1760_v10  ;;  %16668 = vst [vmem:[#allocation69_spill] sm:$0xff] %v11717_v48  ;;  %v11726_v10 = vsel %vm1688_vm3, %v1720_v41, %v9991_v4  ;;  %v1766_v14 = vmul.f32 1.442695, %v11702_v52  ;;  %vm1516_vm7 = vcmp.gt.f32.partialorder %v11668_v45, 0.0 }
 0x35a   : > { %1900 = vrot.lane.b32.xlu0 %v1861_v12, %s10926_s5  ;;  %16669 = vst [vmem:[#allocation70_spill] sm:$0xff] %v11726_v10  ;;  %v11730_v27 = vsel %vm1510_vm4, %v1542_v3, %v9993_v8  ;;  %v9995_v38 = vpop.eup %9994  ;;  %v11739_v12 = vadd.f32 1.0, %v11690_v47  ;;  %10006 = vpow2.f32 %v1590_v62  ;;  %v1772_v4 = vmul.f32 1.442695, %v11682_v49 }
 0x35b   : > { %v9151_v40 = vpop.f32.mrb[16].mxu1  ;;  %v9187_v11 = vpop.f32.mrb[48].mxu0  ;;  %16670 = vst [vmem:[#allocation71_spill] sm:$0xff] %v11730_v27  ;;  %10008 = vpow2.f32 %v1770_v19  ;;  %v11746_v15 = vadd.f32 1.0, %v11679_v42  ;;  %v11749_v3 = vadd.f32 1.0, %v11702_v52  ;;  %v11765_v22 = vsel %vm1513_vm5, %v1545_v36, %v9995_v38 }
 0x35c   : > { %v1260_v5 = vpop.f32.mrb[17].mxu1  ;;  %v1439_v1 = vpop.f32.mrb[49].mxu0  ;;  %v11735_v29 = vadd.f32 %v9151_v40, %v11461_v34  ;;  %16671 = vst [vmem:[#allocation72_spill] sm:$0xff] %v11739_v12  ;;  %v1592_v41 = vmul.f32 1.442695, %v11713_v28  ;;  %10010 = vpow2.f32 %v1596_v57  ;;  %16673 = vst [vmem:[#allocation74_spill] sm:$0xff] %v11765_v22  ;;  %v11769_v57 = vadd.f32 %v9187_v11, %v11463_v37 }
 0x35d   : > { %v9152_v63 = vpop.f32.mrb[18].mxu1  ;;  %v9188_v56 = vpop.f32.mrb[50].mxu0  ;;  %v11743_v17 = vadd.f32 %v11461_v34, %v1260_v5  ;;  %16672 = vst [vmem:[#allocation73_spill] sm:$0xff] %v11749_v3  ;;  %v1768_v62 = vmul.f32 1.442695, %v11721_v60  ;;  %10012 = vpow2.f32 %v1766_v14  ;;  %vm1514_vm8 = vcmp.gt.f32.partialorder %v11679_v42, 0.0 }
 0x35e   : > { %v1263_v59 = vpop.f32.mrb[19].mxu1  ;;  %v1442_v50 = vpop.f32.mrb[51].mxu0  ;;  %v11756_v51 = vadd.f32 %v9152_v63, %v11461_v34  ;;  %v11759_v5 = vadd.f32 %v9188_v56, %v11463_v37  ;;  %v1602_v31 = vmul.f32 1.442695, %v11735_v29  ;;  %v11781_v26 = vadd.f32 1.0, %v11695_v43 }
 0x35f   : > { %v9997_v8 = vpop.eup %9996  ;;  %10014 = vpow2.f32 %v1772_v4  ;;  %v1598_v36 = vmul.f32 1.442695, %v11743_v17  ;;  %v11791_v18 = vadd.f32 %v11463_v37, %v1439_v1  ;;  %v11794_v55 = vadd.f32 %v11461_v34, %v1263_v59 }
 0x360   : > { %v11773_v63 = vpop.eup %9998  ;;  %v11777_v56 = vsel %vm1511_vm6, %v1543_v32, %v9997_v8  ;;  %10016 = vpow2.f32 %v1592_v41  ;;  %v1860_v32 = vpack.c.bf16 %v11721_v60, %v11702_v52  ;;  %vm1517_vm9 = vcmp.gt.f32.partialorder %v11695_v43, 0.0 }
 0x361   : > { %16674 = vst [vmem:[#allocation75_spill] sm:$0xff] %v11777_v56  ;;  %v11788_v38 = vpop.eup %10000  ;;  %16675 = vst [vmem:[#allocation76_spill] sm:$0xff] %v11791_v18  ;;  %10018 = vpow2.f32 %v1768_v62  ;;  %v1604_v4 = vmul.f32 1.442695, %v11756_v51  ;;  %v11801_v24 = vadd.f32 %v11463_v37, %v1442_v50  ;;  %v1863_v41 = vpack.c.bf16 %v11759_v5, %v11769_v57 }
 0x362   : > { %v10003_v8 = vpop.eup %10002  ;;  %v11808_v59 = vadd.f32 1.0, %v11682_v49  ;;  %10020 = vpow2.f32 %v1602_v31  ;;  %v1778_v9 = vmul.f32 1.442695, %v11769_v57  ;;  %1898 = vrot.lane.b32.xlu0 %v1860_v32, %s10926_s5  ;;  %v11816_v25 = vadd.f32 1.0, %v11713_v28 }
 0x363   : > { %v9155_v40 = vpop.f32.mrb[20].mxu1  ;;  %v11752_v53 = vpop.f32.mrb[52].mxu0  ;;  %16676 = vst [vmem:[#allocation77_spill] sm:$0xff] %v11801_v24  ;;  %v11819_v50 = vadd.f32 1.0, %v11721_v60  ;;  %10022 = vpow2.f32 %v1598_v36  ;;  %v1600_v30 = vmul.f32 1.442695, %v11794_v55  ;;  %1904 = vrot.lane.b32.xlu1 %v1863_v41, %s10926_s5  ;;  %v11825_v31 = vsel %vm1516_vm7, %v1548_v21, %v10003_v8 }
 0x364   : > { %v1276_v19 = vpop.f32.mrb[21].mxu1  ;;  %v11761_v54 = vpop.f32.mrb[53].mxu0  ;;  %16677 = vst [vmem:[#allocation78_spill] sm:$0xff] %v11808_v59  ;;  %v11813_v62 = vadd.f32 %v9155_v40, %v11461_v34  ;;  %16679 = vst [vmem:[#allocation80_spill] sm:$0xff] %v11825_v31  ;;  %v11828_v32 = vadd.f32 1.0, %v11735_v29  ;;  %v11831_v40 = vadd.f32 1.0, %v11769_v57  ;;  %10024 = vpow2.f32 %v1604_v4 }
 0x365   : > { %v9156_v13 = vpop.f32.mrb[22].mxu1  ;;  %v11771_v35 = vpop.f32.mrb[54].mxu0  ;;  %16678 = vst [vmem:[#allocation79_spill] sm:$0xff] %v11819_v50  ;;  %v1774_v39 = vmul.f32 1.442695, %v11791_v18  ;;  %vm1515_vm10 = vcmp.gt.f32.partialorder %v11713_v28, 0.0  ;;  %v1862_v21 = vpack.c.bf16 %v11801_v24, %v11791_v18  ;;  %10026 = vpow2.f32 %v1778_v9 }
 0x366   : > { %v11784_v14 = vpop.f32.mrb[23].mxu1  ;;  %v11786_v11 = vpop.f32.mrb[55].mxu0  ;;  %16680 = vst [vmem:[#allocation81_spill] sm:$0xff] %v11831_v40  ;;  %v11838_v41 = vadd.f32 1.0, %v11743_v17  ;;  %v1780_v45 = vmul.f32 1.442695, %v11759_v5  ;;  %v11850_v33 = vadd.f32 %v11461_v34, %v1276_v19  ;;  %v11853_v4 = vadd.f32 %v9156_v13, %v11461_v34 }
 0x367   : > { %v11805_v1 = vpop.eup %10004  ;;  %vm1520_vm11 = vcmp.gt.f32.partialorder %v11735_v29, 0.0  ;;  %v1610_v27 = vmul.f32 1.442695, %v11813_v62  ;;  %vm1518_vm12 = vcmp.gt.f32.partialorder %v11743_v17, 0.0  ;;  %v11861_v6 = vadd.f32 1.0, %v11791_v18  ;;  %1902 = vrot.lane.b32.xlu0 %v1862_v21, %s10926_s5 }
 0x368   : > { %v10007_v36 = vpop.eup %10006  ;;  %10028 = vpow2.f32 %v1600_v30  ;;  %v1776_v9 = vmul.f32 1.442695, %v11801_v24  ;;  %v11866_v19 = vadd.f32 %v11752_v53, %v11463_v37  ;;  %v1606_v30 = vmul.f32 1.442695, %v11850_v33 }
 0x369   : > { %v11845_v56 = vpop.eup %10008  ;;  %16682 = vst [vmem:[#allocation83_spill] sm:$0xff] %v11861_v6  ;;  %v11878_v18 = vsel %vm1514_vm8, %v11746_v15, %v10007_v36  ;;  %10030 = vpow2.f32 %v1774_v39  ;;  %v11883_v53 = vadd.f32 %v11463_v37, %v11761_v54  ;;  %vm1521_vm13 = vcmp.gt.f32.partialorder %v11756_v51, 0.0 }
 0x36a   : > { %16681 = vst [vmem:[#allocation82_spill] sm:$0xff] %v11845_v56  ;;  %v10011_v0 = vpop.eup %10010  ;;  %16684 = vst [vmem:[#allocation85_spill] sm:$0xff] %v11878_v18  ;;  %v1553_v21 = vadd.f32 1.0, %v11756_v51  ;;  %10032 = vpow2.f32 %v1780_v45  ;;  %v11891_v56 = vadd.f32 %v11771_v35, %v11463_v37  ;;  %v11895_v39 = vadd.f32 %v11461_v34, %v11784_v14 }
 0x36b   : > { %v9159_v22 = vpop.f32.mrb[24].mxu1  ;;  %v11834_v48 = vpop.f32.mrb[56].mxu0  ;;  %v11900_v54 = vsel %vm1517_vm9, %v11781_v26, %v10011_v0  ;;  %v11903_v15 = vadd.f32 1.0, %v11759_v5  ;;  %10034 = vpow2.f32 %v1610_v27  ;;  %v1612_v36 = vmul.f32 1.442695, %v11853_v4 }
 0x36c   : > { %v1292_v8 = vpop.f32.mrb[25].mxu1  ;;  %v11843_v31 = vpop.f32.mrb[57].mxu0  ;;  %16686 = vst [vmem:[#allocation87_spill] sm:$0xff] %v11900_v54  ;;  %vm1519_vm14 = vcmp.gt.f32.partialorder %v11794_v55, 0.0  ;;  %v1551_v35 = vadd.f32 1.0, %v11794_v55  ;;  %10036 = vpow2.f32 %v1776_v9  ;;  %v11912_v43 = vadd.f32 1.0, %v11801_v24 }
 0x36d   : > { %v11855_v58 = vpop.f32.mrb[26].mxu1  ;;  %v11857_v40 = vpop.f32.mrb[58].mxu0  ;;  %16687 = vst [vmem:[#allocation88_spill] sm:$0xff] %v11903_v15  ;;  %v1786_v14 = vmul.f32 1.442695, %v11866_v19  ;;  %v11915_v0 = vadd.f32 1.0, %v11813_v62  ;;  %10038 = vpow2.f32 %v1606_v30  ;;  %v11925_v9 = vadd.f32 %v11463_v37, %v11786_v11 }
 0x36e   : > { %v11869_v13 = vpop.f32.mrb[27].mxu1  ;;  %v11871_v59 = vpop.f32.mrb[59].mxu0  ;;  %16689 = vst [vmem:[#allocation90_spill] sm:$0xff] %v11912_v43  ;;  %v1782_v27 = vmul.f32 1.442695, %v11883_v53  ;;  %v1865_v43 = vpack.c.bf16 %v11891_v56, %v11866_v19  ;;  %v11930_v24 = vadd.f32 %v9159_v22, %v11461_v34  ;;  %vm1524_vm15 = vcmp.gt.f32.partialorder %v11813_v62, 0.0 }
 0x36f   : > { %v11873_v12 = vpop.eup %10012  ;;  %v11943_v11 = vadd.f32 1.0, %v11866_v19  ;;  %10040 = vpow2.f32 %v1612_v36  ;;  %vm1522_vm1 = vcmp.gt.f32.partialorder %v11850_v33, 0.0  ;;  %v1554_v29 = vadd.f32 1.0, %v11850_v33 }
 0x370   : > { %16683 = vst [vmem:[#allocation84_spill] sm:$0xff] %v11873_v12  ;;  %v11885_v6 = vpop.eup %10014  ;;  %10042 = vpow2.f32 %v1786_v14  ;;  %1908 = vrot.lane.b32.xlu1 %v1865_v43, %s10926_s5  ;;  %v11978_v14 = vadd.f32 1.0, %v11883_v53  ;;  %v1784_v43 = vmul.f32 1.442695, %v11925_v9  ;;  %vm1525_vm2 = vcmp.gt.f32.partialorder %v11853_v4, 0.0 }
 0x371   : > { %16685 = vst [vmem:[#allocation86_spill] sm:$0xff] %v11885_v6  ;;  %v10017_v42 = vpop.eup %10016  ;;  %v1608_v6 = vmul.f32 1.442695, %v11895_v39  ;;  %16691 = vst [vmem:[#allocation92_spill] sm:$0xff] %v11943_v11  ;;  %10044 = vpow2.f32 %v1782_v27  ;;  %vm1523_vm3 = vcmp.gt.f32.partialorder %v11895_v39, 0.0  ;;  %vm1528_vm4 = vcmp.gt.f32.partialorder %v11930_v24, 0.0 }
 0x372   : > { %v11906_v45 = vpop.eup %10018  ;;  %v11939_v50 = vsel %vm1515_vm10, %v11816_v25, %v10017_v42  ;;  %v1788_v25 = vmul.f32 1.442695, %v11891_v56  ;;  %v11961_v42 = vadd.f32 %v11834_v48, %v11463_v37  ;;  %16694 = vst [vmem:[#allocation95_spill] sm:$0xff] %v11978_v14  ;;  %vm1686_vm5 = vcmp.gt.f32.partialorder %v11622_v44, 0.0 }
 0x373   : > { %16688 = vst [vmem:[#allocation89_spill] sm:$0xff] %v11906_v45  ;;  %v10021_v18 = vpop.eup %10020  ;;  %v11918_v26 = vpop.f32.mrb[28].mxu1  ;;  %16690 = vst [vmem:[#allocation91_spill] sm:$0xff] %v11939_v50  ;;  %v11946_v45 = vadd.f32 %v11461_v34, %v1292_v8  ;;  %10046 = vpow2.f32 %v1608_v6  ;;  %vm1687_vm6 = vcmp.gt.f32.partialorder %v11606_v20, 0.0  ;;  %vm1689_vm10 = vcmp.gt.f32.partialorder %v11598_v23, 0.0  ;;  %v16710_v23 = vld [vmem:[#allocation70_spill] sm:$0xff] }
 0x374   : > { %v11920_v54 = vpop.f32.mrb[60].mxu0  ;;  %v10023_v15 = vpop.eup %10022  ;;  %v11955_v28 = vsel %vm1520_vm11, %v11828_v32, %v10021_v18  ;;  %v1618_v32 = vmul.f32 1.442695, %v11930_v24  ;;  %v1794_v11 = vmul.f32 1.442695, %v11961_v42  ;;  %vm1690_vm11 = vcmp.gt.f32.partialorder %v11702_v52, 0.0 }
 0x375   : > { %v11932_v30 = vpop.f32.mrb[29].mxu1  ;;  %v11934_v10 = vpop.f32.mrb[61].mxu0  ;;  %16692 = vst [vmem:[#allocation93_spill] sm:$0xff] %v11955_v28  ;;  %v11972_v18 = vsel %vm1518_vm12, %v11838_v41, %v10023_v15  ;;  %v11983_v28 = vadd.f32 %v11463_v37, %v11843_v31  ;;  %v1557_v15 = vadd.f32 1.0, %v11853_v4  ;;  %v1614_v27 = vmul.f32 1.442695, %v11946_v45 }
 0x376   : > { %v11948_v22 = vpop.f32.mrb[30].mxu1  ;;  %v11950_v3 = vpop.f32.mrb[62].mxu0  ;;  %16693 = vst [vmem:[#allocation94_spill] sm:$0xff] %v11972_v18  ;;  %10048 = vpow2.f32 %v1618_v32  ;;  %v11997_v18 = vadd.f32 1.0, %v11891_v56  ;;  %v1555_v31 = vadd.f32 1.0, %v11895_v39  ;;  %v12011_v32 = vadd.f32 %v11857_v40, %v11463_v37  ;;  %v16711_v52 = vld [vmem:[#allocation82_spill] sm:$0xff] }
 0x377   : > { %v10025_v12 = vpop.eup %10024  ;;  %v11963_v8 = vpop.f32.mrb[31].mxu1  ;;  %10050 = vpow2.f32 %v1788_v25  ;;  %v12015_v25 = vadd.f32 %v11461_v34, %v11869_v13  ;;  %v1790_v55 = vmul.f32 1.442695, %v11983_v28  ;;  %vm1526_vm7 = vcmp.gt.f32.partialorder %v11946_v45, 0.0 }
 0x378   : > { %v11965_v36 = vpop.f32.mrb[63].mxu0  ;;  %v11967_v50 = vpop.eup %10026  ;;  %v11989_v41 = vsel %vm1521_vm13, %v1553_v21, %v10025_v12  ;;  %16696 = vst [vmem:[#allocation97_spill] sm:$0xff] %v11997_v18  ;;  %v12007_v21 = vadd.f32 %v11855_v58, %v11461_v34  ;;  %10052 = vpow2.f32 %v1784_v43  ;;  %v1864_v58 = vpack.c.bf16 %v11925_v9, %v11883_v53 }
 0x379   : > { %v10029_v48 = vpop.eup %10028  ;;  %16695 = vst [vmem:[#allocation96_spill] sm:$0xff] %v11989_v41  ;;  %10054 = vpow2.f32 %v1614_v27  ;;  %v1796_v27 = vmul.f32 1.442695, %v12011_v32  ;;  %v1616_v14 = vmul.f32 1.442695, %v12015_v25  ;;  %v12070_v33 = vadd.f32 %v11920_v54, %v11463_v37 }
 0x37a   : > { %v11985_v17 = vpop.eup %10030  ;;  %v12003_v12 = vsel %vm1519_vm14, %v1551_v35, %v10029_v48  ;;  %v12023_v35 = vadd.f32 %v11463_v37, %v11871_v59  ;;  %v12028_v48 = vadd.f32 1.0, %v11925_v9  ;;  %v1620_v13 = vmul.f32 1.442695, %v12007_v21  ;;  %1906 = vrot.lane.b32.xlu1 %v1864_v58, %s10926_s5 }
 0x37b   : > { %v11994_v6 = vpop.eup %10032  ;;  %16697 = vst [vmem:[#allocation98_spill] sm:$0xff] %v12003_v12  ;;  %v1560_v59 = vadd.f32 1.0, %v11930_v24  ;;  %v12039_v12 = vadd.f32 1.0, %v11961_v42  ;;  %10056 = vpow2.f32 %v1794_v11  ;;  %v12056_v11 = vadd.f32 1.0, %v11983_v28 }
 0x37c   : > { %v10035_v51 = vpop.eup %10034  ;;  %16698 = vst [vmem:[#allocation99_spill] sm:$0xff] %v12028_v48  ;;  %v12043_v48 = vadd.f32 1.0, %v11946_v45  ;;  %10058 = vpow2.f32 %v1620_v13  ;;  %v1867_v13 = vpack.c.bf16 %v12011_v32, %v11961_v42  ;;  %vm1529_vm8 = vcmp.gt.f32.partialorder %v12007_v21, 0.0 }
 0x37d   : > { %v12017_v41 = vpop.eup %10036  ;;  %v12035_v43 = vsel %vm1524_vm15, %v11915_v0, %v10035_v51  ;;  %10060 = vpow2.f32 %v1790_v55  ;;  %v1792_v51 = vmul.f32 1.442695, %v12023_v35  ;;  %v12087_v54 = vadd.f32 1.0, %v12011_v32 }
 0x37e   : > { %v10039_v40 = vpop.eup %10038  ;;  %16699 = vst [vmem:[#allocation100_spill] sm:$0xff] %v12035_v43  ;;  %10062 = vpow2.f32 %v1616_v14  ;;  %v12066_v43 = vadd.f32 %v11918_v26, %v11461_v34  ;;  %v1561_v14 = vadd.f32 1.0, %v12007_v21  ;;  %v12084_v26 = vadd.f32 %v11463_v37, %v11934_v10  ;;  %1912 = vrot.lane.b32.xlu1 %v1867_v13, %s10926_s5 }
 0x37f   : > { %v10041_v18 = vpop.eup %10040  ;;  %v12053_v0 = vsel %vm1522_vm1, %v1554_v29, %v10039_v40  ;;  %v12080_v40 = vadd.f32 %v11461_v34, %v11932_v30  ;;  %10064 = vpow2.f32 %v1796_v27  ;;  %vm1527_vm9 = vcmp.gt.f32.partialorder %v12015_v25, 0.0 }
 0x380   : > { %v12047_v62 = vpop.eup %10042  ;;  %16700 = vst [vmem:[#allocation101_spill] sm:$0xff] %v12053_v0  ;;  %v12074_v55 = vsel %vm1525_vm2, %v1557_v15, %v10041_v18  ;;  %v1626_v4 = vmul.f32 1.442695, %v12066_v43  ;;  %v12093_v18 = vadd.f32 %v11948_v22, %v11461_v34  ;;  %v1559_v10 = vadd.f32 1.0, %v12015_v25 }
 0x381   : > { %v12059_v58 = vpop.eup %10044  ;;  %16701 = vst [vmem:[#allocation102_spill] sm:$0xff] %v12074_v55  ;;  %10066 = vpow2.f32 %v1792_v51  ;;  %v1802_v30 = vmul.f32 1.442695, %v12070_v33  ;;  %vm1691_vm12 = vcmp.gt.f32.partialorder %v11721_v60, 0.0  ;;  %v12108_v22 = vadd.f32 1.0, %v12023_v35  ;;  %v16714_v60 = vld [vmem:[#allocation78_spill] sm:$0xff] }
 0x382   : > { %v10047_v29 = vpop.eup %10046  ;;  %10068 = vpow2.f32 %v1626_v4  ;;  %v1622_v13 = vmul.f32 1.442695, %v12080_v40  ;;  %vm1692_vm13 = vcmp.gt.f32.partialorder %v11690_v47, 0.0  ;;  %vm1693_vm14 = vcmp.gt.f32.partialorder %v11682_v49, 0.0  ;;  %v16718_v47 = vld [vmem:[#allocation76_spill] sm:$0xff]  ;;  %v16720_v49 = vld [vmem:[#allocation83_spill] sm:$0xff] }
 0x383   : > { %v10049_v0 = vpop.eup %10048  ;;  %v12105_v27 = vsel %vm1523_vm3, %v1555_v31, %v10047_v29  ;;  %v12120_v39 = vadd.f32 1.0, %v12066_v43  ;;  %10070 = vpow2.f32 %v1802_v30  ;;  %v1798_v31 = vmul.f32 1.442695, %v12084_v26 }
 0x384   : > { %v12095_v15 = vpop.eup %10050  ;;  %16702 = vst [vmem:[#allocation103_spill] sm:$0xff] %v12105_v27  ;;  %v12117_v51 = vsel %vm1528_vm4, %v1560_v59, %v10049_v0  ;;  %vm1532_vm15 = vcmp.gt.f32.partialorder %v12066_v43, 0.0  ;;  %v12125_v4 = vadd.f32 1.0, %v12070_v33  ;;  %v12128_v27 = vadd.f32 1.0, %v12080_v40 }
 0x385   : > { %v12111_v55 = vpop.eup %10052  ;;  %16703 = vst [vmem:[#allocation104_spill] sm:$0xff] %v12117_v51  ;;  %10072 = vpow2.f32 %v1622_v13  ;;  %v1628_v24 = vmul.f32 1.442695, %v12093_v18  ;;  %vm1696_vm1 = vcmp.gt.f32.partialorder %v11769_v57, 0.0  ;;  %vm1697_vm2 = vcmp.gt.f32.partialorder %v11759_v5, 0.0 }
 0x386   : > { %v10055_v29 = vpop.eup %10054  ;;  %10074 = vpow2.f32 %v1798_v31  ;;  %v12137_v0 = vadd.f32 %v11950_v3, %v11463_v37  ;;  %v1866_v30 = vpack.c.bf16 %v12023_v35, %v11983_v28  ;;  %v12143_v51 = vadd.f32 %v11461_v34, %v11963_v8 }
 0x387   : > { %v12131_v59 = vpop.eup %10056  ;;  %10076 = vpow2.f32 %v1628_v24  ;;  %v12149_v31 = vadd.f32 %v11463_v37, %v11965_v36  ;;  %v12155_v3 = vsel %vm1686_vm5, %v11686_v16, %v11773_v63  ;;  %v12161_v34 = vsel %vm1687_vm6, %v11709_v2, %v11805_v1 }
 0x388   : > { %v10059_v13 = vpop.eup %10058  ;;  %16704 = vst [vmem:[#allocation105_spill] sm:$0xff] %v12155_v3  ;;  %vm1700_vm0 = vcmp.gt.f32.partialorder %v11866_v19, 0.0  ;;  %vm1699_vm4 = vcmp.gt.f32.partialorder %v11925_v9, 0.0  ;;  %v12171_v37 = vsel %vm1526_vm7, %v12043_v48, %v10055_v29  ;;  %v12175_v44 = vadd.f32 1.0, %v12084_v26  ;;  %1910 = vrot.lane.b32.xlu1 %v1866_v30, %s10926_s5  ;;  %v16732_v9 = vld [vmem:[#allocation67_spill] sm:$0xff] }
 0x389   : > { %v12163_v8 = vpop.eup %10060  ;;  %v1565_v2 = vadd.f32 1.0, %v12093_v18  ;;  %v1804_v20 = vmul.f32 1.442695, %v12137_v0  ;;  %v12182_v63 = vsel %vm1529_vm8, %v1561_v14, %v10059_v13  ;;  %vm1703_vm6 = vcmp.gt.f32.partialorder %v12023_v35, 0.0 }
 0x38a   : > { %v10063_v16 = vpop.eup %10062  ;;  %vm1533_vm7 = vcmp.gt.f32.partialorder %v12093_v18, 0.0  ;;  %v12187_v1 = vadd.f32 1.0, %v12137_v0  ;;  %v12190_v45 = vadd.f32 1.0, %v12143_v51  ;;  %v1624_v36 = vmul.f32 1.442695, %v12143_v51 }
 0x38b   : > { %vm1705_vm3 = vcmp.gt.f32.partialorder %v12011_v32, 0.0  ;;  %v12197_v21 = vsel %vm1527_vm9, %v1559_v10, %v10063_v16  ;;  %vm1706_vm8 = vcmp.gt.f32.partialorder %v12084_v26, 0.0  ;;  %10078 = vpow2.f32 %v1804_v20  ;;  %v10065_v24 = vpop.eup %10064  ;;  %v16707_v20 = vld [vmem:[#allocation73_spill] sm:$0xff] }
 0x38c   : > { %v12201_v48 = vadd.f32 1.0, %v12149_v31  ;;  %v1800_v14 = vmul.f32 1.442695, %v12149_v31  ;;  %v16705_v29 = vpack.c.bf16 %v11566_v46, %v11558_v61  ;;  %vm1708_vm5 = vcmp.gt.f32.partialorder %v12070_v33, 0.0  ;;  %v10067_v13 = vpop.eup %10066  ;;  %v16706_v46 = vld [vmem:[#allocation84_spill] sm:$0xff] }
 0x38d   : > { %10080 = vpow2.f32 %v1624_v36  ;;  %v1869_v25 = vpack.c.bf16 %v12137_v0, %v12070_v33  ;;  %v1868_v10 = vpack.c.bf16 %v12149_v31, %v12084_v26  ;;  %v12219_v61 = vsel %vm1689_vm10, %v11698_v7, %v11788_v38  ;;  %v16708_v36 = vld [vmem:[#allocation89_spill] sm:$0xff]  ;;  %v10069_v3 = vpop.eup %10068  ;;  %v16742_v26 = vld [vmem:[#allocation91_spill] sm:$0xff]  ;;  %v16746_v33 = vld [vmem:[#allocation98_spill] sm:$0xff] }
 0x38e   : > { %1967 = vxpose.xlu0.c.b16.start [1/8] (narrow) %v16705_v29, 32  ;;  %10082 = vpow2.f32 %v1800_v14  ;;  %v12225_v16 = vsel %vm1690_vm11, %v16707_v20, %v16706_v46  ;;  %v16709_v29 = vld [vmem:[#allocation79_spill] sm:$0xff]  ;;  %vm1531_vm9 = vcmp.gt.f32.partialorder %v12143_v51, 0.0  ;;  %v1843_v7 = vpack.c.bf16 %v12219_v61, %v16710_v23  ;;  %v16712_v14 = vld [vmem:[#allocation72_spill] sm:$0xff]  ;;  %v16713_v20 = vld [vmem:[#allocation86_spill] sm:$0xff] }
 0x38f   : > { %v12231_v30 = vsel %vm1691_vm12, %v16709_v29, %v16708_v36  ;;  %1916 = vrot.lane.b32.xlu1 %v1869_v25, %s10926_s5  ;;  %v1820_v46 = vsel %vm1692_vm13, %v16712_v14, %v16711_v52  ;;  %v1821_v36 = vsel %vm1693_vm14, %v16714_v60, %v16713_v20  ;;  %v10071_v29 = vpop.eup %10070  ;;  %v12250_v25 = vsel %vm1532_vm15, %v12120_v39, %v10069_v3  ;;  %v16715_v61 = vld [vmem:[#allocation60_spill] sm:$0xff]  ;;  %v16719_v52 = vld [vmem:[#allocation77_spill] sm:$0xff]  ;;  %v16721_v60 = vld [vmem:[#allocation90_spill] sm:$0xff] }
 0x390   : > { %v1844_v38 = vpack.c.bf16 %v12231_v30, %v12225_v16  ;;  %vm1707_vm10 = vcmp.gt.f32.partialorder %v12149_v31, 0.0  ;;  %v16716_v30 = vld [vmem:[#allocation58_spill] sm:$0xff]  ;;  %v1845_v23 = vpack.c.bf16 %v1821_v36, %v1820_v46  ;;  %vm1694_vm11 = vcmp.gt.f32.partialorder %v16718_v47, 0.0  ;;  %v10073_v14 = vpop.eup %10072  ;;  %v16722_v39 = vld [vmem:[#allocation81_spill] sm:$0xff] }
 0x391   : > { %v16717_v16 = vpack.c.bf16 %v16715_v61, %v16716_v30  ;;  %vm1695_vm12 = vcmp.gt.f32.partialorder %v16719_v52, 0.0  ;;  %v1822_v20 = vsel %vm1694_vm11, %v16720_v49, %v11985_v17  ;;  %v1824_v3 = vsel %vm1696_vm1, %v16722_v39, %v11967_v50  ;;  %v16723_v61 = vld [vmem:[#allocation88_spill] sm:$0xff]  ;;  %v10075_v36 = vpop.eup %10074  ;;  %v16727_v50 = vld [vmem:[#allocation99_spill] sm:$0xff]  ;;  %v16738_v49 = vld [vmem:[#allocation69_spill] sm:$0xff] }
 0x392   : > { %v1823_v43 = vsel %vm1695_vm12, %v16721_v60, %v12017_v41  ;;  %v1825_v46 = vsel %vm1697_vm2, %v16723_v61, %v11994_v6  ;;  %vm16724_vm13 = vcmp.gt.f32.partialorder %v12080_v40, 0.0  ;;  %v16725_v41 = vld [vmem:[#allocation95_spill] sm:$0xff]  ;;  %vm16726_vm14 = vcmp.gt.f32.partialorder %v11883_v53, 0.0  ;;  %v10077_v57 = vpop.eup %10076  ;;  %v16728_v6 = vld [vmem:[#allocation92_spill] sm:$0xff] }
 0x393   : > { %1968 = vxpose.xlu0.c.b16.cont [2/8] (narrow) %v16717_v16, 32  ;;  %v12273_v30 = vsel %vm16724_vm13, %v12128_v27, %v10073_v14  ;;  %v1846_v17 = vpack.c.bf16 %v1823_v43, %v1822_v20  ;;  %v1847_v16 = vpack.c.bf16 %v1825_v46, %v1824_v3  ;;  %v1826_v47 = vsel %vm16726_vm14, %v16725_v41, %v12059_v58  ;;  %v16729_v27 = vld [vmem:[#allocation97_spill] sm:$0xff]  ;;  %v16744_v20 = vld [vmem:[#allocation87_spill] sm:$0xff]  ;;  %v16745_v43 = vld [vmem:[#allocation94_spill] sm:$0xff] }
 0x394   : > { %1914 = vrot.lane.b32.xlu1 %v1868_v10, %s10926_s5  ;;  %v1827_v5 = vsel %vm1699_vm4, %v16727_v50, %v12111_v55  ;;  %v1828_v40 = vsel %vm1700_vm0, %v16728_v6, %v12047_v62  ;;  %vm16730_vm15 = vcmp.gt.f32.partialorder %v11891_v56, 0.0  ;;  %vm16731_vm1 = vcmp.gt.f32.partialorder %v11983_v28, 0.0  ;;  %v16733_v55 = vld [vmem:[#allocation66_spill] sm:$0xff]  ;;  %v16747_v3 = vld [vmem:[#allocation68_spill] sm:$0xff] }
 0x395   : > { %v1829_v52 = vsel %vm16730_vm15, %v16729_v27, %v12095_v15  ;;  %v1830_v53 = vsel %vm16731_vm1, %v12056_v11, %v12163_v8  ;;  %v12298_v58 = vsel %vm1533_vm7, %v1565_v2, %v10077_v57  ;;  %v16734_v10 = vpack.c.bf16 %v16732_v9, %v16733_v55  ;;  %v10079_v8 = vpop.eup %10078  ;;  %v16748_v61 = vld [vmem:[#allocation64_spill] sm:$0xff]  ;;  %v16753_v57 = vld [vmem:[#allocation103_spill] sm:$0xff] }
 0x396   : > { %v1848_v19 = vpack.c.bf16 %v1827_v5, %v1826_v47  ;;  %v1849_v62 = vpack.c.bf16 %v1829_v52, %v1828_v40  ;;  %v1831_v56 = vsel %vm1703_vm6, %v12108_v22, %v10067_v13  ;;  %vm16735_vm0 = vcmp.gt.f32.partialorder %v11961_v42, 0.0  ;;  %v16736_v22 = vld [vmem:[#allocation71_spill] sm:$0xff]  ;;  %v16739_v42 = vld [vmem:[#allocation74_spill] sm:$0xff]  ;;  %v16752_v47 = vld [vmem:[#allocation101_spill] sm:$0xff] }
 0x397   : > { %1969 = vxpose.xlu0.c.b16.cont [3/8] (narrow) %v16734_v10, 32  ;;  %v1850_v15 = vpack.c.bf16 %v1831_v56, %v1830_v53  ;;  %v1832_v28 = vsel %vm16735_vm0, %v12039_v12, %v12131_v59  ;;  %v1833_v11 = vsel %vm1705_vm3, %v12087_v54, %v10065_v24  ;;  %v1834_v18 = vsel %vm1706_vm8, %v12175_v44, %v10075_v36  ;;  %v16737_v13 = vld [vmem:[#allocation75_spill] sm:$0xff]  ;;  %v10081_v59 = vpop.eup %10080  ;;  %v16741_v54 = vld [vmem:[#allocation85_spill] sm:$0xff]  ;;  %v16743_v24 = vld [vmem:[#allocation80_spill] sm:$0xff] }
 0x398   : > { %v1851_v2 = vpack.c.bf16 %v1833_v11, %v1832_v28  ;;  %v1836_v35 = vsel %vm1708_vm5, %v12125_v4, %v10071_v29  ;;  %v1666_v14 = vpack.c.bf16 %v16737_v13, %v16736_v22  ;;  %v1667_v12 = vpack.c.bf16 %v16739_v42, %v16738_v49  ;;  %v10083_v29 = vpop.eup %10082  ;;  %v16751_v36 = vld [vmem:[#allocation96_spill] sm:$0xff]  ;;  %v16755_v40 = vld [vmem:[#allocation102_spill] sm:$0xff]  ;;  %v16757_v10 = vld [vmem:[#allocation105_spill] sm:$0xff] }
 0x399   : > { %vm16740_vm2 = vcmp.gt.f32.partialorder %v12137_v0, 0.0  ;;  %v1668_v44 = vpack.c.bf16 %v16742_v26, %v16741_v54  ;;  %v1669_v60 = vpack.c.bf16 %v16744_v20, %v16743_v24  ;;  %v1670_v4 = vpack.c.bf16 %v16746_v33, %v16745_v43  ;;  %v16754_v6 = vld [vmem:[#allocation100_spill] sm:$0xff] }
 0x39a   : > { %v1837_v32 = vsel %vm16740_vm2, %v12187_v1, %v10079_v8  ;;  %v12335_v39 = vsel %vm1531_vm9, %v12190_v45, %v10081_v59  ;;  %v16749_v46 = vpack.c.bf16 %v16747_v3, %v16748_v61  ;;  %v16750_v1 = vld [vmem:[#allocation93_spill] sm:$0xff]  ;;  %v1672_v50 = vpack.c.bf16 %v16753_v57, %v16752_v47  ;;  %v16756_v27 = vld [vmem:[#allocation104_spill] sm:$0xff] }
 0x39b   : > { %v1853_v0 = vpack.c.bf16 %v1837_v32, %v1836_v35  ;;  %v1671_v41 = vpack.c.bf16 %v16751_v36, %v16750_v1  ;;  %v1835_v5 = vsel %vm1707_vm10, %v12201_v48, %v10083_v29  ;;  %v1673_v51 = vpack.c.bf16 %v16755_v40, %v16754_v6 }
 0x39c   : > { %1970 = vxpose.xlu0.c.b16.cont [4/8] (narrow) %v16749_v46, 32  ;;  %v1674_v45 = vpack.c.bf16 %v12197_v21, %v12171_v37  ;;  %v1675_v52 = vpack.c.bf16 %v12182_v63, %v16756_v27  ;;  %v1852_v53 = vpack.c.bf16 %v1835_v5, %v1834_v18  ;;  %v1676_v9 = vpack.c.bf16 %v12335_v39, %v12273_v30  ;;  %v1889_v8 = vpop.permute.xlu1 %1888  ;;  %v9936_v37 = vld [vmem:[%s16803_s8] sm:$0xff]   ;;  %v9937_v63 = vld [vmem:[%s16803_s8 + $0x8] sm:$0xff]  }
 0x39d   : > { %v1677_v55 = vpack.c.bf16 %v12298_v58, %v12250_v25  ;;  %v16758_v31 = vpack.c.bf16 %v12161_v34, %v16757_v10  ;;  %vm16759_vm3 = vcmask 261120   ;;  %9237 = vmatprep.subr.bf16.mxu0 %v9936_v37 }
 0x39e   : > { %vm16760_vm4 = vmmov %vm16759_vm3  ;;  %9238 = vmatpush3.bf16.msra.mxu0 %v9936_v37 }
 0x39f   : > { %vm16761_vm5 = vmmov %vm16759_vm3  ;;  %9239 = vmatprep.subr.bf16.mxu0 %v9937_v63 }
 0x3a0   : > { %1971 = vxpose.xlu0.c.b16.cont [5/8] (narrow) %v16758_v31, 32  ;;  %v1887_v34 = vpop.permute.xlu1 %1886  ;;  %vm16762_vm6 = vmmov %vm16759_vm3 }
 0x3a1   : > { %vm16763_vm7 = vmmov %vm16759_vm3 }
 0x3a2   : > { %vm16764_vm8 = vmmov %vm16759_vm3  ;;  %9240 = vmatpush3.bf16.msra.mxu0 %v9937_v63 }
 0x3a3   : > { %vm16765_vm9 = vmmov %vm16759_vm3 }
 0x3a4   : > { %1972 = vxpose.xlu0.c.b16.cont [6/8] (narrow) %v1843_v7, 32  ;;  %vm16766_vm10 = vmmov %vm16759_vm3 }
 0x3a5   : > { %vm16767_vm11 = vmmov %vm16759_vm3 }
 0x3a6   : > { %vm16768_vm12 = vmmov %vm16759_vm3 }
 0x3a7   : > { %vm16769_vm13 = vmmov %vm16759_vm3 }
 0x3a8   : > { %1973 = vxpose.xlu0.c.b16.cont [7/8] (narrow) %v1844_v38, 32  ;;  %vm16770_vm14 = vmmov %vm16759_vm3 }
 0x3a9   : > { %vm16771_vm15 = vmmov %vm16759_vm3 }
 0x3aa   : > { %vm16772_vm1 = vmmov %vm16759_vm3 }
 0x3ab   : > { %vm16773_vm0 = vmmov %vm16772_vm1 }
 0x3ac   : > { %1974 = vxpose.xlu0.c.b16.end [8/8] (narrow) %v1845_v23, 32  ;;  %v1920_v23 = vsel %vm16760_vm4, %v1887_v34, 1065369472  ;;  %vm16774_vm2 = vmmov %vm16773_vm0 }
 0x3ad   : > { %v1893_v48 = vpop.permute.xlu0 %1892  ;;  %vm16783_vm4 = vmmov %vm16773_vm0 }
 0x3ae   : > { %v1929_v29 = vsel %vm16766_vm10, %v1893_v48, 1065369472  ;;  %vm16795_vm10 = vmmov %vm16773_vm0 }
 0x3b1   : > { %v1891_v56 = vpop.permute.xlu0 %1890 }
 0x3b7   : > { %1983 = vxpose.xlu1.c.b16.start [1/8] (narrow) %v1846_v17, 32 }
 0x3bb   : > { %1984 = vxpose.xlu1.c.b16.cont [2/8] (narrow) %v1847_v16, 32  ;;  %v1923_v16 = vsel %vm16762_vm6, %v1889_v8, 1065369472  ;;  %vm16791_vm6 = vmmov %vm16773_vm0 }
 0x3bc   : > { %v1897_v28 = vpop.permute.xlu0 %1896 }
 0x3bd   : > { %v1935_v10 = vsel %vm16770_vm14, %v1897_v28, 1065369472  ;;  %vm16799_vm14 = vmmov %vm16773_vm0 }
 0x3bf   : > { %1985 = vxpose.xlu1.c.b16.cont [3/8] (narrow) %v1848_v19, 32 }
 0x3c0   : > { %v1895_v11 = vpop.permute.xlu0 %1894 }
 0x3c3   : > { %1986 = vxpose.xlu1.c.b16.cont [4/8] (narrow) %v1849_v62, 32 }
 0x3c7   : > { %1987 = vxpose.xlu1.c.b16.cont [5/8] (narrow) %v1850_v15, 32 }
 0x3cb   : > { %1988 = vxpose.xlu1.c.b16.cont [6/8] (narrow) %v1851_v2, 32  ;;  %v1926_v2 = vsel %vm16764_vm8, %v1891_v56, 1065369472  ;;  %vm16793_vm8 = vmmov %vm16773_vm0 }
 0x3cc   : > { %v1901_v18 = vpop.permute.xlu0 %1900 }
 0x3cf   : > { %1989 = vxpose.xlu1.c.b16.cont [7/8] (narrow) %v1852_v53, 32 }
 0x3d3   : > { %1990 = vxpose.xlu1.c.b16.end [8/8] (narrow) %v1853_v0, 32  ;;  %v1932_v0 = vsel %vm16768_vm12, %v1895_v11, 1065369472  ;;  %v1941_v11 = vsel %vm16774_vm2, %v1901_v18, 1065369472  ;;  %v654_v18 = vld [vmem:[%s16779_s23] sm:$0xff]  ;;  %vm16797_vm12 = vmmov %vm16773_vm0 }
 0x3d4   : > { %v1899_v35 = vpop.permute.xlu0 %1898  ;;  %vm16802_vm2 = vmmov %vm16773_vm0 }
 0x3d5   : > { %v1905_v59 = vpop.permute.xlu1 %1904  ;;  %v1938_v48 = vsel %vm16772_vm1, %v1899_v35, 1065369472  ;;  %vm16801_vm1 = vmmov %vm16773_vm0 }
 0x3d6   : > { %v1947_v17 = vsel %vm16761_vm5, %v1905_v59, 1065369472  ;;  %vm16787_vm5 = vmmov %vm16773_vm0 }
 0x3d9   : > { %v1903_v7 = vpop.permute.xlu0 %1902 }
 0x3da   : > { %v1944_v38 = vsel %vm16759_vm3, %v1903_v7, 1065369472  ;;  %vm16778_vm3 = vmmov %vm16773_vm0 }
 0x3db   : > { %8833 = vmatprep.subr.bf16.mxu1 %v1944_v38  ;;  %v16775_v38 = vld [vmem:[#allocation57_spill] sm:$0xff] }
 0x3dc   : > { %8834 = vmatpush3.bf16.msra.mxu1 %v1920_v23  ;;  %v16776_v23 = vld [vmem:[#allocation59_spill] sm:$0xff] }
 0x3dd   : > { %8835 = vmatprep.subr.bf16.mxu1 %v1947_v17  ;;  %v16777_v17 = vpack.c.bf16 %v16775_v38, %v16776_v23  ;;  %v16784_v38 = vld [vmem:[#allocation63_spill] sm:$0xff]  ;;  %v16785_v23 = vld [vmem:[#allocation62_spill] sm:$0xff] }
 0x3e0   : > { %8836 = vmatpush3.bf16.msra.mxu1 %v1923_v16 }
 0x3e2   : > { %v1909_v19 = vpop.permute.xlu1 %1908 }
 0x3e3   : > { %v1953_v32 = vsel %vm16765_vm9, %v1909_v19, 1065369472  ;;  %vm16794_vm9 = vmmov %vm16773_vm0 }
 0x3ec   : > { %v1907_v62 = vpop.permute.xlu1 %1906 }
 0x3ed   : > { %v1950_v15 = vsel %vm16763_vm7, %v1907_v62, 1065369472  ;;  %vm16792_vm7 = vmmov %vm16773_vm0 }
 0x3ee   : > { %8837 = vmatprep.subr.bf16.mxu1 %v1950_v15  ;;  %v655_v15 = vld [vmem:[%s16779_s23 + $0x8] sm:$0xff] }
 0x3ef   : > { %8838 = vmatpush3.bf16.msra.mxu1 %v1926_v2 }
 0x3f0   : > { %8839 = vmatprep.subr.bf16.mxu1 %v1953_v32  ;;  %v1913_v3 = vpop.permute.xlu1 %1912 }
 0x3f1   : > { %v1959_v5 = vsel %vm16769_vm13, %v1913_v3, 1065369472  ;;  %vm16798_vm13 = vmmov %vm16773_vm0 }
 0x3f3   : > { %8840 = vmatpush3.bf16.msra.mxu1 %v1929_v29 }
 0x3f6   : > { %v1975_v34 = vpop.trf.xlu0 }
 0x3fa   : > { %v1911_v61 = vpop.permute.xlu1 %1910  ;;  %v1976_v28 = vpop.trf.xlu0 }
 0x3fb   : > { %v1956_v46 = vsel %vm16767_vm11, %v1911_v61, 1065369472  ;;  %vm16796_vm11 = vmmov %vm16773_vm0 }
 0x3fc   : > { %8841 = vmatprep.subr.bf16.mxu1 %v1956_v46 }
 0x3fd   : > { %8842 = vmatpush3.bf16.msra.mxu1 %v1932_v0 }
 0x3fe   : > { %8843 = vmatprep.subr.bf16.mxu1 %v1959_v5 }
 0x401   : > { %v1917_v53 = vpop.permute.xlu1 %1916  ;;  %8844 = vmatpush3.bf16.msra.mxu1 %v1935_v10  ;;  %v656_v10 = vld [vmem:[%s16779_s23 + $0x10] sm:$0xff] }
 0x402   : > { %v1965_v8 = vsel %vm16773_vm0, %v1917_v53, 1065369472 }
 0x406   : > { %v1915_v31 = vpop.permute.xlu1 %1914 }
 0x407   : > { %v1962_v56 = vsel %vm16771_vm15, %v1915_v31, 1065369472  ;;  %v657_v31 = vld [vmem:[%s16779_s23 + $0x18] sm:$0xff]  ;;  %vm16800_vm15 = vmmov %vm16773_vm0 }
 0x408   : > { %8845 = vmatprep.subr.bf16.mxu1 %v1962_v56 }
 0x409   : > { %8846 = vmatpush3.bf16.msra.mxu1 %v1938_v48 }
 0x40a   : > { %8847 = vmatprep.subr.bf16.mxu1 %v1965_v8 }
 0x40d   : > { %8848 = vmatpush3.bf16.msra.mxu1 %v1941_v11 }
 0x41d   : > { %v1991_v59 = vpop.trf.xlu1 }
 0x41e   : > { %2031 = vmatprep.mubr.bf16.mxu1 %v1991_v59  ;;  %v16780_v59 = vld [vmem:[#allocation56_spill] sm:$0xff] }
 0x41f   : > { %2032 = vmatmul.mubr.bf16.vlgmr.msra.gmra.mrb[32].mxu1 %v1975_v34 }
 0x421   : > { %v1992_v7 = vpop.trf.xlu1 }
 0x422   : > { %2039 = vmatprep.mubr.bf16.mxu1 %v1992_v7  ;;  %v16781_v7 = vld [vmem:[#allocation55_spill] sm:$0xff] }
 0x427   : > { %2040 = vmatmul.mubr.bf16.gmra.mrb[36].mxu1 %v1976_v28  ;;  %v16782_v28 = vpack.c.bf16 %v16780_v59, %v16781_v7 }
 0x428   : > { %9205 = vmatprep.mubr.msk.bf16.mxu1 %vm16778_vm3, %v16777_v17  ;;  %v16786_v17 = vpack.c.bf16 %v16784_v38, %v16785_v23  ;;  %vm16804_vm3 = vmmov %vm16773_vm0 }
 0x4f2   : > { %v8849_v35 = vpop.f32.mrb[32].mxu1 }
 0x4f3   : > { %v8850_v16 = vpop.f32.mrb[33].mxu1 }
 0x4f4   : > { %v8851_v19 = vadd.f32 %v8850_v16, %v8849_v35  ;;  %v8852_v62 = vpop.f32.mrb[34].mxu1  ;;  %v16788_v35 = vld [vmem:[#allocation65_spill] sm:$0xff] }
 0x4f5   : > { %v8853_v2 = vpop.f32.mrb[35].mxu1  ;;  %v16789_v16 = vld [vmem:[#allocation61_spill] sm:$0xff] }
 0x4f6   : > { %v8854_v32 = vadd.f32 %v8853_v2, %v8852_v62  ;;  %v2048_v29 = vmul.f32 %v8851_v19, %v654_v18  ;;  %v16790_v19 = vpack.c.bf16 %v16788_v35, %v16789_v16 }
 0x4f8   : > { %v2049_v3 = vmul.f32 %v8854_v32, %v655_v15 }
 0x4fa   : > { %v8855_v61 = vpop.f32.mrb[36].mxu1  ;;  %v2052_v46 = vpack.c.bf16 %v2049_v3, %v2048_v29 }
 0x4fb   : > { %v8856_v0 = vpop.f32.mrb[37].mxu1 }
 0x4fc   : > { %v8857_v5 = vadd.f32 %v8856_v0, %v8855_v61  ;;  %v8858_v53 = vpop.f32.mrb[38].mxu1  ;;  %9201 = vmatprep.subr.bf16.mxu1 %v2052_v46 }
 0x4fd   : > { %v8859_v56 = vpop.f32.mrb[39].mxu1  ;;  %9202 = vmatpush3.bf16.msra.mxu1 %v2052_v46 }
 0x4fe   : > { %v8860_v48 = vadd.f32 %v8859_v56, %v8858_v53  ;;  %v2050_v8 = vmul.f32 %v8857_v5, %v656_v10 }
 0x500   : > { %v2051_v11 = vmul.f32 %v8860_v48, %v657_v31 }
 0x502   : > { %v2053_v34 = vpack.c.bf16 %v2051_v11, %v2050_v8 }
 0x504   : > { %9203 = vmatprep.subr.bf16.mxu1 %v2053_v34 }
 0x505   : > { %9204 = vmatpush3.bf16.msra.mxu1 %v2053_v34 }
 0x508   : > { %9206 = vmatmul.mubr.msk.bf16.vlgmr.msra.gmra.mrb[40].mxu1 %vm16783_vm4, %v16782_v28  ;;  %vm16805_vm4 = vmmov %vm16773_vm0 }
 0x509   : > { %9209 = vmatprep.mubr.msk.bf16.mxu1 %vm16787_vm5, %v16786_v17  ;;  %vm16806_vm5 = vmmov %vm16773_vm0 }
 0x510   : > { %9210 = vmatmul.mubr.msk.bf16.gmra.mrb[44].mxu1 %vm16791_vm6, %v16790_v19  ;;  %vm16807_vm6 = vmmov %vm16773_vm0 }
 0x511   : > { %9213 = vmatprep.mubr.msk.bf16.mxu1 %vm16792_vm7, %v1666_v14  ;;  %vm16808_vm7 = vmmov %vm16773_vm0 }
 0x518   : > { %9214 = vmatmul.mubr.msk.bf16.gmra.mrb[48].mxu1 %vm16793_vm8, %v1667_v12  ;;  %vm16809_vm8 = vmmov %vm16773_vm0 }
 0x519   : > { %9217 = vmatprep.mubr.msk.bf16.mxu1 %vm16794_vm9, %v1668_v44  ;;  %vm16810_vm9 = vmmov %vm16773_vm0 }
 0x520   : > { %9218 = vmatmul.mubr.msk.bf16.gmra.mrb[52].mxu1 %vm16795_vm10, %v1669_v60  ;;  %vm16811_vm10 = vmmov %vm16773_vm0 }
 0x521   : > { %9221 = vmatprep.mubr.msk.bf16.mxu1 %vm16796_vm11, %v1670_v4  ;;  %vm16812_vm11 = vmmov %vm16773_vm0 }
 0x528   : > { %9222 = vmatmul.mubr.msk.bf16.gmra.mrb[56].mxu1 %vm16797_vm12, %v1671_v41  ;;  %vm16813_vm12 = vmmov %vm16773_vm0 }
 0x529   : > { %9225 = vmatprep.mubr.msk.bf16.mxu1 %vm16798_vm13, %v1672_v50  ;;  %vm16814_vm13 = vmmov %vm16773_vm0 }
 0x530   : > { %9226 = vmatmul.mubr.msk.bf16.gmra.mrb[60].mxu1 %vm16799_vm14, %v1673_v51  ;;  %vm16815_vm14 = vmmov %vm16773_vm0 }
 0x531   : > { %9229 = vmatprep.mubr.msk.bf16.mxu1 %vm16800_vm15, %v1674_v45  ;;  %vm16816_vm15 = vmmov %vm16773_vm0 }
 0x538   : > { %9230 = vmatmul.mubr.msk.bf16.gmra.mrb[64].mxu1 %vm16801_vm1, %v1675_v52  ;;  %vm16817_vm1 = vmmov %vm16773_vm0 }
 0x539   : > { %9233 = vmatprep.mubr.msk.bf16.mxu1 %vm16773_vm0, %v1676_v9 }
 0x540   : > { %9234 = vmatmul.mubr.msk.bf16.gmra.mrb[68].mxu1 %vm16802_vm2, %v1677_v55  ;;  %vm16818_vm2 = vmmov %vm16773_vm0 }
 0x5db   : > { %v12458_v21 = vpop.f32.mrb[40].mxu1 }
 0x5dc   : > { %v12460_v30 = vpop.f32.mrb[41].mxu1  ;;  %v2265_v49 = vadd.f32 1e-06, %v12458_v21 }
 0x5dd   : > { %v2263_v25 = vadd.f32 1e-06, %v12460_v30  ;;  %v12463_v58 = vpop.f32.mrb[42].mxu1 }
 0x5de   : > { %v12465_v22 = vpop.f32.mrb[43].mxu1  ;;  %v2266_v13 = vadd.f32 1e-06, %v12463_v58 }
 0x5df   : > { %10084 = vrcp.f32 %v2263_v25  ;;  %v2264_v14 = vadd.f32 1e-06, %v12465_v22 }
 0x5e1   : > { %10086 = vrcp.f32 %v2264_v14 }
 0x5e2   : > { %10088 = vrcp.f32 %v2266_v13 }
 0x5e3   : > { %v12470_v42 = vpop.f32.mrb[44].mxu1  ;;  %10090 = vrcp.f32 %v2265_v49 }
 0x5e4   : > { %v12472_v12 = vpop.f32.mrb[45].mxu1  ;;  %v2269_v20 = vadd.f32 1e-06, %v12470_v42 }
 0x5e5   : > { %v2267_v54 = vadd.f32 1e-06, %v12472_v12  ;;  %v12475_v26 = vpop.f32.mrb[46].mxu1 }
 0x5e6   : > { %v12477_v44 = vpop.f32.mrb[47].mxu1  ;;  %v2270_v43 = vadd.f32 1e-06, %v12475_v26 }
 0x5e7   : > { %v2268_v24 = vadd.f32 1e-06, %v12477_v44  ;;  %10092 = vrcp.f32 %v2267_v54 }
 0x5e9   : > { %v10085_v60 = vpop.eup %10084  ;;  %10094 = vrcp.f32 %v2268_v24 }
 0x5ea   : > { %2359 = vrot.lane.b32.xlu0 %v10085_v60, %s10926_s5  ;;  %10096 = vrcp.f32 %v2269_v20 }
 0x5eb   : > { %v10087_v33 = vpop.eup %10086  ;;  %v12483_v4 = vpop.f32.mrb[48].mxu1  ;;  %10098 = vrcp.f32 %v2270_v43 }
 0x5ec   : > { %2361 = vrot.lane.b32.xlu1 %v10087_v33, %s10926_s5  ;;  %v12486_v39 = vpop.f32.mrb[49].mxu1  ;;  %v10089_v1 = vpop.eup %10088  ;;  %v2273_v6 = vadd.f32 1e-06, %v12483_v4 }
 0x5ed   : > { %v2271_v36 = vadd.f32 1e-06, %v12486_v39  ;;  %v12489_v41 = vpop.f32.mrb[50].mxu1  ;;  %v10091_v57 = vpop.eup %10090 }
 0x5ee   : > { %2365 = vrot.lane.b32.xlu0 %v10089_v1, %s10926_s5  ;;  %v12492_v47 = vpop.f32.mrb[51].mxu1  ;;  %v2274_v40 = vadd.f32 1e-06, %v12489_v41 }
 0x5ef   : > { %v2272_v50 = vadd.f32 1e-06, %v12492_v47  ;;  %10100 = vrcp.f32 %v2271_v36 }
 0x5f0   : > { %2363 = vrot.lane.b32.xlu1 %v10091_v57, %s10926_s5 }
 0x5f1   : > { %10102 = vrcp.f32 %v2272_v50  ;;  %v10093_v51 = vpop.eup %10092 }
 0x5f2   : > { %10104 = vrcp.f32 %v2273_v6 }
 0x5f3   : > { %v10095_v45 = vpop.eup %10094  ;;  %v12498_v27 = vpop.f32.mrb[52].mxu1  ;;  %10106 = vrcp.f32 %v2274_v40 }
 0x5f4   : > { %2367 = vrot.lane.b32.xlu1 %v10093_v51, %s10926_s5  ;;  %2369 = vrot.lane.b32.xlu0 %v10095_v45, %s10926_s5  ;;  %v12502_v52 = vpop.f32.mrb[53].mxu1  ;;  %v10097_v62 = vpop.eup %10096  ;;  %v2277_v32 = vadd.f32 1e-06, %v12498_v27 }
 0x5f5   : > { %v2275_v9 = vadd.f32 1e-06, %v12502_v52  ;;  %v12505_v55 = vpop.f32.mrb[54].mxu1  ;;  %v10099_v15 = vpop.eup %10098 }
 0x5f6   : > { %v12507_v18 = vpop.f32.mrb[55].mxu1  ;;  %v2278_v29 = vadd.f32 1e-06, %v12505_v55 }
 0x5f7   : > { %v2276_v2 = vadd.f32 1e-06, %v12507_v18  ;;  %10108 = vrcp.f32 %v2275_v9 }
 0x5f8   : > { %2371 = vrot.lane.b32.xlu1 %v10097_v62, %s10926_s5  ;;  %2373 = vrot.lane.b32.xlu0 %v10099_v15, %s10926_s5 }
 0x5f9   : > { %10110 = vrcp.f32 %v2276_v2  ;;  %v10101_v3 = vpop.eup %10100 }
 0x5fa   : > { %10112 = vrcp.f32 %v2277_v32 }
 0x5fb   : > { %v10103_v61 = vpop.eup %10102  ;;  %v12514_v46 = vpop.f32.mrb[56].mxu1  ;;  %10114 = vrcp.f32 %v2278_v29 }
 0x5fc   : > { %2375 = vrot.lane.b32.xlu1 %v10101_v3, %s10926_s5  ;;  %2377 = vrot.lane.b32.xlu0 %v10103_v61, %s10926_s5  ;;  %v12518_v0 = vpop.f32.mrb[57].mxu1  ;;  %v10105_v10 = vpop.eup %10104  ;;  %v2281_v8 = vadd.f32 1e-06, %v12514_v46 }
 0x5fd   : > { %v2279_v5 = vadd.f32 1e-06, %v12518_v0  ;;  %v12521_v53 = vpop.f32.mrb[58].mxu1  ;;  %v10107_v56 = vpop.eup %10106 }
 0x5fe   : > { %v12523_v31 = vpop.f32.mrb[59].mxu1  ;;  %v2282_v11 = vadd.f32 1e-06, %v12521_v53 }
 0x5ff   : > { %v2280_v48 = vadd.f32 1e-06, %v12523_v31  ;;  %10116 = vrcp.f32 %v2279_v5 }
 0x600   : > { %2379 = vrot.lane.b32.xlu1 %v10105_v10, %s10926_s5  ;;  %2381 = vrot.lane.b32.xlu0 %v10107_v56, %s10926_s5 }
 0x601   : > { %10118 = vrcp.f32 %v2280_v48  ;;  %v10109_v34 = vpop.eup %10108 }
 0x602   : > { %10120 = vrcp.f32 %v2281_v8 }
 0x603   : > { %v10111_v59 = vpop.eup %10110  ;;  %v12530_v7 = vpop.f32.mrb[60].mxu1  ;;  %10122 = vrcp.f32 %v2282_v11 }
 0x604   : > { %2383 = vrot.lane.b32.xlu1 %v10109_v34, %s10926_s5  ;;  %2385 = vrot.lane.b32.xlu0 %v10111_v59, %s10926_s5  ;;  %v12534_v28 = vpop.f32.mrb[61].mxu1  ;;  %v10113_v17 = vpop.eup %10112  ;;  %v2285_v37 = vadd.f32 1e-06, %v12530_v7 }
 0x605   : > { %v2283_v38 = vadd.f32 1e-06, %v12534_v28  ;;  %v12537_v23 = vpop.f32.mrb[62].mxu1  ;;  %v10115_v16 = vpop.eup %10114 }
 0x606   : > { %v12539_v35 = vpop.f32.mrb[63].mxu1  ;;  %v2286_v63 = vadd.f32 1e-06, %v12537_v23 }
 0x607   : > { %v2284_v19 = vadd.f32 1e-06, %v12539_v35  ;;  %10124 = vrcp.f32 %v2283_v38 }
 0x608   : > { %2387 = vrot.lane.b32.xlu1 %v10113_v17, %s10926_s5  ;;  %2389 = vrot.lane.b32.xlu0 %v10115_v16, %s10926_s5 }
 0x609   : > { %10126 = vrcp.f32 %v2284_v19  ;;  %v10117_v25 = vpop.eup %10116 }
 0x60a   : > { %10128 = vrcp.f32 %v2285_v37 }
 0x60b   : > { %v10119_v13 = vpop.eup %10118  ;;  %v12546_v14 = vpop.f32.mrb[64].mxu1  ;;  %10130 = vrcp.f32 %v2286_v63 }
 0x60c   : > { %2391 = vrot.lane.b32.xlu1 %v10117_v25, %s10926_s5  ;;  %2393 = vrot.lane.b32.xlu0 %v10119_v13, %s10926_s5  ;;  %v12550_v49 = vpop.f32.mrb[65].mxu1  ;;  %v10121_v20 = vpop.eup %10120  ;;  %v2289_v1 = vadd.f32 1e-06, %v12546_v14 }
 0x60d   : > { %v2287_v54 = vadd.f32 1e-06, %v12550_v49  ;;  %v12553_v24 = vpop.f32.mrb[66].mxu1  ;;  %v10123_v43 = vpop.eup %10122 }
 0x60e   : > { %v12555_v60 = vpop.f32.mrb[67].mxu1  ;;  %v2290_v36 = vadd.f32 1e-06, %v12553_v24 }
 0x60f   : > { %v2288_v33 = vadd.f32 1e-06, %v12555_v60  ;;  %10132 = vrcp.f32 %v2287_v54 }
 0x610   : > { %2395 = vrot.lane.b32.xlu1 %v10121_v20, %s10926_s5  ;;  %2397 = vrot.lane.b32.xlu0 %v10123_v43, %s10926_s5 }
 0x611   : > { %10134 = vrcp.f32 %v2288_v33  ;;  %v10125_v57 = vpop.eup %10124 }
 0x612   : > { %10136 = vrcp.f32 %v2289_v1 }
 0x613   : > { %v10127_v50 = vpop.eup %10126  ;;  %v12562_v6 = vpop.f32.mrb[68].mxu1  ;;  %10138 = vrcp.f32 %v2290_v36 }
 0x614   : > { %2399 = vrot.lane.b32.xlu1 %v10125_v57, %s10926_s5  ;;  %2401 = vrot.lane.b32.xlu0 %v10127_v50, %s10926_s5  ;;  %v12566_v40 = vpop.f32.mrb[69].mxu1  ;;  %v10129_v9 = vpop.eup %10128  ;;  %v2293_v32 = vadd.f32 1e-06, %v12562_v6 }
 0x615   : > { %v2291_v51 = vadd.f32 1e-06, %v12566_v40  ;;  %v12569_v45 = vpop.f32.mrb[70].mxu1  ;;  %v10131_v15 = vpop.eup %10130 }
 0x616   : > { %v12571_v62 = vpop.f32.mrb[71].mxu1  ;;  %v2294_v29 = vadd.f32 1e-06, %v12569_v45 }
 0x617   : > { %v2292_v2 = vadd.f32 1e-06, %v12571_v62  ;;  %10140 = vrcp.f32 %v2291_v51 }
 0x618   : > { %2403 = vrot.lane.b32.xlu1 %v10129_v9, %s10926_s5  ;;  %2405 = vrot.lane.b32.xlu0 %v10131_v15, %s10926_s5 }
 0x619   : > { %10142 = vrcp.f32 %v2292_v2  ;;  %v10133_v3 = vpop.eup %10132 }
 0x61a   : > { %10144 = vrcp.f32 %v2293_v32 }
 0x61b   : > { %v10135_v61 = vpop.eup %10134  ;;  %10146 = vrcp.f32 %v2294_v29 }
 0x61c   : > { %2407 = vrot.lane.b32.xlu1 %v10133_v3, %s10926_s5  ;;  %2409 = vrot.lane.b32.xlu0 %v10135_v61, %s10926_s5  ;;  %v10137_v5 = vpop.eup %10136 }
 0x61d   : > { %v10139_v10 = vpop.eup %10138 }
 0x620   : > { %2411 = vrot.lane.b32.xlu1 %v10137_v5, %s10926_s5  ;;  %2413 = vrot.lane.b32.xlu0 %v10139_v10, %s10926_s5 }
 0x621   : > { %v10141_v56 = vpop.eup %10140 }
 0x623   : > { %v10143_v48 = vpop.eup %10142 }
 0x624   : > { %2415 = vrot.lane.b32.xlu1 %v10141_v56, %s10926_s5  ;;  %2417 = vrot.lane.b32.xlu0 %v10143_v48, %s10926_s5  ;;  %v10145_v8 = vpop.eup %10144 }
 0x625   : > { %v10147_v11 = vpop.eup %10146 }
 0x628   : > { %2419 = vrot.lane.b32.xlu1 %v10145_v8, %s10926_s5  ;;  %2421 = vrot.lane.b32.xlu0 %v10147_v11, %s10926_s5 }
 0x65c   : > { %v2360_v34 = vpop.permute.xlu0 %2359 }
 0x65d   : > { %v2455_v38 = vmul.f32 %v2360_v34, %v12460_v30 }
 0x65e   : > { %v2362_v59 = vpop.permute.xlu1 %2361 }
 0x65f   : > { %v2456_v17 = vmul.f32 %v2362_v59, %v12465_v22 }
 0x660   : > { %v2366_v16 = vpop.permute.xlu0 %2365 }
 0x661   : > { %v2487_v19 = vpack.c.bf16 %v2456_v17, %v2455_v38  ;;  %v2458_v63 = vmul.f32 %v12463_v58, %v2366_v16 }
 0x662   : > { %v2364_v37 = vpop.permute.xlu1 %2363 }
 0x663   : > { %v2457_v25 = vmul.f32 %v12458_v21, %v2364_v37  ;;  %9241 = vmatprep.mubr.msk.bf16.mxu0 %vm16804_vm3, %v2487_v19  ;;  %vm16824_vm3 = vmmov %vm16773_vm0 }
 0x665   : > { %v2488_v13 = vpack.c.bf16 %v2458_v63, %v2457_v25 }
 0x666   : > { %v2368_v54 = vpop.permute.xlu1 %2367  ;;  %v2370_v20 = vpop.permute.xlu0 %2369 }
 0x667   : > { %v2459_v43 = vmul.f32 %v2368_v54, %v12472_v12  ;;  %v2460_v33 = vmul.f32 %v2370_v20, %v12477_v44  ;;  %9242 = vmatmul.mubr.msk.bf16.vlgmr.msra.gmra.mrb[64].mxu0 %vm16805_vm4, %v2488_v13  ;;  %vm16826_vm4 = vmmov %vm16773_vm0 }
 0x669   : > { %v2489_v30 = vpack.c.bf16 %v2460_v33, %v2459_v43 }
 0x66a   : > { %v2372_v22 = vpop.permute.xlu1 %2371  ;;  %v2374_v1 = vpop.permute.xlu0 %2373 }
 0x66b   : > { %v2461_v36 = vmul.f32 %v12470_v42, %v2372_v22  ;;  %v2462_v58 = vmul.f32 %v12475_v26, %v2374_v1  ;;  %9245 = vmatprep.mubr.msk.bf16.mxu0 %vm16806_vm5, %v2489_v30  ;;  %vm16827_vm5 = vmmov %vm16773_vm0 }
 0x66d   : > { %v2490_v21 = vpack.c.bf16 %v2462_v58, %v2461_v36 }
 0x66e   : > { %v2376_v57 = vpop.permute.xlu1 %2375  ;;  %v2378_v50 = vpop.permute.xlu0 %2377 }
 0x66f   : > { %v2463_v51 = vmul.f32 %v2376_v57, %v12486_v39  ;;  %v2464_v12 = vmul.f32 %v2378_v50, %v12492_v47  ;;  %9246 = vmatmul.mubr.msk.bf16.gmra.mrb[68].mxu0 %vm16807_vm6, %v2490_v21  ;;  %v2503_v57 = vlaneseq  ;;  %vm16828_vm6 = vmmov %vm16773_vm0 }
 0x671   : > { %v2491_v44 = vpack.c.bf16 %v2464_v12, %v2463_v51  ;;  %v12634_v50 = vshrl.u32 %v2503_v57, 7 }
 0x672   : > { %v2380_v9 = vpop.permute.xlu1 %2379  ;;  %v2382_v15 = vpop.permute.xlu0 %2381 }
 0x673   : > { %v2465_v2 = vmul.f32 %v12483_v4, %v2380_v9  ;;  %v2466_v42 = vmul.f32 %v12489_v41, %v2382_v15  ;;  %9249 = vmatprep.mubr.msk.bf16.mxu0 %vm16808_vm7, %v2491_v44  ;;  %16819 = vst [vmem:[#allocation84_spill] sm:$0xff] %v12634_v50  ;;  %v16821_v15 = vld [vmem:[#allocation26_spill] sm:$0xff]  ;;  %vm16832_vm7 = vmmov %vm16773_vm0 }
 0x675   : > { %v2492_v26 = vpack.c.bf16 %v2466_v42, %v2465_v2 }
 0x676   : > { %v2384_v32 = vpop.permute.xlu1 %2383  ;;  %v2386_v29 = vpop.permute.xlu0 %2385 }
 0x677   : > { %v2467_v3 = vmul.f32 %v2384_v32, %v12502_v52  ;;  %v2468_v39 = vmul.f32 %v2386_v29, %v12507_v18  ;;  %9250 = vmatmul.mubr.msk.bf16.gmra.mrb[72].mxu0 %vm16809_vm8, %v2492_v26  ;;  %v9938_v32 = vld [vmem:[#allocation8] sm:$0xff]   ;;  %v16822_v29 = vld [vmem:[#allocation24_spill] sm:$0xff]  ;;  %vm16834_vm8 = vmmov %vm16773_vm0 }
 0x678   : > { %9273 = vmatprep.subr.bf16.mxu1 %v9938_v32 }
 0x679   : > { %v2493_v47 = vpack.c.bf16 %v2468_v39, %v2467_v3  ;;  %9274 = vmatpush3.bf16.msra.mxu1 %v9938_v32 }
 0x67a   : > { %v2388_v61 = vpop.permute.xlu1 %2387  ;;  %v2390_v5 = vpop.permute.xlu0 %2389 }
 0x67b   : > { %v2469_v10 = vmul.f32 %v12498_v27, %v2388_v61  ;;  %v2470_v4 = vmul.f32 %v12505_v55, %v2390_v5  ;;  %9253 = vmatprep.mubr.msk.bf16.mxu0 %vm16810_vm9, %v2493_v47  ;;  %v16823_v47 = vld [vmem:[#allocation25_spill] sm:$0xff]  ;;  %vm16835_vm9 = vmmov %vm16773_vm0 }
 0x67d   : > { %v2494_v41 = vpack.c.bf16 %v2470_v4, %v2469_v10  ;;  %v16825_v4 = vld [vmem:[#allocation23_spill] sm:$0xff] }
 0x67e   : > { %v2392_v56 = vpop.permute.xlu1 %2391  ;;  %v2394_v48 = vpop.permute.xlu0 %2393 }
 0x67f   : > { %v2471_v8 = vmul.f32 %v2392_v56, %v12518_v0  ;;  %v2472_v52 = vmul.f32 %v2394_v48, %v12523_v31  ;;  %9254 = vmatmul.mubr.msk.bf16.gmra.mrb[76].mxu0 %vm16811_vm10, %v2494_v41  ;;  %vm16836_vm10 = vmmov %vm16773_vm0 }
 0x681   : > { %v2495_v18 = vpack.c.bf16 %v2472_v52, %v2471_v8 }
 0x682   : > { %v2396_v11 = vpop.permute.xlu1 %2395  ;;  %v2398_v34 = vpop.permute.xlu0 %2397 }
 0x683   : > { %v2473_v59 = vmul.f32 %v12514_v46, %v2396_v11  ;;  %v2474_v27 = vmul.f32 %v12521_v53, %v2398_v34  ;;  %9257 = vmatprep.mubr.msk.bf16.mxu0 %vm16812_vm11, %v2495_v18  ;;  %vm16840_vm11 = vmmov %vm16773_vm0 }
 0x685   : > { %v2496_v55 = vpack.c.bf16 %v2474_v27, %v2473_v59 }
 0x686   : > { %v2400_v38 = vpop.permute.xlu1 %2399  ;;  %v2402_v17 = vpop.permute.xlu0 %2401 }
 0x687   : > { %v2475_v16 = vmul.f32 %v2400_v38, %v12534_v28  ;;  %v2476_v0 = vmul.f32 %v2402_v17, %v12539_v35  ;;  %9258 = vmatmul.mubr.msk.bf16.gmra.mrb[80].mxu0 %vm16813_vm12, %v2496_v55  ;;  %v16829_v55 = vld [vmem:[#allocation30_spill] sm:$0xff]  ;;  %vm16842_vm12 = vmmov %vm16773_vm0 }
 0x689   : > { %v2497_v31 = vpack.c.bf16 %v2476_v0, %v2475_v16  ;;  %v16830_v0 = vld [vmem:[#allocation28_spill] sm:$0xff] }
 0x68a   : > { %v2404_v19 = vpop.permute.xlu1 %2403  ;;  %v2406_v37 = vpop.permute.xlu0 %2405 }
 0x68b   : > { %v2477_v63 = vmul.f32 %v12530_v7, %v2404_v19  ;;  %v2478_v46 = vmul.f32 %v12537_v23, %v2406_v37  ;;  %9261 = vmatprep.mubr.msk.bf16.mxu0 %vm16814_vm13, %v2497_v31  ;;  %v16831_v37 = vld [vmem:[#allocation29_spill] sm:$0xff]  ;;  %vm16843_vm13 = vmmov %vm16773_vm0 }
 0x68d   : > { %v2498_v53 = vpack.c.bf16 %v2478_v46, %v2477_v63 }
 0x68e   : > { %v2408_v25 = vpop.permute.xlu1 %2407  ;;  %v2410_v13 = vpop.permute.xlu0 %2409 }
 0x68f   : > { %v2479_v54 = vmul.f32 %v2408_v25, %v12550_v49  ;;  %v2480_v28 = vmul.f32 %v2410_v13, %v12555_v60  ;;  %9262 = vmatmul.mubr.msk.bf16.gmra.mrb[84].mxu0 %vm16815_vm14, %v2498_v53  ;;  %v16833_v25 = vld [vmem:[#allocation27_spill] sm:$0xff]  ;;  %vm16844_vm14 = vmmov %vm16773_vm0 }
 0x691   : > { %v2499_v35 = vpack.c.bf16 %v2480_v28, %v2479_v54 }
 0x692   : > { %v2412_v20 = vpop.permute.xlu1 %2411  ;;  %v2414_v43 = vpop.permute.xlu0 %2413 }
 0x693   : > { %v2481_v33 = vmul.f32 %v12546_v14, %v2412_v20  ;;  %v2482_v7 = vmul.f32 %v12553_v24, %v2414_v43  ;;  %9265 = vmatprep.mubr.msk.bf16.mxu0 %vm16816_vm15, %v2499_v35  ;;  %vm16848_vm15 = vmmov %vm16773_vm0 }
 0x695   : > { %v2500_v23 = vpack.c.bf16 %v2482_v7, %v2481_v33 }
 0x696   : > { %v2416_v30 = vpop.permute.xlu1 %2415  ;;  %v2418_v22 = vpop.permute.xlu0 %2417 }
 0x697   : > { %v2483_v1 = vmul.f32 %v2416_v30, %v12566_v40  ;;  %v2484_v49 = vmul.f32 %v2418_v22, %v12571_v62  ;;  %9266 = vmatmul.mubr.msk.bf16.gmra.mrb[88].mxu0 %vm16817_vm1, %v2500_v23  ;;  %v16520_v40 = vsub.s32 0, %v12634_v50  ;;  %v12640_v62 = vld [vmem:[%s16820_s22] sm:$0x3f]  ;;  %vm16850_vm1 = vmmov %vm16773_vm0 }
 0x698   : > { %v16837_v22 = vld [vmem:[#allocation34_spill] sm:$0xff] }
 0x699   : > { %v2501_v60 = vpack.c.bf16 %v2484_v49, %v2483_v1 }
 0x69a   : > { %v2420_v36 = vpop.permute.xlu1 %2419  ;;  %v2422_v58 = vpop.permute.xlu0 %2421 }
 0x69b   : > { %v2485_v21 = vmul.f32 %v12562_v6, %v2420_v36  ;;  %v2486_v14 = vmul.f32 %v12569_v45, %v2422_v58  ;;  %9269 = vmatprep.mubr.msk.bf16.mxu0 %vm16773_vm0, %v2501_v60  ;;  %v12645_v6 = vrot.slane %v12640_v62, %v16520_v40  ;;  %v16838_v36 = vld [vmem:[#allocation32_spill] sm:$0xff] }
 0x69d   : > { %v2502_v24 = vpack.c.bf16 %v2486_v14, %v2485_v21  ;;  %v16839_v14 = vld [vmem:[#allocation33_spill] sm:$0xff] }
 0x69f   : > { %9270 = vmatmul.mubr.msk.bf16.gmra.mrb[92].mxu0 %vm16818_vm2, %v2502_v24  ;;  %vm16851_vm2 = vmmov %vm16773_vm0 }
 0x73a   : > { %v9243_v45 = vpop.f32.mrb[64].mxu0 }
 0x73b   : > { %v2610_v51 = vadd.f32 %v9243_v45, %v12645_v6  ;;  %v2601_v12 = vpop.f32.mrb[65].mxu0  ;;  %v16841_v45 = vld [vmem:[#allocation31_spill] sm:$0xff] }
 0x73c   : > { %v2602_v44 = vadd.f32 %v2601_v12, %v12645_v6  ;;  %v9244_v9 = vpop.f32.mrb[66].mxu0 }
 0x73d   : > { %v12650_v2 = vadd.f32 %v2610_v51, %v16821_v15  ;;  %v2613_v42 = vadd.f32 %v9244_v9, %v12645_v6  ;;  %v2604_v26 = vpop.f32.mrb[67].mxu0 }
 0x73e   : > { %v12654_v3 = vadd.f32 %v2602_v44, %v16822_v29  ;;  %v2605_v39 = vadd.f32 %v2604_v26, %v12645_v6 }
 0x73f   : > { %v12658_v61 = vadd.f32 %v16823_v47, %v2613_v42  ;;  %v2766_v5 = vsel %vm16824_vm3, %v12650_v2, 0.0  ;;  %v2891_v10 = vmul.f32 %v12650_v2, %v12650_v2  ;;  %vm16855_vm3 = vmmov %vm16773_vm0 }
 0x740   : > { %v12665_v41 = vadd.f32 %v16825_v4, %v2605_v39  ;;  %2767 = vadd.xlane.f32.xlu0 %v2766_v5  ;;  %v2760_v56 = vsel %vm16826_vm4, %v12654_v3, 0.0  ;;  %v2889_v53 = vmul.f32 %v12654_v3, %v12654_v3  ;;  %v16845_v5 = vld [vmem:[#allocation38_spill] sm:$0xff]  ;;  %vm16857_vm4 = vmmov %vm16773_vm0 }
 0x741   : > { %2761 = vadd.xlane.f32.xlu1 %v2760_v56  ;;  %v2927_v18 = vsel %vm16827_vm5, %v2891_v10, 0.0  ;;  %v2769_v59 = vsel %vm16828_vm6, %v12658_v61, 0.0  ;;  %v2892_v27 = vmul.f32 %v12658_v61, %v12658_v61  ;;  %vm16858_vm5 = vmmov %vm16773_vm0 }
 0x742   : > { %v9247_v48 = vpop.f32.mrb[68].mxu0  ;;  %v2763_v46 = vsel %vm16832_vm7, %v12665_v41, 0.0  ;;  %v2890_v28 = vmul.f32 %v12665_v41, %v12665_v41  ;;  %v2921_v33 = vsel %vm16835_vm9, %v2889_v53, 0.0  ;;  %vm16859_vm6 = vmmov %vm16773_vm0 }
 0x743   : > { %v2626_v8 = vadd.f32 %v9247_v48, %v12645_v6  ;;  %v2617_v52 = vpop.f32.mrb[69].mxu0  ;;  %v2930_v54 = vsel %vm16834_vm8, %v2892_v27, 0.0  ;;  %v16846_v48 = vld [vmem:[#allocation36_spill] sm:$0xff]  ;;  %v16849_v27 = vld [vmem:[#allocation35_spill] sm:$0xff]  ;;  %vm16863_vm7 = vmmov %vm16773_vm0 }
 0x744   : > { %v2618_v11 = vadd.f32 %v2617_v52, %v12645_v6  ;;  %v9248_v34 = vpop.f32.mrb[70].mxu0  ;;  %2928 = vadd.xlane.f32.xlu0 %v2927_v18  ;;  %v2924_v30 = vsel %vm16836_vm10, %v2890_v28, 0.0  ;;  %v16847_v18 = vld [vmem:[#allocation37_spill] sm:$0xff]  ;;  %v16852_v28 = vld [vmem:[#allocation42_spill] sm:$0xff]  ;;  %vm16865_vm8 = vmmov %vm16773_vm0 }
 0x745   : > { %v12677_v38 = vadd.f32 %v2626_v8, %v16829_v55  ;;  %v2629_v17 = vadd.f32 %v9248_v34, %v12645_v6  ;;  %v2620_v16 = vpop.f32.mrb[71].mxu0  ;;  %2770 = vadd.xlane.f32.xlu1 %v2769_v59  ;;  %vm16866_vm9 = vmmov %vm16773_vm0 }
 0x746   : > { %v12681_v31 = vadd.f32 %v2618_v11, %v16830_v0  ;;  %v2621_v19 = vadd.f32 %v2620_v16, %v12645_v6  ;;  %vm16867_vm10 = vmmov %vm16773_vm0 }
 0x747   : > { %v12685_v63 = vadd.f32 %v16831_v37, %v2629_v17  ;;  %v2778_v57 = vsel %vm16840_vm11, %v12677_v38, 0.0  ;;  %v2895_v26 = vmul.f32 %v12677_v38, %v12677_v38  ;;  %vm16871_vm11 = vmmov %vm16773_vm0 }
 0x748   : > { %v12692_v13 = vadd.f32 %v16833_v25, %v2621_v19  ;;  %2764 = vadd.xlane.f32.xlu0 %v2763_v46  ;;  %v2772_v42 = vsel %vm16843_vm13, %v12681_v31, 0.0  ;;  %v2893_v59 = vmul.f32 %v12681_v31, %v12681_v31  ;;  %vm16874_vm13 = vmmov %vm16773_vm0 }
 0x749   : > { %2931 = vadd.xlane.f32.xlu1 %v2930_v54  ;;  %v2781_v12 = vsel %vm16842_vm12, %v12685_v63, 0.0  ;;  %v2896_v47 = vmul.f32 %v12685_v63, %v12685_v63  ;;  %v2939_v34 = vsel %vm16848_vm15, %v2895_v26, 0.0  ;;  %vm16873_vm12 = vmmov %vm16773_vm0 }
 0x74a   : > { %v9251_v35 = vpop.f32.mrb[72].mxu0  ;;  %v2775_v39 = vsel %vm16844_vm14, %v12692_v13, 0.0  ;;  %v2894_v16 = vmul.f32 %v12692_v13, %v12692_v13  ;;  %v2933_v46 = vsel %vm16773_vm0, %v2893_v59, 0.0  ;;  %v16864_v59 = vld [vmem:[#allocation43_spill] sm:$0xff]  ;;  %vm16875_vm14 = vmmov %vm16773_vm0 }
 0x74b   : > { %v2642_v20 = vadd.f32 %v9251_v35, %v12645_v6  ;;  %v2633_v43 = vpop.f32.mrb[73].mxu0  ;;  %v2942_v17 = vsel %vm16850_vm1, %v2896_v47, 0.0  ;;  %vm16879_vm15 = vmmov %vm16773_vm0 }
 0x74c   : > { %v2634_v7 = vadd.f32 %v2633_v43, %v12645_v6  ;;  %v9252_v23 = vpop.f32.mrb[74].mxu0  ;;  %2922 = vadd.xlane.f32.xlu0 %v2921_v33  ;;  %v2936_v54 = vsel %vm16851_vm2, %v2894_v16, 0.0  ;;  %v16853_v33 = vld [vmem:[#allocation40_spill] sm:$0xff]  ;;  %vm16881_vm1 = vmmov %vm16773_vm0 }
 0x74d   : > { %v12702_v1 = vadd.f32 %v2642_v20, %v16837_v22  ;;  %v2645_v49 = vadd.f32 %v9252_v23, %v12645_v6  ;;  %v2636_v60 = vpop.f32.mrb[75].mxu0  ;;  %2925 = vadd.xlane.f32.xlu1 %v2924_v30  ;;  %v16854_v30 = vld [vmem:[#allocation41_spill] sm:$0xff]  ;;  %vm16882_vm2 = vmmov %vm16773_vm0 }
 0x74e   : > { %v12706_v58 = vadd.f32 %v2634_v7, %v16838_v36  ;;  %v2637_v21 = vadd.f32 %v2636_v60, %v12645_v6  ;;  %v16856_v60 = vld [vmem:[#allocation39_spill] sm:$0xff] }
 0x74f   : > { %v12710_v24 = vadd.f32 %v16839_v14, %v2645_v49  ;;  %v2790_v49 = vsel %vm16855_vm3, %v12702_v1, 0.0  ;;  %vm16883_vm3 = vmmov %vm16773_vm0 }
 0x750   : > { %v12715_v51 = vadd.f32 %v16841_v45, %v2637_v21  ;;  %2779 = vadd.xlane.f32.xlu0 %v2778_v57 }
 0x751   : > { %2782 = vadd.xlane.f32.xlu1 %v2781_v12  ;;  %v2793_v21 = vsel %vm16857_vm4, %v12710_v24, 0.0  ;;  %v2784_v12 = vsel %vm16858_vm5, %v12706_v58, 0.0  ;;  %v2900_v26 = vmul.f32 %v12710_v24, %v12710_v24  ;;  %vm16884_vm4 = vmmov %vm16773_vm0 }
 0x752   : > { %v9255_v44 = vpop.f32.mrb[76].mxu0  ;;  %v2898_v16 = vmul.f32 %v12715_v51, %v12715_v51  ;;  %vm16885_vm5 = vmmov %vm16773_vm0 }
 0x753   : > { %v2658_v9 = vadd.f32 %v9255_v44, %v12645_v6  ;;  %v2649_v15 = vpop.f32.mrb[77].mxu0  ;;  %v2899_v44 = vmul.f32 %v12702_v1, %v12702_v1 }
 0x754   : > { %v2650_v32 = vadd.f32 %v2649_v15, %v12645_v6  ;;  %v9256_v29 = vpop.f32.mrb[78].mxu0  ;;  %2773 = vadd.xlane.f32.xlu0 %v2772_v42  ;;  %v2787_v42 = vsel %vm16859_vm6, %v12715_v51, 0.0  ;;  %vm16886_vm6 = vmmov %vm16773_vm0 }
 0x755   : > { %v12730_v10 = vadd.f32 %v2658_v9, %v16845_v5  ;;  %v2661_v4 = vadd.f32 %v9256_v29, %v12645_v6  ;;  %v2652_v56 = vpop.f32.mrb[79].mxu0  ;;  %2776 = vadd.xlane.f32.xlu1 %v2775_v39  ;;  %v16861_v5 = vld [vmem:[#allocation44_spill] sm:$0xff] }
 0x756   : > { %v12734_v8 = vadd.f32 %v2650_v32, %v16846_v48  ;;  %v2653_v52 = vadd.f32 %v2652_v56, %v12645_v6  ;;  %v16860_v32 = vld [vmem:[#allocation46_spill] sm:$0xff]  ;;  %v16862_v48 = vld [vmem:[#allocation45_spill] sm:$0xff] }
 0x757   : > { %v12738_v11 = vadd.f32 %v16847_v18, %v2661_v4  ;;  %v2951_v18 = vsel %vm16863_vm7, %v2899_v44, 0.0  ;;  %vm16887_vm7 = vmmov %vm16773_vm0 }
 0x758   : > { %v12744_v55 = vadd.f32 %v16849_v27, %v2653_v52  ;;  %2940 = vadd.xlane.f32.xlu0 %v2939_v34  ;;  %v2897_v34 = vmul.f32 %v12706_v58, %v12706_v58 }
 0x759   : > { %2943 = vadd.xlane.f32.xlu1 %v2942_v17  ;;  %v2954_v17 = vsel %vm16865_vm8, %v2900_v26, 0.0  ;;  %v2805_v44 = vsel %vm16873_vm12, %v12738_v11, 0.0  ;;  %v2796_v26 = vsel %vm16874_vm13, %v12734_v8, 0.0  ;;  %vm16888_vm8 = vmmov %vm16773_vm0 }
 0x75a   : > { %v9259_v0 = vpop.f32.mrb[80].mxu0  ;;  %vm16892_vm12 = vmmov %vm16773_vm0 }
 0x75b   : > { %v2674_v19 = vadd.f32 %v9259_v0, %v12645_v6  ;;  %v2665_v37 = vpop.f32.mrb[81].mxu0  ;;  %vm16893_vm13 = vmmov %vm16773_vm0 }
 0x75c   : > { %v2666_v53 = vadd.f32 %v2665_v37, %v12645_v6  ;;  %v9260_v25 = vpop.f32.mrb[82].mxu0  ;;  %2934 = vadd.xlane.f32.xlu0 %v2933_v46  ;;  %v2945_v46 = vsel %vm16866_vm9, %v2897_v34, 0.0  ;;  %vm16889_vm9 = vmmov %vm16773_vm0 }
 0x75d   : > { %v12754_v35 = vadd.f32 %v2674_v19, %v16852_v28  ;;  %v2677_v20 = vadd.f32 %v9260_v25, %v12645_v6  ;;  %v2668_v43 = vpop.f32.mrb[83].mxu0  ;;  %2937 = vadd.xlane.f32.xlu1 %v2936_v54  ;;  %v2948_v54 = vsel %vm16867_vm10, %v2898_v16, 0.0  ;;  %v9939_v28 = vld [vmem:[#allocation8 + $0x8] sm:$0xff]   ;;  %vm16890_vm10 = vmmov %vm16773_vm0 }
 0x75e   : > { %v12758_v7 = vadd.f32 %v2666_v53, %v16853_v33  ;;  %v2669_v23 = vadd.f32 %v2668_v43, %v12645_v6  ;;  %9275 = vmatprep.subr.bf16.mxu1 %v9939_v28 }
 0x75f   : > { %v12762_v22 = vadd.f32 %v16854_v30, %v2677_v20  ;;  %v16868_v20 = vld [vmem:[#allocation50_spill] sm:$0xff]  ;;  %v16869_v30 = vld [vmem:[#allocation48_spill] sm:$0xff]  ;;  %9276 = vmatpush3.bf16.msra.mxu1 %v9939_v28 }
 0x760   : > { %v12767_v36 = vadd.f32 %v16856_v60, %v2669_v23  ;;  %2791 = vadd.xlane.f32.xlu0 %v2790_v49 }
 0x761   : > { %2794 = vadd.xlane.f32.xlu1 %v2793_v21  ;;  %v16870_v21 = vld [vmem:[#allocation49_spill] sm:$0xff] }
 0x762   : > { %v9263_v14 = vpop.f32.mrb[84].mxu0 }
 0x763   : > { %v2690_v57 = vadd.f32 %v9263_v14, %v12645_v6  ;;  %v2681_v45 = vpop.f32.mrb[85].mxu0 }
 0x764   : > { %v2682_v9 = vadd.f32 %v2681_v45, %v12645_v6  ;;  %v9264_v15 = vpop.f32.mrb[86].mxu0  ;;  %2785 = vadd.xlane.f32.xlu0 %v2784_v12  ;;  %v16872_v45 = vld [vmem:[#allocation47_spill] sm:$0xff] }
 0x765   : > { %v12782_v29 = vadd.f32 %v2690_v57, %v16860_v32  ;;  %v2693_v39 = vadd.f32 %v9264_v15, %v12645_v6  ;;  %v2684_v47 = vpop.f32.mrb[87].mxu0  ;;  %2788 = vadd.xlane.f32.xlu1 %v2787_v42  ;;  %v2802_v57 = vsel %vm16871_vm11, %v12730_v10, 0.0  ;;  %v2903_v32 = vmul.f32 %v12730_v10, %v12730_v10  ;;  %vm16891_vm11 = vmmov %vm16773_vm0 }
 0x766   : > { %v12786_v4 = vadd.f32 %v2682_v9, %v16861_v5  ;;  %v2685_v56 = vadd.f32 %v2684_v47, %v12645_v6  ;;  %v2799_v5 = vsel %vm16875_vm14, %v12744_v55, 0.0  ;;  %vm16894_vm14 = vmmov %vm16773_vm0 }
 0x767   : > { %v12790_v52 = vadd.f32 %v16862_v48, %v2693_v39  ;;  %v16876_v48 = vld [vmem:[#allocation54_spill] sm:$0xff] }
 0x768   : > { %v12796_v27 = vadd.f32 %v16864_v59, %v2685_v56  ;;  %2952 = vadd.xlane.f32.xlu0 %v2951_v18  ;;  %v2904_v56 = vmul.f32 %v12738_v11, %v12738_v11 }
 0x769   : > { %2955 = vadd.xlane.f32.xlu1 %v2954_v17  ;;  %v16877_v17 = vld [vmem:[#allocation52_spill] sm:$0xff] }
 0x76a   : > { %v9267_v0 = vpop.f32.mrb[88].mxu0  ;;  %v2966_v28 = vsel %vm16881_vm1, %v2904_v56, 0.0  ;;  %v2911_v56 = vmul.f32 %v12782_v29, %v12782_v29  ;;  %vm16896_vm1 = vmmov %vm16773_vm0 }
 0x76b   : > { %v2706_v19 = vadd.f32 %v9267_v0, %v12645_v6  ;;  %v2697_v37 = vpop.f32.mrb[89].mxu0 }
 0x76c   : > { %v2698_v53 = vadd.f32 %v2697_v37, %v12645_v6  ;;  %v9268_v25 = vpop.f32.mrb[90].mxu0  ;;  %2946 = vadd.xlane.f32.xlu0 %v2945_v46  ;;  %v2963_v46 = vsel %vm16879_vm15, %v2903_v32, 0.0  ;;  %vm16895_vm15 = vmmov %vm16773_vm0 }
 0x76d   : > { %v12806_v43 = vadd.f32 %v2706_v19, %v16868_v20  ;;  %v2709_v33 = vadd.f32 %v9268_v25, %v12645_v6  ;;  %v2700_v23 = vpop.f32.mrb[91].mxu0  ;;  %2949 = vadd.xlane.f32.xlu1 %v2948_v54  ;;  %v16878_v19 = vld [vmem:[#allocation53_spill] sm:$0xff]  ;;  %v16880_v25 = vld [vmem:[#allocation51_spill] sm:$0xff]  ;;  %v2902_v20 = vmul.f32 %v12744_v55, %v12744_v55 }
 0x76e   : > { %v12810_v49 = vadd.f32 %v2698_v53, %v16869_v30  ;;  %v2701_v60 = vadd.f32 %v2700_v23, %v12645_v6  ;;  %v2901_v53 = vmul.f32 %v12734_v8, %v12734_v8  ;;  %v2814_v23 = vsel %vm16883_vm3, %v12754_v35, 0.0  ;;  %vm16898_vm3 = vmmov %vm16773_vm0 }
 0x76f   : > { %v12814_v14 = vadd.f32 %v16870_v21, %v2709_v33  ;;  %v2960_v33 = vsel %vm16882_vm2, %v2902_v20, 0.0  ;;  %v2817_v30 = vsel %vm16884_vm4, %v12762_v22, 0.0  ;;  %v2907_v21 = vmul.f32 %v12754_v35, %v12754_v35  ;;  %vm16897_vm2 = vmmov %vm16773_vm0 }
 0x770   : > { %v12819_v12 = vadd.f32 %v16872_v45, %v2701_v60  ;;  %2803 = vadd.xlane.f32.xlu0 %v2802_v57  ;;  %v2808_v60 = vsel %vm16885_vm5, %v12758_v7, 0.0  ;;  %v2811_v57 = vsel %vm16886_vm6, %v12767_v36, 0.0  ;;  %v2908_v45 = vmul.f32 %v12762_v22, %v12762_v22  ;;  %vm16899_vm4 = vmmov %vm16773_vm0 }
 0x771   : > { %2806 = vadd.xlane.f32.xlu1 %v2805_v44  ;;  %v2975_v44 = vsel %vm16887_vm7, %v2907_v21, 0.0  ;;  %vm16900_vm5 = vmmov %vm16773_vm0 }
 0x772   : > { %v9271_v9 = vpop.f32.mrb[92].mxu0  ;;  %v2832_v20 = vsel %vm16900_vm5, %v12810_v49, 0.0  ;;  %vm16901_vm6 = vmmov %vm16773_vm0 }
 0x773   : > { %v2722_v15 = vadd.f32 %v9271_v9, %v12645_v6  ;;  %v2713_v42 = vpop.f32.mrb[93].mxu0  ;;  %v2905_v9 = vmul.f32 %v12758_v7, %v12758_v7  ;;  %vm16902_vm7 = vmmov %vm16773_vm0 }
 0x774   : > { %v2714_v39 = vadd.f32 %v2713_v42, %v12645_v6  ;;  %2797 = vadd.xlane.f32.xlu0 %v2796_v26  ;;  %v9272_v47 = vpop.f32.mrb[94].mxu0  ;;  %v2906_v42 = vmul.f32 %v12767_v36, %v12767_v36  ;;  %vm16916_vm5 = vmmov %vm16773_vm0 }
 0x775   : > { %v12834_v18 = vadd.f32 %v2722_v15, %v16876_v48  ;;  %v2725_v34 = vadd.f32 %v9272_v47, %v12645_v6  ;;  %2800 = vadd.xlane.f32.xlu1 %v2799_v5  ;;  %v2716_v59 = vpop.f32.mrb[95].mxu0  ;;  %v2978_v15 = vsel %vm16888_vm8, %v2908_v45, 0.0  ;;  %v2969_v26 = vsel %vm16889_vm9, %v2905_v9, 0.0  ;;  %vm16903_vm8 = vmmov %vm16773_vm0 }
 0x776   : > { %v12838_v16 = vadd.f32 %v2714_v39, %v16877_v17  ;;  %v2717_v0 = vadd.f32 %v2716_v59, %v12645_v6  ;;  %v2957_v6 = vsel %vm16773_vm0, %v2901_v53, 0.0  ;;  %v2972_v32 = vsel %vm16890_vm10, %v2906_v42, 0.0  ;;  %vm16904_vm9 = vmmov %vm16773_vm0 }
 0x777   : > { %v12842_v37 = vadd.f32 %v16878_v19, %v2725_v34  ;;  %v2826_v39 = vsel %vm16891_vm11, %v12782_v29, 0.0  ;;  %v2829_v47 = vsel %vm16892_vm12, %v12790_v52, 0.0  ;;  %v2820_v5 = vsel %vm16893_vm13, %v12786_v4, 0.0  ;;  %vm16905_vm10 = vmmov %vm16773_vm0 }
 0x778   : > { %v12848_v54 = vadd.f32 %v16880_v25, %v2717_v0  ;;  %2964 = vadd.xlane.f32.xlu0 %v2963_v46  ;;  %v2823_v48 = vsel %vm16894_vm14, %v12796_v27, 0.0  ;;  %v2912_v34 = vmul.f32 %v12790_v52, %v12790_v52  ;;  %v2987_v59 = vsel %vm16895_vm15, %v2911_v56, 0.0  ;;  %vm16906_vm11 = vmmov %vm16773_vm0 }
 0x779   : > { %2967 = vadd.xlane.f32.xlu1 %v2966_v28  ;;  %v2909_v17 = vmul.f32 %v12786_v4, %v12786_v4  ;;  %v2910_v19 = vmul.f32 %v12796_v27, %v12796_v27  ;;  %v2838_v25 = vsel %vm16898_vm3, %v12806_v43, 0.0  ;;  %v2841_v28 = vsel %vm16899_vm4, %v12814_v14, 0.0  ;;  %vm16907_vm12 = vmmov %vm16773_vm0 }
 0x77a   : > { %v2990_v0 = vsel %vm16896_vm1, %v2912_v34, 0.0  ;;  %v2850_v9 = vsel %vm16906_vm11, %v12834_v18, 0.0  ;;  %vm16908_vm13 = vmmov %vm16773_vm0 }
 0x77b   : > { %v2981_v46 = vsel %vm16773_vm0, %v2909_v17, 0.0  ;;  %v2984_v53 = vsel %vm16897_vm2, %v2910_v19, 0.0  ;;  %v2844_v42 = vsel %vm16908_vm13, %v12838_v16, 0.0  ;;  %vm16909_vm14 = vmmov %vm16773_vm0 }
 0x77c   : > { %2958 = vadd.xlane.f32.xlu0 %v2957_v6  ;;  %v2915_v6 = vmul.f32 %v12806_v43, %v12806_v43  ;;  %vm16910_vm15 = vmmov %vm16773_vm0 }
 0x77d   : > { %2961 = vadd.xlane.f32.xlu1 %v2960_v33  ;;  %v2835_v33 = vsel %vm16901_vm6, %v12819_v12, 0.0  ;;  %vm16911_vm1 = vmmov %vm16773_vm0 }
 0x77e   : > { %vm16912_vm2 = vmmov %vm16773_vm0 }
 0x77f   : > { %vm16914_vm3 = vmmov %vm16773_vm0 }
 0x780   : > { %2815 = vadd.xlane.f32.xlu0 %v2814_v23  ;;  %v2916_v23 = vmul.f32 %v12814_v14, %v12814_v14  ;;  %vm16915_vm4 = vmmov %vm16773_vm0 }
 0x781   : > { %2818 = vadd.xlane.f32.xlu1 %v2817_v30  ;;  %v2999_v30 = vsel %vm16902_vm7, %v2915_v6, 0.0  ;;  %vm16917_vm6 = vmmov %vm16773_vm0 }
 0x782   : > { %v3002_v21 = vsel %vm16903_vm8, %v2916_v23, 0.0  ;;  %vm16918_vm7 = vmmov %vm16773_vm0 }
 0x783   : > { %vm16919_vm8 = vmmov %vm16773_vm0 }
 0x784   : > { %2809 = vadd.xlane.f32.xlu0 %v2808_v60  ;;  %v2913_v60 = vmul.f32 %v12810_v49, %v12810_v49  ;;  %vm16922_vm11 = vmmov %vm16773_vm0 }
 0x785   : > { %2812 = vadd.xlane.f32.xlu1 %v2811_v57  ;;  %v2914_v57 = vmul.f32 %v12819_v12, %v12819_v12  ;;  %vm16924_vm13 = vmmov %vm16773_vm0 }
 0x786   : > { %v2993_v45 = vsel %vm16904_vm9, %v2913_v60, 0.0  ;;  %vm16920_vm9 = vmmov %vm16773_vm0 }
 0x788   : > { %2976 = vadd.xlane.f32.xlu0 %v2975_v44  ;;  %v2996_v44 = vsel %vm16905_vm10, %v2914_v57, 0.0  ;;  %vm16921_vm10 = vmmov %vm16773_vm0 }
 0x789   : > { %2979 = vadd.xlane.f32.xlu1 %v2978_v15  ;;  %v2853_v15 = vsel %vm16907_vm12, %v12842_v37, 0.0  ;;  %vm16923_vm12 = vmmov %vm16773_vm0 }
 0x78c   : > { %2970 = vadd.xlane.f32.xlu0 %v2969_v26  ;;  %v2917_v26 = vmul.f32 %v12838_v16, %v12838_v16 }
 0x78d   : > { %2973 = vadd.xlane.f32.xlu1 %v2972_v32  ;;  %v2847_v32 = vsel %vm16909_vm14, %v12848_v54, 0.0  ;;  %vm16925_vm14 = vmmov %vm16773_vm0 }
 0x790   : > { %2827 = vadd.xlane.f32.xlu0 %v2826_v39  ;;  %v2918_v39 = vmul.f32 %v12848_v54, %v12848_v54 }
 0x791   : > { %2830 = vadd.xlane.f32.xlu1 %v2829_v47  ;;  %v3005_v47 = vsel %vm16910_vm15, %v2917_v26, 0.0  ;;  %vm16926_vm15 = vmmov %vm16773_vm0 }
 0x792   : > { %v3008_v56 = vsel %vm16911_vm1, %v2918_v39, 0.0  ;;  %vm16927_vm1 = vmmov %vm16773_vm0 }
 0x794   : > { %2821 = vadd.xlane.f32.xlu0 %v2820_v5  ;;  %v2919_v5 = vmul.f32 %v12834_v18, %v12834_v18 }
 0x795   : > { %2824 = vadd.xlane.f32.xlu1 %v2823_v48  ;;  %v2920_v48 = vmul.f32 %v12842_v37, %v12842_v37 }
 0x796   : > { %v3011_v34 = vsel %vm16773_vm0, %v2919_v5, 0.0 }
 0x798   : > { %2988 = vadd.xlane.f32.xlu0 %v2987_v59  ;;  %v3014_v59 = vsel %vm16912_vm2, %v2920_v48, 0.0  ;;  %vm16928_vm2 = vmmov %vm16773_vm0 }
 0x799   : > { %2991 = vadd.xlane.f32.xlu1 %v2990_v0 }
 0x79c   : > { %2982 = vadd.xlane.f32.xlu0 %v2981_v46 }
 0x79d   : > { %2985 = vadd.xlane.f32.xlu1 %v2984_v53 }
 0x7a0   : > { %2839 = vadd.xlane.f32.xlu0 %v2838_v25 }
 0x7a1   : > { %2842 = vadd.xlane.f32.xlu1 %v2841_v28 }
 0x7a4   : > { %2833 = vadd.xlane.f32.xlu0 %v2832_v20 }
 0x7a5   : > { %2836 = vadd.xlane.f32.xlu1 %v2835_v33 }
 0x7a8   : > { %3000 = vadd.xlane.f32.xlu0 %v2999_v30 }
 0x7a9   : > { %3003 = vadd.xlane.f32.xlu1 %v3002_v21 }
 0x7ac   : > { %2994 = vadd.xlane.f32.xlu0 %v2993_v45 }
 0x7ad   : > { %2997 = vadd.xlane.f32.xlu1 %v2996_v44 }
 0x7b0   : > { %2851 = vadd.xlane.f32.xlu0 %v2850_v9 }
 0x7b1   : > { %2854 = vadd.xlane.f32.xlu1 %v2853_v15 }
 0x7b4   : > { %2845 = vadd.xlane.f32.xlu0 %v2844_v42 }
 0x7b5   : > { %2848 = vadd.xlane.f32.xlu1 %v2847_v32 }
 0x7b8   : > { %3006 = vadd.xlane.f32.xlu0 %v3005_v47 }
 0x7b9   : > { %3009 = vadd.xlane.f32.xlu1 %v3008_v56 }
 0x7bc   : > { %3012 = vadd.xlane.f32.xlu0 %v3011_v34 }
 0x7bd   : > { %3015 = vadd.xlane.f32.xlu1 %v3014_v59 }
 0x7cd   : > { %v2768_v17 = vpop.xlane.xlu0 %2767 }
 0x7ce   : > { %v12935_v0 = vmul.f32 0.03125, %v2768_v17  ;;  %v2762_v19 = vpop.xlane.xlu1 %2761 }
 0x7cf   : > { %v12939_v23 = vmul.f32 0.03125, %v2762_v19 }
 0x7d0   : > { %v3051_v53 = vmul.f32 %v12935_v0, %v12935_v0 }
 0x7d1   : > { %v2929_v46 = vpop.xlane.xlu0 %2928  ;;  %v3049_v15 = vmul.f32 %v12939_v23, %v12939_v23 }
 0x7d2   : > { %v3019_v25 = vmul.f32 0.03125, %v2929_v46  ;;  %v2771_v28 = vpop.xlane.xlu1 %2770 }
 0x7d3   : > { %v2860_v20 = vmul.f32 0.03125, %v2771_v28 }
 0x7d4   : > { %v3083_v6 = vsub.f32 %v3019_v25, %v3051_v53 }
 0x7d5   : > { %v2765_v33 = vpop.xlane.xlu0 %2764  ;;  %v3052_v21 = vmul.f32 %v2860_v20, %v2860_v20 }
 0x7d6   : > { %v3115_v30 = vmax.f32 %v3083_v6, 0.0  ;;  %v2932_v60 = vpop.xlane.xlu1 %2931  ;;  %v12941_v57 = vmul.f32 0.03125, %v2765_v33 }
 0x7d7   : > { %v3020_v45 = vmul.f32 0.03125, %v2932_v60  ;;  %v16515_v60 = vsub.s32 2, %v12634_v50 }
 0x7d8   : > { %v3179_v42 = vadd.f32 1e-05, %v3115_v30  ;;  %v3050_v39 = vmul.f32 %v12941_v57, %v12941_v57 }
 0x7d9   : > { %v3084_v44 = vsub.f32 %v3020_v45, %v3052_v21  ;;  %v2923_v9 = vpop.xlane.xlu0 %2922 }
 0x7da   : > { %v3017_v26 = vmul.f32 0.03125, %v2923_v9  ;;  %v2926_v32 = vpop.xlane.xlu1 %2925  ;;  %10148 = vrsqrt.f32 %v3179_v42  ;;  %v9940_v42 = vld [vmem:[%s16913_s17] sm:$0xff]  }
 0x7db   : > { %v3116_v47 = vmax.f32 %v3084_v44, 0.0  ;;  %v3018_v5 = vmul.f32 0.03125, %v2926_v32  ;;  %9309 = vmatprep.subr.bf16.mxu0 %v9940_v42 }
 0x7dc   : > { %v3081_v56 = vsub.f32 %v3017_v26, %v3049_v15  ;;  %v9941_v26 = vld [vmem:[%s16913_s17 + $0x8] sm:$0xff]   ;;  %9310 = vmatpush3.bf16.msra.mxu0 %v9940_v42 }
 0x7dd   : > { %v3180_v48 = vadd.f32 1e-05, %v3116_v47  ;;  %v3082_v34 = vsub.f32 %v3018_v5, %v3050_v39  ;;  %v2780_v59 = vpop.xlane.xlu0 %2779  ;;  %9311 = vmatprep.subr.bf16.mxu0 %v9941_v26 }
 0x7de   : > { %v3113_v17 = vmax.f32 %v3081_v56, 0.0  ;;  %v2783_v19 = vpop.xlane.xlu1 %2782  ;;  %v12947_v6 = vmul.f32 0.03125, %v2780_v59  ;;  %v12969_v56 = vrot.slane %v12640_v62, %v16515_v60 }
 0x7df   : > { %10150 = vrsqrt.f32 %v3180_v48  ;;  %v3114_v46 = vmax.f32 %v3082_v34, 0.0  ;;  %v12949_v30 = vmul.f32 0.03125, %v2783_v19  ;;  %v3148_v48 = vsub.f32 %v12658_v61, %v2860_v20 }
 0x7e0   : > { %v3177_v53 = vadd.f32 1e-05, %v3113_v17  ;;  %v3055_v45 = vmul.f32 %v12947_v6, %v12947_v6  ;;  %v3147_v17 = vsub.f32 %v12650_v2, %v12935_v0  ;;  %v3145_v19 = vsub.f32 %v12654_v3, %v12939_v23  ;;  %v9942_v2 = vld [vmem:[%s16913_s17 + $0x10] sm:$0xff]   ;;  %9312 = vmatpush3.bf16.msra.mxu0 %v9941_v26 }
 0x7e1   : > { %v3178_v25 = vadd.f32 1e-05, %v3114_v46  ;;  %v2774_v28 = vpop.xlane.xlu0 %2773  ;;  %v3056_v32 = vmul.f32 %v12949_v30, %v12949_v30  ;;  %9313 = vmatprep.subr.bf16.mxu0 %v9942_v2 }
 0x7e2   : > { %10152 = vrsqrt.f32 %v3177_v53  ;;  %v2777_v33 = vpop.xlane.xlu1 %2776  ;;  %v12954_v44 = vmul.f32 0.03125, %v2774_v28 }
 0x7e3   : > { %10154 = vrsqrt.f32 %v3178_v25  ;;  %v12964_v39 = vmul.f32 0.03125, %v2777_v33  ;;  %v16518_v25 = vsub.s32 3, %v12634_v50 }
 0x7e4   : > { %v10149_v5 = vpop.eup %10148  ;;  %v3053_v33 = vmul.f32 %v12954_v44, %v12954_v44  ;;  %9314 = vmatpush3.bf16.msra.mxu0 %v9942_v2 }
 0x7e5   : > { %v2941_v21 = vpop.xlane.xlu0 %2940  ;;  %v3243_v0 = vmul.f32 %v10149_v5, %v3147_v17  ;;  %v3054_v3 = vmul.f32 %v12964_v39, %v12964_v39  ;;  %v12989_v5 = vrot.slane %v12640_v62, %v16518_v25 }
 0x7e6   : > { %v3023_v9 = vmul.f32 0.03125, %v2941_v21  ;;  %v2944_v15 = vpop.xlane.xlu1 %2943 }
 0x7e7   : > { %v3024_v47 = vmul.f32 0.03125, %v2944_v15  ;;  %v3146_v15 = vsub.f32 %v12665_v41, %v12941_v57  ;;  %v3279_v41 = vmul.f32 %v12969_v56, %v3243_v0 }
 0x7e8   : > { %v3087_v34 = vsub.f32 %v3023_v9, %v3055_v45 }
 0x7e9   : > { %v10151_v59 = vpop.eup %10150  ;;  %v3088_v46 = vsub.f32 %v3024_v47, %v3056_v32  ;;  %v2935_v53 = vpop.xlane.xlu0 %2934 }
 0x7ea   : > { %v3244_v28 = vmul.f32 %v10151_v59, %v3148_v48  ;;  %v3119_v21 = vmax.f32 %v3087_v34, 0.0  ;;  %v3021_v61 = vmul.f32 0.03125, %v2935_v53  ;;  %v2938_v20 = vpop.xlane.xlu1 %2937 }
 0x7eb   : > { %v3120_v23 = vmax.f32 %v3088_v46, 0.0  ;;  %v3022_v45 = vmul.f32 0.03125, %v2938_v20 }
 0x7ec   : > { %v10153_v9 = vpop.eup %10152  ;;  %v3183_v42 = vadd.f32 1e-05, %v3119_v21  ;;  %v3085_v32 = vsub.f32 %v3021_v61, %v3053_v33  ;;  %v3280_v17 = vmul.f32 %v12969_v56, %v3244_v28 }
 0x7ed   : > { %v10155_v47 = vpop.eup %10154  ;;  %v3184_v48 = vadd.f32 1e-05, %v3120_v23  ;;  %v3086_v34 = vsub.f32 %v3022_v45, %v3054_v3  ;;  %v2792_v59 = vpop.xlane.xlu0 %2791  ;;  %v3241_v53 = vmul.f32 %v10153_v9, %v3145_v19 }
 0x7ee   : > { %10156 = vrsqrt.f32 %v3183_v42  ;;  %v3117_v46 = vmax.f32 %v3085_v32, 0.0  ;;  %v2795_v20 = vpop.xlane.xlu1 %2794  ;;  %v3242_v60 = vmul.f32 %v10155_v47, %v3146_v15  ;;  %v12998_v28 = vmul.f32 0.03125, %v2792_v59 }
 0x7ef   : > { %10158 = vrsqrt.f32 %v3184_v48  ;;  %v3118_v57 = vmax.f32 %v3086_v34, 0.0  ;;  %v3277_v33 = vmul.f32 %v12969_v56, %v3241_v53  ;;  %v13004_v0 = vadd.f32 %v12989_v5, %v3280_v17 }
 0x7f0   : > { %v3181_v19 = vadd.f32 1e-05, %v3117_v46  ;;  %v3278_v21 = vmul.f32 %v12969_v56, %v3242_v60  ;;  %v13006_v45 = vmul.f32 0.03125, %v2795_v20  ;;  %v13009_v60 = vadd.f32 %v12989_v5, %v3279_v41 }
 0x7f1   : > { %v3182_v61 = vadd.f32 1e-05, %v3118_v57  ;;  %v2786_v62 = vpop.xlane.xlu0 %2785  ;;  %v12996_v26 = vadd.f32 %v12989_v5, %v3277_v33  ;;  %v3059_v42 = vmul.f32 %v12998_v28, %v12998_v28  ;;  %v3151_v34 = vsub.f32 %v12677_v38, %v12947_v6 }
 0x7f2   : > { %10160 = vrsqrt.f32 %v3181_v19  ;;  %v2789_v3 = vpop.xlane.xlu1 %2788  ;;  %v13001_v23 = vadd.f32 %v12989_v5, %v3278_v21  ;;  %v3346_v15 = vpack.c.bf16 %v13004_v0, %v13009_v60  ;;  %v13017_v32 = vmul.f32 0.03125, %v2786_v62 }
 0x7f3   : > { %10162 = vrsqrt.f32 %v3182_v61  ;;  %v3060_v59 = vmul.f32 %v13006_v45, %v13006_v45  ;;  %v13024_v53 = vmul.f32 0.03125, %v2789_v3  ;;  %v3152_v20 = vsub.f32 %v12685_v63, %v12949_v30 }
 0x7f4   : > { %v3345_v9 = vpack.c.bf16 %v13001_v23, %v12996_v26  ;;  %v3057_v38 = vmul.f32 %v13017_v32, %v13017_v32 }
 0x7f5   : > { %v2953_v2 = vpop.xlane.xlu0 %2952 }
 0x7f6   : > { %v3027_v47 = vmul.f32 0.03125, %v2953_v2  ;;  %v2956_v48 = vpop.xlane.xlu1 %2955  ;;  %9277 = vmatprep.mubr.msk.bf16.mxu1 %vm16914_vm3, %v3345_v9  ;;  %v3149_v9 = vsub.f32 %v12681_v31, %v12954_v44  ;;  %v3058_v2 = vmul.f32 %v13024_v53, %v13024_v53  ;;  %vm3664_vm3 = vcmask 523264  }
 0x7f7   : > { %v3028_v17 = vmul.f32 0.03125, %v2956_v48  ;;  %9278 = vmatmul.mubr.msk.bf16.vlgmr.msra.gmra.mrb[72].mxu1 %vm16915_vm4, %v3346_v15  ;;  %vm16929_vm4 = vmmov %vm16773_vm0 }
 0x7f8   : > { %v10157_v46 = vpop.eup %10156  ;;  %v3091_v41 = vsub.f32 %v3027_v47, %v3059_v42  ;;  %v3150_v42 = vsub.f32 %v12692_v13, %v12964_v39 }
 0x7f9   : > { %v10159_v57 = vpop.eup %10158  ;;  %v3092_v33 = vsub.f32 %v3028_v17, %v3060_v59  ;;  %v2947_v19 = vpop.xlane.xlu0 %2946  ;;  %v3247_v21 = vmul.f32 %v10157_v46, %v3151_v34 }
 0x7fa   : > { %v3123_v6 = vmax.f32 %v3091_v41, 0.0  ;;  %v3025_v61 = vmul.f32 0.03125, %v2947_v19  ;;  %v2950_v62 = vpop.xlane.xlu1 %2949  ;;  %v3248_v3 = vmul.f32 %v10159_v57, %v3152_v20 }
 0x7fb   : > { %v3124_v15 = vmax.f32 %v3092_v33, 0.0  ;;  %v3026_v63 = vmul.f32 0.03125, %v2950_v62  ;;  %v3283_v20 = vmul.f32 %v12969_v56, %v3247_v21 }
 0x7fc   : > { %v10161_v30 = vpop.eup %10160  ;;  %v3187_v47 = vadd.f32 1e-05, %v3123_v6  ;;  %v3089_v48 = vsub.f32 %v3025_v61, %v3057_v38  ;;  %v3284_v33 = vmul.f32 %v12969_v56, %v3248_v3 }
 0x7fd   : > { %v10163_v34 = vpop.eup %10162  ;;  %v3188_v59 = vadd.f32 1e-05, %v3124_v15  ;;  %v3090_v17 = vsub.f32 %v3026_v63, %v3058_v2  ;;  %v2804_v46 = vpop.xlane.xlu0 %2803  ;;  %v3245_v41 = vmul.f32 %v10161_v30, %v3149_v9  ;;  %v13045_v21 = vadd.f32 %v12989_v5, %v3283_v20 }
 0x7fe   : > { %10164 = vrsqrt.f32 %v3187_v47  ;;  %v3121_v31 = vmax.f32 %v3089_v48, 0.0  ;;  %v2807_v44 = vpop.xlane.xlu1 %2806  ;;  %v3246_v57 = vmul.f32 %v10163_v34, %v3150_v42  ;;  %v13047_v9 = vmul.f32 0.03125, %v2804_v46 }
 0x7ff   : > { %10166 = vrsqrt.f32 %v3188_v59  ;;  %v3122_v19 = vmax.f32 %v3090_v17, 0.0  ;;  %v3281_v62 = vmul.f32 %v12969_v56, %v3245_v41  ;;  %v13053_v15 = vadd.f32 %v12989_v5, %v3284_v33 }
 0x800   : > { %v3185_v13 = vadd.f32 1e-05, %v3121_v31  ;;  %v3282_v39 = vmul.f32 %v12969_v56, %v3246_v57  ;;  %v13055_v63 = vmul.f32 0.03125, %v2807_v44  ;;  %v3063_v48 = vmul.f32 %v13047_v9, %v13047_v9 }
 0x801   : > { %v3186_v38 = vadd.f32 1e-05, %v3122_v19  ;;  %v2798_v6 = vpop.xlane.xlu0 %2797  ;;  %v13042_v61 = vadd.f32 %v12989_v5, %v3281_v62  ;;  %v3348_v47 = vpack.c.bf16 %v13053_v15, %v13045_v21  ;;  %v3155_v46 = vsub.f32 %v12702_v1, %v12998_v28 }
 0x802   : > { %10168 = vrsqrt.f32 %v3185_v13  ;;  %v2801_v2 = vpop.xlane.xlu1 %2800  ;;  %v13050_v3 = vadd.f32 %v12989_v5, %v3282_v39  ;;  %v13063_v34 = vmul.f32 0.03125, %v2798_v6  ;;  %v3064_v41 = vmul.f32 %v13055_v63, %v13055_v63 }
 0x803   : > { %10170 = vrsqrt.f32 %v3186_v38  ;;  %v13070_v20 = vmul.f32 0.03125, %v2801_v2  ;;  %v3156_v57 = vsub.f32 %v12710_v24, %v13006_v45 }
 0x804   : > { %v3347_v30 = vpack.c.bf16 %v13050_v3, %v13042_v61  ;;  %v3061_v1 = vmul.f32 %v13063_v34, %v13063_v34 }
 0x805   : > { %v2965_v42 = vpop.xlane.xlu0 %2964 }
 0x806   : > { %v3031_v59 = vmul.f32 0.03125, %v2965_v42  ;;  %v2968_v17 = vpop.xlane.xlu1 %2967  ;;  %9281 = vmatprep.mubr.msk.bf16.mxu1 %vm16916_vm5, %v3347_v30  ;;  %v3153_v30 = vsub.f32 %v12706_v58, %v13017_v32  ;;  %v3062_v42 = vmul.f32 %v13070_v20, %v13070_v20  ;;  %vm16930_vm5 = vmmov %vm16773_vm0 }
 0x807   : > { %v3032_v31 = vmul.f32 0.03125, %v2968_v17  ;;  %9282 = vmatmul.mubr.msk.bf16.gmra.mrb[76].mxu1 %vm16917_vm6, %v3348_v47  ;;  %vm16931_vm6 = vmmov %vm16773_vm0 }
 0x808   : > { %v10165_v44 = vpop.eup %10164  ;;  %v3095_v33 = vsub.f32 %v3031_v59, %v3063_v48  ;;  %v3154_v48 = vsub.f32 %v12715_v51, %v13024_v53 }
 0x809   : > { %v10167_v19 = vpop.eup %10166  ;;  %v3096_v62 = vsub.f32 %v3032_v31, %v3064_v41  ;;  %v2959_v13 = vpop.xlane.xlu0 %2958  ;;  %v3251_v39 = vmul.f32 %v10165_v44, %v3155_v46 }
 0x80a   : > { %v3127_v28 = vmax.f32 %v3095_v33, 0.0  ;;  %v3029_v38 = vmul.f32 0.03125, %v2959_v13  ;;  %v2962_v6 = vpop.xlane.xlu1 %2961  ;;  %v3252_v2 = vmul.f32 %v10167_v19, %v3156_v57 }
 0x80b   : > { %v3128_v47 = vmax.f32 %v3096_v62, 0.0  ;;  %v3030_v24 = vmul.f32 0.03125, %v2962_v6  ;;  %v3287_v57 = vmul.f32 %v12969_v56, %v3251_v39 }
 0x80c   : > { %v10169_v45 = vpop.eup %10168  ;;  %v3191_v59 = vadd.f32 1e-05, %v3127_v28  ;;  %v3093_v17 = vsub.f32 %v3029_v38, %v3061_v1  ;;  %v3288_v62 = vmul.f32 %v12969_v56, %v3252_v2 }
 0x80d   : > { %v10171_v46 = vpop.eup %10170  ;;  %v3192_v41 = vadd.f32 1e-05, %v3128_v47  ;;  %v3094_v31 = vsub.f32 %v3030_v24, %v3062_v42  ;;  %v2816_v44 = vpop.xlane.xlu0 %2815  ;;  %v3249_v33 = vmul.f32 %v10169_v45, %v3153_v30  ;;  %v13091_v39 = vadd.f32 %v12989_v5, %v3287_v57 }
 0x80e   : > { %10172 = vrsqrt.f32 %v3191_v59  ;;  %v3125_v58 = vmax.f32 %v3093_v17, 0.0  ;;  %v2819_v32 = vpop.xlane.xlu1 %2818  ;;  %v3250_v19 = vmul.f32 %v10171_v46, %v3154_v48  ;;  %v13093_v30 = vmul.f32 0.03125, %v2816_v44 }
 0x80f   : > { %10174 = vrsqrt.f32 %v3192_v41  ;;  %v3126_v13 = vmax.f32 %v3094_v31, 0.0  ;;  %v3285_v6 = vmul.f32 %v12969_v56, %v3249_v33  ;;  %v13099_v47 = vadd.f32 %v12989_v5, %v3288_v62 }
 0x810   : > { %v3189_v51 = vadd.f32 1e-05, %v3125_v58  ;;  %v3286_v53 = vmul.f32 %v12969_v56, %v3250_v19  ;;  %v13101_v24 = vmul.f32 0.03125, %v2819_v32  ;;  %v3067_v17 = vmul.f32 %v13093_v30, %v13093_v30 }
 0x811   : > { %v3190_v1 = vadd.f32 1e-05, %v3126_v13  ;;  %v2810_v28 = vpop.xlane.xlu0 %2809  ;;  %v13088_v38 = vadd.f32 %v12989_v5, %v3285_v6  ;;  %v3350_v59 = vpack.c.bf16 %v13099_v47, %v13091_v39  ;;  %v3159_v44 = vsub.f32 %v12730_v10, %v13047_v9 }
 0x812   : > { %10176 = vrsqrt.f32 %v3189_v51  ;;  %v2813_v42 = vpop.xlane.xlu1 %2812  ;;  %v13096_v2 = vadd.f32 %v12989_v5, %v3286_v53  ;;  %v13109_v46 = vmul.f32 0.03125, %v2810_v28  ;;  %v3068_v33 = vmul.f32 %v13101_v24, %v13101_v24 }
 0x813   : > { %10178 = vrsqrt.f32 %v3190_v1  ;;  %v13116_v57 = vmul.f32 0.03125, %v2813_v42  ;;  %v3160_v19 = vsub.f32 %v12738_v11, %v13055_v63 }
 0x814   : > { %v3349_v45 = vpack.c.bf16 %v13096_v2, %v13088_v38  ;;  %v3065_v10 = vmul.f32 %v13109_v46, %v13109_v46 }
 0x815   : > { %v2977_v48 = vpop.xlane.xlu0 %2976 }
 0x816   : > { %v3035_v41 = vmul.f32 0.03125, %v2977_v48  ;;  %v2980_v31 = vpop.xlane.xlu1 %2979  ;;  %9285 = vmatprep.mubr.msk.bf16.mxu1 %vm16918_vm7, %v3349_v45  ;;  %v3157_v45 = vsub.f32 %v12734_v8, %v13063_v34  ;;  %v3066_v48 = vmul.f32 %v13116_v57, %v13116_v57  ;;  %vm16932_vm7 = vmmov %vm16773_vm0 }
 0x817   : > { %v3036_v58 = vmul.f32 0.03125, %v2980_v31  ;;  %9286 = vmatmul.mubr.msk.bf16.gmra.mrb[80].mxu1 %vm16919_vm8, %v3350_v59  ;;  %vm16933_vm8 = vmmov %vm16773_vm0 }
 0x818   : > { %v10173_v32 = vpop.eup %10172  ;;  %v3099_v62 = vsub.f32 %v3035_v41, %v3067_v17  ;;  %v3158_v17 = vsub.f32 %v12744_v55, %v13070_v20 }
 0x819   : > { %v10175_v13 = vpop.eup %10174  ;;  %v3100_v6 = vsub.f32 %v3036_v58, %v3068_v33  ;;  %v2971_v51 = vpop.xlane.xlu0 %2970  ;;  %v3255_v53 = vmul.f32 %v10173_v32, %v3159_v44 }
 0x81a   : > { %v3131_v9 = vmax.f32 %v3099_v62, 0.0  ;;  %v3033_v1 = vmul.f32 0.03125, %v2971_v51  ;;  %v2974_v28 = vpop.xlane.xlu1 %2973  ;;  %v3256_v42 = vmul.f32 %v10175_v13, %v3160_v19 }
 0x81b   : > { %v3132_v59 = vmax.f32 %v3100_v6, 0.0  ;;  %v3034_v11 = vmul.f32 0.03125, %v2974_v28  ;;  %v3291_v19 = vmul.f32 %v12969_v56, %v3255_v53 }
 0x81c   : > { %v10177_v63 = vpop.eup %10176  ;;  %v3195_v41 = vadd.f32 1e-05, %v3131_v9  ;;  %v3097_v31 = vsub.f32 %v3033_v1, %v3065_v10  ;;  %v3292_v6 = vmul.f32 %v12969_v56, %v3256_v42 }
 0x81d   : > { %v10179_v44 = vpop.eup %10178  ;;  %v3196_v33 = vadd.f32 1e-05, %v3132_v59  ;;  %v3098_v58 = vsub.f32 %v3034_v11, %v3066_v48  ;;  %v2828_v32 = vpop.xlane.xlu0 %2827  ;;  %v3253_v62 = vmul.f32 %v10177_v63, %v3157_v45  ;;  %v13137_v53 = vadd.f32 %v12989_v5, %v3291_v19 }
 0x81e   : > { %10180 = vrsqrt.f32 %v3195_v41  ;;  %v3129_v8 = vmax.f32 %v3097_v31, 0.0  ;;  %v2831_v34 = vpop.xlane.xlu1 %2830  ;;  %v3254_v13 = vmul.f32 %v10179_v44, %v3158_v17  ;;  %v13139_v45 = vmul.f32 0.03125, %v2828_v32 }
 0x81f   : > { %10182 = vrsqrt.f32 %v3196_v33  ;;  %v3130_v51 = vmax.f32 %v3098_v58, 0.0  ;;  %v3289_v28 = vmul.f32 %v12969_v56, %v3253_v62  ;;  %v13145_v59 = vadd.f32 %v12989_v5, %v3292_v6 }
 0x820   : > { %v3193_v55 = vadd.f32 1e-05, %v3129_v8  ;;  %v3290_v20 = vmul.f32 %v12969_v56, %v3254_v13  ;;  %v13147_v11 = vmul.f32 0.03125, %v2831_v34  ;;  %v3071_v31 = vmul.f32 %v13139_v45, %v13139_v45 }
 0x821   : > { %v3194_v10 = vadd.f32 1e-05, %v3130_v51  ;;  %v2822_v9 = vpop.xlane.xlu0 %2821  ;;  %v13134_v1 = vadd.f32 %v12989_v5, %v3289_v28  ;;  %v3352_v41 = vpack.c.bf16 %v13145_v59, %v13137_v53  ;;  %v3163_v32 = vsub.f32 %v12754_v35, %v13093_v30 }
 0x822   : > { %10184 = vrsqrt.f32 %v3193_v55  ;;  %v2825_v48 = vpop.xlane.xlu1 %2824  ;;  %v13142_v42 = vadd.f32 %v12989_v5, %v3290_v20  ;;  %v13155_v44 = vmul.f32 0.03125, %v2822_v9  ;;  %v3072_v62 = vmul.f32 %v13147_v11, %v13147_v11 }
 0x823   : > { %10186 = vrsqrt.f32 %v3194_v10  ;;  %v13162_v19 = vmul.f32 0.03125, %v2825_v48  ;;  %v3164_v13 = vsub.f32 %v12762_v22, %v13101_v24 }
 0x824   : > { %v3351_v63 = vpack.c.bf16 %v13142_v42, %v13134_v1  ;;  %v3069_v35 = vmul.f32 %v13155_v44, %v13155_v44 }
 0x825   : > { %v2989_v17 = vpop.xlane.xlu0 %2988 }
 0x826   : > { %v3039_v33 = vmul.f32 0.03125, %v2989_v17  ;;  %v2992_v58 = vpop.xlane.xlu1 %2991  ;;  %9289 = vmatprep.mubr.msk.bf16.mxu1 %vm16920_vm9, %v3351_v63  ;;  %v3161_v63 = vsub.f32 %v12758_v7, %v13109_v46  ;;  %v3070_v17 = vmul.f32 %v13162_v19, %v13162_v19  ;;  %vm16934_vm9 = vmmov %vm16773_vm0 }
 0x827   : > { %v3040_v8 = vmul.f32 0.03125, %v2992_v58  ;;  %9290 = vmatmul.mubr.msk.bf16.gmra.mrb[84].mxu1 %vm16921_vm10, %v3352_v41  ;;  %vm16935_vm10 = vmmov %vm16773_vm0 }
 0x828   : > { %v10181_v34 = vpop.eup %10180  ;;  %v3103_v6 = vsub.f32 %v3039_v33, %v3071_v31  ;;  %v3162_v31 = vsub.f32 %v12767_v36, %v13116_v57 }
 0x829   : > { %v10183_v51 = vpop.eup %10182  ;;  %v3104_v28 = vsub.f32 %v3040_v8, %v3072_v62  ;;  %v2983_v55 = vpop.xlane.xlu0 %2982  ;;  %v3259_v20 = vmul.f32 %v10181_v34, %v3163_v32 }
 0x82a   : > { %v3135_v30 = vmax.f32 %v3103_v6, 0.0  ;;  %v3037_v10 = vmul.f32 0.03125, %v2983_v55  ;;  %v2986_v9 = vpop.xlane.xlu1 %2985  ;;  %v3260_v48 = vmul.f32 %v10183_v51, %v3164_v13 }
 0x82b   : > { %v3136_v41 = vmax.f32 %v3104_v28, 0.0  ;;  %v3038_v22 = vmul.f32 0.03125, %v2986_v9  ;;  %v3295_v13 = vmul.f32 %v12969_v56, %v3259_v20 }
 0x82c   : > { %v10185_v24 = vpop.eup %10184  ;;  %v3199_v33 = vadd.f32 1e-05, %v3135_v30  ;;  %v3101_v58 = vsub.f32 %v3037_v10, %v3069_v35  ;;  %v3296_v28 = vmul.f32 %v12969_v56, %v3260_v48 }
 0x82d   : > { %v10187_v32 = vpop.eup %10186  ;;  %v3200_v62 = vadd.f32 1e-05, %v3136_v41  ;;  %v3102_v8 = vsub.f32 %v3038_v22, %v3070_v17  ;;  %v2840_v34 = vpop.xlane.xlu0 %2839  ;;  %v3257_v6 = vmul.f32 %v10185_v24, %v3161_v63  ;;  %v13183_v20 = vadd.f32 %v12989_v5, %v3295_v13 }
 0x82e   : > { %10188 = vrsqrt.f32 %v3199_v33  ;;  %v3133_v7 = vmax.f32 %v3101_v58, 0.0  ;;  %v2843_v46 = vpop.xlane.xlu1 %2842  ;;  %v3258_v51 = vmul.f32 %v10187_v32, %v3162_v31  ;;  %v13185_v63 = vmul.f32 0.03125, %v2840_v34 }
 0x82f   : > { %10190 = vrsqrt.f32 %v3200_v62  ;;  %v3134_v55 = vmax.f32 %v3102_v8, 0.0  ;;  %v3293_v9 = vmul.f32 %v12969_v56, %v3257_v6  ;;  %v13191_v41 = vadd.f32 %v12989_v5, %v3296_v28 }
 0x830   : > { %v3197_v36 = vadd.f32 1e-05, %v3133_v7  ;;  %v3294_v57 = vmul.f32 %v12969_v56, %v3258_v51  ;;  %v13193_v22 = vmul.f32 0.03125, %v2843_v46  ;;  %v3075_v58 = vmul.f32 %v13185_v63, %v13185_v63 }
 0x831   : > { %v3198_v35 = vadd.f32 1e-05, %v3134_v55  ;;  %v2834_v30 = vpop.xlane.xlu0 %2833  ;;  %v13180_v10 = vadd.f32 %v12989_v5, %v3293_v9  ;;  %v3354_v33 = vpack.c.bf16 %v13191_v41, %v13183_v20  ;;  %v3167_v34 = vsub.f32 %v12782_v29, %v13139_v45 }
 0x832   : > { %10192 = vrsqrt.f32 %v3197_v36  ;;  %v2837_v17 = vpop.xlane.xlu1 %2836  ;;  %v13188_v48 = vadd.f32 %v12989_v5, %v3294_v57  ;;  %v13201_v32 = vmul.f32 0.03125, %v2834_v30  ;;  %v3076_v6 = vmul.f32 %v13193_v22, %v13193_v22 }
 0x833   : > { %10194 = vrsqrt.f32 %v3198_v35  ;;  %v13208_v13 = vmul.f32 0.03125, %v2837_v17  ;;  %v3168_v51 = vsub.f32 %v12790_v52, %v13147_v11 }
 0x834   : > { %v3353_v24 = vpack.c.bf16 %v13188_v48, %v13180_v10  ;;  %v3073_v29 = vmul.f32 %v13201_v32, %v13201_v32 }
 0x835   : > { %v3001_v31 = vpop.xlane.xlu0 %3000 }
 0x836   : > { %v3043_v62 = vmul.f32 0.03125, %v3001_v31  ;;  %v3004_v8 = vpop.xlane.xlu1 %3003  ;;  %9293 = vmatprep.mubr.msk.bf16.mxu1 %vm16922_vm11, %v3353_v24  ;;  %v3165_v24 = vsub.f32 %v12786_v4, %v13155_v44  ;;  %v3074_v31 = vmul.f32 %v13208_v13, %v13208_v13  ;;  %vm16936_vm11 = vmmov %vm16773_vm0 }
 0x837   : > { %v3044_v7 = vmul.f32 0.03125, %v3004_v8  ;;  %9294 = vmatmul.mubr.msk.bf16.gmra.mrb[88].mxu1 %vm16923_vm12, %v3354_v33  ;;  %vm16937_vm12 = vmmov %vm16773_vm0 }
 0x838   : > { %v10189_v46 = vpop.eup %10188  ;;  %v3107_v28 = vsub.f32 %v3043_v62, %v3075_v58  ;;  %v3166_v58 = vsub.f32 %v12796_v27, %v13162_v19 }
 0x839   : > { %v10191_v55 = vpop.eup %10190  ;;  %v3108_v9 = vsub.f32 %v3044_v7, %v3076_v6  ;;  %v2995_v36 = vpop.xlane.xlu0 %2994  ;;  %v3263_v57 = vmul.f32 %v10189_v46, %v3167_v34 }
 0x83a   : > { %v3139_v45 = vmax.f32 %v3107_v28, 0.0  ;;  %v3041_v35 = vmul.f32 0.03125, %v2995_v36  ;;  %v2998_v30 = vpop.xlane.xlu1 %2997  ;;  %v3264_v17 = vmul.f32 %v10191_v55, %v3168_v51 }
 0x83b   : > { %v3140_v33 = vmax.f32 %v3108_v9, 0.0  ;;  %v3042_v52 = vmul.f32 0.03125, %v2998_v30  ;;  %v3299_v51 = vmul.f32 %v12969_v56, %v3263_v57 }
 0x83c   : > { %v10193_v11 = vpop.eup %10192  ;;  %v3203_v62 = vadd.f32 1e-05, %v3139_v45  ;;  %v3105_v8 = vsub.f32 %v3041_v35, %v3073_v29  ;;  %v3300_v9 = vmul.f32 %v12969_v56, %v3264_v17 }
 0x83d   : > { %v10195_v34 = vpop.eup %10194  ;;  %v3204_v6 = vadd.f32 1e-05, %v3140_v33  ;;  %v3106_v7 = vsub.f32 %v3042_v52, %v3074_v31  ;;  %v2852_v46 = vpop.xlane.xlu0 %2851  ;;  %v3261_v28 = vmul.f32 %v10193_v11, %v3165_v24  ;;  %v13229_v57 = vadd.f32 %v12989_v5, %v3299_v51 }
 0x83e   : > { %10196 = vrsqrt.f32 %v3203_v62  ;;  %v3137_v4 = vmax.f32 %v3105_v8, 0.0  ;;  %v2855_v44 = vpop.xlane.xlu1 %2854  ;;  %v3262_v55 = vmul.f32 %v10195_v34, %v3166_v58  ;;  %v13237_v33 = vadd.f32 %v12989_v5, %v3300_v9 }
 0x83f   : > { %10198 = vrsqrt.f32 %v3204_v6  ;;  %v3138_v36 = vmax.f32 %v3106_v7, 0.0  ;;  %v3297_v30 = vmul.f32 %v12969_v56, %v3261_v28  ;;  %v13245_v8 = vmul.f32 0.03125, %v2852_v46 }
 0x840   : > { %v3201_v27 = vadd.f32 1e-05, %v3137_v4  ;;  %v3298_v19 = vmul.f32 %v12969_v56, %v3262_v55  ;;  %v3356_v62 = vpack.c.bf16 %v13237_v33, %v13229_v57  ;;  %v3171_v28 = vsub.f32 %v12806_v43, %v13185_v63 }
 0x841   : > { %v3202_v29 = vadd.f32 1e-05, %v3138_v36  ;;  %v2846_v45 = vpop.xlane.xlu0 %2845  ;;  %v13226_v35 = vadd.f32 %v12989_v5, %v3297_v30  ;;  %v13252_v51 = vmul.f32 0.03125, %v2855_v44  ;;  %v3172_v9 = vsub.f32 %v12814_v14, %v13193_v22 }
 0x842   : > { %10200 = vrsqrt.f32 %v3201_v27  ;;  %v13231_v24 = vmul.f32 0.03125, %v2846_v45  ;;  %v2849_v31 = vpop.xlane.xlu1 %2848  ;;  %v13234_v17 = vadd.f32 %v12989_v5, %v3298_v19  ;;  %v3079_v43 = vmul.f32 %v13245_v8, %v13245_v8 }
 0x843   : > { %10202 = vrsqrt.f32 %v3202_v29  ;;  %v13239_v52 = vmul.f32 0.03125, %v2849_v31 }
 0x844   : > { %v3355_v11 = vpack.c.bf16 %v13234_v17, %v13226_v35  ;;  %v3077_v34 = vmul.f32 %v13231_v24, %v13231_v24 }
 0x845   : > { %v3007_v58 = vpop.xlane.xlu0 %3006  ;;  %v3078_v4 = vmul.f32 %v13239_v52, %v13239_v52 }
 0x846   : > { %v3045_v6 = vmul.f32 0.03125, %v3007_v58  ;;  %v3010_v7 = vpop.xlane.xlu1 %3009  ;;  %9297 = vmatprep.mubr.msk.bf16.mxu1 %vm16924_vm13, %v3355_v11  ;;  %v3169_v11 = vsub.f32 %v12810_v49, %v13201_v32  ;;  %v3080_v58 = vmul.f32 %v13252_v51, %v13252_v51  ;;  %vm16938_vm13 = vmmov %vm16773_vm0 }
 0x847   : > { %v3046_v55 = vmul.f32 0.03125, %v3010_v7  ;;  %9298 = vmatmul.mubr.msk.bf16.gmra.mrb[92].mxu1 %vm16925_vm14, %v3356_v62  ;;  %vm16939_vm14 = vmmov %vm16773_vm0 }
 0x848   : > { %v10197_v46 = vpop.eup %10196  ;;  %v3109_v36 = vsub.f32 %v3045_v6, %v3077_v34  ;;  %v3170_v34 = vsub.f32 %v12819_v12, %v13208_v13 }
 0x849   : > { %v10199_v30 = vpop.eup %10198  ;;  %v3110_v27 = vsub.f32 %v3046_v55, %v3078_v4  ;;  %v3013_v19 = vpop.xlane.xlu0 %3012  ;;  %v3267_v29 = vmul.f32 %v10197_v46, %v3171_v28 }
 0x84a   : > { %v3141_v63 = vmax.f32 %v3109_v36, 0.0  ;;  %v3047_v44 = vmul.f32 0.03125, %v3013_v19  ;;  %v3016_v45 = vpop.xlane.xlu1 %3015  ;;  %v3268_v31 = vmul.f32 %v10199_v30, %v3172_v9 }
 0x84b   : > { %v3142_v62 = vmax.f32 %v3110_v27, 0.0  ;;  %v3048_v14 = vmul.f32 0.03125, %v3016_v45  ;;  %v3303_v28 = vmul.f32 %v12969_v56, %v3267_v29  ;;  %v9943_v45 = vld [vmem:[%s16913_s17 + $0x18] sm:$0xff]  }
 0x84c   : > { %v10201_v22 = vpop.eup %10200  ;;  %v3205_v6 = vadd.f32 1e-05, %v3141_v63  ;;  %v3111_v7 = vsub.f32 %v3047_v44, %v3079_v43  ;;  %v3304_v36 = vmul.f32 %v12969_v56, %v3268_v31  ;;  %9315 = vmatprep.subr.bf16.mxu0 %v9943_v45 }
 0x84d   : > { %v10203_v4 = vpop.eup %10202  ;;  %v3206_v55 = vadd.f32 1e-05, %v3142_v62  ;;  %v3112_v46 = vsub.f32 %v3048_v14, %v3080_v58  ;;  %v3265_v9 = vmul.f32 %v10201_v22, %v3169_v11  ;;  %v13275_v29 = vadd.f32 %v12989_v5, %v3303_v28  ;;  %9316 = vmatpush3.bf16.msra.mxu0 %v9943_v45 }
 0x84e   : > { %10204 = vrsqrt.f32 %v3205_v6  ;;  %v3143_v49 = vmax.f32 %v3111_v7, 0.0  ;;  %v3266_v32 = vmul.f32 %v10203_v4, %v3170_v34  ;;  %v13278_v63 = vadd.f32 %v12989_v5, %v3304_v36 }
 0x84f   : > { %10206 = vrsqrt.f32 %v3206_v55  ;;  %v3144_v30 = vmax.f32 %v3112_v46, 0.0  ;;  %v3301_v27 = vmul.f32 %v12969_v56, %v3265_v9  ;;  %v3173_v58 = vsub.f32 %v12838_v16, %v13231_v24 }
 0x850   : > { %v3207_v19 = vadd.f32 1e-05, %v3143_v49  ;;  %v3302_v12 = vmul.f32 %v12969_v56, %v3266_v32  ;;  %v3358_v11 = vpack.c.bf16 %v13278_v63, %v13275_v29  ;;  %v3174_v14 = vsub.f32 %v12848_v54, %v13239_v52  ;;  %v13322_v32 = vld [vmem:[#allocation10] ss:$0 sm:$0xff] }
 0x851   : > { %v3208_v13 = vadd.f32 1e-05, %v3144_v30  ;;  %v13272_v43 = vadd.f32 %v12989_v5, %v3301_v27  ;;  %v3175_v7 = vsub.f32 %v12834_v18, %v13245_v8  ;;  %v3176_v55 = vsub.f32 %v12842_v37, %v13252_v51 }
 0x852   : > { %10208 = vrsqrt.f32 %v3207_v19  ;;  %v13281_v44 = vadd.f32 %v12989_v5, %v3302_v12 }
 0x853   : > { %10210 = vrsqrt.f32 %v3208_v13 }
 0x854   : > { %v3357_v31 = vpack.c.bf16 %v13281_v44, %v13272_v43 }
 0x856   : > { %9301 = vmatprep.mubr.msk.bf16.mxu1 %vm16926_vm15, %v3357_v31  ;;  %vm16940_vm15 = vmmov %vm16773_vm0 }
 0x857   : > { %9302 = vmatmul.mubr.msk.bf16.gmra.mrb[96].mxu1 %vm16927_vm1, %v3358_v11  ;;  %vm16941_vm1 = vmmov %vm16773_vm0 }
 0x858   : > { %v10205_v62 = vpop.eup %10204 }
 0x859   : > { %v10207_v22 = vpop.eup %10206  ;;  %v3269_v34 = vmul.f32 %v10205_v62, %v3173_v58 }
 0x85a   : > { %v3270_v6 = vmul.f32 %v10207_v22, %v3174_v14 }
 0x85b   : > { %v3305_v28 = vmul.f32 %v12969_v56, %v3269_v34 }
 0x85c   : > { %v10209_v4 = vpop.eup %10208  ;;  %v3306_v16 = vmul.f32 %v12969_v56, %v3270_v6 }
 0x85d   : > { %v10211_v24 = vpop.eup %10210  ;;  %v13303_v46 = vadd.f32 %v12989_v5, %v3305_v28  ;;  %v3271_v9 = vmul.f32 %v10209_v4, %v3175_v7 }
 0x85e   : > { %v13306_v54 = vadd.f32 %v12989_v5, %v3306_v16  ;;  %v3272_v52 = vmul.f32 %v10211_v24, %v3176_v55 }
 0x85f   : > { %v3307_v36 = vmul.f32 %v12969_v56, %v3271_v9 }
 0x860   : > { %v3359_v18 = vpack.c.bf16 %v13306_v54, %v13303_v46  ;;  %v3308_v8 = vmul.f32 %v12969_v56, %v3272_v52 }
 0x861   : > { %v13313_v37 = vadd.f32 %v12989_v5, %v3307_v36 }
 0x862   : > { %9305 = vmatprep.mubr.msk.bf16.mxu1 %vm16773_vm0, %v3359_v18  ;;  %v13317_v51 = vadd.f32 %v12989_v5, %v3308_v8 }
 0x864   : > { %v3360_v49 = vpack.c.bf16 %v13317_v51, %v13313_v37 }
 0x866   : > { %9306 = vmatmul.mubr.msk.bf16.gmra.mrb[100].mxu1 %vm16928_vm2, %v3360_v49  ;;  %vm16942_vm2 = vmmov %vm16773_vm0 }
 0x8ca   : > { %v9279_v30 = vpop.f32.mrb[72].mxu1 }
 0x8cb   : > { %v3470_v27 = vadd.f32 %v9279_v30, %v13322_v32  ;;  %v3461_v19 = vpop.f32.mrb[73].mxu1 }
 0x8cc   : > { %v3462_v56 = vadd.f32 %v13322_v32, %v3461_v19  ;;  %v9280_v12 = vpop.f32.mrb[74].mxu1 }
 0x8cd   : > { %v3473_v13 = vadd.f32 %v9280_v12, %v13322_v32  ;;  %v3464_v45 = vpop.f32.mrb[75].mxu1  ;;  %v3590_v31 = vmax.f32 %v3470_v27, 0.0 }
 0x8ce   : > { %v3465_v5 = vadd.f32 %v13322_v32, %v3464_v45  ;;  %v3588_v58 = vmax.f32 %v3462_v56, 0.0 }
 0x8cf   : > { %v3591_v11 = vmax.f32 %v3473_v13, 0.0 }
 0x8d0   : > { %v3589_v62 = vmax.f32 %v3465_v5, 0.0 }
 0x8d1   : > { %v3621_v14 = vpack.c.bf16 %v3591_v11, %v3590_v31 }
 0x8d2   : > { %v3620_v22 = vpack.c.bf16 %v3589_v62, %v3588_v58 }
 0x8d4   : > { %9317 = vmatprep.mubr.msk.bf16.mxu0 %vm3664_vm3, %v3620_v22 }
 0x8d5   : > { %9318 = vmatmul.mubr.msk.bf16.vlgmr.msra.gmra.mrb[96].mxu0 %vm3664_vm3, %v3621_v14 }
 0x8da   : > { %v9283_v34 = vpop.f32.mrb[76].mxu1 }
 0x8db   : > { %v3486_v6 = vadd.f32 %v9283_v34, %v13322_v32  ;;  %v3477_v7 = vpop.f32.mrb[77].mxu1 }
 0x8dc   : > { %v3478_v28 = vadd.f32 %v13322_v32, %v3477_v7  ;;  %v9284_v4 = vpop.f32.mrb[78].mxu1 }
 0x8dd   : > { %v3489_v55 = vadd.f32 %v9284_v4, %v13322_v32  ;;  %v3480_v16 = vpop.f32.mrb[79].mxu1  ;;  %v3594_v9 = vmax.f32 %v3486_v6, 0.0 }
 0x8de   : > { %v3481_v24 = vadd.f32 %v13322_v32, %v3480_v16  ;;  %v3592_v36 = vmax.f32 %v3478_v28, 0.0 }
 0x8df   : > { %v3595_v52 = vmax.f32 %v3489_v55, 0.0 }
 0x8e0   : > { %v3593_v18 = vmax.f32 %v3481_v24, 0.0 }
 0x8e1   : > { %v3623_v8 = vpack.c.bf16 %v3595_v52, %v3594_v9 }
 0x8e2   : > { %v3622_v49 = vpack.c.bf16 %v3593_v18, %v3592_v36 }
 0x8e4   : > { %9321 = vmatprep.mubr.msk.bf16.mxu0 %vm3664_vm3, %v3622_v49 }
 0x8e5   : > { %9322 = vmatmul.mubr.msk.bf16.gmra.mrb[100].mxu0 %vm3664_vm3, %v3623_v8 }
 0x8ea   : > { %v9287_v30 = vpop.f32.mrb[80].mxu1 }
 0x8eb   : > { %v3502_v27 = vadd.f32 %v9287_v30, %v13322_v32  ;;  %v3493_v19 = vpop.f32.mrb[81].mxu1 }
 0x8ec   : > { %v3494_v56 = vadd.f32 %v13322_v32, %v3493_v19  ;;  %v9288_v12 = vpop.f32.mrb[82].mxu1 }
 0x8ed   : > { %v3505_v13 = vadd.f32 %v9288_v12, %v13322_v32  ;;  %v3496_v45 = vpop.f32.mrb[83].mxu1  ;;  %v3598_v31 = vmax.f32 %v3502_v27, 0.0 }
 0x8ee   : > { %v3497_v5 = vadd.f32 %v13322_v32, %v3496_v45  ;;  %v3596_v58 = vmax.f32 %v3494_v56, 0.0 }
 0x8ef   : > { %v3599_v11 = vmax.f32 %v3505_v13, 0.0 }
 0x8f0   : > { %v3597_v62 = vmax.f32 %v3497_v5, 0.0 }
 0x8f1   : > { %v3625_v14 = vpack.c.bf16 %v3599_v11, %v3598_v31 }
 0x8f2   : > { %v3624_v22 = vpack.c.bf16 %v3597_v62, %v3596_v58 }
 0x8f4   : > { %9325 = vmatprep.mubr.msk.bf16.mxu0 %vm3664_vm3, %v3624_v22 }
 0x8f5   : > { %9326 = vmatmul.mubr.msk.bf16.gmra.mrb[104].mxu0 %vm3664_vm3, %v3625_v14 }
 0x8fa   : > { %v9291_v34 = vpop.f32.mrb[84].mxu1 }
 0x8fb   : > { %v3518_v6 = vadd.f32 %v9291_v34, %v13322_v32  ;;  %v3509_v7 = vpop.f32.mrb[85].mxu1 }
 0x8fc   : > { %v3510_v28 = vadd.f32 %v13322_v32, %v3509_v7  ;;  %v9292_v4 = vpop.f32.mrb[86].mxu1 }
 0x8fd   : > { %v3521_v55 = vadd.f32 %v9292_v4, %v13322_v32  ;;  %v3512_v16 = vpop.f32.mrb[87].mxu1  ;;  %v3602_v9 = vmax.f32 %v3518_v6, 0.0 }
 0x8fe   : > { %v3513_v24 = vadd.f32 %v13322_v32, %v3512_v16  ;;  %v3600_v36 = vmax.f32 %v3510_v28, 0.0 }
 0x8ff   : > { %v3603_v52 = vmax.f32 %v3521_v55, 0.0 }
 0x900   : > { %v3601_v18 = vmax.f32 %v3513_v24, 0.0 }
 0x901   : > { %v3627_v8 = vpack.c.bf16 %v3603_v52, %v3602_v9 }
 0x902   : > { %v3626_v49 = vpack.c.bf16 %v3601_v18, %v3600_v36 }
 0x904   : > { %9329 = vmatprep.mubr.msk.bf16.mxu0 %vm3664_vm3, %v3626_v49 }
 0x905   : > { %9330 = vmatmul.mubr.msk.bf16.gmra.mrb[108].mxu0 %vm3664_vm3, %v3627_v8 }
 0x90a   : > { %v9295_v30 = vpop.f32.mrb[88].mxu1 }
 0x90b   : > { %v3534_v27 = vadd.f32 %v9295_v30, %v13322_v32  ;;  %v3525_v19 = vpop.f32.mrb[89].mxu1 }
 0x90c   : > { %v3526_v56 = vadd.f32 %v13322_v32, %v3525_v19  ;;  %v9296_v12 = vpop.f32.mrb[90].mxu1 }
 0x90d   : > { %v3537_v13 = vadd.f32 %v9296_v12, %v13322_v32  ;;  %v3528_v45 = vpop.f32.mrb[91].mxu1  ;;  %v3606_v31 = vmax.f32 %v3534_v27, 0.0 }
 0x90e   : > { %v3529_v5 = vadd.f32 %v13322_v32, %v3528_v45  ;;  %v3604_v58 = vmax.f32 %v3526_v56, 0.0 }
 0x90f   : > { %v3607_v11 = vmax.f32 %v3537_v13, 0.0 }
 0x910   : > { %v3605_v62 = vmax.f32 %v3529_v5, 0.0 }
 0x911   : > { %v3629_v14 = vpack.c.bf16 %v3607_v11, %v3606_v31 }
 0x912   : > { %v3628_v22 = vpack.c.bf16 %v3605_v62, %v3604_v58 }
 0x914   : > { %9333 = vmatprep.mubr.msk.bf16.mxu0 %vm3664_vm3, %v3628_v22 }
 0x915   : > { %9334 = vmatmul.mubr.msk.bf16.gmra.mrb[112].mxu0 %vm3664_vm3, %v3629_v14 }
 0x91a   : > { %v9299_v34 = vpop.f32.mrb[92].mxu1 }
 0x91b   : > { %v3550_v6 = vadd.f32 %v9299_v34, %v13322_v32  ;;  %v3541_v7 = vpop.f32.mrb[93].mxu1 }
 0x91c   : > { %v3542_v28 = vadd.f32 %v13322_v32, %v3541_v7  ;;  %v9300_v4 = vpop.f32.mrb[94].mxu1 }
 0x91d   : > { %v3553_v55 = vadd.f32 %v9300_v4, %v13322_v32  ;;  %v3544_v16 = vpop.f32.mrb[95].mxu1  ;;  %v3610_v9 = vmax.f32 %v3550_v6, 0.0 }
 0x91e   : > { %v3545_v24 = vadd.f32 %v13322_v32, %v3544_v16  ;;  %v3608_v36 = vmax.f32 %v3542_v28, 0.0 }
 0x91f   : > { %v3611_v52 = vmax.f32 %v3553_v55, 0.0 }
 0x920   : > { %v3609_v18 = vmax.f32 %v3545_v24, 0.0 }
 0x921   : > { %v3631_v8 = vpack.c.bf16 %v3611_v52, %v3610_v9 }
 0x922   : > { %v3630_v49 = vpack.c.bf16 %v3609_v18, %v3608_v36 }
 0x924   : > { %9337 = vmatprep.mubr.msk.bf16.mxu0 %vm3664_vm3, %v3630_v49 }
 0x925   : > { %9338 = vmatmul.mubr.msk.bf16.gmra.mrb[116].mxu0 %vm3664_vm3, %v3631_v8 }
 0x92a   : > { %v9303_v30 = vpop.f32.mrb[96].mxu1 }
 0x92b   : > { %v3566_v27 = vadd.f32 %v9303_v30, %v13322_v32  ;;  %v3557_v19 = vpop.f32.mrb[97].mxu1  ;;  %v16517_v30 = vsub.s32 1, %v12634_v50 }
 0x92c   : > { %v3558_v56 = vadd.f32 %v13322_v32, %v3557_v19  ;;  %v9304_v12 = vpop.f32.mrb[98].mxu1 }
 0x92d   : > { %v3569_v13 = vadd.f32 %v9304_v12, %v13322_v32  ;;  %v3560_v45 = vpop.f32.mrb[99].mxu1  ;;  %v3614_v31 = vmax.f32 %v3566_v27, 0.0  ;;  %v13376_v27 = vld [vmem:[%s16820_s22] sm:$0x3f] }
 0x92e   : > { %v3561_v5 = vadd.f32 %v13322_v32, %v3560_v45  ;;  %v3612_v58 = vmax.f32 %v3558_v56, 0.0 }
 0x92f   : > { %v3615_v11 = vmax.f32 %v3569_v13, 0.0 }
 0x930   : > { %v3613_v62 = vmax.f32 %v3561_v5, 0.0 }
 0x931   : > { %v3633_v14 = vpack.c.bf16 %v3615_v11, %v3614_v31 }
 0x932   : > { %v3632_v22 = vpack.c.bf16 %v3613_v62, %v3612_v58 }
 0x934   : > { %9341 = vmatprep.mubr.msk.bf16.mxu0 %vm3664_vm3, %v3632_v22 }
 0x935   : > { %9342 = vmatmul.mubr.msk.bf16.gmra.mrb[120].mxu0 %vm3664_vm3, %v3633_v14 }
 0x939   : > { %v9307_v34 = vpop.f32.mrb[100].mxu1 }
 0x93a   : > { %v3582_v6 = vadd.f32 %v9307_v34, %v13322_v32  ;;  %v3573_v7 = vpop.f32.mrb[101].mxu1 }
 0x93b   : > { %v3574_v28 = vadd.f32 %v13322_v32, %v3573_v7  ;;  %v9308_v4 = vpop.f32.mrb[102].mxu1 }
 0x93c   : > { %v3585_v55 = vadd.f32 %v9308_v4, %v13322_v32  ;;  %v3576_v16 = vpop.f32.mrb[103].mxu1  ;;  %v3618_v9 = vmax.f32 %v3582_v6, 0.0 }
 0x93d   : > { %v3577_v24 = vadd.f32 %v13322_v32, %v3576_v16  ;;  %v3616_v36 = vmax.f32 %v3574_v28, 0.0  ;;  %v13381_v32 = vrot.slane %v13376_v27, %v16517_v30 }
 0x93e   : > { %v3619_v52 = vmax.f32 %v3585_v55, 0.0 }
 0x93f   : > { %v3617_v18 = vmax.f32 %v3577_v24, 0.0 }
 0x940   : > { %v3635_v8 = vpack.c.bf16 %v3619_v52, %v3618_v9 }
 0x941   : > { %v3634_v49 = vpack.c.bf16 %v3617_v18, %v3616_v36 }
 0x943   : > { %9345 = vmatprep.mubr.msk.bf16.mxu0 %vm3664_vm3, %v3634_v49 }
 0x944   : > { %9346 = vmatmul.mubr.msk.bf16.gmra.mrb[124].mxu0 %vm3664_vm3, %v3635_v8 }
 0x9a8   : > { %v9319_v19 = vpop.f32.mrb[96].mxu0 }
 0x9a9   : > { %v3756_v56 = vadd.f32 %v9319_v19, %v13381_v32  ;;  %v3747_v12 = vpop.f32.mrb[97].mxu0 }
 0x9aa   : > { %v3748_v13 = vadd.f32 %v3747_v12, %v13381_v32  ;;  %v9320_v45 = vpop.f32.mrb[98].mxu0 }
 0x9ab   : > { %v13386_v5 = vadd.f32 %v3756_v56, %v13009_v60  ;;  %v3759_v31 = vadd.f32 %v9320_v45, %v13381_v32  ;;  %v3750_v11 = vpop.f32.mrb[99].mxu0 }
 0x9ac   : > { %v3751_v58 = vadd.f32 %v3750_v11, %v13381_v32  ;;  %v13391_v62 = vadd.f32 %v3748_v13, %v12996_v26 }
 0x9ad   : > { %v13394_v14 = vadd.f32 %v3759_v31, %v13004_v0  ;;  %v3912_v22 = vsel %vm16929_vm4, %v13386_v5, 0.0  ;;  %v4036_v26 = vmul.f32 %v13386_v5, %v13386_v5  ;;  %vm16943_vm4 = vmmov %vm16773_vm0 }
 0x9ae   : > { %3913 = vadd.xlane.f32.xlu0 %v3912_v22  ;;  %v13399_v34 = vadd.f32 %v3751_v58, %v13001_v23  ;;  %v3906_v6 = vsel %vm16931_vm6, %v13391_v62, 0.0  ;;  %v4034_v28 = vmul.f32 %v13391_v62, %v13391_v62  ;;  %vm16945_vm6 = vmmov %vm16773_vm0 }
 0x9af   : > { %v3915_v60 = vsel %vm16930_vm5, %v13394_v14, 0.0  ;;  %v4037_v7 = vmul.f32 %v13394_v14, %v13394_v14  ;;  %v4072_v23 = vsel %vm16933_vm8, %v4036_v26, 0.0  ;;  %vm16944_vm5 = vmmov %vm16773_vm0 }
 0x9b0   : > { %3916 = vadd.xlane.f32.xlu1 %v3915_v60  ;;  %v3909_v0 = vsel %vm16932_vm7, %v13399_v34, 0.0  ;;  %v4035_v55 = vmul.f32 %v13399_v34, %v13399_v34  ;;  %v4066_v52 = vsel %vm16935_vm10, %v4034_v28, 0.0  ;;  %vm16946_vm7 = vmmov %vm16773_vm0 }
 0x9b1   : > { %v4075_v4 = vsel %vm16934_vm9, %v4037_v7, 0.0  ;;  %vm16947_vm8 = vmmov %vm16773_vm0 }
 0x9b2   : > { %3907 = vadd.xlane.f32.xlu0 %v3906_v6  ;;  %v4069_v56 = vsel %vm16936_vm11, %v4035_v55, 0.0  ;;  %vm16948_vm9 = vmmov %vm16773_vm0 }
 0x9b3   : > { %vm16949_vm10 = vmmov %vm16773_vm0 }
 0x9b4   : > { %3910 = vadd.xlane.f32.xlu1 %v3909_v0  ;;  %vm16950_vm11 = vmmov %vm16773_vm0 }
 0x9b6   : > { %4073 = vadd.xlane.f32.xlu0 %v4072_v23 }
 0x9b8   : > { %4076 = vadd.xlane.f32.xlu1 %v4075_v4  ;;  %v9323_v16 = vpop.f32.mrb[100].mxu0 }
 0x9b9   : > { %v3772_v24 = vadd.f32 %v9323_v16, %v13381_v32  ;;  %v3763_v9 = vpop.f32.mrb[101].mxu0 }
 0x9ba   : > { %v3764_v36 = vadd.f32 %v3763_v9, %v13381_v32  ;;  %4067 = vadd.xlane.f32.xlu0 %v4066_v52  ;;  %v9324_v18 = vpop.f32.mrb[102].mxu0 }
 0x9bb   : > { %v13421_v8 = vadd.f32 %v3772_v24, %v13045_v21  ;;  %v3775_v49 = vadd.f32 %v9324_v18, %v13381_v32  ;;  %v3766_v19 = vpop.f32.mrb[103].mxu0 }
 0x9bc   : > { %v3767_v12 = vadd.f32 %v3766_v19, %v13381_v32  ;;  %4070 = vadd.xlane.f32.xlu1 %v4069_v56  ;;  %v13427_v13 = vadd.f32 %v3764_v36, %v13042_v61 }
 0x9bd   : > { %v13430_v45 = vadd.f32 %v3775_v49, %v13053_v15  ;;  %v3924_v31 = vsel %vm16937_vm12, %v13421_v8, 0.0  ;;  %v4040_v61 = vmul.f32 %v13421_v8, %v13421_v8  ;;  %vm16951_vm12 = vmmov %vm16773_vm0 }
 0x9be   : > { %3925 = vadd.xlane.f32.xlu0 %v3924_v31  ;;  %v13435_v21 = vadd.f32 %v3767_v12, %v13050_v3  ;;  %v3918_v58 = vsel %vm16939_vm14, %v13427_v13, 0.0  ;;  %v4038_v60 = vmul.f32 %v13427_v13, %v13427_v13  ;;  %vm16953_vm14 = vmmov %vm16773_vm0 }
 0x9bf   : > { %v3927_v11 = vsel %vm16938_vm13, %v13430_v45, 0.0  ;;  %v4041_v22 = vmul.f32 %v13430_v45, %v13430_v45  ;;  %v4084_v3 = vsel %vm16941_vm1, %v4040_v61, 0.0  ;;  %vm16952_vm13 = vmmov %vm16773_vm0 }
 0x9c0   : > { %3928 = vadd.xlane.f32.xlu1 %v3927_v11  ;;  %v3921_v15 = vsel %vm16940_vm15, %v13435_v21, 0.0  ;;  %v4039_v26 = vmul.f32 %v13435_v21, %v13435_v21  ;;  %v4078_v28 = vsel %vm16942_vm2, %v4038_v60, 0.0  ;;  %vm16954_vm15 = vmmov %vm16773_vm0 }
 0x9c1   : > { %v4087_v6 = vsel %vm16773_vm0, %v4041_v22, 0.0  ;;  %vm16955_vm1 = vmmov %vm16773_vm0 }
 0x9c2   : > { %3919 = vadd.xlane.f32.xlu0 %v3918_v58  ;;  %v4081_v52 = vsel %vm16943_vm4, %v4039_v26, 0.0  ;;  %vm16956_vm2 = vmmov %vm16773_vm0 }
 0x9c3   : > { %vm16957_vm4 = vmmov %vm16773_vm0 }
 0x9c4   : > { %3922 = vadd.xlane.f32.xlu1 %v3921_v15 }
 0x9c6   : > { %4085 = vadd.xlane.f32.xlu0 %v4084_v3 }
 0x9c8   : > { %4088 = vadd.xlane.f32.xlu1 %v4087_v6  ;;  %v9327_v0 = vpop.f32.mrb[104].mxu0 }
 0x9c9   : > { %v3788_v7 = vadd.f32 %v9327_v0, %v13381_v32  ;;  %v3779_v23 = vpop.f32.mrb[105].mxu0 }
 0x9ca   : > { %v3780_v4 = vadd.f32 %v3779_v23, %v13381_v32  ;;  %4079 = vadd.xlane.f32.xlu0 %v4078_v28  ;;  %v9328_v55 = vpop.f32.mrb[106].mxu0 }
 0x9cb   : > { %v13457_v16 = vadd.f32 %v3788_v7, %v13091_v39  ;;  %v3791_v24 = vadd.f32 %v9328_v55, %v13381_v32  ;;  %v3782_v9 = vpop.f32.mrb[107].mxu0 }
 0x9cc   : > { %v3783_v36 = vadd.f32 %v3782_v9, %v13381_v32  ;;  %4082 = vadd.xlane.f32.xlu1 %v4081_v52  ;;  %v13463_v18 = vadd.f32 %v3780_v4, %v13088_v38 }
 0x9cd   : > { %v13466_v49 = vadd.f32 %v3791_v24, %v13099_v47  ;;  %v3936_v19 = vsel %vm16944_vm5, %v13457_v16, 0.0  ;;  %v4044_v38 = vmul.f32 %v13457_v16, %v13457_v16  ;;  %vm16958_vm5 = vmmov %vm16773_vm0 }
 0x9ce   : > { %3937 = vadd.xlane.f32.xlu0 %v3936_v19  ;;  %v13471_v39 = vadd.f32 %v3783_v36, %v13096_v2  ;;  %v3930_v12 = vsel %vm16946_vm7, %v13463_v18, 0.0  ;;  %v4042_v11 = vmul.f32 %v13463_v18, %v13463_v18  ;;  %vm16960_vm7 = vmmov %vm16773_vm0 }
 0x9cf   : > { %v3939_v56 = vsel %vm16945_vm6, %v13466_v49, 0.0  ;;  %v4045_v31 = vmul.f32 %v13466_v49, %v13466_v49  ;;  %v4096_v2 = vsel %vm16948_vm9, %v4044_v38, 0.0  ;;  %vm16959_vm6 = vmmov %vm16773_vm0 }
 0x9d0   : > { %3940 = vadd.xlane.f32.xlu1 %v3939_v56  ;;  %v3933_v47 = vsel %vm16947_vm8, %v13471_v39, 0.0  ;;  %v4043_v61 = vmul.f32 %v13471_v39, %v13471_v39  ;;  %v4090_v60 = vsel %vm16950_vm11, %v4042_v11, 0.0  ;;  %v9945_v56 = vld [vmem:[%s16620_s3 + $0x18] sm:$0xff]   ;;  %vm16961_vm8 = vmmov %vm16773_vm0 }
 0x9d1   : > { %v4099_v58 = vsel %vm16949_vm10, %v4045_v31, 0.0  ;;  %vm16962_vm9 = vmmov %vm16773_vm0 }
 0x9d2   : > { %3931 = vadd.xlane.f32.xlu0 %v3930_v12  ;;  %v4093_v28 = vsel %vm16951_vm12, %v4043_v61, 0.0  ;;  %vm16963_vm10 = vmmov %vm16773_vm0 }
 0x9d3   : > { %vm16964_vm11 = vmmov %vm16773_vm0 }
 0x9d4   : > { %3934 = vadd.xlane.f32.xlu1 %v3933_v47  ;;  %vm16965_vm12 = vmmov %vm16773_vm0 }
 0x9d6   : > { %4097 = vadd.xlane.f32.xlu0 %v4096_v2 }
 0x9d8   : > { %4100 = vadd.xlane.f32.xlu1 %v4099_v58  ;;  %v9331_v15 = vpop.f32.mrb[108].mxu0 }
 0x9d9   : > { %v3804_v22 = vadd.f32 %v9331_v15, %v13381_v32  ;;  %v3795_v3 = vpop.f32.mrb[109].mxu0 }
 0x9da   : > { %v3796_v6 = vadd.f32 %v3795_v3, %v13381_v32  ;;  %4091 = vadd.xlane.f32.xlu0 %v4090_v60  ;;  %v9332_v26 = vpop.f32.mrb[110].mxu0 }
 0x9db   : > { %v13493_v0 = vadd.f32 %v3804_v22, %v13137_v53  ;;  %v3807_v7 = vadd.f32 %v9332_v26, %v13381_v32  ;;  %v3798_v23 = vpop.f32.mrb[111].mxu0 }
 0x9dc   : > { %v3799_v4 = vadd.f32 %v3798_v23, %v13381_v32  ;;  %4094 = vadd.xlane.f32.xlu1 %v4093_v28  ;;  %v13499_v55 = vadd.f32 %v3796_v6, %v13134_v1 }
 0x9dd   : > { %v13502_v24 = vadd.f32 %v3807_v7, %v13145_v59  ;;  %v3948_v9 = vsel %vm16952_vm13, %v13493_v0, 0.0  ;;  %v4048_v1 = vmul.f32 %v13493_v0, %v13493_v0  ;;  %v9944_v59 = vld [vmem:[%s16620_s3 + $0x10] sm:$0xff]   ;;  %vm16966_vm13 = vmmov %vm16773_vm0 }
 0x9de   : > { %3949 = vadd.xlane.f32.xlu0 %v3948_v9  ;;  %v13507_v53 = vadd.f32 %v3799_v4, %v13142_v42  ;;  %v3942_v36 = vsel %vm16954_vm15, %v13499_v55, 0.0  ;;  %9385 = vmatprep.subr.bf16.mxu0 %v9944_v59  ;;  %v4046_v38 = vmul.f32 %v13499_v55, %v13499_v55  ;;  %vm16968_vm15 = vmmov %vm16773_vm0 }
 0x9df   : > { %v3951_v52 = vsel %vm16953_vm14, %v13502_v24, 0.0  ;;  %v4049_v42 = vmul.f32 %v13502_v24, %v13502_v24  ;;  %v4108_v12 = vsel %vm16773_vm0, %v4048_v1, 0.0  ;;  %9386 = vmatpush3.bf16.msra.mxu0 %v9944_v59  ;;  %vm16967_vm14 = vmmov %vm16773_vm0 }
 0x9e0   : > { %3952 = vadd.xlane.f32.xlu1 %v3951_v52  ;;  %v3945_v19 = vsel %vm16955_vm1, %v13507_v53, 0.0  ;;  %9387 = vmatprep.subr.bf16.mxu0 %v9945_v56  ;;  %v4047_v31 = vmul.f32 %v13507_v53, %v13507_v53  ;;  %v4102_v61 = vsel %vm16957_vm4, %v4046_v38, 0.0  ;;  %vm16969_vm1 = vmmov %vm16773_vm0 }
 0x9e1   : > { %v4111_v47 = vsel %vm16956_vm2, %v4049_v42, 0.0  ;;  %vm16970_vm2 = vmmov %vm16773_vm0 }
 0x9e2   : > { %3943 = vadd.xlane.f32.xlu0 %v3942_v36  ;;  %v4105_v26 = vsel %vm16958_vm5, %v4047_v31, 0.0  ;;  %vm16971_vm4 = vmmov %vm16773_vm0 }
 0x9e3   : > { %9388 = vmatpush3.bf16.msra.mxu0 %v9945_v56  ;;  %vm16972_vm5 = vmmov %vm16773_vm0 }
 0x9e4   : > { %3946 = vadd.xlane.f32.xlu1 %v3945_v19 }
 0x9e6   : > { %4109 = vadd.xlane.f32.xlu0 %v4108_v12 }
 0x9e8   : > { %4112 = vadd.xlane.f32.xlu1 %v4111_v47  ;;  %v9335_v2 = vpop.f32.mrb[112].mxu0 }
 0x9e9   : > { %v3820_v11 = vadd.f32 %v9335_v2, %v13381_v32  ;;  %v3811_v58 = vpop.f32.mrb[113].mxu0 }
 0x9ea   : > { %v3812_v15 = vadd.f32 %v3811_v58, %v13381_v32  ;;  %4103 = vadd.xlane.f32.xlu0 %v4102_v61  ;;  %v9336_v22 = vpop.f32.mrb[114].mxu0 }
 0x9eb   : > { %v13535_v3 = vadd.f32 %v3820_v11, %v13183_v20  ;;  %v3823_v60 = vadd.f32 %v9336_v22, %v13381_v32  ;;  %v3814_v6 = vpop.f32.mrb[115].mxu0 }
 0x9ec   : > { %v3815_v7 = vadd.f32 %v3814_v6, %v13381_v32  ;;  %4106 = vadd.xlane.f32.xlu1 %v4105_v26  ;;  %v13541_v23 = vadd.f32 %v3812_v15, %v13180_v10 }
 0x9ed   : > { %v13544_v28 = vadd.f32 %v3823_v60, %v13191_v41  ;;  %v3960_v4 = vsel %vm16959_vm6, %v13535_v3, 0.0  ;;  %v4052_v10 = vmul.f32 %v13535_v3, %v13535_v3  ;;  %vm16973_vm6 = vmmov %vm16773_vm0 }
 0x9ee   : > { %3961 = vadd.xlane.f32.xlu0 %v3960_v4  ;;  %v13549_v20 = vadd.f32 %v3815_v7, %v13188_v48  ;;  %v3954_v52 = vsel %vm16961_vm8, %v13541_v23, 0.0  ;;  %v4050_v1 = vmul.f32 %v13541_v23, %v13541_v23  ;;  %vm16975_vm8 = vmmov %vm16773_vm0 }
 0x9ef   : > { %v3963_v9 = vsel %vm16960_vm7, %v13544_v28, 0.0  ;;  %v4053_v36 = vmul.f32 %v13544_v28, %v13544_v28  ;;  %v4120_v48 = vsel %vm16963_vm10, %v4052_v10, 0.0  ;;  %vm16974_vm7 = vmmov %vm16773_vm0 }
 0x9f0   : > { %3964 = vadd.xlane.f32.xlu1 %v3963_v9  ;;  %v3957_v41 = vsel %vm16962_vm9, %v13549_v20, 0.0  ;;  %v4051_v19 = vmul.f32 %v13549_v20, %v13549_v20  ;;  %v4114_v38 = vsel %vm16965_vm12, %v4050_v1, 0.0  ;;  %vm16976_vm9 = vmmov %vm16773_vm0 }
 0x9f1   : > { %v4123_v59 = vsel %vm16964_vm11, %v4053_v36, 0.0  ;;  %vm16977_vm10 = vmmov %vm16773_vm0 }
 0x9f2   : > { %3955 = vadd.xlane.f32.xlu0 %v3954_v52  ;;  %v4117_v61 = vsel %vm16966_vm13, %v4051_v19, 0.0  ;;  %vm16978_vm11 = vmmov %vm16773_vm0 }
 0x9f3   : > { %vm16979_vm12 = vmmov %vm16773_vm0 }
 0x9f4   : > { %3958 = vadd.xlane.f32.xlu1 %v3957_v41  ;;  %vm16980_vm13 = vmmov %vm16773_vm0 }
 0x9f6   : > { %4121 = vadd.xlane.f32.xlu0 %v4120_v48 }
 0x9f8   : > { %4124 = vadd.xlane.f32.xlu1 %v4123_v59  ;;  %v9339_v42 = vpop.f32.mrb[116].mxu0 }
 0x9f9   : > { %v3836_v56 = vadd.f32 %v9339_v42, %v13381_v32  ;;  %v3827_v12 = vpop.f32.mrb[117].mxu0 }
 0x9fa   : > { %v3828_v47 = vadd.f32 %v3827_v12, %v13381_v32  ;;  %4115 = vadd.xlane.f32.xlu0 %v4114_v38  ;;  %v9340_v31 = vpop.f32.mrb[118].mxu0 }
 0x9fb   : > { %v13571_v2 = vadd.f32 %v3836_v56, %v13229_v57  ;;  %v3839_v11 = vadd.f32 %v9340_v31, %v13381_v32  ;;  %v3830_v58 = vpop.f32.mrb[119].mxu0 }
 0x9fc   : > { %v3831_v15 = vadd.f32 %v3830_v58, %v13381_v32  ;;  %4118 = vadd.xlane.f32.xlu1 %v4117_v61  ;;  %v13577_v22 = vadd.f32 %v3828_v47, %v13226_v35 }
 0x9fd   : > { %v13580_v60 = vadd.f32 %v3839_v11, %v13237_v33  ;;  %v3972_v6 = vsel %vm16967_vm14, %v13571_v2, 0.0  ;;  %v4056_v35 = vmul.f32 %v13571_v2, %v13571_v2  ;;  %vm16982_vm14 = vmmov %vm16773_vm0 }
 0x9fe   : > { %3973 = vadd.xlane.f32.xlu0 %v3972_v6  ;;  %v13585_v57 = vadd.f32 %v3831_v15, %v13234_v17  ;;  %v3966_v7 = vsel %vm16969_vm1, %v13577_v22, 0.0  ;;  %v4054_v9 = vmul.f32 %v13577_v22, %v13577_v22  ;;  %vm16985_vm1 = vmmov %vm16773_vm0 }
 0x9ff   : > { %v3975_v26 = vsel %vm16968_vm15, %v13580_v60, 0.0  ;;  %v4057_v4 = vmul.f32 %v13580_v60, %v13580_v60  ;;  %v4132_v17 = vsel %vm16970_vm2, %v4056_v35, 0.0  ;;  %vm16984_vm15 = vmmov %vm16773_vm0 }
 0xa00   : > { %3976 = vadd.xlane.f32.xlu1 %v3975_v26  ;;  %v3969_v33 = vsel %vm16773_vm0, %v13585_v57, 0.0  ;;  %v4055_v10 = vmul.f32 %v13585_v57, %v13585_v57  ;;  %v4126_v1 = vsel %vm16972_vm5, %v4054_v9, 0.0  ;;  %vm16987_vm2 = vmmov %vm16773_vm0 }
 0xa01   : > { %v4135_v52 = vsel %vm16971_vm4, %v4057_v4, 0.0  ;;  %vm16988_vm4 = vmmov %vm16773_vm0 }
 0xa02   : > { %3967 = vadd.xlane.f32.xlu0 %v3966_v7  ;;  %v4129_v38 = vsel %vm16973_vm6, %v4055_v10, 0.0  ;;  %vm16989_vm5 = vmmov %vm16773_vm0 }
 0xa03   : > { %vm16990_vm6 = vmmov %vm16773_vm0 }
 0xa04   : > { %3970 = vadd.xlane.f32.xlu1 %v3969_v33 }
 0xa06   : > { %4133 = vadd.xlane.f32.xlu0 %v4132_v17 }
 0xa08   : > { %4136 = vadd.xlane.f32.xlu1 %v4135_v52  ;;  %v9343_v41 = vpop.f32.mrb[120].mxu0 }
 0xa09   : > { %v3852_v36 = vadd.f32 %v9343_v41, %v13381_v32  ;;  %v3843_v48 = vpop.f32.mrb[121].mxu0 }
 0xa0a   : > { %v3844_v59 = vadd.f32 %v3843_v48, %v13381_v32  ;;  %4127 = vadd.xlane.f32.xlu0 %v4126_v1  ;;  %v9344_v19 = vpop.f32.mrb[122].mxu0 }
 0xa0b   : > { %v13607_v42 = vadd.f32 %v3852_v36, %v13275_v29  ;;  %v3855_v56 = vadd.f32 %v9344_v19, %v13381_v32  ;;  %v3846_v12 = vpop.f32.mrb[123].mxu0 }
 0xa0c   : > { %v3847_v47 = vadd.f32 %v3846_v12, %v13381_v32  ;;  %4130 = vadd.xlane.f32.xlu1 %v4129_v38  ;;  %v13613_v31 = vadd.f32 %v3844_v59, %v13272_v43 }
 0xa0d   : > { %v13616_v11 = vadd.f32 %v3855_v56, %v13278_v63  ;;  %v3984_v58 = vsel %vm16974_vm7, %v13607_v42, 0.0  ;;  %v4060_v43 = vmul.f32 %v13607_v42, %v13607_v42  ;;  %vm16991_vm7 = vmmov %vm16773_vm0 }
 0xa0e   : > { %3985 = vadd.xlane.f32.xlu0 %v3984_v58  ;;  %v13621_v29 = vadd.f32 %v3847_v47, %v13281_v44  ;;  %v3978_v15 = vsel %vm16976_vm9, %v13613_v31, 0.0  ;;  %v4058_v26 = vmul.f32 %v13613_v31, %v13613_v31  ;;  %vm17000_vm9 = vmmov %vm16773_vm0 }
 0xa0f   : > { %v3987_v61 = vsel %vm16975_vm8, %v13616_v11, 0.0  ;;  %v4061_v6 = vmul.f32 %v13616_v11, %v13616_v11  ;;  %v4144_v44 = vsel %vm16978_vm11, %v4060_v43, 0.0  ;;  %vm16998_vm8 = vmmov %vm16773_vm0 }
 0xa10   : > { %3988 = vadd.xlane.f32.xlu1 %v3987_v61  ;;  %v3981_v63 = vsel %vm16977_vm10, %v13621_v29, 0.0  ;;  %v4059_v33 = vmul.f32 %v13621_v29, %v13621_v29  ;;  %v4138_v10 = vsel %vm16980_vm13, %v4058_v26, 0.0  ;;  %vm17010_vm10 = vmmov %vm16773_vm0 }
 0xa11   : > { %v4147_v35 = vsel %vm16979_vm12, %v4061_v6, 0.0  ;;  %vm17012_vm11 = vmmov %vm16773_vm0 }
 0xa12   : > { %3979 = vadd.xlane.f32.xlu0 %v3978_v15  ;;  %v4141_v59 = vsel %vm16982_vm14, %v4059_v33, 0.0  ;;  %vm17022_vm12 = vmmov %vm16773_vm0 }
 0xa13   : > { %vm17024_vm13 = vmmov %vm16773_vm0 }
 0xa14   : > { %3982 = vadd.xlane.f32.xlu1 %v3981_v63  ;;  %vm17033_vm14 = vmmov %vm16773_vm0 }
 0xa16   : > { %4145 = vadd.xlane.f32.xlu0 %v4144_v44 }
 0xa17   : > { %v9347_v7 = vpop.f32.mrb[124].mxu0 }
 0xa18   : > { %v3868_v4 = vadd.f32 %v9347_v7, %v13381_v32  ;;  %4148 = vadd.xlane.f32.xlu1 %v4147_v35  ;;  %v3859_v17 = vpop.f32.mrb[125].mxu0 }
 0xa19   : > { %v3860_v9 = vadd.f32 %v3859_v17, %v13381_v32  ;;  %v9348_v52 = vpop.f32.mrb[126].mxu0 }
 0xa1a   : > { %v13643_v41 = vadd.f32 %v3868_v4, %v13313_v37  ;;  %v3871_v36 = vadd.f32 %v9348_v52, %v13381_v32  ;;  %4139 = vadd.xlane.f32.xlu0 %v4138_v10  ;;  %v3862_v48 = vpop.f32.mrb[127].mxu0 }
 0xa1b   : > { %v3863_v1 = vadd.f32 %v3862_v48, %v13381_v32  ;;  %v13654_v12 = vadd.f32 %v3860_v9, %v13303_v46 }
 0xa1c   : > { %16981 = vst [vmem:[#allocation73_spill] sm:$0xff] %v13643_v41  ;;  %v13649_v19 = vadd.f32 %v3871_v36, %v13317_v51  ;;  %4142 = vadd.xlane.f32.xlu1 %v4141_v59  ;;  %v3996_v56 = vsel %vm16984_vm15, %v13643_v41, 0.0  ;;  %vm17035_vm15 = vmmov %vm16773_vm0 }
 0xa1d   : > { %v13659_v38 = vadd.f32 %v3863_v1, %v13306_v54  ;;  %v3990_v32 = vsel %vm16773_vm0, %v13654_v12, 0.0  ;;  %v4062_v51 = vmul.f32 %v13654_v12, %v13654_v12  ;;  %v4064_v54 = vmul.f32 %v13643_v41, %v13643_v41 }
 0xa1e   : > { %16983 = vst [vmem:[#allocation89_spill] sm:$0xff] %v13649_v19  ;;  %3997 = vadd.xlane.f32.xlu0 %v3996_v56  ;;  %v3999_v37 = vsel %vm16985_vm1, %v13649_v19, 0.0  ;;  %v4065_v15 = vmul.f32 %v13649_v19, %v13649_v19  ;;  %vm17042_vm1 = vmmov %vm16773_vm0 }
 0xa1f   : > { %16986 = vst [vmem:[#allocation79_spill] sm:$0xff] %v13659_v38  ;;  %v3993_v47 = vsel %vm16987_vm2, %v13659_v38, 0.0  ;;  %v4063_v46 = vmul.f32 %v13659_v38, %v13659_v38  ;;  %v4150_v58 = vsel %vm16988_vm4, %v4062_v51, 0.0  ;;  %v4156_v43 = vsel %vm16990_vm6, %v4064_v54, 0.0  ;;  %vm17048_vm2 = vmmov %vm16773_vm0 }
 0xa20   : > { %4000 = vadd.xlane.f32.xlu1 %v3999_v37  ;;  %v4159_v63 = vsel %vm16991_vm7, %v4065_v15, 0.0  ;;  %vm17049_vm4 = vmmov %vm16773_vm0 }
 0xa21   : > { %v4153_v61 = vsel %vm16989_vm5, %v4063_v46, 0.0  ;;  %vm17054_vm5 = vmmov %vm16773_vm0 }
 0xa22   : > { %3991 = vadd.xlane.f32.xlu0 %v3990_v32  ;;  %vm17055_vm6 = vmmov %vm16773_vm0 }
 0xa23   : > { %vm17061_vm7 = vmmov %vm16773_vm0 }
 0xa24   : > { %3994 = vadd.xlane.f32.xlu1 %v3993_v47 }
 0xa26   : > { %4151 = vadd.xlane.f32.xlu0 %v4150_v58 }
 0xa28   : > { %4154 = vadd.xlane.f32.xlu1 %v4153_v61 }
 0xa2a   : > { %4157 = vadd.xlane.f32.xlu0 %v4156_v43 }
 0xa2c   : > { %4160 = vadd.xlane.f32.xlu1 %v4159_v63 }
 0xa3b   : > { %v3914_v6 = vpop.xlane.xlu0 %3913 }
 0xa3c   : > { %v4004_v7 = vmul.f32 0.03125, %v3914_v6 }
 0xa3d   : > { %v3917_v44 = vpop.xlane.xlu1 %3916 }
 0xa3e   : > { %v4005_v33 = vmul.f32 0.03125, %v3917_v44  ;;  %v4196_v17 = vmul.f32 %v4004_v7, %v4004_v7 }
 0xa3f   : > { %v3908_v26 = vpop.xlane.xlu0 %3907 }
 0xa40   : > { %v13677_v9 = vmul.f32 0.03125, %v3908_v26  ;;  %v4197_v48 = vmul.f32 %v4005_v33, %v4005_v33 }
 0xa41   : > { %v3911_v35 = vpop.xlane.xlu1 %3910 }
 0xa42   : > { %v13679_v10 = vmul.f32 0.03125, %v3911_v35  ;;  %v4194_v37 = vmul.f32 %v13677_v9, %v13677_v9 }
 0xa43   : > { %v4074_v4 = vpop.xlane.xlu0 %4073 }
 0xa44   : > { %v4164_v52 = vmul.f32 0.03125, %v4074_v4  ;;  %v4195_v46 = vmul.f32 %v13679_v10, %v13679_v10  ;;  %v4291_v25 = vsub.f32 %v13399_v34, %v13679_v10 }
 0xa45   : > { %v4077_v36 = vpop.xlane.xlu1 %4076 }
 0xa46   : > { %v4228_v1 = vsub.f32 %v4164_v52, %v4196_v17  ;;  %v4165_v59 = vmul.f32 0.03125, %v4077_v36 }
 0xa47   : > { %v4068_v56 = vpop.xlane.xlu0 %4067 }
 0xa48   : > { %v4260_v32 = vmax.f32 %v4228_v1, 0.0  ;;  %v4229_v51 = vsub.f32 %v4165_v59, %v4197_v48  ;;  %v4162_v47 = vmul.f32 0.03125, %v4068_v56  ;;  %v16516_v56 = vsub.s32 4, %v12634_v50 }
 0xa49   : > { %v4071_v58 = vpop.xlane.xlu1 %4070 }
 0xa4a   : > { %v4324_v54 = vadd.f32 1e-05, %v4260_v32  ;;  %v4261_v61 = vmax.f32 %v4229_v51, 0.0  ;;  %v4226_v15 = vsub.f32 %v4162_v47, %v4194_v37  ;;  %v4163_v43 = vmul.f32 0.03125, %v4071_v58 }
 0xa4b   : > { %v3926_v63 = vpop.xlane.xlu0 %3925 }
 0xa4c   : > { %10212 = vrsqrt.f32 %v4324_v54  ;;  %v4325_v6 = vadd.f32 1e-05, %v4261_v61  ;;  %v4258_v44 = vmax.f32 %v4226_v15, 0.0  ;;  %v4227_v26 = vsub.f32 %v4163_v43, %v4195_v46 }
 0xa4d   : > { %v3929_v35 = vpop.xlane.xlu1 %3928  ;;  %v13685_v48 = vmul.f32 0.03125, %v3926_v63  ;;  %v4292_v63 = vsub.f32 %v13386_v5, %v4004_v7  ;;  %v4290_v5 = vsub.f32 %v13391_v62, %v13677_v9 }
 0xa4e   : > { %10214 = vrsqrt.f32 %v4325_v6  ;;  %v4322_v4 = vadd.f32 1e-05, %v4258_v44  ;;  %v4259_v17 = vmax.f32 %v4227_v26, 0.0  ;;  %v13687_v59 = vmul.f32 0.03125, %v3929_v35 }
 0xa4f   : > { %v3920_v52 = vpop.xlane.xlu0 %3919  ;;  %v4200_v32 = vmul.f32 %v13685_v48, %v13685_v48  ;;  %v4293_v6 = vsub.f32 %v13394_v14, %v4005_v33  ;;  %v13703_v44 = vrot.slane %v13376_v27, %v16516_v56  ;;  %v16519_v26 = vsub.s32 5, %v12634_v50 }
 0xa50   : > { %10216 = vrsqrt.f32 %v4322_v4  ;;  %v4323_v36 = vadd.f32 1e-05, %v4259_v17  ;;  %v13692_v51 = vmul.f32 0.03125, %v3920_v52  ;;  %v4201_v61 = vmul.f32 %v13687_v59, %v13687_v59 }
 0xa51   : > { %v3923_v1 = vpop.xlane.xlu1 %3922 }
 0xa52   : > { %10218 = vrsqrt.f32 %v4323_v36  ;;  %v13694_v46 = vmul.f32 0.03125, %v3923_v1  ;;  %v4198_v17 = vmul.f32 %v13692_v51, %v13692_v51 }
 0xa53   : > { %v4086_v37 = vpop.xlane.xlu0 %4085 }
 0xa54   : > { %v4168_v47 = vmul.f32 0.03125, %v4086_v37  ;;  %v4199_v33 = vmul.f32 %v13694_v46, %v13694_v46 }
 0xa55   : > { %v4089_v58 = vpop.xlane.xlu1 %4088 }
 0xa56   : > { %v10213_v54 = vpop.eup %10212  ;;  %v4232_v15 = vsub.f32 %v4168_v47, %v4200_v32  ;;  %v4169_v43 = vmul.f32 0.03125, %v4089_v58 }
 0xa57   : > { %v4080_v35 = vpop.xlane.xlu0 %4079  ;;  %v4388_v7 = vmul.f32 %v10213_v54, %v4292_v63  ;;  %v13718_v63 = vrot.slane %v13376_v27, %v16519_v26 }
 0xa58   : > { %v10215_v4 = vpop.eup %10214  ;;  %v4264_v52 = vmax.f32 %v4232_v15, 0.0  ;;  %v4233_v36 = vsub.f32 %v4169_v43, %v4201_v61  ;;  %v4166_v1 = vmul.f32 0.03125, %v4080_v35 }
 0xa59   : > { %v4389_v14 = vmul.f32 %v10215_v4, %v4293_v6  ;;  %v4083_v37 = vpop.xlane.xlu1 %4082  ;;  %v4424_v6 = vmul.f32 %v13703_v44, %v4388_v7  ;;  %v592_v7 = vld [vmem:[#allocation13 + $0x10] sm:$0xff] }
 0xa5a   : > { %v10217_v32 = vpop.eup %10216  ;;  %v4328_v47 = vadd.f32 1e-05, %v4264_v52  ;;  %v4265_v58 = vmax.f32 %v4233_v36, 0.0  ;;  %v4230_v56 = vsub.f32 %v4166_v1, %v4198_v17  ;;  %v4167_v30 = vmul.f32 0.03125, %v4083_v37  ;;  %v597_v37 = vld [vmem:[#allocation13 + $0x38] sm:$0xff] }
 0xa5b   : > { %v4425_v61 = vmul.f32 %v13703_v44, %v4389_v14  ;;  %v3938_v15 = vpop.xlane.xlu0 %3937  ;;  %v4386_v43 = vmul.f32 %v10217_v32, %v4290_v5  ;;  %v591_v5 = vld [vmem:[#allocation13 + $0x8] sm:$0xff]  ;;  %v13729_v32 = vadd.f32 %v13718_v63, %v4424_v6 }
 0xa5c   : > { %v10219_v35 = vpop.eup %10218  ;;  %10220 = vrsqrt.f32 %v4328_v47  ;;  %v4329_v62 = vadd.f32 1e-05, %v4265_v58  ;;  %v4262_v9 = vmax.f32 %v4230_v56, 0.0  ;;  %v4231_v54 = vsub.f32 %v4167_v30, %v4199_v33  ;;  %v593_v56 = vld [vmem:[#allocation13 + $0x18] sm:$0xff]  ;;  %v590_v30 = vld [vmem:[#allocation13] sm:$0xff]  ;;  %v599_v6 = vld [vmem:[#allocation13 + $0x48] sm:$0xff] }
 0xa5d   : > { %v3941_v4 = vpop.xlane.xlu1 %3940  ;;  %v4387_v17 = vmul.f32 %v10219_v35, %v4291_v25  ;;  %v4422_v34 = vmul.f32 %v13703_v44, %v4386_v43  ;;  %v13724_v14 = vadd.f32 %v13718_v63, %v4425_v61  ;;  %v13726_v33 = vmul.f32 0.03125, %v3938_v15  ;;  %v595_v25 = vld [vmem:[#allocation13 + $0x28] sm:$0xff]  ;;  %v594_v61 = vld [vmem:[#allocation13 + $0x20] sm:$0xff] }
 0xa5e   : > { %10222 = vrsqrt.f32 %v4329_v62  ;;  %v4326_v10 = vadd.f32 1e-05, %v4262_v9  ;;  %v4263_v52 = vmax.f32 %v4231_v54, 0.0  ;;  %v13737_v35 = vpack.c.bf16 %v593_v56, %v591_v5  ;;  %v596_v62 = vld [vmem:[#allocation13 + $0x30] sm:$0xff] }
 0xa5f   : > { %v3932_v36 = vpop.xlane.xlu0 %3931  ;;  %v4423_v1 = vmul.f32 %v13703_v44, %v4387_v17  ;;  %v13732_v58 = vadd.f32 %v13718_v63, %v4422_v34  ;;  %v13739_v15 = vmul.f32 0.03125, %v3941_v4  ;;  %v13741_v9 = vpack.c.bf16 %v592_v7, %v590_v30  ;;  %v601_v17 = vld [vmem:[#allocation13 + $0x58] sm:$0xff]  ;;  %v598_v7 = vld [vmem:[#allocation13 + $0x40] sm:$0xff] }
 0xa60   : > { %10224 = vrsqrt.f32 %v4326_v10  ;;  %v4327_v27 = vadd.f32 1e-05, %v4263_v52  ;;  %16992 = vst [vmem:[#allocation70_spill] sm:$0xff] %v13737_v35  ;;  %v13743_v54 = vpack.c.bf16 %v597_v37, %v595_v25  ;;  %v13745_v10 = vmul.f32 0.03125, %v3932_v36  ;;  %9578 = vmatprep.subr.bf16.mxu1 %v13737_v35  ;;  %v600_v25 = vld [vmem:[#allocation13 + $0x50] sm:$0xff] }
 0xa61   : > { %v3935_v47 = vpop.xlane.xlu1 %3934  ;;  %v13735_v43 = vadd.f32 %v13718_v63, %v4423_v1  ;;  %16993 = vst [vmem:[#allocation82_spill] sm:$0xff] %v13741_v9  ;;  %v4204_v1 = vmul.f32 %v13726_v33, %v13726_v33  ;;  %v13756_v5 = vpack.c.bf16 %v13724_v14, %v13729_v32  ;;  %9580 = vmatpush1.bf16.msra.mxu1 %v13741_v9 }
 0xa62   : > { %10226 = vrsqrt.f32 %v4327_v27  ;;  %16994 = vst [vmem:[#allocation72_spill] sm:$0xff] %v13743_v54  ;;  %v13759_v56 = vpack.c.bf16 %v596_v62, %v594_v61  ;;  %v13761_v36 = vmul.f32 0.03125, %v3935_v47  ;;  %9582 = vmatprep.subr.bf16.mxu1 %v13743_v54  ;;  %v13766_v27 = vpack.c.bf16 %v601_v17, %v599_v6  ;;  %v603_v47 = vld [vmem:[#allocation13 + $0x68] sm:$0xff]  ;;  %v605_v61 = vld [vmem:[#allocation13 + $0x78] sm:$0xff] }
 0xa63   : > { %v4098_v34 = vpop.xlane.xlu0 %4097  ;;  %v13749_v52 = vpack.c.bf16 %v13735_v43, %v13732_v58  ;;  %16996 = vst [vmem:[#allocation78_spill] sm:$0xff] %v13756_v5  ;;  %v4296_v62 = vsub.f32 %v13421_v8, %v13685_v48  ;;  %v4297_v6 = vsub.f32 %v13430_v45, %v13687_v59  ;;  %v4294_v17 = vsub.f32 %v13427_v13, %v13692_v51  ;;  %v604_v8 = vld [vmem:[#allocation13 + $0x70] sm:$0xff] }
 0xa64   : > { %v4172_v4 = vmul.f32 0.03125, %v4098_v34  ;;  %16997 = vst [vmem:[#allocation60_spill] sm:$0xff] %v13759_v56  ;;  %16999 = vst [vmem:[#allocation58_spill] sm:$0xff] %v13766_v27  ;;  %v4205_v34 = vmul.f32 %v13739_v15, %v13739_v15  ;;  %v4202_v54 = vmul.f32 %v13745_v10, %v13745_v10  ;;  %v13781_v50 = vpack.c.bf16 %v600_v25, %v598_v7  ;;  %v609_v7 = vld [vmem:[#allocation13 + $0x98] sm:$0xff] }
 0xa65   : > { %16995 = vst [vmem:[#allocation86_spill] sm:$0xff] %v13749_v52  ;;  %v4101_v30 = vpop.xlane.xlu1 %4100  ;;  %9389 = vmatprep.mubr.msk.bf16.mxu0 %vm16998_vm8, %v13749_v52  ;;  %9584 = vmatpush1.bf16.msra.mxu1 %v13759_v56  ;;  %v4203_v45 = vmul.f32 %v13761_v36, %v13761_v36  ;;  %v13786_v51 = vpack.c.bf16 %v605_v61, %v603_v47  ;;  %v607_v56 = vld [vmem:[#allocation13 + $0x88] sm:$0xff]  ;;  %vm17064_vm8 = vmmov %vm16773_vm0 }
 0xa66   : > { %v10221_v37 = vpop.eup %10220  ;;  %v4236_v26 = vsub.f32 %v4172_v4, %v4204_v1  ;;  %v4173_v40 = vmul.f32 0.03125, %v4101_v30  ;;  %9390 = vmatmul.mubr.msk.bf16.vlgmr.msra.gmra.mrb[128].mxu0 %vm17000_vm9, %v13756_v5  ;;  %17001 = vst [vmem:[#allocation76_spill] sm:$0xff] %v13781_v50  ;;  %v602_v5 = vld [vmem:[#allocation13 + $0x60] sm:$0xff]  ;;  %9586 = vmatprep.subr.bf16.mxu1 %v13766_v27  ;;  %v4295_v25 = vsub.f32 %v13435_v21, %v13694_v46  ;;  %vm17066_vm9 = vmmov %vm16773_vm0 }
 0xa67   : > { %v4092_v9 = vpop.xlane.xlu0 %4091  ;;  %v4392_v59 = vmul.f32 %v10221_v37, %v4296_v62  ;;  %17002 = vst [vmem:[#allocation77_spill] sm:$0xff] %v13786_v51  ;;  %v13791_v37 = vpack.c.bf16 %v604_v8, %v602_v5  ;;  %v13796_v21 = vpack.c.bf16 %v609_v7, %v607_v56  ;;  %v613_v8 = vld [vmem:[#allocation13 + $0xb8] sm:$0xff]  ;;  %v610_v56 = vld [vmem:[#allocation13 + $0xa0] sm:$0xff] }
 0xa68   : > { %v10223_v1 = vpop.eup %10222  ;;  %v4268_v4 = vmax.f32 %v4236_v26, 0.0  ;;  %v4237_v30 = vsub.f32 %v4173_v40, %v4205_v34  ;;  %v4170_v35 = vmul.f32 0.03125, %v4092_v9 }
 0xa69   : > { %v4095_v48 = vpop.xlane.xlu1 %4094  ;;  %v4393_v13 = vmul.f32 %v10223_v1, %v4297_v6  ;;  %17003 = vst [vmem:[#allocation83_spill] sm:$0xff] %v13791_v37  ;;  %9588 = vmatpush1.bf16.msra.mxu1 %v13781_v50  ;;  %17004 = vst [vmem:[#allocation90_spill] sm:$0xff] %v13796_v21  ;;  %v4428_v5 = vmul.f32 %v13703_v44, %v4392_v59 }
 0xa6a   : > { %v10225_v52 = vpop.eup %10224  ;;  %v4332_v26 = vadd.f32 1e-05, %v4268_v4  ;;  %v4269_v40 = vmax.f32 %v4237_v30, 0.0  ;;  %v4234_v9 = vsub.f32 %v4170_v35, %v4202_v54  ;;  %v4171_v34 = vmul.f32 0.03125, %v4095_v48  ;;  %v606_v35 = vld [vmem:[#allocation13 + $0x80] sm:$0xff]  ;;  %v608_v54 = vld [vmem:[#allocation13 + $0x90] sm:$0xff]  ;;  %9590 = vmatprep.subr.bf16.mxu1 %v13786_v51 }
 0xa6b   : > { %v3950_v19 = vpop.xlane.xlu0 %3949  ;;  %v4390_v41 = vmul.f32 %v10225_v52, %v4294_v17  ;;  %v4429_v38 = vmul.f32 %v13703_v44, %v4393_v13  ;;  %v611_v17 = vld [vmem:[#allocation13 + $0xa8] sm:$0xff]  ;;  %v13800_v13 = vpack.c.bf16 %v608_v54, %v606_v35  ;;  %v618_v51 = vld [vmem:[#allocation13 + $0xe0] sm:$0xff] }
 0xa6c   : > { %v10227_v62 = vpop.eup %10226  ;;  %10228 = vrsqrt.f32 %v4332_v26  ;;  %v4333_v47 = vadd.f32 1e-05, %v4269_v40  ;;  %v4266_v61 = vmax.f32 %v4234_v9, 0.0  ;;  %v4235_v6 = vsub.f32 %v4171_v34, %v4203_v45  ;;  %v612_v9 = vld [vmem:[#allocation13 + $0xb0] sm:$0xff] }
 0xa6d   : > { %v3953_v1 = vpop.xlane.xlu1 %3952  ;;  %v4391_v4 = vmul.f32 %v10227_v62, %v4295_v25  ;;  %v4426_v30 = vmul.f32 %v13703_v44, %v4390_v41  ;;  %17005 = vst [vmem:[#allocation81_spill] sm:$0xff] %v13800_v13  ;;  %v13802_v40 = vmul.f32 0.03125, %v3950_v19  ;;  %v13805_v41 = vadd.f32 %v13718_v63, %v4429_v38  ;;  %9592 = vmatpush1.bf16.msra.mxu1 %v13791_v37  ;;  %v615_v62 = vld [vmem:[#allocation13 + $0xc8] sm:$0xff] }
 0xa6e   : > { %10230 = vrsqrt.f32 %v4333_v47  ;;  %v4330_v46 = vadd.f32 1e-05, %v4266_v61  ;;  %v4267_v52 = vmax.f32 %v4235_v6, 0.0  ;;  %9594 = vmatprep.subr.bf16.mxu1 %v13796_v21  ;;  %v13815_v25 = vpack.c.bf16 %v613_v8, %v611_v17  ;;  %v617_v47 = vld [vmem:[#allocation13 + $0xd8] sm:$0xff] }
 0xa6f   : > { %v3944_v45 = vpop.xlane.xlu0 %3943  ;;  %v4427_v48 = vmul.f32 %v13703_v44, %v4391_v4  ;;  %v13809_v59 = vadd.f32 %v13718_v63, %v4426_v30  ;;  %v13817_v19 = vmul.f32 0.03125, %v3953_v1  ;;  %v13820_v38 = vadd.f32 %v13718_v63, %v4428_v5 }
 0xa70   : > { %10232 = vrsqrt.f32 %v4330_v46  ;;  %v4331_v26 = vadd.f32 1e-05, %v4267_v52  ;;  %17006 = vst [vmem:[#allocation88_spill] sm:$0xff] %v13815_v25  ;;  %v13826_v35 = vpack.c.bf16 %v612_v9, %v610_v56  ;;  %v4208_v54 = vmul.f32 %v13802_v40, %v13802_v40  ;;  %v614_v46 = vld [vmem:[#allocation13 + $0xc0] sm:$0xff]  ;;  %v616_v52 = vld [vmem:[#allocation13 + $0xd0] sm:$0xff]  ;;  %v619_v9 = vld [vmem:[#allocation13 + $0xe8] sm:$0xff] }
 0xa71   : > { %v3947_v34 = vpop.xlane.xlu1 %3946  ;;  %v13812_v7 = vadd.f32 %v13718_v63, %v4427_v48  ;;  %v13830_v4 = vmul.f32 0.03125, %v3944_v45  ;;  %v13834_v1 = vpack.c.bf16 %v13805_v41, %v13820_v38  ;;  %9596 = vmatpush1.bf16.msra.mxu1 %v13800_v13  ;;  %v13842_v8 = vpack.c.bf16 %v617_v47, %v615_v62 }
 0xa72   : > { %10234 = vrsqrt.f32 %v4331_v26  ;;  %17008 = vst [vmem:[#allocation99_spill] sm:$0xff] %v13826_v35  ;;  %v13837_v5 = vmul.f32 0.03125, %v3947_v34  ;;  %9598 = vmatprep.subr.bf16.mxu1 %v13815_v25  ;;  %v4209_v48 = vmul.f32 %v13817_v19, %v13817_v19  ;;  %v621_v34 = vld [vmem:[#allocation13 + $0xf8] sm:$0xff]  ;;  %v4301_v13 = vsub.f32 %v13466_v49, %v13739_v15 }
 0xa73   : > { %v4110_v61 = vpop.xlane.xlu0 %4109  ;;  %v13824_v6 = vpack.c.bf16 %v13812_v7, %v13809_v59  ;;  %17009 = vst [vmem:[#allocation92_spill] sm:$0xff] %v13834_v1  ;;  %17011 = vst [vmem:[#allocation97_spill] sm:$0xff] %v13842_v8  ;;  %v4298_v62 = vsub.f32 %v13463_v18, %v13745_v10  ;;  %v13854_v25 = vpack.c.bf16 %v616_v52, %v614_v46 }
 0xa74   : > { %v4176_v30 = vmul.f32 0.03125, %v4110_v61  ;;  %v4300_v61 = vsub.f32 %v13457_v16, %v13726_v33  ;;  %v620_v16 = vld [vmem:[#allocation13 + $0xf0] sm:$0xff]  ;;  %v4207_v49 = vmul.f32 %v13837_v5, %v13837_v5  ;;  %v13862_v10 = vpack.c.bf16 %v621_v34, %v619_v9 }
 0xa75   : > { %17007 = vst [vmem:[#allocation95_spill] sm:$0xff] %v13824_v6  ;;  %v4113_v17 = vpop.xlane.xlu1 %4112  ;;  %9393 = vmatprep.mubr.msk.bf16.mxu0 %vm17010_vm10, %v13824_v6  ;;  %17013 = vst [vmem:[#allocation67_spill] sm:$0xff] %v13854_v25  ;;  %9600 = vmatpush1.bf16.msra.mxu1 %v13826_v35  ;;  %v4299_v35 = vsub.f32 %v13471_v39, %v13761_v36 }
 0xa76   : > { %v10229_v45 = vpop.eup %10228  ;;  %v4240_v26 = vsub.f32 %v4176_v30, %v4208_v54  ;;  %v4177_v56 = vmul.f32 0.03125, %v4113_v17  ;;  %9394 = vmatmul.mubr.msk.bf16.gmra.mrb[132].mxu0 %vm17012_vm11, %v13834_v1  ;;  %v4206_v54 = vmul.f32 %v13830_v4, %v13830_v4  ;;  %9602 = vmatprep.subr.bf16.mxu1 %v13842_v8  ;;  %17014 = vst [vmem:[#allocation66_spill] sm:$0xff] %v13862_v10  ;;  %vm17068_vm10 = vmmov %vm16773_vm0 }
 0xa77   : > { %v4104_v47 = vpop.xlane.xlu0 %4103  ;;  %v4396_v15 = vmul.f32 %v10229_v45, %v4300_v61  ;;  %v13867_v45 = vpack.c.bf16 %v620_v16, %v618_v51  ;;  %v624_v61 = vld [vmem:[#allocation13 + $0x110] sm:$0xff]  ;;  %v629_v16 = vld [vmem:[#allocation13 + $0x138] sm:$0xff]  ;;  %vm17070_vm11 = vmmov %vm16773_vm0 }
 0xa78   : > { %v10231_v21 = vpop.eup %10230  ;;  %v4272_v30 = vmax.f32 %v4240_v26, 0.0  ;;  %v4241_v17 = vsub.f32 %v4177_v56, %v4209_v48  ;;  %v4174_v37 = vmul.f32 0.03125, %v4104_v47  ;;  %v623_v56 = vld [vmem:[#allocation13 + $0x108] sm:$0xff]  ;;  %v625_v47 = vld [vmem:[#allocation13 + $0x118] sm:$0xff] }
 0xa79   : > { %v4107_v33 = vpop.xlane.xlu1 %4106  ;;  %v4397_v18 = vmul.f32 %v10231_v21, %v4301_v13  ;;  %17015 = vst [vmem:[#allocation71_spill] sm:$0xff] %v13867_v45  ;;  %9604 = vmatpush1.bf16.msra.mxu1 %v13854_v25  ;;  %v13872_v39 = vpack.c.bf16 %v625_v47, %v623_v56 }
 0xa7a   : > { %v10233_v46 = vpop.eup %10232  ;;  %v4336_v52 = vadd.f32 1e-05, %v4272_v30  ;;  %v4273_v50 = vmax.f32 %v4241_v17, 0.0  ;;  %v4238_v26 = vsub.f32 %v4174_v37, %v4206_v54  ;;  %v4175_v48 = vmul.f32 0.03125, %v4107_v33  ;;  %v622_v37 = vld [vmem:[#allocation13 + $0x100] sm:$0xff]  ;;  %9606 = vmatprep.subr.bf16.mxu1 %v13862_v10 }
 0xa7b   : > { %v3962_v27 = vpop.xlane.xlu0 %3961  ;;  %v4394_v1 = vmul.f32 %v10233_v46, %v4298_v62  ;;  %v4433_v6 = vmul.f32 %v13703_v44, %v4397_v18  ;;  %17016 = vst [vmem:[#allocation75_spill] sm:$0xff] %v13872_v39  ;;  %v4432_v62 = vmul.f32 %v13703_v44, %v4396_v15  ;;  %v13876_v18 = vpack.c.bf16 %v624_v61, %v622_v37  ;;  %v634_v10 = vld [vmem:[#allocation13 + $0x160] sm:$0xff] }
 0xa7c   : > { %v10235_v21 = vpop.eup %10234  ;;  %10236 = vrsqrt.f32 %v4336_v52  ;;  %v4337_v13 = vadd.f32 1e-05, %v4273_v50  ;;  %v4270_v9 = vmax.f32 %v4238_v26, 0.0  ;;  %v4239_v34 = vsub.f32 %v4175_v48, %v4207_v49  ;;  %v627_v50 = vld [vmem:[#allocation13 + $0x128] sm:$0xff]  ;;  %v626_v52 = vld [vmem:[#allocation13 + $0x120] sm:$0xff]  ;;  %v628_v26 = vld [vmem:[#allocation13 + $0x130] sm:$0xff] }
 0xa7d   : > { %v3965_v54 = vpop.xlane.xlu1 %3964  ;;  %v4395_v30 = vmul.f32 %v10235_v21, %v4299_v35  ;;  %v4430_v17 = vmul.f32 %v13703_v44, %v4394_v1  ;;  %17017 = vst [vmem:[#allocation69_spill] sm:$0xff] %v13876_v18  ;;  %v13878_v46 = vmul.f32 0.03125, %v3962_v27  ;;  %v13881_v1 = vadd.f32 %v13718_v63, %v4433_v6  ;;  %9608 = vmatpush1.bf16.msra.mxu1 %v13867_v45  ;;  %v631_v21 = vld [vmem:[#allocation13 + $0x148] sm:$0xff] }
 0xa7e   : > { %10238 = vrsqrt.f32 %v4337_v13  ;;  %v4334_v36 = vadd.f32 1e-05, %v4270_v9  ;;  %v4271_v51 = vmax.f32 %v4239_v34, 0.0  ;;  %9610 = vmatprep.subr.bf16.mxu1 %v13872_v39  ;;  %v13891_v47 = vpack.c.bf16 %v629_v16, %v627_v50  ;;  %v633_v13 = vld [vmem:[#allocation13 + $0x158] sm:$0xff] }
 0xa7f   : > { %v3956_v49 = vpop.xlane.xlu0 %3955  ;;  %v4431_v33 = vmul.f32 %v13703_v44, %v4395_v30  ;;  %v13885_v15 = vadd.f32 %v13718_v63, %v4430_v17  ;;  %v13893_v27 = vmul.f32 0.03125, %v3965_v54  ;;  %v13896_v6 = vadd.f32 %v13718_v63, %v4432_v62 }
 0xa80   : > { %10240 = vrsqrt.f32 %v4334_v36  ;;  %v4335_v35 = vadd.f32 1e-05, %v4271_v51  ;;  %17018 = vst [vmem:[#allocation74_spill] sm:$0xff] %v13891_v47  ;;  %v13902_v37 = vpack.c.bf16 %v628_v26, %v626_v52  ;;  %v4212_v61 = vmul.f32 %v13878_v46, %v13878_v46  ;;  %v630_v36 = vld [vmem:[#allocation13 + $0x140] sm:$0xff]  ;;  %v632_v51 = vld [vmem:[#allocation13 + $0x150] sm:$0xff]  ;;  %v635_v26 = vld [vmem:[#allocation13 + $0x168] sm:$0xff] }
 0xa81   : > { %v3959_v48 = vpop.xlane.xlu1 %3958  ;;  %v13888_v56 = vadd.f32 %v13718_v63, %v4431_v33  ;;  %v13906_v30 = vmul.f32 0.03125, %v3956_v49  ;;  %v13910_v54 = vpack.c.bf16 %v13881_v1, %v13896_v6  ;;  %9612 = vmatpush1.bf16.msra.mxu1 %v13876_v18  ;;  %v13918_v16 = vpack.c.bf16 %v633_v13, %v631_v21 }
 0xa82   : > { %10242 = vrsqrt.f32 %v4335_v35  ;;  %17020 = vst [vmem:[#allocation91_spill] sm:$0xff] %v13902_v37  ;;  %v13913_v62 = vmul.f32 0.03125, %v3959_v48  ;;  %9614 = vmatprep.subr.bf16.mxu1 %v13891_v47  ;;  %v4213_v33 = vmul.f32 %v13893_v27, %v13893_v27  ;;  %v637_v48 = vld [vmem:[#allocation13 + $0x178] sm:$0xff]  ;;  %v4305_v18 = vsub.f32 %v13502_v24, %v13817_v19 }
 0xa83   : > { %v4122_v9 = vpop.xlane.xlu0 %4121  ;;  %v13900_v34 = vpack.c.bf16 %v13888_v56, %v13885_v15  ;;  %17021 = vst [vmem:[#allocation80_spill] sm:$0xff] %v13910_v54  ;;  %17023 = vst [vmem:[#allocation87_spill] sm:$0xff] %v13918_v16  ;;  %v4302_v21 = vsub.f32 %v13499_v55, %v13830_v4  ;;  %v13930_v47 = vpack.c.bf16 %v632_v51, %v630_v36 }
 0xa84   : > { %v4180_v17 = vmul.f32 0.03125, %v4122_v9  ;;  %v4304_v9 = vsub.f32 %v13493_v0, %v13802_v40  ;;  %v636_v0 = vld [vmem:[#allocation13 + $0x170] sm:$0xff]  ;;  %v4211_v24 = vmul.f32 %v13913_v62, %v13913_v62  ;;  %v13938_v4 = vpack.c.bf16 %v637_v48, %v635_v26 }
 0xa85   : > { %17019 = vst [vmem:[#allocation85_spill] sm:$0xff] %v13900_v34  ;;  %v4125_v50 = vpop.xlane.xlu1 %4124  ;;  %9397 = vmatprep.mubr.msk.bf16.mxu0 %vm17022_vm12, %v13900_v34  ;;  %17025 = vst [vmem:[#allocation94_spill] sm:$0xff] %v13930_v47  ;;  %9616 = vmatpush1.bf16.msra.mxu1 %v13902_v37  ;;  %v4303_v37 = vsub.f32 %v13507_v53, %v13837_v5 }
 0xa86   : > { %v10237_v49 = vpop.eup %10236  ;;  %v4244_v35 = vsub.f32 %v4180_v17, %v4212_v61  ;;  %v4181_v52 = vmul.f32 0.03125, %v4125_v50  ;;  %9398 = vmatmul.mubr.msk.bf16.gmra.mrb[136].mxu0 %vm17024_vm13, %v13910_v54  ;;  %v4210_v61 = vmul.f32 %v13906_v30, %v13906_v30  ;;  %9618 = vmatprep.subr.bf16.mxu1 %v13918_v16  ;;  %17026 = vst [vmem:[#allocation98_spill] sm:$0xff] %v13938_v4  ;;  %vm17072_vm12 = vmmov %vm16773_vm0 }
 0xa87   : > { %v4116_v13 = vpop.xlane.xlu0 %4115  ;;  %v4400_v19 = vmul.f32 %v10237_v49, %v4304_v9  ;;  %v13943_v49 = vpack.c.bf16 %v636_v0, %v634_v10  ;;  %v640_v9 = vld [vmem:[#allocation13 + $0x190] sm:$0xff]  ;;  %v645_v0 = vld [vmem:[#allocation13 + $0x1b8] sm:$0xff]  ;;  %vm17074_vm13 = vmmov %vm16773_vm0 }
 0xa88   : > { %v10239_v39 = vpop.eup %10238  ;;  %v4276_v17 = vmax.f32 %v4244_v35, 0.0  ;;  %v4245_v50 = vsub.f32 %v4181_v52, %v4213_v33  ;;  %v4178_v45 = vmul.f32 0.03125, %v4116_v13  ;;  %v639_v52 = vld [vmem:[#allocation13 + $0x188] sm:$0xff]  ;;  %v641_v13 = vld [vmem:[#allocation13 + $0x198] sm:$0xff] }
 0xa89   : > { %v4119_v40 = vpop.xlane.xlu1 %4118  ;;  %v4401_v55 = vmul.f32 %v10239_v39, %v4305_v18  ;;  %17027 = vst [vmem:[#allocation68_spill] sm:$0xff] %v13943_v49  ;;  %9620 = vmatpush1.bf16.msra.mxu1 %v13930_v47  ;;  %v13948_v53 = vpack.c.bf16 %v641_v13, %v639_v52 }
 0xa8a   : > { %v10241_v36 = vpop.eup %10240  ;;  %v4340_v51 = vadd.f32 1e-05, %v4276_v17  ;;  %v4277_v25 = vmax.f32 %v4245_v50, 0.0  ;;  %v4242_v35 = vsub.f32 %v4178_v45, %v4210_v61  ;;  %v4179_v33 = vmul.f32 0.03125, %v4119_v40  ;;  %v638_v45 = vld [vmem:[#allocation13 + $0x180] sm:$0xff]  ;;  %9622 = vmatprep.subr.bf16.mxu1 %v13938_v4 }
 0xa8b   : > { %v3974_v8 = vpop.xlane.xlu0 %3973  ;;  %v4398_v54 = vmul.f32 %v10241_v36, %v4302_v21  ;;  %v4437_v34 = vmul.f32 %v13703_v44, %v4401_v55  ;;  %17028 = vst [vmem:[#allocation64_spill] sm:$0xff] %v13948_v53  ;;  %v4436_v21 = vmul.f32 %v13703_v44, %v4400_v19  ;;  %v13952_v55 = vpack.c.bf16 %v640_v9, %v638_v45  ;;  %v646_v9 = vld [vmem:[#allocation13 + $0x1c0] sm:$0xff] }
 0xa8c   : > { %v10243_v39 = vpop.eup %10242  ;;  %10244 = vrsqrt.f32 %v4340_v51  ;;  %v4341_v18 = vadd.f32 1e-05, %v4277_v25  ;;  %v4274_v26 = vmax.f32 %v4242_v35, 0.0  ;;  %v4243_v48 = vsub.f32 %v4179_v33, %v4211_v24  ;;  %v643_v25 = vld [vmem:[#allocation13 + $0x1a8] sm:$0xff]  ;;  %v642_v51 = vld [vmem:[#allocation13 + $0x1a0] sm:$0xff]  ;;  %v644_v35 = vld [vmem:[#allocation13 + $0x1b0] sm:$0xff] }
 0xa8d   : > { %v3977_v61 = vpop.xlane.xlu1 %3976  ;;  %v4399_v17 = vmul.f32 %v10243_v39, %v4303_v37  ;;  %v4434_v50 = vmul.f32 %v13703_v44, %v4398_v54  ;;  %17029 = vst [vmem:[#allocation93_spill] sm:$0xff] %v13952_v55  ;;  %v13954_v36 = vmul.f32 0.03125, %v3974_v8  ;;  %v13957_v54 = vadd.f32 %v13718_v63, %v4437_v34  ;;  %9624 = vmatpush1.bf16.msra.mxu1 %v13943_v49  ;;  %v647_v39 = vld [vmem:[#allocation13 + $0x1c8] sm:$0xff] }
 0xa8e   : > { %10246 = vrsqrt.f32 %v4341_v18  ;;  %v4338_v5 = vadd.f32 1e-05, %v4274_v26  ;;  %v4275_v10 = vmax.f32 %v4243_v48, 0.0  ;;  %9626 = vmatprep.subr.bf16.mxu1 %v13948_v53  ;;  %v13967_v13 = vpack.c.bf16 %v645_v0, %v643_v25  ;;  %v649_v18 = vld [vmem:[#allocation13 + $0x1d8] sm:$0xff] }
 0xa8f   : > { %v3968_v24 = vpop.xlane.xlu0 %3967  ;;  %v4435_v40 = vmul.f32 %v13703_v44, %v4399_v17  ;;  %v13961_v19 = vadd.f32 %v13718_v63, %v4434_v50  ;;  %v13969_v8 = vmul.f32 0.03125, %v3977_v61  ;;  %v13972_v34 = vadd.f32 %v13718_v63, %v4436_v21  ;;  %v651_v21 = vld [vmem:[#allocation13 + $0x1e8] sm:$0xff]  ;;  %v653_v25 = vld [vmem:[#allocation13 + $0x1f8] sm:$0xff] }
 0xa90   : > { %10248 = vrsqrt.f32 %v4338_v5  ;;  %v4339_v37 = vadd.f32 1e-05, %v4275_v10  ;;  %17031 = vst [vmem:[#allocation101_spill] sm:$0xff] %v13967_v13  ;;  %v13978_v45 = vpack.c.bf16 %v644_v35, %v642_v51  ;;  %v4216_v17 = vmul.f32 %v13954_v36, %v13954_v36  ;;  %v648_v10 = vld [vmem:[#allocation13 + $0x1d0] sm:$0xff] }
 0xa91   : > { %v3971_v33 = vpop.xlane.xlu1 %3970  ;;  %v13964_v52 = vadd.f32 %v13718_v63, %v4435_v40  ;;  %v13982_v50 = vmul.f32 0.03125, %v3968_v24  ;;  %v13986_v5 = vpack.c.bf16 %v13957_v54, %v13972_v34  ;;  %9628 = vmatpush1.bf16.msra.mxu1 %v13952_v55  ;;  %v13994_v24 = vpack.c.bf16 %v649_v18, %v647_v39 }
 0xa92   : > { %10250 = vrsqrt.f32 %v4339_v37  ;;  %17032 = vst [vmem:[#allocation103_spill] sm:$0xff] %v13978_v45  ;;  %v13989_v0 = vmul.f32 0.03125, %v3971_v33  ;;  %9630 = vmatprep.subr.bf16.mxu1 %v13967_v13  ;;  %v4217_v51 = vmul.f32 %v13969_v8, %v13969_v8  ;;  %v4308_v33 = vsub.f32 %v13535_v3, %v13878_v46 }
 0xa93   : > { %17030 = vst [vmem:[#allocation96_spill] sm:$0xff] %v13964_v52  ;;  %v4134_v26 = vpop.xlane.xlu0 %4133  ;;  %v13976_v48 = vpack.c.bf16 %v13964_v52, %v13961_v19  ;;  %17034 = vst [vmem:[#allocation100_spill] sm:$0xff] %v13994_v24  ;;  %v4309_v55 = vsub.f32 %v13544_v28, %v13893_v27  ;;  %v14004_v49 = vpack.c.bf16 %v648_v10, %v646_v9 }
 0xa94   : > { %v4184_v61 = vmul.f32 0.03125, %v4134_v26  ;;  %v14006_v39 = vpack.c.bf16 %v653_v25, %v651_v21  ;;  %v4214_v13 = vmul.f32 %v13982_v50, %v13982_v50  ;;  %v4306_v3 = vsub.f32 %v13541_v23, %v13906_v30 }
 0xa95   : > { %v4137_v40 = vpop.xlane.xlu1 %4136  ;;  %9401 = vmatprep.mubr.msk.bf16.mxu0 %vm17033_vm14, %v13976_v48  ;;  %17036 = vst [vmem:[#allocation102_spill] sm:$0xff] %v14004_v49  ;;  %9632 = vmatpush1.bf16.msra.mxu1 %v13978_v45  ;;  %v4215_v28 = vmul.f32 %v13989_v0, %v13989_v0  ;;  %vm17076_vm14 = vmmov %vm16773_vm0 }
 0xa96   : > { %v10245_v37 = vpop.eup %10244  ;;  %v4248_v35 = vsub.f32 %v4184_v61, %v4216_v17  ;;  %v4185_v26 = vmul.f32 0.03125, %v4137_v40  ;;  %9402 = vmatmul.mubr.msk.bf16.gmra.mrb[140].mxu0 %vm17035_vm15, %v13986_v5  ;;  %17037 = vst [vmem:[#allocation104_spill] sm:$0xff] %v14006_v39  ;;  %9634 = vmatprep.subr.bf16.mxu1 %v13994_v24  ;;  %vm17077_vm15 = vmmov %vm16773_vm0 }
 0xa97   : > { %v4128_v53 = vpop.xlane.xlu0 %4127  ;;  %v4404_v27 = vmul.f32 %v10245_v37, %v4308_v33 }
 0xa98   : > { %v10247_v18 = vpop.eup %10246  ;;  %v4280_v17 = vmax.f32 %v4248_v35, 0.0  ;;  %v4249_v61 = vsub.f32 %v4185_v26, %v4217_v51  ;;  %v4182_v40 = vmul.f32 0.03125, %v4128_v53  ;;  %v4307_v53 = vsub.f32 %v13549_v20, %v13913_v62 }
 0xa99   : > { %v4131_v46 = vpop.xlane.xlu1 %4130  ;;  %v4405_v9 = vmul.f32 %v10247_v18, %v4309_v55  ;;  %9636 = vmatpush1.bf16.msra.mxu1 %v14004_v49  ;;  %v4440_v62 = vmul.f32 %v13703_v44, %v4404_v27 }
 0xa9a   : > { %v10249_v10 = vpop.eup %10248  ;;  %v4344_v21 = vadd.f32 1e-05, %v4280_v17  ;;  %v4281_v25 = vmax.f32 %v4249_v61, 0.0  ;;  %v4246_v4 = vsub.f32 %v4182_v40, %v4214_v13  ;;  %v4183_v35 = vmul.f32 0.03125, %v4131_v46  ;;  %9638 = vmatprep.subr.bf16.mxu1 %v14006_v39 }
 0xa9b   : > { %v3986_v51 = vpop.xlane.xlu0 %3985  ;;  %v4402_v26 = vmul.f32 %v10249_v10, %v4306_v3  ;;  %v4441_v23 = vmul.f32 %v13703_v44, %v4405_v9  ;;  %v14040_v9 = vadd.f32 %v13718_v63, %v4440_v62  ;;  %v4311_v39 = vsub.f32 %v13585_v57, %v13989_v0 }
 0xa9c   : > { %v10251_v30 = vpop.eup %10250  ;;  %10252 = vrsqrt.f32 %v4344_v21  ;;  %v4345_v45 = vadd.f32 1e-05, %v4281_v25  ;;  %v4278_v47 = vmax.f32 %v4246_v4, 0.0  ;;  %v4247_v37 = vsub.f32 %v4183_v35, %v4215_v28 }
 0xa9d   : > { %v3989_v55 = vpop.xlane.xlu1 %3988  ;;  %v4438_v33 = vmul.f32 %v13703_v44, %v4402_v26  ;;  %v4403_v18 = vmul.f32 %v10251_v30, %v4307_v53  ;;  %v14027_v3 = vmul.f32 0.03125, %v3986_v51  ;;  %v14030_v28 = vadd.f32 %v13718_v63, %v4441_v23  ;;  %17041 = vst [vmem:[#allocation56_spill] sm:$0xff] %v14040_v9  ;;  %v650_v26 = vld [vmem:[#allocation13 + $0x1e0] sm:$0xff]  ;;  %v652_v23 = vld [vmem:[#allocation13 + $0x1f0] sm:$0xff] }
 0xa9e   : > { %10254 = vrsqrt.f32 %v4345_v45  ;;  %v4342_v13 = vadd.f32 1e-05, %v4278_v47  ;;  %v4279_v20 = vmax.f32 %v4247_v37, 0.0  ;;  %v14037_v27 = vmul.f32 0.03125, %v3989_v55 }
 0xa9f   : > { %v3980_v17 = vpop.xlane.xlu0 %3979  ;;  %v14024_v61 = vadd.f32 %v13718_v63, %v4438_v33  ;;  %v4439_v4 = vmul.f32 %v13703_v44, %v4403_v18  ;;  %17039 = vst [vmem:[#allocation57_spill] sm:$0xff] %v14030_v28  ;;  %v4220_v25 = vmul.f32 %v14027_v3, %v14027_v3  ;;  %v14052_v51 = vpack.c.bf16 %v14030_v28, %v14040_v9 }
 0xaa0   : > { %10256 = vrsqrt.f32 %v4342_v13  ;;  %v4343_v40 = vadd.f32 1e-05, %v4279_v20  ;;  %v14048_v35 = vmul.f32 0.03125, %v3980_v17  ;;  %v14060_v33 = vpack.c.bf16 %v652_v23, %v650_v26 }
 0xaa1   : > { %17038 = vst [vmem:[#allocation105_spill] sm:$0xff] %v14024_v61  ;;  %v3983_v46 = vpop.xlane.xlu1 %3982  ;;  %v9828_v47 = vpack.i.bf16 %v13732_v58, %v14024_v61  ;;  %v14035_v45 = vadd.f32 %v13718_v63, %v4439_v4  ;;  %v4221_v13 = vmul.f32 %v14037_v27, %v14037_v27  ;;  %v4312_v17 = vsub.f32 %v13571_v2, %v13954_v36 }
 0xaa2   : > { %10258 = vrsqrt.f32 %v4343_v40  ;;  %v14054_v30 = vmul.f32 0.03125, %v3983_v46  ;;  %17043 = vst [vmem:[#allocation55_spill] sm:$0xff] %v14060_v33  ;;  %v4313_v4 = vsub.f32 %v13580_v60, %v13969_v8  ;;  %v4310_v40 = vsub.f32 %v13577_v22, %v13982_v50  ;;  %9640 = vmatpush1.bf16.msra.mxu1 %v14060_v33 }
 0xaa3   : > { %17040 = vst [vmem:[#allocation59_spill] sm:$0xff] %v14035_v45  ;;  %9829 = vxpose.xlu0.b32.start [1/16] (narrow) %v9828_v47, 32  ;;  %v4146_v10 = vpop.xlane.xlu0 %4145  ;;  %v14044_v21 = vpack.c.bf16 %v14035_v45, %v14024_v61  ;;  %v9830_v55 = vpack.i.bf16 %v13735_v43, %v14035_v45  ;;  %v9832_v60 = vpack.i.bf16 %v13729_v32, %v14040_v9 }
 0xaa4   : > { %v4188_v53 = vmul.f32 0.03125, %v4146_v10  ;;  %v4218_v10 = vmul.f32 %v14048_v35, %v14048_v35  ;;  %v4219_v2 = vmul.f32 %v14054_v30, %v14054_v30 }
 0xaa5   : > { %v4149_v37 = vpop.xlane.xlu1 %4148  ;;  %9405 = vmatprep.mubr.msk.bf16.mxu0 %vm17042_vm1, %v14044_v21 }
 0xaa6   : > { %v10253_v18 = vpop.eup %10252  ;;  %v4252_v20 = vsub.f32 %v4188_v53, %v4220_v25  ;;  %v4189_v62 = vmul.f32 0.03125, %v4149_v37  ;;  %9406 = vmatmul.mubr.msk.bf16.gmra.mrb[144].mxu0 %vm16773_vm0, %v14052_v51 }
 0xaa7   : > { %9831 = vxpose.xlu0.b32.cont [2/16] (narrow) %v9830_v55, 32  ;;  %v4140_v46 = vpop.xlane.xlu0 %4139  ;;  %v4408_v8 = vmul.f32 %v10253_v18, %v4312_v17  ;;  %v9834_v17 = vpack.i.bf16 %v13724_v14, %v14030_v28 }
 0xaa8   : > { %v10255_v47 = vpop.eup %10254  ;;  %v4284_v25 = vmax.f32 %v4252_v20, 0.0  ;;  %v4253_v53 = vsub.f32 %v4189_v62, %v4221_v13  ;;  %v4186_v26 = vmul.f32 0.03125, %v4140_v46 }
 0xaa9   : > { %v4143_v36 = vpop.xlane.xlu1 %4142  ;;  %v4409_v22 = vmul.f32 %v10255_v47, %v4313_v4  ;;  %v4444_v0 = vmul.f32 %v13703_v44, %v4408_v8 }
 0xaaa   : > { %v10257_v50 = vpop.eup %10256  ;;  %v4348_v23 = vadd.f32 1e-05, %v4284_v25  ;;  %v4285_v37 = vmax.f32 %v4253_v53, 0.0  ;;  %v4250_v55 = vsub.f32 %v4186_v26, %v4218_v10  ;;  %v4187_v33 = vmul.f32 0.03125, %v4143_v36 }
 0xaab   : > { %9833 = vxpose.xlu0.b32.cont [3/16] (narrow) %v9832_v60, 32  ;;  %v3998_v13 = vpop.xlane.xlu0 %3997  ;;  %v4406_v20 = vmul.f32 %v10257_v50, %v4310_v40  ;;  %v4445_v62 = vmul.f32 %v13703_v44, %v4409_v22  ;;  %v14089_v40 = vld [vmem:[%s16621_s1 + $0x10] sm:$0xff]   ;;  %v14109_v60 = vadd.f32 %v13718_v63, %v4444_v0 }
 0xaac   : > { %v10259_v46 = vpop.eup %10258  ;;  %10260 = vrsqrt.f32 %v4348_v23  ;;  %v4349_v49 = vadd.f32 1e-05, %v4285_v37  ;;  %v4282_v24 = vmax.f32 %v4250_v55, 0.0  ;;  %v4251_v16 = vsub.f32 %v4187_v33, %v4219_v2  ;;  %9349 = vmatprep.subr.bf16.mxu1 %v14089_v40 }
 0xaad   : > { %v4001_v18 = vpop.xlane.xlu1 %4000  ;;  %v4442_v4 = vmul.f32 %v13703_v44, %v4406_v20  ;;  %v4407_v47 = vmul.f32 %v10259_v46, %v4311_v39  ;;  %17047 = vst [vmem:[#allocation61_spill] sm:$0xff] %v14109_v60  ;;  %v14115_v50 = vmul.f32 0.03125, %v3998_v13 }
 0xaae   : > { %10262 = vrsqrt.f32 %v4349_v49  ;;  %v4346_v10 = vadd.f32 1e-05, %v4282_v24  ;;  %v4283_v57 = vmax.f32 %v4251_v16, 0.0  ;;  %v14096_v49 = vadd.f32 %v13718_v63, %v4445_v62 }
 0xaaf   : > { %9835 = vxpose.xlu0.b32.cont [4/16] (narrow) %v9834_v17, 32  ;;  %v3992_v25 = vpop.xlane.xlu0 %3991  ;;  %v14092_v33 = vadd.f32 %v13718_v63, %v4442_v4  ;;  %v4443_v53 = vmul.f32 %v13703_v44, %v4407_v47  ;;  %v14123_v20 = vmul.f32 0.03125, %v4001_v18  ;;  %v4316_v18 = vsub.f32 %v13607_v42, %v14027_v3 }
 0xab0   : > { %10264 = vrsqrt.f32 %v4346_v10  ;;  %v4347_v26 = vadd.f32 1e-05, %v4283_v57  ;;  %17045 = vst [vmem:[#allocation62_spill] sm:$0xff] %v14096_v49  ;;  %v14099_v16 = vmul.f32 0.03125, %v3992_v25  ;;  %v14121_v55 = vpack.c.bf16 %v14096_v49, %v14109_v60 }
 0xab1   : > { %17044 = vst [vmem:[#allocation63_spill] sm:$0xff] %v14092_v33  ;;  %v3995_v24 = vpop.xlane.xlu1 %3994  ;;  %v9836_v39 = vpack.i.bf16 %v13809_v59, %v14092_v33  ;;  %v14104_v2 = vadd.f32 %v13718_v63, %v4443_v53  ;;  %v4317_v10 = vsub.f32 %v13616_v11, %v14037_v27  ;;  %v4314_v57 = vsub.f32 %v13613_v31, %v14048_v35 }
 0xab2   : > { %10266 = vrsqrt.f32 %v4347_v26  ;;  %v14106_v36 = vmul.f32 0.03125, %v3995_v24  ;;  %v4222_v23 = vmul.f32 %v14099_v16, %v14099_v16  ;;  %v4224_v53 = vmul.f32 %v14115_v50, %v14115_v50 }
 0xab3   : > { %17046 = vst [vmem:[#allocation65_spill] sm:$0xff] %v14104_v2  ;;  %9837 = vxpose.xlu0.b32.cont [5/16] (narrow) %v9836_v39, 32  ;;  %v4152_v8 = vpop.xlane.xlu0 %4151  ;;  %v14113_v22 = vpack.c.bf16 %v14104_v2, %v14092_v33  ;;  %v9838_v46 = vpack.i.bf16 %v13812_v7, %v14104_v2  ;;  %v9840_v42 = vpack.i.bf16 %v13820_v38, %v14109_v60 }
 0xab4   : > { %v4190_v37 = vmul.f32 0.03125, %v4152_v8  ;;  %v4223_v13 = vmul.f32 %v14106_v36, %v14106_v36  ;;  %v4225_v8 = vmul.f32 %v14123_v20, %v14123_v20 }
 0xab5   : > { %v4155_v62 = vpop.xlane.xlu1 %4154  ;;  %9409 = vmatprep.mubr.msk.bf16.mxu0 %vm17048_vm2, %v14113_v22 }
 0xab6   : > { %v10261_v17 = vpop.eup %10260  ;;  %v4254_v4 = vsub.f32 %v4190_v37, %v4222_v23  ;;  %v4191_v47 = vmul.f32 0.03125, %v4155_v62  ;;  %9410 = vmatmul.mubr.msk.bf16.gmra.mrb[148].mxu0 %vm17049_vm4, %v14121_v55 }
 0xab7   : > { %9839 = vxpose.xlu0.b32.cont [6/16] (narrow) %v9838_v46, 32  ;;  %v4158_v0 = vpop.xlane.xlu0 %4157  ;;  %v4412_v11 = vmul.f32 %v10261_v17, %v4316_v18  ;;  %v4315_v46 = vsub.f32 %v13621_v29, %v14054_v30  ;;  %v9842_v17 = vpack.i.bf16 %v13805_v41, %v14096_v49 }
 0xab8   : > { %v10263_v25 = vpop.eup %10262  ;;  %v4286_v26 = vmax.f32 %v4254_v4, 0.0  ;;  %v4255_v24 = vsub.f32 %v4191_v47, %v4223_v13  ;;  %v4192_v39 = vmul.f32 0.03125, %v4158_v0 }
 0xab9   : > { %v4161_v23 = vpop.xlane.xlu1 %4160  ;;  %v4413_v3 = vmul.f32 %v10263_v25, %v4317_v10  ;;  %v4448_v29 = vmul.f32 %v13703_v44, %v4412_v11 }
 0xaba   : > { %v10265_v27 = vpop.eup %10264  ;;  %v4350_v31 = vadd.f32 1e-05, %v4286_v26  ;;  %v4287_v35 = vmax.f32 %v4255_v24, 0.0  ;;  %v4256_v37 = vsub.f32 %v4192_v39, %v4224_v53  ;;  %v4193_v62 = vmul.f32 0.03125, %v4161_v23 }
 0xabb   : > { %9841 = vxpose.xlu0.b32.cont [7/16] (narrow) %v9840_v42, 32  ;;  %v4410_v13 = vmul.f32 %v10265_v27, %v4314_v57  ;;  %v4449_v4 = vmul.f32 %v13703_v44, %v4413_v3  ;;  %v4318_v42 = vsub.f32 %v13654_v12, %v14099_v16  ;;  %v17056_v27 = vld [vmem:[#allocation79_spill] sm:$0xff] }
 0xabc   : > { %v10267_v47 = vpop.eup %10266  ;;  %10268 = vrsqrt.f32 %v4350_v31  ;;  %v4351_v0 = vadd.f32 1e-05, %v4287_v35  ;;  %v4288_v2 = vmax.f32 %v4256_v37, 0.0  ;;  %v4257_v33 = vsub.f32 %v4193_v62, %v4225_v8  ;;  %v17057_v62 = vld [vmem:[#allocation73_spill] sm:$0xff] }
 0xabd   : > { %v4446_v18 = vmul.f32 %v13703_v44, %v4410_v13  ;;  %v4411_v10 = vmul.f32 %v10267_v47, %v4315_v46  ;;  %v14157_v24 = vadd.f32 %v13718_v63, %v4449_v4  ;;  %v4319_v31 = vsub.f32 %v17056_v27, %v14106_v36  ;;  %v17058_v47 = vld [vmem:[#allocation89_spill] sm:$0xff] }
 0xabe   : > { %10270 = vrsqrt.f32 %v4351_v0  ;;  %v4352_v25 = vadd.f32 1e-05, %v4288_v2  ;;  %v4289_v53 = vmax.f32 %v4257_v33, 0.0  ;;  %v14165_v33 = vadd.f32 %v13718_v63, %v4448_v29 }
 0xabf   : > { %9843 = vxpose.xlu0.b32.cont [8/16] (narrow) %v9842_v17, 32  ;;  %v14153_v30 = vadd.f32 %v13718_v63, %v4446_v18  ;;  %v4447_v57 = vmul.f32 %v13703_v44, %v4411_v10  ;;  %17051 = vst [vmem:[#allocation24_spill] sm:$0xff] %v14157_v24  ;;  %v4320_v46 = vsub.f32 %v17057_v62, %v14115_v50 }
 0xac0   : > { %10272 = vrsqrt.f32 %v4352_v25  ;;  %v4353_v26 = vadd.f32 1e-05, %v4289_v53  ;;  %17053 = vst [vmem:[#allocation23_spill] sm:$0xff] %v14165_v33  ;;  %v14173_v23 = vpack.c.bf16 %v14157_v24, %v14165_v33  ;;  %v9848_v12 = vpack.i.bf16 %v13896_v6, %v14165_v33 }
 0xac1   : > { %17050 = vst [vmem:[#allocation26_spill] sm:$0xff] %v14153_v30  ;;  %v9844_v39 = vpack.i.bf16 %v13885_v15, %v14153_v30  ;;  %v14162_v8 = vadd.f32 %v13718_v63, %v4447_v57  ;;  %v4321_v0 = vsub.f32 %v17058_v47, %v14123_v20  ;;  %v9850_v10 = vpack.i.bf16 %v13881_v1, %v14157_v24 }
 0xac2   : > { %10274 = vrsqrt.f32 %v4353_v26 }
 0xac3   : > { %17052 = vst [vmem:[#allocation25_spill] sm:$0xff] %v14162_v8  ;;  %9845 = vxpose.xlu0.b32.cont [9/16] (narrow) %v9844_v39, 32  ;;  %v14169_v2 = vpack.c.bf16 %v14162_v8, %v14153_v30  ;;  %v9846_v11 = vpack.i.bf16 %v13888_v56, %v14162_v8 }
 0xac5   : > { %9413 = vmatprep.mubr.msk.bf16.mxu0 %vm17054_vm5, %v14169_v2 }
 0xac6   : > { %v10269_v3 = vpop.eup %10268  ;;  %9414 = vmatmul.mubr.msk.bf16.gmra.mrb[152].mxu0 %vm17055_vm6, %v14173_v23  ;;  %vm17078_vm6 = vmmov %vm17054_vm5 }
 0xac7   : > { %9847 = vxpose.xlu0.b32.cont [10/16] (narrow) %v9846_v11, 32  ;;  %v4414_v35 = vmul.f32 %v10269_v3, %v4318_v42 }
 0xac8   : > { %v10271_v37 = vpop.eup %10270 }
 0xac9   : > { %v4415_v16 = vmul.f32 %v10271_v37, %v4319_v31  ;;  %v4450_v13 = vmul.f32 %v13703_v44, %v4414_v35  ;;  %v9947_v37 = vld [vmem:[%s16621_s1 + $0x18] sm:$0xff]  }
 0xaca   : > { %v10273_v4 = vpop.eup %10272 }
 0xacb   : > { %9849 = vxpose.xlu0.b32.cont [11/16] (narrow) %v9848_v12, 32  ;;  %v4451_v17 = vmul.f32 %v13703_v44, %v4415_v16  ;;  %v4416_v36 = vmul.f32 %v10273_v4, %v4320_v46  ;;  %v14196_v50 = vadd.f32 %v13718_v63, %v4450_v13 }
 0xacc   : > { %v10275_v18 = vpop.eup %10274 }
 0xacd   : > { %17059 = vst [vmem:[#allocation30_spill] sm:$0xff] %v14196_v50  ;;  %v14199_v25 = vadd.f32 %v13718_v63, %v4451_v17  ;;  %v4417_v53 = vmul.f32 %v10275_v18, %v4321_v0  ;;  %v4452_v29 = vmul.f32 %v13703_v44, %v4416_v36  ;;  %v9852_v26 = vpack.i.bf16 %v13961_v19, %v14196_v50  ;;  %v17065_v36 = vld [vmem:[#allocation86_spill] sm:$0xff] }
 0xace   : > { %v17067_v18 = vld [vmem:[#allocation78_spill] sm:$0xff] }
 0xacf   : > { %17060 = vst [vmem:[#allocation28_spill] sm:$0xff] %v14199_v25  ;;  %9851 = vxpose.xlu0.b32.cont [12/16] (narrow) %v9850_v10, 32  ;;  %v14204_v20 = vpack.c.bf16 %v14199_v25, %v14196_v50  ;;  %v4453_v57 = vmul.f32 %v13703_v44, %v4417_v53  ;;  %v14212_v39 = vadd.f32 %v13718_v63, %v4452_v29  ;;  %v17069_v10 = vld [vmem:[#allocation95_spill] sm:$0xff] }
 0xad0   : > { %v9854_v44 = vpack.i.bf16 %v13964_v52, %v14199_v25 }
 0xad1   : > { %9417 = vmatprep.mubr.msk.bf16.mxu0 %vm17061_vm7, %v14204_v20  ;;  %17062 = vst [vmem:[#allocation29_spill] sm:$0xff] %v14212_v39  ;;  %v14215_v42 = vadd.f32 %v13718_v63, %v4453_v57  ;;  %v9856_v3 = vpack.i.bf16 %v13972_v34, %v14212_v39  ;;  %vm17079_vm7 = vmmov %vm17054_vm5 }
 0xad3   : > { %17063 = vst [vmem:[#allocation27_spill] sm:$0xff] %v14215_v42  ;;  %9853 = vxpose.xlu0.b32.cont [13/16] (narrow) %v9852_v26, 32  ;;  %v14219_v11 = vpack.c.bf16 %v14215_v42, %v14212_v39  ;;  %v9858_v63 = vpack.i.bf16 %v13957_v54, %v14215_v42 }
 0xad5   : > { %9418 = vmatmul.mubr.msk.bf16.gmra.mrb[156].mxu0 %vm17064_vm8, %v14219_v11  ;;  %vm17080_vm8 = vmmov %vm17054_vm5 }
 0xad7   : > { %9855 = vxpose.xlu0.b32.cont [14/16] (narrow) %v9854_v44, 32 }
 0xadb   : > { %9857 = vxpose.xlu0.b32.cont [15/16] (narrow) %v9856_v3, 32 }
 0xadf   : > { %9859 = vxpose.xlu0.b32.end [16/16] (narrow) %v9858_v63, 32 }
 0xb23   : > { %v9860_v27 = vpop.trf.xlu0 }
 0xb24   : > { %v9864_v31 = vunpack.i.h.bf16 %v9860_v27  ;;  %v9861_v35 = vunpack.i.l.bf16 %v9860_v27 }
 0xb26   : > { %4618 = vmatprep.mubr.f32.mxu1 %v9861_v35 }
 0xb27   : > { %v9865_v62 = vpop.trf.xlu0  ;;  %4619 = vmatmul.mubr.f32.vlgmr.msra.gmra.mrb[104].mxu1 %v9864_v31 }
 0xb28   : > { %v9866_v46 = vunpack.i.l.bf16 %v9865_v62  ;;  %v9869_v12 = vunpack.i.h.bf16 %v9865_v62  ;;  %9350 = vmatpush3.bf16.msra.mxu1 %v14089_v40  ;;  %v14237_v40 = vld [vmem:[#allocation7 + $0x1] ss:$0 sm:$0xff] }
 0xb29   : > { %9351 = vmatprep.subr.bf16.mxu1 %v9947_v37 }
 0xb2a   : > { %4624 = vmatprep.mubr.f32.mxu1 %v9866_v46 }
 0xb2b   : > { %v9870_v16 = vpop.trf.xlu0  ;;  %4625 = vmatmul.mubr.f32.gmra.mrb[106].mxu1 %v9869_v12  ;;  %v17071_v12 = vld [vmem:[#allocation92_spill] sm:$0xff] }
 0xb2c   : > { %v9871_v13 = vunpack.i.l.bf16 %v9870_v16  ;;  %v9874_v4 = vunpack.i.h.bf16 %v9870_v16  ;;  %9352 = vmatpush3.bf16.msra.mxu1 %v9947_v37 }
 0xb2e   : > { %4630 = vmatprep.mubr.f32.mxu1 %v9871_v13  ;;  %v17073_v13 = vld [vmem:[#allocation85_spill] sm:$0xff] }
 0xb2f   : > { %v9875_v47 = vpop.trf.xlu0  ;;  %4631 = vmatmul.mubr.f32.gmra.mrb[108].mxu1 %v9874_v4  ;;  %v17075_v4 = vld [vmem:[#allocation80_spill] sm:$0xff] }
 0xb30   : > { %v9876_v0 = vunpack.i.l.bf16 %v9875_v47  ;;  %v9879_v17 = vunpack.i.h.bf16 %v9875_v47 }
 0xb32   : > { %4636 = vmatprep.mubr.f32.mxu1 %v9876_v0 }
 0xb33   : > { %4637 = vmatmul.mubr.f32.gmra.mrb[110].mxu1 %v9879_v17 }
 0xb34   : > { %9353 = vmatprep.mubr.msk.bf16.mxu1 %vm17066_vm9, %v17065_v36 }
 0xb37   : > { %9354 = vmatmul.mubr.msk.bf16.vlgmr.msra.gmra.mrb[112].mxu1 %vm17068_vm10, %v17067_v18 }
 0xb38   : > { %9357 = vmatprep.mubr.msk.bf16.mxu1 %vm17070_vm11, %v17069_v10 }
 0xb39   : > { %v9391_v53 = vpop.f32.mrb[128].mxu0 }
 0xb3a   : > { %v4992_v29 = vadd.f32 %v9391_v53, %v14237_v40  ;;  %v4983_v57 = vpop.f32.mrb[129].mxu0 }
 0xb3b   : > { %v4984_v26 = vadd.f32 %v14237_v40, %v4983_v57  ;;  %v9392_v44 = vpop.f32.mrb[130].mxu0 }
 0xb3c   : > { %v5354_v3 = vmul.f32 1.442695, %v4992_v29  ;;  %v4995_v63 = vadd.f32 %v9392_v44, %v14237_v40  ;;  %v4986_v27 = vpop.f32.mrb[131].mxu0  ;;  %v5320_v17 = vadd.f32 1.0, %v4992_v29  ;;  %vm5288_vm4 = vcmp.gt.f32.partialorder %v4992_v29, 0.0 }
 0xb3d   : > { %v5350_v31 = vmul.f32 1.442695, %v4984_v26  ;;  %v4987_v35 = vadd.f32 %v14237_v40, %v4986_v27  ;;  %v5318_v36 = vadd.f32 1.0, %v4984_v26  ;;  %vm5286_vm1 = vcmp.gt.f32.partialorder %v4984_v26, 0.0 }
 0xb3e   : > { %10276 = vpow2.f32 %v5354_v3  ;;  %v5356_v37 = vmul.f32 1.442695, %v4995_v63  ;;  %v5463_v62 = vpack.c.bf16 %v4995_v63, %v4992_v29  ;;  %v5321_v53 = vadd.f32 1.0, %v4995_v63 }
 0xb3f   : > { %10278 = vpow2.f32 %v5350_v31  ;;  %v5352_v46 = vmul.f32 1.442695, %v4987_v35  ;;  %9358 = vmatmul.mubr.msk.bf16.gmra.mrb[116].mxu1 %vm17072_vm12, %v17071_v12  ;;  %v5462_v16 = vpack.c.bf16 %v4987_v35, %v4984_v26  ;;  %v5319_v57 = vadd.f32 1.0, %v4987_v35 }
 0xb40   : > { %10280 = vpow2.f32 %v5356_v37  ;;  %5496 = vrot.lane.b32.xlu1 %v5463_v62, %s10926_s5  ;;  %9361 = vmatprep.mubr.msk.bf16.mxu1 %vm17074_vm13, %v17073_v13  ;;  %vm5287_vm0 = vcmp.gt.f32.partialorder %v4987_v35, 0.0  ;;  %vm5289_vm2 = vcmp.gt.f32.partialorder %v4995_v63, 0.0  ;;  %vm17081_vm13 = vmmov %vm17054_vm5 }
 0xb41   : > { %10282 = vpow2.f32 %v5352_v46 }
 0xb44   : > { %5494 = vrot.lane.b32.xlu1 %v5462_v16, %s10926_s5 }
 0xb47   : > { %9362 = vmatmul.mubr.msk.bf16.gmra.mrb[120].mxu1 %vm17076_vm14, %v17075_v4  ;;  %vm17082_vm14 = vmmov %vm17054_vm5 }
 0xb48   : > { %v10277_v47 = vpop.eup %10276  ;;  %9365 = vmatprep.mubr.msk.bf16.mxu1 %vm17077_vm15, %v13976_v48  ;;  %vm17083_vm15 = vmmov %vm17054_vm5 }
 0xb49   : > { %v10279_v0 = vpop.eup %10278  ;;  %v9395_v18 = vpop.f32.mrb[132].mxu0  ;;  %v5416_v42 = vsel %vm5288_vm4, %v5320_v17, %v10277_v47 }
 0xb4a   : > { %v10281_v10 = vpop.eup %10280  ;;  %v14256_v44 = vadd.f32 %v9395_v18, %v14237_v40  ;;  %v4999_v3 = vpop.f32.mrb[133].mxu0  ;;  %v5414_v62 = vsel %vm5286_vm1, %v5318_v36, %v10279_v0  ;;  %vm17084_vm1 = vmmov %vm17054_vm5 }
 0xb4b   : > { %v10283_v27 = vpop.eup %10282  ;;  %v5000_v31 = vadd.f32 %v14237_v40, %v4999_v3  ;;  %v9396_v37 = vpop.f32.mrb[134].mxu0  ;;  %v5417_v13 = vsel %vm5289_vm2, %v5321_v53, %v10281_v10 }
 0xb4c   : > { %v5362_v48 = vmul.f32 1.442695, %v14256_v44  ;;  %v5011_v46 = vadd.f32 %v9396_v37, %v14237_v40  ;;  %v5002_v12 = vpop.f32.mrb[135].mxu0  ;;  %v5415_v16 = vsel %vm5287_vm0, %v5319_v57, %v10283_v27  ;;  %v5447_v63 = vpack.c.bf16 %v5417_v13, %v5416_v42 }
 0xb4d   : > { %v5358_v4 = vmul.f32 1.442695, %v5000_v31  ;;  %v5003_v18 = vadd.f32 %v14237_v40, %v5002_v12  ;;  %v5446_v25 = vpack.c.bf16 %v5415_v16, %v5414_v62  ;;  %v5322_v42 = vadd.f32 1.0, %v5000_v31 }
 0xb4e   : > { %10284 = vpow2.f32 %v5362_v48  ;;  %v5364_v26 = vmul.f32 1.442695, %v5011_v46  ;;  %v5465_v3 = vpack.c.bf16 %v5011_v46, %v14256_v44  ;;  %v5325_v36 = vadd.f32 1.0, %v5011_v46 }
 0xb4f   : > { %10286 = vpow2.f32 %v5358_v4  ;;  %v5360_v35 = vmul.f32 1.442695, %v5003_v18  ;;  %5574 = vxpose.xlu0.c.b16.start [1/8] (narrow) %v5446_v25, 32  ;;  %9366 = vmatmul.mubr.msk.bf16.gmra.mrb[124].mxu1 %vm17054_vm5, %v13986_v5  ;;  %v5464_v0 = vpack.c.bf16 %v5003_v18, %v5000_v31  ;;  %v5324_v25 = vadd.f32 1.0, %v14256_v44 }
 0xb50   : > { %10288 = vpow2.f32 %v5364_v26  ;;  %5500 = vrot.lane.b32.xlu1 %v5465_v3, %s10926_s5  ;;  %9369 = vmatprep.mubr.msk.bf16.mxu1 %vm17078_vm6, %v14044_v21  ;;  %v5323_v21 = vadd.f32 1.0, %v5003_v18  ;;  %vm5290_vm9 = vcmp.gt.f32.partialorder %v5000_v31, 0.0  ;;  %vm5291_vm10 = vcmp.gt.f32.partialorder %v5003_v18, 0.0  ;;  %vm17085_vm6 = vmmov %vm17084_vm1 }
 0xb51   : > { %10290 = vpow2.f32 %v5360_v35  ;;  %vm5293_vm11 = vcmp.gt.f32.partialorder %v5011_v46, 0.0  ;;  %vm5292_vm12 = vcmp.gt.f32.partialorder %v14256_v44, 0.0 }
 0xb53   : > { %5575 = vxpose.xlu0.c.b16.cont [2/8] (narrow) %v5447_v63, 32 }
 0xb54   : > { %5498 = vrot.lane.b32.xlu1 %v5464_v0, %s10926_s5 }
 0xb57   : > { %9370 = vmatmul.mubr.msk.bf16.gmra.mrb[128].mxu1 %vm17079_vm7, %v14052_v51 }
 0xb58   : > { %v10285_v29 = vpop.eup %10284  ;;  %9373 = vmatprep.mubr.msk.bf16.mxu1 %vm17080_vm8, %v14113_v22 }
 0xb59   : > { %v10287_v5 = vpop.eup %10286  ;;  %v9399_v47 = vpop.f32.mrb[136].mxu0  ;;  %v5420_v18 = vsel %vm5292_vm12, %v5324_v25, %v10285_v29 }
 0xb5a   : > { %v10289_v17 = vpop.eup %10288  ;;  %v14275_v10 = vadd.f32 %v9399_v47, %v14237_v40  ;;  %v5015_v53 = vpop.f32.mrb[137].mxu0  ;;  %v5418_v37 = vsel %vm5290_vm9, %v5322_v42, %v10287_v5 }
 0xb5b   : > { %v10291_v57 = vpop.eup %10290  ;;  %v5016_v51 = vadd.f32 %v14237_v40, %v5015_v53  ;;  %v9400_v27 = vpop.f32.mrb[138].mxu0  ;;  %v5421_v16 = vsel %vm5293_vm11, %v5325_v36, %v10289_v17 }
 0xb5c   : > { %v5370_v22 = vmul.f32 1.442695, %v14275_v10  ;;  %v5027_v62 = vadd.f32 %v9400_v27, %v14237_v40  ;;  %v5018_v48 = vpop.f32.mrb[139].mxu0  ;;  %v5419_v12 = vsel %vm5291_vm10, %v5323_v21, %v10291_v57  ;;  %v5449_v35 = vpack.c.bf16 %v5421_v16, %v5420_v18 }
 0xb5d   : > { %v5366_v13 = vmul.f32 1.442695, %v5016_v51  ;;  %v5019_v4 = vadd.f32 %v14237_v40, %v5018_v48  ;;  %v5448_v26 = vpack.c.bf16 %v5419_v12, %v5418_v37  ;;  %v5328_v0 = vadd.f32 1.0, %v14275_v10 }
 0xb5e   : > { %10292 = vpow2.f32 %v5370_v22  ;;  %v5372_v31 = vmul.f32 1.442695, %v5027_v62  ;;  %v5467_v3 = vpack.c.bf16 %v5027_v62, %v14275_v10  ;;  %v5326_v25 = vadd.f32 1.0, %v5016_v51 }
 0xb5f   : > { %10294 = vpow2.f32 %v5366_v13  ;;  %v5368_v46 = vmul.f32 1.442695, %v5019_v4  ;;  %5576 = vxpose.xlu0.c.b16.cont [3/8] (narrow) %v5448_v26, 32  ;;  %9374 = vmatmul.mubr.msk.bf16.gmra.mrb[132].mxu1 %vm17081_vm13, %v14121_v55  ;;  %v5466_v63 = vpack.c.bf16 %v5019_v4, %v5016_v51  ;;  %v5329_v42 = vadd.f32 1.0, %v5027_v62 }
 0xb60   : > { %10296 = vpow2.f32 %v5372_v31  ;;  %5504 = vrot.lane.b32.xlu1 %v5467_v3, %s10926_s5  ;;  %9377 = vmatprep.mubr.msk.bf16.mxu1 %vm17082_vm14, %v14169_v2  ;;  %v5327_v2 = vadd.f32 1.0, %v5019_v4  ;;  %vm5294_vm0 = vcmp.gt.f32.partialorder %v5016_v51, 0.0  ;;  %vm5295_vm2 = vcmp.gt.f32.partialorder %v5019_v4, 0.0 }
 0xb61   : > { %10298 = vpow2.f32 %v5368_v46  ;;  %vm5297_vm4 = vcmp.gt.f32.partialorder %v5027_v62, 0.0  ;;  %vm5296_vm5 = vcmp.gt.f32.partialorder %v14275_v10, 0.0 }
 0xb63   : > { %5577 = vxpose.xlu0.c.b16.cont [4/8] (narrow) %v5449_v35, 32 }
 0xb64   : > { %5502 = vrot.lane.b32.xlu1 %v5466_v63, %s10926_s5 }
 0xb67   : > { %9378 = vmatmul.mubr.msk.bf16.gmra.mrb[136].mxu1 %vm17083_vm15, %v14173_v23 }
 0xb68   : > { %v10293_v44 = vpop.eup %10292  ;;  %9381 = vmatprep.mubr.msk.bf16.mxu1 %vm17084_vm1, %v14204_v20 }
 0xb69   : > { %v10295_v55 = vpop.eup %10294  ;;  %v9403_v29 = vpop.f32.mrb[140].mxu0  ;;  %v5424_v31 = vsel %vm5296_vm5, %v5328_v0, %v10293_v44 }
 0xb6a   : > { %v10297_v5 = vpop.eup %10296  ;;  %v5040_v47 = vadd.f32 %v9403_v29, %v14237_v40  ;;  %v5031_v17 = vpop.f32.mrb[141].mxu0  ;;  %v5422_v57 = vsel %vm5294_vm0, %v5326_v25, %v10295_v55 }
 0xb6b   : > { %v10299_v36 = vpop.eup %10298  ;;  %v5032_v21 = vadd.f32 %v14237_v40, %v5031_v17  ;;  %v9404_v53 = vpop.f32.mrb[142].mxu0  ;;  %v5425_v37 = vsel %vm5297_vm4, %v5329_v42, %v10297_v5 }
 0xb6c   : > { %v5043_v23 = vadd.f32 %v9404_v53, %v14237_v40  ;;  %v5034_v20 = vpop.f32.mrb[143].mxu0  ;;  %v5423_v27 = vsel %vm5295_vm2, %v5327_v2, %v10299_v36  ;;  %v5378_v22 = vmul.f32 1.442695, %v5040_v47  ;;  %v5451_v51 = vpack.c.bf16 %v5425_v37, %v5424_v31 }
 0xb6d   : > { %v5035_v48 = vadd.f32 %v14237_v40, %v5034_v20  ;;  %v5450_v12 = vpack.c.bf16 %v5423_v27, %v5422_v57  ;;  %v5374_v16 = vmul.f32 1.442695, %v5032_v21  ;;  %v5332_v0 = vadd.f32 1.0, %v5040_v47 }
 0xb6e   : > { %v5380_v13 = vmul.f32 1.442695, %v5043_v23  ;;  %v5469_v26 = vpack.c.bf16 %v5043_v23, %v5040_v47  ;;  %v5333_v63 = vadd.f32 1.0, %v5043_v23  ;;  %vm5301_vm7 = vcmp.gt.f32.partialorder %v5043_v23, 0.0 }
 0xb6f   : > { %v5376_v3 = vmul.f32 1.442695, %v5035_v48  ;;  %5578 = vxpose.xlu0.c.b16.cont [5/8] (narrow) %v5450_v12, 32  ;;  %9382 = vmatmul.mubr.msk.bf16.gmra.mrb[140].mxu1 %vm17085_vm6, %v14219_v11  ;;  %v5468_v62 = vpack.c.bf16 %v5035_v48, %v5032_v21  ;;  %v5330_v2 = vadd.f32 1.0, %v5032_v21  ;;  %v5331_v17 = vadd.f32 1.0, %v5035_v48 }
 0xb70   : > { %10300 = vpow2.f32 %v5380_v13  ;;  %5508 = vrot.lane.b32.xlu1 %v5469_v26, %s10926_s5  ;;  %vm5298_vm8 = vcmp.gt.f32.partialorder %v5032_v21, 0.0  ;;  %vm5300_vm9 = vcmp.gt.f32.partialorder %v5040_v47, 0.0  ;;  %vm5299_vm10 = vcmp.gt.f32.partialorder %v5035_v48, 0.0 }
 0xb71   : > { %10302 = vpow2.f32 %v5378_v22 }
 0xb72   : > { %10304 = vpow2.f32 %v5374_v16 }
 0xb73   : > { %10306 = vpow2.f32 %v5376_v3  ;;  %5579 = vxpose.xlu0.c.b16.cont [6/8] (narrow) %v5451_v51, 32 }
 0xb74   : > { %5506 = vrot.lane.b32.xlu1 %v5468_v62, %s10926_s5 }
 0xb79   : > { %v9407_v10 = vpop.f32.mrb[144].mxu0 }
 0xb7a   : > { %v10301_v4 = vpop.eup %10300  ;;  %v14304_v18 = vadd.f32 %v9407_v10, %v14237_v40  ;;  %v5047_v46 = vpop.f32.mrb[145].mxu0 }
 0xb7b   : > { %v10303_v35 = vpop.eup %10302  ;;  %v14307_v11 = vadd.f32 %v14237_v40, %v5047_v46  ;;  %v9408_v44 = vpop.f32.mrb[146].mxu0  ;;  %v5429_v53 = vsel %vm5301_vm7, %v5333_v63, %v10301_v4 }
 0xb7c   : > { %v10305_v55 = vpop.eup %10304  ;;  %v5386_v29 = vmul.f32 1.442695, %v14304_v18  ;;  %v5059_v5 = vadd.f32 %v9408_v44, %v14237_v40  ;;  %v5050_v25 = vpop.f32.mrb[147].mxu0  ;;  %v5428_v22 = vsel %vm5300_vm9, %v5332_v0, %v10303_v35  ;;  %vm5304_vm11 = vcmp.gt.f32.partialorder %v14304_v18, 0.0 }
 0xb7d   : > { %v10307_v42 = vpop.eup %10306  ;;  %v5051_v36 = vadd.f32 %v14237_v40, %v5050_v25  ;;  %v5382_v20 = vmul.f32 1.442695, %v14307_v11  ;;  %v5426_v37 = vsel %vm5298_vm8, %v5330_v2, %v10305_v55  ;;  %v5453_v23 = vpack.c.bf16 %v5429_v53, %v5428_v22 }
 0xb7e   : > { %v5388_v57 = vmul.f32 1.442695, %v5059_v5  ;;  %10308 = vpow2.f32 %v5386_v29  ;;  %v5427_v12 = vsel %vm5299_vm10, %v5331_v17, %v10307_v42  ;;  %v5471_v16 = vpack.c.bf16 %v5059_v5, %v14304_v18 }
 0xb7f   : > { %v5384_v27 = vmul.f32 1.442695, %v5051_v36  ;;  %v5452_v13 = vpack.c.bf16 %v5427_v12, %v5426_v37  ;;  %v5470_v26 = vpack.c.bf16 %v5051_v36, %v14307_v11  ;;  %v5336_v4 = vadd.f32 1.0, %v14304_v18 }
 0xb80   : > { %10310 = vpow2.f32 %v5388_v57  ;;  %5512 = vrot.lane.b32.xlu1 %v5471_v16, %s10926_s5  ;;  %vm5302_vm12 = vcmp.gt.f32.partialorder %v14307_v11, 0.0  ;;  %v5337_v46 = vadd.f32 1.0, %v5059_v5  ;;  %v5334_v55 = vadd.f32 1.0, %v14307_v11 }
 0xb81   : > { %10312 = vpow2.f32 %v5382_v20  ;;  %5580 = vxpose.xlu0.c.b16.cont [7/8] (narrow) %v5452_v13, 32  ;;  %vm5305_vm13 = vcmp.gt.f32.partialorder %v5059_v5, 0.0  ;;  %v5335_v25 = vadd.f32 1.0, %v5051_v36  ;;  %vm5303_vm14 = vcmp.gt.f32.partialorder %v5051_v36, 0.0 }
 0xb82   : > { %10314 = vpow2.f32 %v5384_v27 }
 0xb84   : > { %5510 = vrot.lane.b32.xlu1 %v5470_v26, %s10926_s5 }
 0xb85   : > { %5581 = vxpose.xlu0.c.b16.end [8/8] (narrow) %v5453_v23, 32 }
 0xb88   : > { %v10309_v21 = vpop.eup %10308 }
 0xb89   : > { %v9411_v47 = vpop.f32.mrb[148].mxu0  ;;  %v14332_v20 = vsel %vm5304_vm11, %v5336_v4, %v10309_v21 }
 0xb8a   : > { %v14318_v48 = vadd.f32 %v9411_v47, %v14237_v40  ;;  %v5063_v31 = vpop.f32.mrb[149].mxu0  ;;  %v10311_v3 = vpop.eup %10310 }
 0xb8b   : > { %v5064_v51 = vadd.f32 %v14237_v40, %v5063_v31  ;;  %v9412_v62 = vpop.f32.mrb[150].mxu0  ;;  %v10313_v10 = vpop.eup %10312  ;;  %v14328_v17 = vsel %vm5305_vm13, %v5337_v46, %v10311_v3 }
 0xb8c   : > { %v5075_v35 = vadd.f32 %v9412_v62, %v14237_v40  ;;  %v5066_v63 = vpop.f32.mrb[151].mxu0  ;;  %v10315_v44 = vpop.eup %10314  ;;  %v5394_v42 = vmul.f32 1.442695, %v14318_v48  ;;  %v14337_v5 = vsel %vm5302_vm12, %v5334_v55, %v10313_v10  ;;  %v5455_v36 = vpack.c.bf16 %v14328_v17, %v14332_v20 }
 0xb8d   : > { %v5390_v0 = vmul.f32 1.442695, %v5064_v51  ;;  %v5067_v29 = vadd.f32 %v14237_v40, %v5066_v63  ;;  %v14339_v37 = vsel %vm5303_vm14, %v5335_v25, %v10315_v44  ;;  %v5338_v18 = vadd.f32 1.0, %v5064_v51 }
 0xb8e   : > { %v5396_v2 = vmul.f32 1.442695, %v5075_v35  ;;  %v5473_v57 = vpack.c.bf16 %v5075_v35, %v14318_v48  ;;  %v5454_v22 = vpack.c.bf16 %v14339_v37, %v14337_v5  ;;  %vm5306_vm15 = vcmp.gt.f32.partialorder %v5064_v51, 0.0 }
 0xb8f   : > { %10316 = vpow2.f32 %v5390_v0  ;;  %v5392_v53 = vmul.f32 1.442695, %v5067_v29  ;;  %v5472_v27 = vpack.c.bf16 %v5067_v29, %v5064_v51  ;;  %v5341_v3 = vadd.f32 1.0, %v5075_v35 }
 0xb90   : > { %10318 = vpow2.f32 %v5396_v2  ;;  %5516 = vrot.lane.b32.xlu1 %v5473_v57, %s10926_s5  ;;  %vm5308_vm1 = vcmp.gt.f32.partialorder %v14318_v48, 0.0  ;;  %vm5309_vm0 = vcmp.gt.f32.partialorder %v5075_v35, 0.0  ;;  %v5340_v44 = vadd.f32 1.0, %v14318_v48 }
 0xb91   : > { %10320 = vpow2.f32 %v5394_v42  ;;  %v5339_v55 = vadd.f32 1.0, %v5067_v29  ;;  %vm5307_vm2 = vcmp.gt.f32.partialorder %v5067_v29, 0.0  ;;  %vm17088_vm12 = vcmask 261120  }
 0xb92   : > { %10322 = vpow2.f32 %v5392_v53  ;;  %vm17089_vm13 = vmmov %vm17088_vm12 }
 0xb93   : > { %vm17090_vm14 = vmmov %vm17088_vm12 }
 0xb94   : > { %5514 = vrot.lane.b32.xlu1 %v5472_v27, %s10926_s5 }
 0xb99   : > { %v10317_v12 = vpop.eup %10316  ;;  %v9415_v11 = vpop.f32.mrb[152].mxu0 }
 0xb9a   : > { %v5088_v16 = vadd.f32 %v9415_v11, %v14237_v40  ;;  %v5079_v23 = vpop.f32.mrb[153].mxu0  ;;  %v14348_v13 = vsel %vm5306_vm15, %v5338_v18, %v10317_v12  ;;  %v10319_v26 = vpop.eup %10318  ;;  %vm17091_vm15 = vmmov %vm17088_vm12 }
 0xb9b   : > { %v5080_v47 = vadd.f32 %v14237_v40, %v5079_v23  ;;  %v9416_v21 = vpop.f32.mrb[154].mxu0  ;;  %v10321_v31 = vpop.eup %10320  ;;  %v14355_v0 = vsel %vm5309_vm0, %v5341_v3, %v10319_v26 }
 0xb9c   : > { %v5402_v62 = vmul.f32 1.442695, %v5088_v16  ;;  %v5091_v10 = vadd.f32 %v9416_v21, %v14237_v40  ;;  %v5082_v4 = vpop.f32.mrb[155].mxu0  ;;  %v10323_v46 = vpop.eup %10322  ;;  %v14359_v27 = vsel %vm5308_vm1, %v5340_v44, %v10321_v31  ;;  %v5344_v29 = vadd.f32 1.0, %v5088_v16  ;;  %vm17092_vm1 = vmmov %vm17088_vm12 }
 0xb9d   : > { %v5398_v51 = vmul.f32 1.442695, %v5080_v47  ;;  %v5083_v63 = vadd.f32 %v14237_v40, %v5082_v4  ;;  %v14357_v57 = vsel %vm5307_vm2, %v5339_v55, %v10323_v46  ;;  %vm5312_vm4 = vcmp.gt.f32.partialorder %v5088_v16, 0.0  ;;  %vm17093_vm0 = vmmov %vm17092_vm1 }
 0xb9e   : > { %10324 = vpow2.f32 %v5402_v62  ;;  %v5404_v25 = vmul.f32 1.442695, %v5091_v10  ;;  %v5475_v2 = vpack.c.bf16 %v5091_v10, %v5088_v16  ;;  %v5342_v12 = vadd.f32 1.0, %v5080_v47  ;;  %vm17094_vm2 = vmmov %vm17093_vm0 }
 0xb9f   : > { %10326 = vpow2.f32 %v5398_v51  ;;  %v5400_v42 = vmul.f32 1.442695, %v5083_v63  ;;  %v5474_v53 = vpack.c.bf16 %v5083_v63, %v5080_v47  ;;  %vm5310_vm5 = vcmp.gt.f32.partialorder %v5080_v47, 0.0 }
 0xba0   : > { %5520 = vrot.lane.b32.xlu1 %v5475_v2, %s10926_s5  ;;  %vm5313_vm6 = vcmp.gt.f32.partialorder %v5091_v10, 0.0  ;;  %v5343_v2 = vadd.f32 1.0, %v5083_v63  ;;  %vm5311_vm7 = vcmp.gt.f32.partialorder %v5083_v63, 0.0 }
 0xba1   : > { %10328 = vpow2.f32 %v5400_v42 }
 0xba2   : > { %10330 = vpow2.f32 %v5404_v25 }
 0xba4   : > { %5518 = vrot.lane.b32.xlu1 %v5474_v53, %s10926_s5  ;;  %v5345_v53 = vadd.f32 1.0, %v5091_v10 }
 0xba8   : > { %v10325_v18 = vpop.eup %10324  ;;  %v9419_v11 = vpop.f32.mrb[156].mxu0 }
 0xba9   : > { %v10327_v23 = vpop.eup %10326  ;;  %v5104_v26 = vadd.f32 %v9419_v11, %v14237_v40  ;;  %v5095_v21 = vpop.f32.mrb[157].mxu0  ;;  %v5440_v31 = vsel %vm5312_vm4, %v5344_v29, %v10325_v18  ;;  %vm17095_vm4 = vmmov %vm17093_vm0 }
 0xbaa   : > { %v5096_v3 = vadd.f32 %v14237_v40, %v5095_v21  ;;  %v9420_v62 = vpop.f32.mrb[158].mxu0  ;;  %v5438_v4 = vsel %vm5310_vm5, %v5342_v12, %v10327_v23  ;;  %vm17096_vm5 = vmmov %vm17093_vm0 }
 0xbab   : > { %v5410_v46 = vmul.f32 1.442695, %v5104_v26  ;;  %v5107_v51 = vadd.f32 %v9420_v62, %v14237_v40  ;;  %v5098_v44 = vpop.f32.mrb[159].mxu0  ;;  %v10329_v55 = vpop.eup %10328  ;;  %vm5316_vm8 = vcmp.gt.f32.partialorder %v5104_v26, 0.0 }
 0xbac   : > { %v5406_v25 = vmul.f32 1.442695, %v5096_v3  ;;  %v5099_v16 = vadd.f32 %v14237_v40, %v5098_v44  ;;  %v10331_v42 = vpop.eup %10330  ;;  %v5439_v11 = vsel %vm5311_vm7, %v5343_v2, %v10329_v55  ;;  %v5348_v40 = vadd.f32 1.0, %v5104_v26  ;;  %vm17097_vm7 = vmmov %vm17093_vm0 }
 0xbad   : > { %10332 = vpow2.f32 %v5410_v46  ;;  %v5412_v47 = vmul.f32 1.442695, %v5107_v51  ;;  %v5477_v18 = vpack.c.bf16 %v5107_v51, %v5104_v26  ;;  %v5458_v23 = vpack.c.bf16 %v5439_v11, %v5438_v4 }
 0xbae   : > { %10334 = vpow2.f32 %v5406_v25  ;;  %v5408_v29 = vmul.f32 1.442695, %v5099_v16  ;;  %v5476_v12 = vpack.c.bf16 %v5099_v16, %v5096_v3  ;;  %v5441_v21 = vsel %vm5313_vm6, %v5345_v53, %v10331_v42 }
 0xbaf   : > { %10336 = vpow2.f32 %v5412_v47  ;;  %5524 = vrot.lane.b32.xlu1 %v5477_v18, %s10926_s5  ;;  %v5459_v62 = vpack.c.bf16 %v5441_v21, %v5440_v31  ;;  %v5349_v10 = vadd.f32 1.0, %v5107_v51  ;;  %v5346_v48 = vadd.f32 1.0, %v5096_v3 }
 0xbb0   : > { %10338 = vpow2.f32 %v5408_v29  ;;  %vm5317_vm9 = vcmp.gt.f32.partialorder %v5107_v51, 0.0  ;;  %v5347_v47 = vadd.f32 1.0, %v5099_v16  ;;  %vm5314_vm10 = vcmp.gt.f32.partialorder %v5096_v3, 0.0 }
 0xbb1   : > { %vm5315_vm11 = vcmp.gt.f32.partialorder %v5099_v16, 0.0 }
 0xbb2   : > { %v5497_v53 = vpop.permute.xlu1 %5496 }
 0xbb3   : > { %5522 = vrot.lane.b32.xlu1 %v5476_v12, %s10926_s5 }
 0xbb6   : > { %v5495_v29 = vpop.permute.xlu1 %5494 }
 0xbb7   : > { %v10333_v44 = vpop.eup %10332 }
 0xbb8   : > { %v10335_v46 = vpop.eup %10334  ;;  %v5444_v63 = vsel %vm5316_vm8, %v5348_v40, %v10333_v44 }
 0xbb9   : > { %v10337_v25 = vpop.eup %10336  ;;  %v5442_v55 = vsel %vm5314_vm10, %v5346_v48, %v10335_v46  ;;  %v17086_v48 = vpack.c.bf16 %v14357_v57, %v14348_v13  ;;  %v14408_v46 = vld [vmem:[#allocation5 + $0x1] ss:$0 sm:$0xff] }
 0xbba   : > { %v10339_v35 = vpop.eup %10338  ;;  %v5445_v4 = vsel %vm5317_vm9, %v5349_v10, %v10337_v25  ;;  %vm17098_vm9 = vmmov %vm17093_vm0 }
 0xbbb   : > { %v5443_v42 = vsel %vm5315_vm11, %v5347_v47, %v10339_v35  ;;  %v5461_v2 = vpack.c.bf16 %v5445_v4, %v5444_v63  ;;  %v17087_v35 = vpack.c.bf16 %v14355_v0, %v14359_v27  ;;  %v5530_v27 = vsel %vm17091_vm15, %v5497_v53, 1065369472 }
 0xbbc   : > { %v5460_v31 = vpack.c.bf16 %v5443_v42, %v5442_v55 }
 0xbc2   : > { %v5501_v18 = vpop.permute.xlu1 %5500 }
 0xbc6   : > { %v5499_v26 = vpop.permute.xlu1 %5498 }
 0xbc7   : > { %v5533_v63 = vsel %vm17093_vm0, %v5499_v26, 1065369472 }
 0xbd2   : > { %v14379_v51 = vpop.permute.xlu1 %5504 }
 0xbd6   : > { %5590 = vxpose.xlu1.c.b16.start [1/8] (narrow) %v5454_v22, 32  ;;  %v14387_v3 = vpop.permute.xlu1 %5502 }
 0xbda   : > { %5591 = vxpose.xlu1.c.b16.cont [2/8] (narrow) %v5455_v36, 32  ;;  %v5527_v36 = vsel %vm17089_vm13, %v5495_v29, 1065369472 }
 0xbde   : > { %5592 = vxpose.xlu1.c.b16.cont [3/8] (narrow) %v17086_v48, 32  ;;  %v5536_v48 = vsel %vm17095_vm4, %v5501_v18, 1065369472  ;;  %vm17101_vm4 = vmmov %vm17093_vm0 }
 0xbe2   : > { %5593 = vxpose.xlu1.c.b16.cont [4/8] (narrow) %v17087_v35, 32  ;;  %v14389_v5 = vpop.permute.xlu1 %5508 }
 0xbe6   : > { %5594 = vxpose.xlu1.c.b16.cont [5/8] (narrow) %v5458_v23, 32  ;;  %v14391_v37 = vpop.permute.xlu1 %5506 }
 0xbea   : > { %5595 = vxpose.xlu1.c.b16.cont [6/8] (narrow) %v5459_v62, 32 }
 0xbee   : > { %5596 = vxpose.xlu1.c.b16.cont [7/8] (narrow) %v5460_v31, 32 }
 0xbf2   : > { %v5513_v17 = vpop.permute.xlu1 %5512  ;;  %5597 = vxpose.xlu1.c.b16.end [8/8] (narrow) %v5461_v2, 32 }
 0xbf3   : > { %v5554_v0 = vsel %vm17090_vm14, %v5513_v17, 1065369472 }
 0xbf6   : > { %v5511_v20 = vpop.permute.xlu1 %5510 }
 0xbf7   : > { %v5551_v22 = vsel %vm17088_vm12, %v5511_v20, 1065369472  ;;  %vm17099_vm12 = vmmov %vm17093_vm0 }
 0xbf8   : > { %8971 = vmatprep.subr.bf16.mxu1 %v5551_v22 }
 0xbf9   : > { %8972 = vmatpush3.bf16.msra.mxu1 %v5527_v36 }
 0xbfa   : > { %v4620_v13 = vpop.f32.mrb[104].mxu1  ;;  %8973 = vmatprep.subr.bf16.mxu1 %v5554_v0 }
 0xbfb   : > { %4643 = vst [vmem:[%s14397_s18] sm:$0xff] %v4620_v13  ;;  %v4622_v57 = vpop.f32.mrb[105].mxu1 }
 0xbfc   : > { %4644 = vst [vmem:[%s14397_s18 + $0x8] sm:$0xff] %v4622_v57 }
 0xbfd   : > { %8974 = vmatpush3.bf16.msra.mxu1 %v5530_v27 }
 0xbfe   : > { %v4626_v16 = vpop.f32.mrb[106].mxu1 }
 0xbff   : > { %4645 = vst [vmem:[%s14397_s18 + $0x10] sm:$0xff] %v4626_v16  ;;  %v4628_v12 = vpop.f32.mrb[107].mxu1 }
 0xc00   : > { %4646 = vst [vmem:[%s14397_s18 + $0x18] sm:$0xff] %v4628_v12 }
 0xc02   : > { %v4632_v11 = vpop.f32.mrb[108].mxu1  ;;  %v5517_v21 = vpop.permute.xlu1 %5516 }
 0xc03   : > { %4647 = vst [vmem:[%s14397_s18 + $0x20] sm:$0xff] %v4632_v11  ;;  %v4634_v23 = vpop.f32.mrb[109].mxu1  ;;  %v5560_v4 = vsel %vm17094_vm2, %v5517_v21, 1065369472  ;;  %vm17100_vm2 = vmmov %vm17093_vm0 }
 0xc04   : > { %4648 = vst [vmem:[%s14397_s18 + $0x28] sm:$0xff] %v4634_v23 }
 0xc06   : > { %v4638_v62 = vpop.f32.mrb[110].mxu1  ;;  %v5515_v44 = vpop.permute.xlu1 %5514 }
 0xc07   : > { %4649 = vst [vmem:[%s14397_s18 + $0x30] sm:$0xff] %v4638_v62  ;;  %v4640_v40 = vpop.f32.mrb[111].mxu1  ;;  %v5557_v10 = vsel %vm17092_vm1, %v5515_v44, 1065369472 }
 0xc08   : > { %4650 = vst [vmem:[%s14397_s18 + $0x38] sm:$0xff] %v4640_v40  ;;  %8975 = vmatprep.subr.bf16.mxu1 %v5557_v10  ;;  %v5539_v10 = vsel %vm17096_vm5, %v14387_v3, 1065369472  ;;  %vm17102_vm5 = vmmov %vm17093_vm0  ;;  %s10804_s18 = sshll.u32 %s10927_s0, 4  ;;  %s10805_s18 = int_to_ptr.vmem [resolvable:$false] %s10804_s18 }
 0xc09   : > { %8976 = vmatpush3.bf16.msra.mxu1 %v5533_v63  ;;  %s10806_s1 = scalar_lea.vmem %s10805_s18, 2048  ;;  %p10807_p11 = scmp.lt.s32.totalorder %s16328_s10, %s10805_s18 }
 0xc0a   : > { %v9355_v25 = vpop.f32.mrb[112].mxu1  ;;  %8977 = vmatprep.subr.bf16.mxu1 %v5560_v4  ;;  %p10808_p12 = scmp.lt.s32.totalorder %s10806_s1, %s10800_s27 }
 0xc0b   : > { %v4813_v47 = vadd.f32 %v9355_v25, %v14408_v46  ;;  %v4804_v55 = vpop.f32.mrb[113].mxu1 }
 0xc0c   : > { %v14415_v42 = vadd.f32 %v14408_v46, %v4804_v55  ;;  %v9356_v2 = vpop.f32.mrb[114].mxu1  ;;  %p10809_p13 = por %p10808_p12, %p10807_p11 }
 0xc0d   : > { %v5178_v31 = vmul.f32 1.442695, %v4813_v47  ;;  %v4816_v53 = vadd.f32 %v9356_v2, %v14408_v46  ;;  %v4807_v29 = vpop.f32.mrb[115].mxu1  ;;  %8978 = vmatpush3.bf16.msra.mxu1 %v5536_v48  ;;  %vm5112_vm6 = vcmp.gt.f32.partialorder %v4813_v47, 0.0  ;;  %v5144_v4 = vadd.f32 1.0, %v4813_v47 }
 0xc0e   : > { %v5174_v26 = vmul.f32 1.442695, %v14415_v42  ;;  %v4808_v35 = vadd.f32 %v14408_v46, %v4807_v29  ;;  %v5142_v55 = vadd.f32 1.0, %v14415_v42  ;;  %vm5110_vm11 = vcmp.gt.f32.partialorder %v14415_v42, 0.0  ;;  %p10810_p8 = pnand %p10809_p13, %p10803_p1 }
 0xc0f   : > { %10340 = vpow2.f32 %v5178_v31  ;;  %v5180_v17 = vmul.f32 1.442695, %v4816_v53  ;;  %v5145_v2 = vadd.f32 1.0, %v4816_v53  ;;  %vm5113_vm8 = vcmp.gt.f32.partialorder %v4816_v53, 0.0 }
 0xc10   : > { %10342 = vpow2.f32 %v5174_v26  ;;  %v5176_v20 = vmul.f32 1.442695, %v4808_v35  ;;  %v5143_v48 = vadd.f32 1.0, %v4808_v35  ;;  %vm5111_vm10 = vcmp.gt.f32.partialorder %v4808_v35, 0.0 }
 0xc11   : > { %10344 = vpow2.f32 %v5180_v17  ;;  %v5542_v47 = vsel %vm17099_vm12, %v14379_v51, 1065369472 }
 0xc12   : > { %10346 = vpow2.f32 %v5176_v20  ;;  %v9359_v22 = vpop.f32.mrb[116].mxu1  ;;  %v5521_v0 = vpop.permute.xlu1 %5520 }
 0xc13   : > { %v14422_v36 = vadd.f32 %v9359_v22, %v14408_v46  ;;  %v4820_v13 = vpop.f32.mrb[117].mxu1  ;;  %v5566_v3 = vsel %vm17098_vm9, %v5521_v0, 1065369472 }
 0xc14   : > { %v14425_v57 = vadd.f32 %v14408_v46, %v4820_v13  ;;  %v9360_v18 = vpop.f32.mrb[118].mxu1 }
 0xc15   : > { %v5186_v27 = vmul.f32 1.442695, %v14422_v36  ;;  %v14429_v16 = vadd.f32 %v9360_v18, %v14408_v46  ;;  %v4823_v12 = vpop.f32.mrb[119].mxu1  ;;  %vm5116_vm15 = vcmp.gt.f32.partialorder %v14422_v36, 0.0 }
 0xc16   : > { %v5182_v11 = vmul.f32 1.442695, %v14425_v57  ;;  %v14433_v23 = vadd.f32 %v14408_v46, %v4823_v12  ;;  %v5519_v40 = vpop.permute.xlu1 %5518  ;;  %vm5114_vm1 = vcmp.gt.f32.partialorder %v14425_v57, 0.0 }
 0xc17   : > { %10348 = vpow2.f32 %v5186_v27  ;;  %v5188_v21 = vmul.f32 1.442695, %v14429_v16  ;;  %v5563_v63 = vsel %vm17097_vm7, %v5519_v40, 1065369472  ;;  %vm5117_vm13 = vcmp.gt.f32.partialorder %v14429_v16, 0.0 }
 0xc18   : > { %10350 = vpow2.f32 %v5182_v11  ;;  %v5184_v62 = vmul.f32 1.442695, %v14433_v23  ;;  %8979 = vmatprep.subr.bf16.mxu1 %v5563_v63  ;;  %vm5115_vm14 = vcmp.gt.f32.partialorder %v14433_v23, 0.0 }
 0xc19   : > { %v10341_v44 = vpop.eup %10340  ;;  %10352 = vpow2.f32 %v5188_v21  ;;  %8980 = vmatpush3.bf16.msra.mxu1 %v5539_v10  ;;  %v5148_v10 = vadd.f32 1.0, %v14422_v36 }
 0xc1a   : > { %v10343_v25 = vpop.eup %10342  ;;  %10354 = vpow2.f32 %v5184_v62  ;;  %v9363_v31 = vpop.f32.mrb[120].mxu1  ;;  %v14446_v22 = vsel %vm5112_vm6, %v5144_v4, %v10341_v44  ;;  %8981 = vmatprep.subr.bf16.mxu1 %v5566_v3  ;;  %v5149_v4 = vadd.f32 1.0, %v14429_v16 }
 0xc1b   : > { %v10345_v29 = vpop.eup %10344  ;;  %v14442_v26 = vadd.f32 %v9363_v31, %v14408_v46  ;;  %v4836_v17 = vpop.f32.mrb[121].mxu1  ;;  %v14460_v11 = vsel %vm5110_vm11, %v5142_v55, %v10343_v25  ;;  %v5146_v25 = vadd.f32 1.0, %v14425_v57 }
 0xc1c   : > { %v10347_v20 = vpop.eup %10346  ;;  %v14448_v13 = vsel %vm5113_vm8, %v5145_v2, %v10345_v29  ;;  %v14451_v18 = vadd.f32 %v14408_v46, %v4836_v17  ;;  %v9364_v53 = vpop.f32.mrb[122].mxu1  ;;  %v5147_v29 = vadd.f32 1.0, %v14433_v23 }
 0xc1d   : > { %v14456_v12 = vsel %vm5111_vm10, %v5143_v48, %v10347_v20  ;;  %v4839_v0 = vpop.f32.mrb[123].mxu1  ;;  %v5194_v35 = vmul.f32 1.442695, %v14442_v26  ;;  %v14465_v62 = vadd.f32 %v9364_v53, %v14408_v46  ;;  %8982 = vmatpush3.bf16.msra.mxu1 %v5542_v47  ;;  %vm5120_vm7 = vcmp.gt.f32.partialorder %v14442_v26, 0.0 }
 0xc1e   : > { %v5190_v21 = vmul.f32 1.442695, %v14451_v18  ;;  %v14468_v42 = vadd.f32 %v14408_v46, %v4839_v0  ;;  %vm5118_vm8 = vcmp.gt.f32.partialorder %v14451_v18, 0.0 }
 0xc1f   : > { %10356 = vpow2.f32 %v5194_v35  ;;  %v5196_v51 = vmul.f32 1.442695, %v14465_v62  ;;  %vm5121_vm6 = vcmp.gt.f32.partialorder %v14465_v62, 0.0 }
 0xc20   : > { %10358 = vpow2.f32 %v5190_v21  ;;  %v5192_v55 = vmul.f32 1.442695, %v14468_v42  ;;  %vm5119_vm9 = vcmp.gt.f32.partialorder %v14468_v42, 0.0 }
 0xc21   : > { %v10349_v44 = vpop.eup %10348  ;;  %10360 = vpow2.f32 %v5196_v51  ;;  %v5525_v48 = vpop.permute.xlu1 %5524 }
 0xc22   : > { %v10351_v63 = vpop.eup %10350  ;;  %v9367_v2 = vpop.f32.mrb[124].mxu1  ;;  %10362 = vpow2.f32 %v5192_v55  ;;  %v14493_v51 = vsel %vm5116_vm15, %v5148_v10, %v10349_v44 }
 0xc23   : > { %v10353_v31 = vpop.eup %10352  ;;  %v14480_v3 = vadd.f32 %v9367_v2, %v14408_v46  ;;  %v4852_v17 = vpop.f32.mrb[125].mxu1 }
 0xc24   : > { %v10355_v20 = vpop.eup %10354  ;;  %v14482_v53 = vsel %vm5117_vm13, %v5149_v4, %v10353_v31  ;;  %v14486_v0 = vadd.f32 %v14408_v46, %v4852_v17  ;;  %v9368_v47 = vpop.f32.mrb[126].mxu1  ;;  %v14495_v4 = vsel %vm5114_vm1, %v5146_v25, %v10351_v63  ;;  %v5545_v25 = vsel %vm17100_vm2, %v14391_v37, 1065369472 }
 0xc25   : > { %v14490_v16 = vsel %vm5115_vm14, %v5147_v29, %v10355_v20  ;;  %v5202_v35 = vmul.f32 1.442695, %v14480_v3  ;;  %v4855_v21 = vpop.f32.mrb[127].mxu1  ;;  %v14499_v55 = vadd.f32 %v9368_v47, %v14408_v46  ;;  %v5523_v36 = vpop.permute.xlu1 %5522  ;;  %v5548_v20 = vsel %vm17101_vm4, %v14389_v5, 1065369472 }
 0xc26   : > { %v5198_v23 = vmul.f32 1.442695, %v14486_v0  ;;  %v14502_v2 = vadd.f32 %v14408_v46, %v4855_v21  ;;  %v5569_v63 = vsel %vm17093_vm0, %v5523_v36, 1065369472  ;;  %v5572_v47 = vsel %vm17102_vm5, %v5525_v48, 1065369472 }
 0xc27   : > { %10364 = vpow2.f32 %v5202_v35  ;;  %v5204_v44 = vmul.f32 1.442695, %v14499_v55  ;;  %8983 = vmatprep.subr.bf16.mxu1 %v5569_v63  ;;  %v5152_v36 = vadd.f32 1.0, %v14442_v26  ;;  %v5150_v37 = vadd.f32 1.0, %v14451_v18 }
 0xc28   : > { %10366 = vpow2.f32 %v5198_v23  ;;  %v5200_v10 = vmul.f32 1.442695, %v14502_v2  ;;  %8984 = vmatpush3.bf16.msra.mxu1 %v5545_v25  ;;  %v5151_v48 = vadd.f32 1.0, %v14468_v42  ;;  %vm5124_vm10 = vcmp.gt.f32.partialorder %v14480_v3, 0.0 }
 0xc29   : > { %10368 = vpow2.f32 %v5204_v44  ;;  %v10357_v17 = vpop.eup %10356  ;;  %v5153_v44 = vadd.f32 1.0, %v14465_v62  ;;  %8985 = vmatprep.subr.bf16.mxu1 %v5572_v47  ;;  %vm5125_vm11 = vcmp.gt.f32.partialorder %v14499_v55, 0.0  ;;  %vm5122_vm12 = vcmp.gt.f32.partialorder %v14486_v0, 0.0 }
 0xc2a   : > { %v9371_v29 = vpop.f32.mrb[128].mxu1  ;;  %10370 = vpow2.f32 %v5200_v10  ;;  %v10359_v23 = vpop.eup %10358  ;;  %vm5123_vm13 = vcmp.gt.f32.partialorder %v14502_v2, 0.0 }
 0xc2b   : > { %v14517_v35 = vadd.f32 %v9371_v29, %v14408_v46  ;;  %v4868_v21 = vpop.f32.mrb[129].mxu1  ;;  %v10361_v10 = vpop.eup %10360  ;;  %v14538_v62 = vsel %vm5118_vm8, %v5150_v37, %v10359_v23  ;;  %v5154_v23 = vadd.f32 1.0, %v14486_v0 }
 0xc2c   : > { %v14523_v63 = vadd.f32 %v14408_v46, %v4868_v21  ;;  %v9372_v5 = vpop.f32.mrb[130].mxu1  ;;  %v10363_v57 = vpop.eup %10362  ;;  %v14533_v47 = vsel %vm5121_vm6, %v5153_v44, %v10361_v10  ;;  %v14536_v21 = vsel %vm5120_vm7, %v5152_v36, %v10357_v17  ;;  %8986 = vmatpush3.bf16.msra.mxu1 %v5548_v20  ;;  %vm17104_vm7 = vcmask 261120  }
 0xc2d   : > { %v5210_v25 = vmul.f32 1.442695, %v14517_v35  ;;  %v14529_v29 = vadd.f32 %v9372_v5, %v14408_v46  ;;  %v4871_v31 = vpop.f32.mrb[131].mxu1  ;;  %v14540_v27 = vsel %vm5119_vm9, %v5151_v48, %v10363_v57  ;;  %v5156_v57 = vadd.f32 1.0, %v14480_v3  ;;  %v5582_v3 = vpop.trf.xlu0 }
 0xc2e   : > { %v5206_v5 = vmul.f32 1.442695, %v14523_v63  ;;  %v14545_v50 = vadd.f32 %v14408_v46, %v4871_v31  ;;  %v5157_v31 = vadd.f32 1.0, %v14499_v55  ;;  %v5155_v48 = vadd.f32 1.0, %v14502_v2 }
 0xc2f   : > { %v5212_v40 = vmul.f32 1.442695, %v14529_v29  ;;  %10372 = vpow2.f32 %v5210_v25  ;;  %vm5129_vm14 = vcmp.gt.f32.partialorder %v14529_v29, 0.0  ;;  %vm5128_vm15 = vcmp.gt.f32.partialorder %v14517_v35, 0.0 }
 0xc30   : > { %v5208_v36 = vmul.f32 1.442695, %v14545_v50  ;;  %v5159_v30 = vadd.f32 1.0, %v14545_v50  ;;  %vm5127_vm1 = vcmp.gt.f32.partialorder %v14545_v50, 0.0  ;;  %vm5126_vm0 = vcmp.gt.f32.partialorder %v14523_v63, 0.0 }
 0xc31   : > { %v10365_v42 = vpop.eup %10364  ;;  %10374 = vpow2.f32 %v5212_v40 }
 0xc32   : > { %v9375_v17 = vpop.f32.mrb[132].mxu1  ;;  %v10367_v20 = vpop.eup %10366  ;;  %10376 = vpow2.f32 %v5206_v5  ;;  %v14570_v39 = vsel %vm5124_vm10, %v5156_v57, %v10365_v42 }
 0xc33   : > { %v14557_v37 = vadd.f32 %v9375_v17, %v14408_v46  ;;  %v4884_v44 = vpop.f32.mrb[133].mxu1  ;;  %v10369_v10 = vpop.eup %10368  ;;  %10378 = vpow2.f32 %v5208_v36  ;;  %v14572_v55 = vsel %vm5122_vm12, %v5154_v23, %v10367_v20  ;;  %v5161_v23 = vadd.f32 1.0, %v14529_v29 }
 0xc34   : > { %v14562_v40 = vadd.f32 %v14408_v46, %v4884_v44  ;;  %v9376_v25 = vpop.f32.mrb[134].mxu1  ;;  %v10371_v18 = vpop.eup %10370  ;;  %v14565_v26 = vsel %vm5125_vm11, %v5157_v31, %v10369_v10 }
 0xc35   : > { %v4887_v17 = vpop.f32.mrb[135].mxu1  ;;  %v14574_v5 = vsel %vm5123_vm13, %v5155_v48, %v10371_v18  ;;  %v5218_v44 = vmul.f32 1.442695, %v14557_v37  ;;  %v14579_v0 = vadd.f32 %v9376_v25, %v14408_v46  ;;  %v5160_v25 = vadd.f32 1.0, %v14517_v35 }
 0xc36   : > { %v5214_v8 = vmul.f32 1.442695, %v14562_v40  ;;  %v14582_v31 = vadd.f32 %v14408_v46, %v4887_v17  ;;  %v5158_v35 = vadd.f32 1.0, %v14523_v63  ;;  %vm5132_vm4 = vcmp.gt.f32.partialorder %v14557_v37, 0.0 }
 0xc37   : > { %10380 = vpow2.f32 %v5218_v44  ;;  %v5220_v18 = vmul.f32 1.442695, %v14579_v0  ;;  %vm5133_vm2 = vcmp.gt.f32.partialorder %v14579_v0, 0.0  ;;  %vm5130_vm5 = vcmp.gt.f32.partialorder %v14562_v40, 0.0 }
 0xc38   : > { %10382 = vpow2.f32 %v5214_v8  ;;  %v5216_v42 = vmul.f32 1.442695, %v14582_v31  ;;  %vm5131_vm6 = vcmp.gt.f32.partialorder %v14582_v31, 0.0 }
 0xc39   : > { %v10373_v20 = vpop.eup %10372  ;;  %10384 = vpow2.f32 %v5220_v18 }
 0xc3a   : > { %v9379_v57 = vpop.f32.mrb[136].mxu1  ;;  %10386 = vpow2.f32 %v5216_v42  ;;  %v14603_v24 = vsel %vm5128_vm15, %v5160_v25, %v10373_v20  ;;  %v5164_v20 = vadd.f32 1.0, %v14557_v37 }
 0xc3b   : > { %v14592_v36 = vadd.f32 %v9379_v57, %v14408_v46  ;;  %v4900_v10 = vpop.f32.mrb[137].mxu1  ;;  %v10375_v48 = vpop.eup %10374 }
 0xc3c   : > { %v14597_v17 = vadd.f32 %v14408_v46, %v4900_v10  ;;  %v9380_v8 = vpop.f32.mrb[138].mxu1  ;;  %v14600_v44 = vsel %vm5129_vm14, %v5161_v23, %v10375_v48  ;;  %v10377_v2 = vpop.eup %10376 }
 0xc3d   : > { %v5226_v18 = vmul.f32 1.442695, %v14592_v36  ;;  %v4903_v57 = vpop.f32.mrb[139].mxu1  ;;  %v14608_v42 = vadd.f32 %v9380_v8, %v14408_v46  ;;  %v5598_v10 = vpop.trf.xlu1  ;;  %v14620_v25 = vsel %vm5126_vm0, %v5158_v35, %v10377_v2  ;;  %v5162_v2 = vadd.f32 1.0, %v14562_v40 }
 0xc3e   : > { %v5222_v29 = vmul.f32 1.442695, %v14597_v17  ;;  %v10379_v33 = vpop.eup %10378  ;;  %v14613_v23 = vadd.f32 %v14408_v46, %v4903_v57  ;;  %5638 = vmatprep.mubr.bf16.mxu1 %v5598_v10  ;;  %v17103_v40 = vpack.c.bf16 %v14456_v12, %v14460_v11  ;;  %vm5136_vm8 = vcmp.gt.f32.partialorder %v14592_v36, 0.0 }
 0xc3f   : > { %v14618_v48 = vsel %vm5127_vm1, %v5159_v30, %v10379_v33  ;;  %5639 = vmatmul.mubr.bf16.vlgmr.msra.gmra.mrb[144].mxu1 %v5582_v3  ;;  %10388 = vpow2.f32 %v5226_v18  ;;  %v5228_v8 = vmul.f32 1.442695, %v14608_v42  ;;  %v5165_v3 = vadd.f32 1.0, %v14579_v0  ;;  %vm17106_vm1 = vmmov %vm17104_vm7 }
 0xc40   : > { %v5224_v49 = vmul.f32 1.442695, %v14613_v23  ;;  %10390 = vpow2.f32 %v5222_v29  ;;  %vm5137_vm9 = vcmp.gt.f32.partialorder %v14608_v42, 0.0  ;;  %v5167_v12 = vadd.f32 1.0, %v14613_v23  ;;  %vm17108_vm0 = vmmov %vm17106_vm1 }
 0xc41   : > { %v5599_v57 = vpop.trf.xlu1  ;;  %v10381_v60 = vpop.eup %10380  ;;  %10392 = vpow2.f32 %v5228_v8  ;;  %v5163_v8 = vadd.f32 1.0, %v14582_v31  ;;  %vm5134_vm10 = vcmp.gt.f32.partialorder %v14597_v17, 0.0  ;;  %vm5135_vm11 = vcmp.gt.f32.partialorder %v14613_v23, 0.0 }
 0xc42   : > { %v9383_v50 = vpop.f32.mrb[140].mxu1  ;;  %5646 = vmatprep.mubr.bf16.mxu1 %v5599_v57  ;;  %v10383_v63 = vpop.eup %10382  ;;  %10394 = vpow2.f32 %v5224_v49 }
 0xc43   : > { %v14628_v30 = vadd.f32 %v9383_v50, %v14408_v46  ;;  %v4916_v33 = vpop.f32.mrb[141].mxu1  ;;  %v10385_v35 = vpop.eup %10384  ;;  %v14646_v0 = vsel %vm5130_vm5, %v5162_v2, %v10383_v63  ;;  %v5166_v2 = vadd.f32 1.0, %v14597_v17  ;;  %vm17114_vm5 = vmmov %vm17108_vm0 }
 0xc44   : > { %v14633_v18 = vadd.f32 %v14408_v46, %v4916_v33  ;;  %v9384_v29 = vpop.f32.mrb[142].mxu1  ;;  %v5583_v57 = vpop.trf.xlu0  ;;  %v14641_v49 = vsel %vm5133_vm2, %v5165_v3, %v10385_v35  ;;  %v14644_v33 = vsel %vm5132_vm4, %v5164_v20, %v10381_v60  ;;  %vm17110_vm2 = vmmov %vm17108_vm0 }
 0xc45   : > { %v5234_v50 = vmul.f32 1.442695, %v14628_v30  ;;  %v4928_v10 = vadd.f32 %v9384_v29, %v14408_v46  ;;  %v4919_v45 = vpop.f32.mrb[143].mxu1  ;;  %v10387_v28 = vpop.eup %10386  ;;  %v5281_v60 = vpack.c.bf16 %v14641_v49, %v14644_v33  ;;  %vm5140_vm12 = vcmp.gt.f32.partialorder %v14628_v30, 0.0  ;;  %vm17112_vm4 = vmmov %vm17108_vm0 }
 0xc46   : > { %v14648_v61 = vsel %vm5131_vm6, %v5163_v8, %v10387_v28  ;;  %v5230_v9 = vmul.f32 1.442695, %v14633_v18  ;;  %v4920_v52 = vadd.f32 %v14408_v46, %v4919_v45  ;;  %v5168_v45 = vadd.f32 1.0, %v14592_v36  ;;  %vm17116_vm6 = vmmov %vm17108_vm0 }
 0xc47   : > { %10396 = vpow2.f32 %v5234_v50  ;;  %v5236_v29 = vmul.f32 1.442695, %v4928_v10  ;;  %5647 = vmatmul.mubr.bf16.gmra.mrb[148].mxu1 %v5583_v57  ;;  %v5280_v37 = vpack.c.bf16 %v14648_v61, %v14646_v0  ;;  %v5169_v46 = vadd.f32 1.0, %v14608_v42  ;;  %v9949_v61 = vld [vmem:[%s16803_s8 + $0x18] sm:$0xff]  }
 0xc48   : > { %9425 = vmatprep.mubr.msk.bf16.mxu1 %vm17104_vm7, %v17103_v40  ;;  %v5232_v31 = vmul.f32 1.442695, %v4920_v52  ;;  %v5172_v42 = vadd.f32 1.0, %v14628_v30  ;;  %vm5141_vm13 = vcmp.gt.f32.partialorder %v4928_v10, 0.0  ;;  %v5171_v23 = vadd.f32 1.0, %v4920_v52  ;;  %vm17118_vm7 = vmmov %vm17108_vm0 }
 0xc49   : > { %10398 = vpow2.f32 %v5236_v29  ;;  %v10389_v28 = vpop.eup %10388  ;;  %v5173_v29 = vadd.f32 1.0, %v4928_v10  ;;  %vm5138_vm14 = vcmp.gt.f32.partialorder %v14633_v18, 0.0  ;;  %vm5139_vm15 = vcmp.gt.f32.partialorder %v4920_v52, 0.0 }
 0xc4a   : > { %10400 = vpow2.f32 %v5230_v9  ;;  %v10391_v20 = vpop.eup %10390  ;;  %v14666_v3 = vsel %vm5136_vm8, %v5168_v45, %v10389_v28  ;;  %v5170_v45 = vadd.f32 1.0, %v14633_v18  ;;  %vm17120_vm8 = vmmov %vm17108_vm0 }
 0xc4b   : > { %v10393_v63 = vpop.eup %10392  ;;  %10402 = vpow2.f32 %v5232_v31  ;;  %v5262_v36 = vsel %vm5134_vm10, %v5166_v2, %v10391_v20  ;;  %vm17123_vm10 = vmmov %vm17108_vm0 }
 0xc4c   : > { %v10395_v11 = vpop.eup %10394  ;;  %v14669_v9 = vsel %vm5137_vm9, %v5169_v46, %v10393_v63  ;;  %vm17122_vm9 = vmmov %vm17108_vm0 }
 0xc4d   : > { %v5263_v35 = vsel %vm5135_vm11, %v5167_v12, %v10395_v11  ;;  %v5283_v8 = vpack.c.bf16 %v14669_v9, %v14666_v3  ;;  %vm17124_vm11 = vmmov %vm17108_vm0 }
 0xc4e   : > { %v5282_v50 = vpack.c.bf16 %v5263_v35, %v5262_v36  ;;  %v10597_v35 = vld [vmem:[%s16779_s23] sm:$0xff] }
 0xc51   : > { %v10397_v57 = vpop.eup %10396 }
 0xc52   : > { %v5268_v17 = vsel %vm5140_vm12, %v5172_v42, %v10397_v57  ;;  %v10598_v42 = vld [vmem:[%s16779_s23 + $0x8] sm:$0xff]  ;;  %vm17125_vm12 = vmmov %vm17108_vm0 }
 0xc53   : > { %v10399_v40 = vpop.eup %10398 }
 0xc54   : > { %v10401_v28 = vpop.eup %10400  ;;  %v5269_v31 = vsel %vm5141_vm13, %v5173_v29, %v10399_v40  ;;  %vm17126_vm13 = vmmov %vm17108_vm0 }
 0xc55   : > { %v5285_v20 = vpack.c.bf16 %v5269_v31, %v5268_v17  ;;  %v10403_v46 = vpop.eup %10402  ;;  %v5266_v63 = vsel %vm5138_vm14, %v5170_v45, %v10401_v28  ;;  %vm17127_vm14 = vmmov %vm17108_vm0 }
 0xc56   : > { %v5267_v2 = vsel %vm5139_vm15, %v5171_v23, %v10403_v46  ;;  %v10599_v23 = vld [vmem:[%s16779_s23 + $0x10] sm:$0xff]  ;;  %vm17128_vm15 = vmmov %vm17108_vm0 }
 0xc57   : > { %v5284_v12 = vpack.c.bf16 %v5267_v2, %v5266_v63  ;;  %v10600_v63 = vld [vmem:[%s16779_s23 + $0x18] sm:$0xff] }
 0xd12   : > { %v8987_v11 = vpop.f32.mrb[144].mxu1 }
 0xd13   : > { %v8988_v3 = vpop.f32.mrb[145].mxu1 }
 0xd14   : > { %v8989_v9 = vadd.f32 %v8988_v3, %v8987_v11  ;;  %v8990_v36 = vpop.f32.mrb[146].mxu1  ;;  %v17105_v3 = vpack.c.bf16 %v14448_v13, %v14446_v22  ;;  %v17113_v22 = vpack.c.bf16 %v14533_v47, %v14536_v21  ;;  %v17115_v13 = vpack.c.bf16 %v14574_v5, %v14572_v55 }
 0xd15   : > { %v8991_v30 = vpop.f32.mrb[147].mxu1 }
 0xd16   : > { %v8992_v10 = vadd.f32 %v8991_v30, %v8990_v36  ;;  %v5655_v57 = vmul.f32 %v10597_v35, %v8989_v9  ;;  %v17107_v9 = vpack.c.bf16 %v14490_v16, %v14495_v4  ;;  %v17109_v36 = vpack.c.bf16 %v14482_v53, %v14493_v51 }
 0xd17   : > { %v17111_v30 = vpack.c.bf16 %v14540_v27, %v14538_v62  ;;  %v17117_v53 = vpack.c.bf16 %v14565_v26, %v14570_v39  ;;  %v17119_v27 = vpack.c.bf16 %v14618_v48, %v14620_v25  ;;  %v17121_v16 = vpack.c.bf16 %v14600_v44, %v14603_v24  ;;  %v9948_v24 = vld [vmem:[%s16803_s8 + $0x10] sm:$0xff]  }
 0xd18   : > { %v5656_v18 = vmul.f32 %v10598_v42, %v8992_v10  ;;  %9457 = vmatprep.subr.bf16.mxu0 %v9948_v24 }
 0xd19   : > { %9458 = vmatpush3.bf16.msra.mxu0 %v9948_v24 }
 0xd1a   : > { %v8993_v52 = vpop.f32.mrb[148].mxu1  ;;  %v5659_v29 = vpack.c.bf16 %v5656_v18, %v5655_v57  ;;  %9459 = vmatprep.subr.bf16.mxu0 %v9949_v61 }
 0xd1b   : > { %v8994_v40 = vpop.f32.mrb[149].mxu1 }
 0xd1c   : > { %v8995_v28 = vadd.f32 %v8994_v40, %v8993_v52  ;;  %v8996_v17 = vpop.f32.mrb[150].mxu1  ;;  %9421 = vmatprep.subr.bf16.mxu1 %v5659_v29 }
 0xd1d   : > { %v8997_v31 = vpop.f32.mrb[151].mxu1  ;;  %9422 = vmatpush3.bf16.msra.mxu1 %v5659_v29  ;;  %9460 = vmatpush3.bf16.msra.mxu0 %v9949_v61 }
 0xd1e   : > { %v8998_v45 = vadd.f32 %v8997_v31, %v8996_v17  ;;  %v5657_v46 = vmul.f32 %v10599_v23, %v8995_v28 }
 0xd20   : > { %v5658_v2 = vmul.f32 %v10600_v63, %v8998_v45 }
 0xd22   : > { %v5660_v11 = vpack.c.bf16 %v5658_v2, %v5657_v46 }
 0xd24   : > { %9423 = vmatprep.subr.bf16.mxu1 %v5660_v11 }
 0xd25   : > { %9424 = vmatpush3.bf16.msra.mxu1 %v5660_v11 }
 0xd28   : > { %9426 = vmatmul.mubr.msk.bf16.vlgmr.msra.gmra.mrb[152].mxu1 %vm17106_vm1, %v17105_v3  ;;  %vm17129_vm1 = vmmov %vm17108_vm0 }
 0xd29   : > { %9429 = vmatprep.mubr.msk.bf16.mxu1 %vm17108_vm0, %v17107_v9 }
 0xd30   : > { %9430 = vmatmul.mubr.msk.bf16.gmra.mrb[156].mxu1 %vm17110_vm2, %v17109_v36  ;;  %vm17130_vm2 = vmmov %vm17108_vm0 }
 0xd31   : > { %9433 = vmatprep.mubr.msk.bf16.mxu1 %vm17112_vm4, %v17111_v30  ;;  %vm17131_vm4 = vmmov %vm17108_vm0 }
 0xd38   : > { %9434 = vmatmul.mubr.msk.bf16.gmra.mrb[160].mxu1 %vm17114_vm5, %v17113_v22  ;;  %vm17132_vm5 = vmmov %vm17108_vm0 }
 0xd39   : > { %9437 = vmatprep.mubr.msk.bf16.mxu1 %vm17116_vm6, %v17115_v13  ;;  %vm17133_vm6 = vmmov %vm17108_vm0 }
 0xd40   : > { %9438 = vmatmul.mubr.msk.bf16.gmra.mrb[164].mxu1 %vm17118_vm7, %v17117_v53  ;;  %vm17134_vm7 = vmmov %vm17108_vm0 }
 0xd41   : > { %9441 = vmatprep.mubr.msk.bf16.mxu1 %vm17120_vm8, %v17119_v27  ;;  %vm17135_vm8 = vmmov %vm17108_vm0 }
 0xd48   : > { %9442 = vmatmul.mubr.msk.bf16.gmra.mrb[168].mxu1 %vm17122_vm9, %v17121_v16  ;;  %vm17136_vm9 = vmmov %vm17108_vm0 }
 0xd49   : > { %9445 = vmatprep.mubr.msk.bf16.mxu1 %vm17123_vm10, %v5280_v37  ;;  %vm17137_vm10 = vmmov %vm17108_vm0 }
 0xd50   : > { %9446 = vmatmul.mubr.msk.bf16.gmra.mrb[172].mxu1 %vm17124_vm11, %v5281_v60  ;;  %vm17138_vm11 = vmmov %vm17108_vm0 }
 0xd51   : > { %9449 = vmatprep.mubr.msk.bf16.mxu1 %vm17125_vm12, %v5282_v50  ;;  %vm17139_vm12 = vmmov %vm17108_vm0 }
 0xd58   : > { %9450 = vmatmul.mubr.msk.bf16.gmra.mrb[176].mxu1 %vm17126_vm13, %v5283_v8  ;;  %vm17140_vm13 = vmmov %vm17108_vm0 }
 0xd59   : > { %9453 = vmatprep.mubr.msk.bf16.mxu1 %vm17127_vm14, %v5284_v12  ;;  %vm17141_vm14 = vmmov %vm17108_vm0 }
 0xd60   : > { %9454 = vmatmul.mubr.msk.bf16.gmra.mrb[180].mxu1 %vm17128_vm15, %v5285_v20  ;;  %vm17142_vm15 = vmmov %vm17108_vm0 }
 0xdfb   : > { %v14744_v39 = vpop.f32.mrb[152].mxu1 }
 0xdfc   : > { %v5872_v51 = vadd.f32 1e-06, %v14744_v39  ;;  %v14747_v4 = vpop.f32.mrb[153].mxu1 }
 0xdfd   : > { %v14749_v47 = vpop.f32.mrb[154].mxu1  ;;  %v5870_v21 = vadd.f32 1e-06, %v14747_v4 }
 0xdfe   : > { %10404 = vrcp.f32 %v5872_v51  ;;  %v14752_v62 = vpop.f32.mrb[155].mxu1  ;;  %v5873_v26 = vadd.f32 1e-06, %v14749_v47 }
 0xdff   : > { %10406 = vrcp.f32 %v5870_v21  ;;  %v5871_v48 = vadd.f32 1e-06, %v14752_v62 }
 0xe00   : > { %10408 = vrcp.f32 %v5873_v26 }
 0xe03   : > { %v14755_v55 = vpop.f32.mrb[156].mxu1 }
 0xe04   : > { %v14757_v5 = vpop.f32.mrb[157].mxu1  ;;  %v5876_v0 = vadd.f32 1e-06, %v14755_v55 }
 0xe05   : > { %v14759_v44 = vpop.f32.mrb[158].mxu1  ;;  %v5874_v12 = vadd.f32 1e-06, %v14757_v5 }
 0xe06   : > { %v5877_v25 = vadd.f32 1e-06, %v14759_v44  ;;  %v14763_v49 = vpop.f32.mrb[159].mxu1 }
 0xe07   : > { %v5875_v42 = vadd.f32 1e-06, %v14763_v49 }
 0xe08   : > { %v10405_v33 = vpop.eup %10404  ;;  %10410 = vrcp.f32 %v5877_v25 }
 0xe09   : > { %5970 = vrot.lane.b32.xlu1 %v10405_v33, %s10926_s5  ;;  %10412 = vrcp.f32 %v5871_v48  ;;  %v10407_v60 = vpop.eup %10406 }
 0xe0a   : > { %10414 = vrcp.f32 %v5876_v0  ;;  %v10409_v35 = vpop.eup %10408 }
 0xe0b   : > { %v14767_v37 = vpop.f32.mrb[160].mxu1 }
 0xe0c   : > { %v5880_v8 = vadd.f32 1e-06, %v14767_v37  ;;  %v14770_v50 = vpop.f32.mrb[161].mxu1 }
 0xe0d   : > { %5966 = vrot.lane.b32.xlu1 %v10407_v60, %s10926_s5  ;;  %v14773_v20 = vpop.f32.mrb[162].mxu1  ;;  %v5878_v17 = vadd.f32 1e-06, %v14770_v50 }
 0xe0e   : > { %10416 = vrcp.f32 %v5880_v8  ;;  %v14776_v10 = vpop.f32.mrb[163].mxu1  ;;  %v5881_v30 = vadd.f32 1e-06, %v14773_v20 }
 0xe0f   : > { %10418 = vrcp.f32 %v5874_v12  ;;  %v5879_v63 = vadd.f32 1e-06, %v14776_v10 }
 0xe10   : > { %10420 = vrcp.f32 %v5875_v42 }
 0xe11   : > { %5972 = vrot.lane.b32.xlu1 %v10409_v35, %s10926_s5 }
 0xe12   : > { %v10411_v57 = vpop.eup %10410 }
 0xe13   : > { %5980 = vrot.lane.b32.xlu0 %v10411_v57, %s10926_s5  ;;  %v14781_v18 = vpop.f32.mrb[164].mxu1  ;;  %v10413_v52 = vpop.eup %10412 }
 0xe14   : > { %v14783_v29 = vpop.f32.mrb[165].mxu1  ;;  %v10415_v45 = vpop.eup %10414  ;;  %v5884_v23 = vadd.f32 1e-06, %v14781_v18 }
 0xe15   : > { %v5882_v40 = vadd.f32 1e-06, %v14783_v29  ;;  %5968 = vrot.lane.b32.xlu1 %v10413_v52, %s10926_s5  ;;  %v14787_v28 = vpop.f32.mrb[166].mxu1 }
 0xe16   : > { %v14790_v31 = vpop.f32.mrb[167].mxu1  ;;  %v5885_v25 = vadd.f32 1e-06, %v14787_v28 }
 0xe17   : > { %10422 = vrcp.f32 %v5882_v40  ;;  %v5883_v16 = vadd.f32 1e-06, %v14790_v31 }
 0xe18   : > { %v10417_v46 = vpop.eup %10416  ;;  %10424 = vrcp.f32 %v5878_v17 }
 0xe19   : > { %5978 = vrot.lane.b32.xlu1 %v10415_v45, %s10926_s5  ;;  %5986 = vrot.lane.b32.xlu0 %v10417_v46, %s10926_s5  ;;  %10426 = vrcp.f32 %v5884_v23  ;;  %v10419_v11 = vpop.eup %10418 }
 0xe1a   : > { %10428 = vrcp.f32 %v5879_v63  ;;  %v10421_v53 = vpop.eup %10420 }
 0xe1b   : > { %v14796_v2 = vpop.f32.mrb[168].mxu1 }
 0xe1c   : > { %v14798_v3 = vpop.f32.mrb[169].mxu1  ;;  %v5888_v13 = vadd.f32 1e-06, %v14796_v2 }
 0xe1d   : > { %v5886_v9 = vadd.f32 1e-06, %v14798_v3  ;;  %5974 = vrot.lane.b32.xlu1 %v10419_v11, %s10926_s5  ;;  %v14802_v36 = vpop.f32.mrb[170].mxu1 }
 0xe1e   : > { %v14805_v22 = vpop.f32.mrb[171].mxu1  ;;  %v5889_v45 = vadd.f32 1e-06, %v14802_v36 }
 0xe1f   : > { %10430 = vrcp.f32 %v5886_v9  ;;  %v5887_v12 = vadd.f32 1e-06, %v14805_v22 }
 0xe20   : > { %10432 = vrcp.f32 %v5881_v30 }
 0xe21   : > { %v10423_v27 = vpop.eup %10422  ;;  %5976 = vrot.lane.b32.xlu1 %v10421_v53, %s10926_s5  ;;  %10434 = vrcp.f32 %v5888_v13 }
 0xe22   : > { %5990 = vrot.lane.b32.xlu0 %v10423_v27, %s10926_s5  ;;  %v10425_v61 = vpop.eup %10424  ;;  %10436 = vrcp.f32 %v5883_v16 }
 0xe23   : > { %v14811_v24 = vpop.f32.mrb[172].mxu1  ;;  %v10427_v21 = vpop.eup %10426 }
 0xe24   : > { %v14813_v51 = vpop.f32.mrb[173].mxu1  ;;  %v5892_v0 = vadd.f32 1e-06, %v14811_v24  ;;  %v10429_v60 = vpop.eup %10428 }
 0xe25   : > { %v5890_v26 = vadd.f32 1e-06, %v14813_v51  ;;  %5982 = vrot.lane.b32.xlu1 %v10425_v61, %s10926_s5  ;;  %v14817_v48 = vpop.f32.mrb[174].mxu1 }
 0xe26   : > { %5994 = vrot.lane.b32.xlu0 %v10427_v21, %s10926_s5  ;;  %v14821_v33 = vpop.f32.mrb[175].mxu1  ;;  %v5893_v21 = vadd.f32 1e-06, %v14817_v48 }
 0xe27   : > { %10438 = vrcp.f32 %v5890_v26  ;;  %v5891_v9 = vadd.f32 1e-06, %v14821_v33 }
 0xe28   : > { %10440 = vrcp.f32 %v5885_v25 }
 0xe29   : > { %v10431_v8 = vpop.eup %10430  ;;  %5984 = vrot.lane.b32.xlu1 %v10429_v60, %s10926_s5  ;;  %10442 = vrcp.f32 %v5892_v0 }
 0xe2a   : > { %5998 = vrot.lane.b32.xlu0 %v10431_v8, %s10926_s5  ;;  %v10433_v57 = vpop.eup %10432  ;;  %10444 = vrcp.f32 %v5887_v12 }
 0xe2b   : > { %v14827_v35 = vpop.f32.mrb[176].mxu1  ;;  %v10435_v52 = vpop.eup %10434 }
 0xe2c   : > { %v14829_v42 = vpop.f32.mrb[177].mxu1  ;;  %v5896_v46 = vadd.f32 1e-06, %v14827_v35  ;;  %v10437_v63 = vpop.eup %10436 }
 0xe2d   : > { %v5894_v40 = vadd.f32 1e-06, %v14829_v42  ;;  %5988 = vrot.lane.b32.xlu1 %v10433_v57, %s10926_s5  ;;  %v14833_v17 = vpop.f32.mrb[178].mxu1 }
 0xe2e   : > { %6002 = vrot.lane.b32.xlu0 %v10435_v52, %s10926_s5  ;;  %v14837_v23 = vpop.f32.mrb[179].mxu1  ;;  %v5897_v52 = vadd.f32 1e-06, %v14833_v17 }
 0xe2f   : > { %10446 = vrcp.f32 %v5894_v40  ;;  %v5895_v8 = vadd.f32 1e-06, %v14837_v23 }
 0xe30   : > { %10448 = vrcp.f32 %v5889_v45 }
 0xe31   : > { %v10439_v11 = vpop.eup %10438  ;;  %5992 = vrot.lane.b32.xlu1 %v10437_v63, %s10926_s5  ;;  %10450 = vrcp.f32 %v5896_v46 }
 0xe32   : > { %6006 = vrot.lane.b32.xlu0 %v10439_v11, %s10926_s5  ;;  %v10441_v13 = vpop.eup %10440  ;;  %10452 = vrcp.f32 %v5891_v9 }
 0xe33   : > { %v14843_v30 = vpop.f32.mrb[180].mxu1  ;;  %v10443_v27 = vpop.eup %10442 }
 0xe34   : > { %v14845_v53 = vpop.f32.mrb[181].mxu1  ;;  %v5900_v25 = vadd.f32 1e-06, %v14843_v30  ;;  %v10445_v0 = vpop.eup %10444 }
 0xe35   : > { %v5898_v16 = vadd.f32 1e-06, %v14845_v53  ;;  %5996 = vrot.lane.b32.xlu1 %v10441_v13, %s10926_s5  ;;  %v14849_v61 = vpop.f32.mrb[182].mxu1 }
 0xe36   : > { %6010 = vrot.lane.b32.xlu0 %v10443_v27, %s10926_s5  ;;  %v14853_v26 = vpop.f32.mrb[183].mxu1  ;;  %v5901_v9 = vadd.f32 1e-06, %v14849_v61 }
 0xe37   : > { %10454 = vrcp.f32 %v5898_v16  ;;  %v5899_v46 = vadd.f32 1e-06, %v14853_v26 }
 0xe38   : > { %10456 = vrcp.f32 %v5893_v21 }
 0xe39   : > { %v10447_v60 = vpop.eup %10446  ;;  %6000 = vrot.lane.b32.xlu1 %v10445_v0, %s10926_s5  ;;  %10458 = vrcp.f32 %v5900_v25 }
 0xe3a   : > { %6014 = vrot.lane.b32.xlu0 %v10447_v60, %s10926_s5  ;;  %v10449_v12 = vpop.eup %10448  ;;  %10460 = vrcp.f32 %v5895_v8 }
 0xe3b   : > { %v10451_v57 = vpop.eup %10450  ;;  %10462 = vrcp.f32 %v5897_v52 }
 0xe3c   : > { %v10453_v40 = vpop.eup %10452  ;;  %10464 = vrcp.f32 %v5899_v46 }
 0xe3d   : > { %6004 = vrot.lane.b32.xlu1 %v10449_v12, %s10926_s5  ;;  %10466 = vrcp.f32 %v5901_v9 }
 0xe3e   : > { %6018 = vrot.lane.b32.xlu0 %v10451_v57, %s10926_s5 }
 0xe41   : > { %v10455_v45 = vpop.eup %10454  ;;  %6008 = vrot.lane.b32.xlu1 %v10453_v40, %s10926_s5 }
 0xe42   : > { %6022 = vrot.lane.b32.xlu0 %v10455_v45, %s10926_s5  ;;  %v10457_v63 = vpop.eup %10456 }
 0xe43   : > { %v10459_v11 = vpop.eup %10458 }
 0xe44   : > { %v10461_v13 = vpop.eup %10460 }
 0xe45   : > { %6012 = vrot.lane.b32.xlu1 %v10457_v63, %s10926_s5  ;;  %v10463_v27 = vpop.eup %10462 }
 0xe46   : > { %6026 = vrot.lane.b32.xlu0 %v10459_v11, %s10926_s5  ;;  %v10465_v16 = vpop.eup %10464 }
 0xe47   : > { %v10467_v21 = vpop.eup %10466 }
 0xe49   : > { %6016 = vrot.lane.b32.xlu1 %v10461_v13, %s10926_s5 }
 0xe4d   : > { %6020 = vrot.lane.b32.xlu1 %v10463_v27, %s10926_s5 }
 0xe51   : > { %6024 = vrot.lane.b32.xlu1 %v10465_v16, %s10926_s5 }
 0xe55   : > { %6028 = vrot.lane.b32.xlu1 %v10467_v21, %s10926_s5  ;;  %s17351_s5 = sld [smem:[#allocation115_spill]] }
 0xe5b   : > { %s16336_s13 = scalar_lea.hbm %s17351_s5, %s16586_s24 }
 0xe7b   : > { %v5971_v25 = vpop.permute.xlu1 %5970 }
 0xe7c   : > { %v6064_v8 = vmul.f32 %v14744_v39, %v5971_v25 }
 0xe7f   : > { %v5967_v0 = vpop.permute.xlu1 %5966 }
 0xe80   : > { %v6062_v40 = vmul.f32 %v5967_v0, %v14747_v4 }
 0xe83   : > { %v5973_v60 = vpop.permute.xlu1 %5972 }
 0xe84   : > { %v6065_v12 = vmul.f32 %v14749_v47, %v5973_v60 }
 0xe85   : > { %v5981_v46 = vpop.permute.xlu0 %5980 }
 0xe86   : > { %v6095_v57 = vpack.c.bf16 %v6065_v12, %v6064_v8  ;;  %v6069_v9 = vmul.f32 %v14759_v44, %v5981_v46 }
 0xe87   : > { %v5969_v52 = vpop.permute.xlu1 %5968 }
 0xe88   : > { %v6063_v45 = vmul.f32 %v5969_v52, %v14752_v62 }
 0xe8a   : > { %v6094_v63 = vpack.c.bf16 %v6063_v45, %v6062_v40 }
 0xe8b   : > { %v5979_v11 = vpop.permute.xlu1 %5978  ;;  %v5987_v47 = vpop.permute.xlu0 %5986 }
 0xe8c   : > { %v6068_v13 = vmul.f32 %v14755_v55, %v5979_v11  ;;  %9461 = vmatprep.mubr.msk.bf16.mxu0 %vm17129_vm1, %v6094_v63  ;;  %vm17143_vm1 = vmmov %vm17108_vm0 }
 0xe8d   : > { %9462 = vmatmul.mubr.msk.bf16.vlgmr.msra.gmra.mrb[160].mxu0 %vm17108_vm0, %v6095_v57 }
 0xe8e   : > { %v6097_v39 = vpack.c.bf16 %v6069_v9, %v6068_v13 }
 0xe8f   : > { %v5975_v27 = vpop.permute.xlu1 %5974 }
 0xe90   : > { %v6066_v21 = vmul.f32 %v5975_v27, %v14757_v5  ;;  %v6072_v5 = vmul.f32 %v14767_v37, %v5987_v47 }
 0xe93   : > { %v5977_v16 = vpop.permute.xlu1 %5976 }
 0xe94   : > { %v6067_v4 = vmul.f32 %v5977_v16, %v14763_v49  ;;  %v5991_v62 = vpop.permute.xlu0 %5990 }
 0xe95   : > { %v6074_v63 = vmul.f32 %v5991_v62, %v14783_v29 }
 0xe96   : > { %v6096_v25 = vpack.c.bf16 %v6067_v4, %v6066_v21 }
 0xe97   : > { %v5983_v0 = vpop.permute.xlu1 %5982 }
 0xe98   : > { %9465 = vmatprep.mubr.msk.bf16.mxu0 %vm17130_vm2, %v6096_v25  ;;  %v5995_v44 = vpop.permute.xlu0 %5994  ;;  %v6070_v60 = vmul.f32 %v5983_v0, %v14770_v50  ;;  %vm17146_vm2 = vmmov %vm17108_vm0 }
 0xe99   : > { %9466 = vmatmul.mubr.msk.bf16.gmra.mrb[164].mxu0 %vm17131_vm4, %v6097_v39  ;;  %v6076_v13 = vmul.f32 %v14781_v18, %v5995_v44  ;;  %vm17147_vm4 = vmmov %vm17108_vm0 }
 0xe9b   : > { %v5985_v55 = vpop.permute.xlu1 %5984 }
 0xe9c   : > { %v6071_v8 = vmul.f32 %v5985_v55, %v14776_v10  ;;  %v5999_v12 = vpop.permute.xlu0 %5998 }
 0xe9d   : > { %v6078_v27 = vmul.f32 %v5999_v12, %v14798_v3 }
 0xe9e   : > { %v6098_v57 = vpack.c.bf16 %v6071_v8, %v6070_v60 }
 0xe9f   : > { %v5989_v52 = vpop.permute.xlu1 %5988 }
 0xea0   : > { %v6073_v49 = vmul.f32 %v14773_v20, %v5989_v52  ;;  %9469 = vmatprep.mubr.msk.bf16.mxu0 %vm17132_vm5, %v6098_v57  ;;  %v6003_v40 = vpop.permute.xlu0 %6002  ;;  %vm17148_vm5 = vmmov %vm17108_vm0 }
 0xea1   : > { %v6080_v21 = vmul.f32 %v14796_v2, %v6003_v40 }
 0xea2   : > { %v6099_v45 = vpack.c.bf16 %v6073_v49, %v6072_v5 }
 0xea3   : > { %v5993_v46 = vpop.permute.xlu1 %5992 }
 0xea4   : > { %v6075_v11 = vmul.f32 %v5993_v46, %v14790_v31  ;;  %9470 = vmatmul.mubr.msk.bf16.gmra.mrb[168].mxu0 %vm17133_vm6, %v6099_v45  ;;  %v6007_v10 = vpop.permute.xlu0 %6006  ;;  %vm17149_vm6 = vmmov %vm17108_vm0 }
 0xea5   : > { %v6082_v25 = vmul.f32 %v6007_v10, %v14813_v51 }
 0xea6   : > { %v6100_v50 = vpack.c.bf16 %v6075_v11, %v6074_v63 }
 0xea7   : > { %v5997_v9 = vpop.permute.xlu1 %5996 }
 0xea8   : > { %v6077_v37 = vmul.f32 %v14787_v28, %v5997_v9  ;;  %9473 = vmatprep.mubr.msk.bf16.mxu0 %vm17134_vm7, %v6100_v50  ;;  %v6011_v29 = vpop.permute.xlu0 %6010  ;;  %vm17150_vm7 = vmmov %vm17108_vm0 }
 0xea9   : > { %v6084_v44 = vmul.f32 %v14811_v24, %v6011_v29 }
 0xeaa   : > { %v6101_v20 = vpack.c.bf16 %v6077_v37, %v6076_v13 }
 0xeab   : > { %v6001_v39 = vpop.permute.xlu1 %6000 }
 0xeac   : > { %v6079_v47 = vmul.f32 %v6001_v39, %v14805_v22  ;;  %9474 = vmatmul.mubr.msk.bf16.gmra.mrb[172].mxu0 %vm17135_vm8, %v6101_v20  ;;  %v6015_v28 = vpop.permute.xlu0 %6014  ;;  %vm17151_vm8 = vmmov %vm17108_vm0 }
 0xead   : > { %v6086_v8 = vmul.f32 %v6015_v28, %v14829_v42 }
 0xeae   : > { %v6102_v31 = vpack.c.bf16 %v6079_v47, %v6078_v27 }
 0xeaf   : > { %v6005_v16 = vpop.permute.xlu1 %6004 }
 0xeb0   : > { %v6081_v4 = vmul.f32 %v14802_v36, %v6005_v16  ;;  %9477 = vmatprep.mubr.msk.bf16.mxu0 %vm17136_vm9, %v6102_v31  ;;  %v6019_v2 = vpop.permute.xlu0 %6018  ;;  %v9950_v31 = vld [vmem:[#allocation8 + $0x10] sm:$0xff]   ;;  %vm17152_vm9 = vmmov %vm17108_vm0 }
 0xeb1   : > { %v6088_v52 = vmul.f32 %v14827_v35, %v6019_v2  ;;  %9493 = vmatprep.subr.bf16.mxu1 %v9950_v31 }
 0xeb2   : > { %v6103_v18 = vpack.c.bf16 %v6081_v4, %v6080_v21  ;;  %9494 = vmatpush3.bf16.msra.mxu1 %v9950_v31 }
 0xeb3   : > { %v6009_v62 = vpop.permute.xlu1 %6008 }
 0xeb4   : > { %v6083_v3 = vmul.f32 %v6009_v62, %v14821_v33  ;;  %9478 = vmatmul.mubr.msk.bf16.gmra.mrb[176].mxu0 %vm17137_vm10, %v6103_v18  ;;  %v6023_v33 = vpop.permute.xlu0 %6022  ;;  %vm17153_vm10 = vmmov %vm17108_vm0 }
 0xeb5   : > { %v6090_v49 = vmul.f32 %v6023_v33, %v14845_v53  ;;  %v17144_v53 = vld [vmem:[#allocation84_spill] sm:$0xff] }
 0xeb6   : > { %v6104_v22 = vpack.c.bf16 %v6083_v3, %v6082_v25 }
 0xeb7   : > { %v6013_v0 = vpop.permute.xlu1 %6012 }
 0xeb8   : > { %v6085_v55 = vmul.f32 %v14817_v48, %v6013_v0  ;;  %9481 = vmatprep.mubr.msk.bf16.mxu0 %vm17138_vm11, %v6104_v22  ;;  %v6027_v42 = vpop.permute.xlu0 %6026  ;;  %vm17154_vm11 = vmmov %vm17108_vm0 }
 0xeb9   : > { %v6092_v46 = vmul.f32 %v14843_v30, %v6027_v42 }
 0xeba   : > { %v6105_v36 = vpack.c.bf16 %v6085_v55, %v6084_v44 }
 0xebb   : > { %v6017_v60 = vpop.permute.xlu1 %6016 }
 0xebc   : > { %v6087_v12 = vmul.f32 %v6017_v60, %v14837_v23  ;;  %9482 = vmatmul.mubr.msk.bf16.gmra.mrb[180].mxu0 %vm17139_vm12, %v6105_v36  ;;  %vm17155_vm12 = vmmov %vm17108_vm0 }
 0xebe   : > { %v6106_v51 = vpack.c.bf16 %v6087_v12, %v6086_v8 }
 0xebf   : > { %v6021_v57 = vpop.permute.xlu1 %6020 }
 0xec0   : > { %v6089_v24 = vmul.f32 %v14833_v17, %v6021_v57  ;;  %9485 = vmatprep.mubr.msk.bf16.mxu0 %vm17140_vm13, %v6106_v51  ;;  %v14923_v17 = vld [vmem:[%s16820_s22 + $0x8] sm:$0x3f]  ;;  %vm17156_vm13 = vmmov %vm17108_vm0 }
 0xec2   : > { %v6107_v48 = vpack.c.bf16 %v6089_v24, %v6088_v52 }
 0xec3   : > { %v6025_v5 = vpop.permute.xlu1 %6024 }
 0xec4   : > { %v6091_v40 = vmul.f32 %v6025_v5, %v14853_v26  ;;  %9486 = vmatmul.mubr.msk.bf16.gmra.mrb[184].mxu0 %vm17141_vm14, %v6107_v48  ;;  %v17145_v26 = vsub.s32 0, %v17144_v53  ;;  %vm17157_vm14 = vmmov %vm17108_vm0 }
 0xec6   : > { %v6108_v23 = vpack.c.bf16 %v6091_v40, %v6090_v49  ;;  %v14928_v11 = vrot.slane %v14923_v17, %v17145_v26 }
 0xec7   : > { %v6029_v45 = vpop.permute.xlu1 %6028 }
 0xec8   : > { %v6093_v63 = vmul.f32 %v14849_v61, %v6029_v45  ;;  %9489 = vmatprep.mubr.msk.bf16.mxu0 %vm17142_vm15, %v6108_v23  ;;  %vm17158_vm15 = vmmov %vm17108_vm0 }
 0xeca   : > { %v6109_v35 = vpack.c.bf16 %v6093_v63, %v6092_v46 }
 0xecc   : > { %9490 = vmatmul.mubr.msk.bf16.gmra.mrb[188].mxu0 %vm17143_vm1, %v6109_v35  ;;  %vm17159_vm1 = vmmov %vm17108_vm0 }
 0xf60   : > { %v9463_v50 = vpop.f32.mrb[160].mxu0 }
 0xf61   : > { %v6217_v30 = vadd.f32 %v9463_v50, %v14928_v11  ;;  %v6208_v10 = vpop.f32.mrb[161].mxu0 }
 0xf62   : > { %v6209_v61 = vadd.f32 %v6208_v10, %v14928_v11  ;;  %v9464_v9 = vpop.f32.mrb[162].mxu0 }
 0xf63   : > { %v14933_v13 = vadd.f32 %v6217_v30, %v13729_v32  ;;  %v6211_v37 = vpop.f32.mrb[163].mxu0  ;;  %v6220_v27 = vadd.f32 %v9464_v9, %v14928_v11 }
 0xf64   : > { %v6212_v20 = vadd.f32 %v6211_v37, %v14928_v11  ;;  %v14937_v39 = vadd.f32 %v6209_v61, %v13732_v58 }
 0xf65   : > { %v6373_v47 = vsel %vm17108_vm0, %v14933_v13, 0.0  ;;  %v6497_v29 = vmul.f32 %v14933_v13, %v14933_v13  ;;  %v14949_v58 = vadd.f32 %v6220_v27, %v13724_v14 }
 0xf66   : > { %6374 = vadd.xlane.f32.xlu0 %v6373_v47  ;;  %v14945_v16 = vadd.f32 %v6212_v20, %v13735_v43  ;;  %v6367_v21 = vsel %vm17147_vm4, %v14937_v39, 0.0  ;;  %v6495_v18 = vmul.f32 %v14937_v39, %v14937_v39  ;;  %vm17161_vm4 = vmmov %vm17108_vm0 }
 0xf67   : > { %v6533_v32 = vsel %vm17146_vm2, %v6497_v29, 0.0  ;;  %v6376_v14 = vsel %vm17149_vm6, %v14949_v58, 0.0  ;;  %v6498_v25 = vmul.f32 %v14949_v58, %v14949_v58  ;;  %vm17160_vm2 = vmmov %vm17108_vm0 }
 0xf68   : > { %6534 = vadd.xlane.f32.xlu1 %v6533_v32  ;;  %v6370_v4 = vsel %vm17148_vm5, %v14945_v16, 0.0  ;;  %v6527_v55 = vsel %vm17150_vm7, %v6495_v18, 0.0  ;;  %v6496_v60 = vmul.f32 %v14945_v16, %v14945_v16  ;;  %vm17162_vm5 = vmmov %vm17108_vm0 }
 0xf69   : > { %v6536_v36 = vsel %vm17151_vm8, %v6498_v25, 0.0  ;;  %vm17163_vm6 = vmmov %vm17108_vm0 }
 0xf6a   : > { %6368 = vadd.xlane.f32.xlu0 %v6367_v21  ;;  %v6530_v33 = vsel %vm17153_vm10, %v6496_v60, 0.0  ;;  %vm17164_vm7 = vmmov %vm17108_vm0 }
 0xf6b   : > { %vm17165_vm8 = vmmov %vm17108_vm0 }
 0xf6c   : > { %v9467_v43 = vpop.f32.mrb[164].mxu0  ;;  %6371 = vadd.xlane.f32.xlu1 %v6370_v4  ;;  %vm17167_vm10 = vmmov %vm17108_vm0 }
 0xf6d   : > { %v6233_v28 = vadd.f32 %v9467_v43, %v14928_v11  ;;  %v6224_v62 = vpop.f32.mrb[165].mxu0 }
 0xf6e   : > { %v9468_v3 = vpop.f32.mrb[166].mxu0  ;;  %6377 = vadd.xlane.f32.xlu0 %v6376_v14  ;;  %v6225_v0 = vadd.f32 %v6224_v62, %v14928_v11 }
 0xf6f   : > { %v14963_v22 = vadd.f32 %v6233_v28, %v13820_v38  ;;  %v6227_v44 = vpop.f32.mrb[167].mxu0  ;;  %v6236_v2 = vadd.f32 %v9468_v3, %v14928_v11 }
 0xf70   : > { %6528 = vadd.xlane.f32.xlu1 %v6527_v55  ;;  %v14972_v8 = vadd.f32 %v6225_v0, %v13809_v59  ;;  %v6228_v51 = vadd.f32 %v6227_v44, %v14928_v11 }
 0xf71   : > { %v6385_v38 = vsel %vm17152_vm9, %v14963_v22, 0.0  ;;  %v14977_v12 = vadd.f32 %v6236_v2, %v13805_v41  ;;  %v6501_v59 = vmul.f32 %v14963_v22, %v14963_v22  ;;  %vm17166_vm9 = vmmov %vm17108_vm0 }
 0xf72   : > { %6537 = vadd.xlane.f32.xlu0 %v6536_v36  ;;  %v6379_v52 = vsel %vm17154_vm11, %v14972_v8, 0.0  ;;  %v14986_v48 = vadd.f32 %v6228_v51, %v13812_v7  ;;  %v6499_v23 = vmul.f32 %v14972_v8, %v14972_v8  ;;  %vm17168_vm11 = vmmov %vm17108_vm0 }
 0xf73   : > { %v6388_v41 = vsel %vm17155_vm12, %v14977_v12, 0.0  ;;  %v6545_v42 = vsel %vm17156_vm13, %v6501_v59, 0.0  ;;  %v6502_v7 = vmul.f32 %v14977_v12, %v14977_v12  ;;  %vm17169_vm12 = vmmov %vm17108_vm0 }
 0xf74   : > { %6386 = vadd.xlane.f32.xlu1 %v6385_v38  ;;  %v6382_v45 = vsel %vm17157_vm14, %v14986_v48, 0.0  ;;  %v6539_v26 = vsel %vm17158_vm15, %v6499_v23, 0.0  ;;  %v6500_v9 = vmul.f32 %v14986_v48, %v14986_v48  ;;  %vm17171_vm13 = vmmov %vm17108_vm0 }
 0xf75   : > { %v6548_v61 = vsel %vm17159_vm1, %v6502_v7, 0.0  ;;  %vm17172_vm14 = vmmov %vm17108_vm0 }
 0xf76   : > { %6531 = vadd.xlane.f32.xlu0 %v6530_v33  ;;  %v6542_v29 = vsel %vm17160_vm2, %v6500_v9, 0.0  ;;  %vm17174_vm15 = vmmov %vm17108_vm0 }
 0xf77   : > { %v9471_v57 = vpop.f32.mrb[168].mxu0  ;;  %vm17176_vm1 = vmmov %vm17108_vm0 }
 0xf78   : > { %v6240_v24 = vpop.f32.mrb[169].mxu0  ;;  %6380 = vadd.xlane.f32.xlu1 %v6379_v52  ;;  %v6249_v40 = vadd.f32 %v9471_v57, %v14928_v11  ;;  %vm17178_vm2 = vmmov %vm17108_vm0 }
 0xf79   : > { %v9472_v5 = vpop.f32.mrb[170].mxu0  ;;  %v6241_v63 = vadd.f32 %v6240_v24, %v14928_v11 }
 0xf7a   : > { %v6243_v49 = vpop.f32.mrb[171].mxu0  ;;  %6389 = vadd.xlane.f32.xlu0 %v6388_v41  ;;  %v14999_v46 = vadd.f32 %v6249_v40, %v13896_v6  ;;  %v6252_v30 = vadd.f32 %v9472_v5, %v14928_v11  ;;  %v9951_v40 = vld [vmem:[#allocation8 + $0x18] sm:$0xff]  }
 0xf7b   : > { %v15008_v6 = vadd.f32 %v6241_v63, %v13885_v15  ;;  %v6244_v47 = vadd.f32 %v6243_v49, %v14928_v11  ;;  %9495 = vmatprep.subr.bf16.mxu1 %v9951_v40 }
 0xf7c   : > { %6546 = vadd.xlane.f32.xlu1 %v6545_v42  ;;  %v6397_v20 = vsel %vm17108_vm0, %v14999_v46, 0.0  ;;  %v15013_v27 = vadd.f32 %v6252_v30, %v13881_v1  ;;  %v6505_v15 = vmul.f32 %v14999_v46, %v14999_v46  ;;  %v17170_v42 = vld [vmem:[#allocation96_spill] sm:$0xff]  ;;  %9496 = vmatpush3.bf16.msra.mxu1 %v9951_v40  ;;  %v17186_v40 = vld [vmem:[#allocation61_spill] sm:$0xff] }
 0xf7d   : > { %v6391_v32 = vsel %vm17161_vm4, %v15008_v6, 0.0  ;;  %v15022_v4 = vadd.f32 %v6244_v47, %v13888_v56  ;;  %v6503_v14 = vmul.f32 %v15008_v6, %v15008_v6  ;;  %vm17180_vm4 = vmmov %vm17108_vm0 }
 0xf7e   : > { %6383 = vadd.xlane.f32.xlu0 %v6382_v45  ;;  %v6400_v1 = vsel %vm17162_vm5, %v15013_v27, 0.0  ;;  %v6557_v62 = vsel %vm17163_vm6, %v6505_v15, 0.0  ;;  %v6506_v56 = vmul.f32 %v15013_v27, %v15013_v27  ;;  %vm17181_vm5 = vmmov %vm17108_vm0 }
 0xf7f   : > { %v9475_v35 = vpop.f32.mrb[172].mxu0  ;;  %v6394_v25 = vsel %vm17164_vm7, %v15022_v4, 0.0  ;;  %v6551_v55 = vsel %vm17165_vm8, %v6503_v14, 0.0  ;;  %v6504_v51 = vmul.f32 %v15022_v4, %v15022_v4  ;;  %vm17183_vm6 = vmmov %vm17108_vm0 }
 0xf80   : > { %v6256_v50 = vpop.f32.mrb[173].mxu0  ;;  %6540 = vadd.xlane.f32.xlu1 %v6539_v26  ;;  %v6265_v28 = vadd.f32 %v9475_v35, %v14928_v11  ;;  %v6560_v38 = vsel %vm17166_vm9, %v6506_v56, 0.0  ;;  %vm17184_vm7 = vmmov %vm17108_vm0 }
 0xf81   : > { %v9476_v10 = vpop.f32.mrb[174].mxu0  ;;  %v6257_v0 = vadd.f32 %v6256_v50, %v14928_v11  ;;  %v6554_v24 = vsel %vm17168_vm11, %v6504_v51, 0.0  ;;  %v17173_v50 = vld [vmem:[#allocation70_spill] sm:$0xff]  ;;  %vm17185_vm8 = vmmov %vm17108_vm0 }
 0xf82   : > { %v6259_v37 = vpop.f32.mrb[175].mxu0  ;;  %6549 = vadd.xlane.f32.xlu0 %v6548_v61  ;;  %v15037_v3 = vadd.f32 %v6265_v28, %v13972_v34  ;;  %v6268_v36 = vadd.f32 %v9476_v10, %v14928_v11  ;;  %9642 = vmatprep.subr.bf16.mxu1 %v17173_v50  ;;  %v17175_v61 = vld [vmem:[#allocation56_spill] sm:$0xff]  ;;  %vm17187_vm9 = vmmov %vm17108_vm0  ;;  %v17189_v50 = vld [vmem:[#allocation63_spill] sm:$0xff] }
 0xf83   : > { %v15054_v33 = vadd.f32 %v6257_v0, %v13961_v19  ;;  %v6260_v59 = vadd.f32 %v6259_v37, %v14928_v11  ;;  %vm17190_vm11 = vmmov %vm17108_vm0 }
 0xf84   : > { %6398 = vadd.xlane.f32.xlu1 %v6397_v20  ;;  %v6409_v57 = vsel %vm17167_vm10, %v15037_v3, 0.0  ;;  %v15059_v52 = vadd.f32 %v6268_v36, %v13957_v54  ;;  %v6509_v19 = vmul.f32 %v15037_v3, %v15037_v3  ;;  %vm17188_vm10 = vmmov %vm17108_vm0 }
 0xf85   : > { %v6403_v41 = vsel %vm17169_vm12, %v15054_v33, 0.0  ;;  %v15072_v54 = vadd.f32 %v6260_v59, %v17170_v42  ;;  %v6507_v26 = vmul.f32 %v15054_v33, %v15054_v33  ;;  %vm17192_vm12 = vmmov %vm17108_vm0 }
 0xf86   : > { %6543 = vadd.xlane.f32.xlu0 %v6542_v29  ;;  %v6412_v45 = vsel %vm17171_vm13, %v15059_v52, 0.0  ;;  %v6569_v35 = vsel %vm17172_vm14, %v6509_v19, 0.0  ;;  %v6510_v10 = vmul.f32 %v15059_v52, %v15059_v52  ;;  %vm17193_vm13 = vmmov %vm17108_vm0 }
 0xf87   : > { %v9479_v31 = vpop.f32.mrb[176].mxu0  ;;  %v6406_v30 = vsel %vm17174_vm15, %v15072_v54, 0.0  ;;  %v6563_v47 = vsel %vm17176_vm1, %v6507_v26, 0.0  ;;  %vm17195_vm14 = vmmov %vm17108_vm0 }
 0xf88   : > { %v6272_v21 = vpop.f32.mrb[177].mxu0  ;;  %6392 = vadd.xlane.f32.xlu1 %v6391_v32  ;;  %v6281_v63 = vadd.f32 %v9479_v31, %v14928_v11  ;;  %v6572_v15 = vsel %vm17108_vm0, %v6510_v10, 0.0  ;;  %vm17196_vm15 = vmmov %vm17108_vm0 }
 0xf89   : > { %v9480_v18 = vpop.f32.mrb[178].mxu0  ;;  %v6273_v37 = vadd.f32 %v6272_v21, %v14928_v11  ;;  %v17177_v21 = vld [vmem:[#allocation105_spill] sm:$0xff]  ;;  %vm17197_vm1 = vmmov %vm17108_vm0 }
 0xf8a   : > { %v15026_v43 = vpop.f32.mrb[179].mxu0  ;;  %6401 = vadd.xlane.f32.xlu0 %v6400_v1  ;;  %v15090_v9 = vadd.f32 %v6281_v63, %v17175_v61  ;;  %v6284_v31 = vadd.f32 %v9480_v18, %v14928_v11  ;;  %v6508_v1 = vmul.f32 %v15072_v54, %v15072_v54 }
 0xf8b   : > { %v6276_v18 = vadd.f32 %v15026_v43, %v14928_v11 }
 0xf8c   : > { %6558 = vadd.xlane.f32.xlu1 %v6557_v62  ;;  %v15107_v62 = vadd.f32 %v6273_v37, %v17177_v21  ;;  %v6421_v14 = vsel %vm17178_vm2, %v15090_v9, 0.0  ;;  %v6566_v0 = vsel %vm17180_vm4, %v6508_v1, 0.0  ;;  %v6513_v36 = vmul.f32 %v15090_v9, %v15090_v9  ;;  %vm17199_vm2 = vmmov %vm17108_vm0 }
 0xf8d   : > { %vm17201_vm4 = vmmov %vm17108_vm0 }
 0xf8e   : > { %6395 = vadd.xlane.f32.xlu0 %v6394_v25  ;;  %v17179_v25 = vld [vmem:[#allocation57_spill] sm:$0xff]  ;;  %v6581_v59 = vsel %vm17184_vm7, %v6513_v36, 0.0  ;;  %vm17206_vm7 = vmmov %vm17108_vm0 }
 0xf8f   : > { %v15040_v44 = vpop.f32.mrb[180].mxu0  ;;  %v15112_v56 = vadd.f32 %v6284_v31, %v17179_v25 }
 0xf90   : > { %v15043_v2 = vpop.f32.mrb[181].mxu0  ;;  %6552 = vadd.xlane.f32.xlu1 %v6551_v55  ;;  %v6415_v55 = vsel %vm17181_vm5, %v15107_v62, 0.0  ;;  %v6297_v43 = vadd.f32 %v15040_v44, %v14928_v11  ;;  %vm17203_vm5 = vmmov %vm17108_vm0 }
 0xf91   : > { %v15046_v60 = vpop.f32.mrb[182].mxu0  ;;  %v6514_v19 = vmul.f32 %v15112_v56, %v15112_v56 }
 0xf92   : > { %v15051_v34 = vpop.f32.mrb[183].mxu0  ;;  %6561 = vadd.xlane.f32.xlu0 %v6560_v38  ;;  %v17182_v38 = vld [vmem:[#allocation59_spill] sm:$0xff]  ;;  %v15136_v42 = vadd.f32 %v6297_v43, %v17186_v40  ;;  %v6300_v63 = vadd.f32 %v15046_v60, %v14928_v11 }
 0xf93   : > { %v15122_v51 = vadd.f32 %v6276_v18, %v17182_v38  ;;  %v6292_v37 = vadd.f32 %v15051_v34, %v14928_v11 }
 0xf94   : > { %6410 = vadd.xlane.f32.xlu1 %v6409_v57  ;;  %v6424_v57 = vsel %vm17183_vm6, %v15112_v56, 0.0  ;;  %v6433_v10 = vsel %vm17190_vm11, %v15136_v42, 0.0  ;;  %v6517_v31 = vmul.f32 %v15136_v42, %v15136_v42  ;;  %vm17204_vm6 = vmmov %vm17108_vm0 }
 0xf95   : > { %v6512_v26 = vmul.f32 %v15122_v51, %v15122_v51  ;;  %vm17211_vm11 = vmmov %vm17108_vm0 }
 0xf96   : > { %6555 = vadd.xlane.f32.xlu0 %v6554_v24  ;;  %v6511_v24 = vmul.f32 %v15107_v62, %v15107_v62 }
 0xf97   : > { %v15063_v5 = vpop.f32.mrb[184].mxu0  ;;  %v6578_v60 = vsel %vm17192_vm12, %v6512_v26, 0.0  ;;  %vm17213_vm12 = vmmov %vm17108_vm0 }
 0xf98   : > { %v15069_v49 = vpop.f32.mrb[185].mxu0  ;;  %6404 = vadd.xlane.f32.xlu1 %v6403_v41  ;;  %v6418_v41 = vsel %vm17185_vm8, %v15122_v51, 0.0  ;;  %v6575_v44 = vsel %vm17187_vm9, %v6511_v24, 0.0  ;;  %v6313_v34 = vadd.f32 %v15063_v5, %v14928_v11  ;;  %v17200_v24 = vld [vmem:[#allocation26_spill] sm:$0xff]  ;;  %vm17207_vm8 = vmmov %vm17108_vm0 }
 0xf99   : > { %v15074_v23 = vpop.f32.mrb[186].mxu0  ;;  %v6305_v38 = vadd.f32 %v15069_v49, %v14928_v11  ;;  %v17202_v49 = vld [vmem:[#allocation24_spill] sm:$0xff]  ;;  %vm17208_vm9 = vmmov %vm17108_vm0 }
 0xf9a   : > { %v15078_v7 = vpop.f32.mrb[187].mxu0  ;;  %6413 = vadd.xlane.f32.xlu0 %v6412_v45  ;;  %v6289_v45 = vadd.f32 %v15043_v2, %v14928_v11  ;;  %v17191_v2 = vld [vmem:[#allocation62_spill] sm:$0xff] }
 0xf9b   : > { %v15152_v61 = vadd.f32 %v6300_v63, %v17191_v2 }
 0xf9c   : > { %6570 = vadd.xlane.f32.xlu1 %v6569_v35  ;;  %v6584_v35 = vsel %vm17188_vm10, %v6514_v19, 0.0  ;;  %vm17210_vm10 = vmmov %vm17108_vm0 }
 0xf9d   : > { %v6436_v21 = vsel %vm17195_vm14, %v15152_v61, 0.0  ;;  %vm17216_vm14 = vmmov %vm17108_vm0 }
 0xf9e   : > { %6407 = vadd.xlane.f32.xlu0 %v6406_v30  ;;  %v15147_v30 = vadd.f32 %v6289_v45, %v17189_v50  ;;  %v6308_v45 = vadd.f32 %v15078_v7, %v14928_v11 }
 0xf9f   : > { %v15093_v20 = vpop.f32.mrb[188].mxu0 }
 0xfa0   : > { %6564 = vadd.xlane.f32.xlu1 %v6563_v47  ;;  %v15096_v29 = vpop.f32.mrb[189].mxu0  ;;  %v6427_v47 = vsel %vm17193_vm13, %v15147_v30, 0.0  ;;  %v6515_v25 = vmul.f32 %v15147_v30, %v15147_v30  ;;  %v6329_v7 = vadd.f32 %v15093_v20, %v14928_v11  ;;  %vm17215_vm13 = vmmov %vm17108_vm0 }
 0xfa1   : > { %v15099_v32 = vpop.f32.mrb[190].mxu0 }
 0xfa2   : > { %6573 = vadd.xlane.f32.xlu0 %v6572_v15  ;;  %v15104_v28 = vpop.f32.mrb[191].mxu0  ;;  %v17194_v15 = vld [vmem:[#allocation65_spill] sm:$0xff]  ;;  %v6587_v5 = vsel %vm17108_vm0, %v6515_v25, 0.0  ;;  %v17212_v25 = vld [vmem:[#allocation30_spill] sm:$0xff] }
 0xfa3   : > { %v15162_v1 = vadd.f32 %v6292_v37, %v17194_v15  ;;  %v6321_v15 = vadd.f32 %v15096_v29, %v14928_v11  ;;  %v17214_v29 = vld [vmem:[#allocation27_spill] sm:$0xff] }
 0xfa4   : > { %6422 = vadd.xlane.f32.xlu1 %v6421_v14  ;;  %v6593_v14 = vsel %vm17196_vm15, %v6517_v31, 0.0  ;;  %vm17218_vm15 = vmmov %vm17108_vm0 }
 0xfa5   : > { %v6430_v18 = vsel %vm17197_vm1, %v15162_v1, 0.0  ;;  %vm17219_vm1 = vmmov %vm17108_vm0 }
 0xfa6   : > { %6567 = vadd.xlane.f32.xlu0 %v6566_v0  ;;  %v6518_v0 = vmul.f32 %v15152_v61, %v15152_v61 }
 0xfa8   : > { %6416 = vadd.xlane.f32.xlu1 %v6415_v55  ;;  %v17198_v55 = vld [vmem:[#allocation23_spill] sm:$0xff]  ;;  %v6596_v43 = vsel %vm17199_vm2, %v6518_v0, 0.0  ;;  %vm17220_vm2 = vmmov %vm17108_vm0 }
 0xfa9   : > { %v15176_v36 = vadd.f32 %v6313_v34, %v17198_v55 }
 0xfaa   : > { %6425 = vadd.xlane.f32.xlu0 %v6424_v57  ;;  %v6316_v57 = vadd.f32 %v15074_v23, %v14928_v11 }
 0xfab   : > { %v6445_v19 = vsel %vm17201_vm4, %v15176_v36, 0.0  ;;  %v6521_v63 = vmul.f32 %v15176_v36, %v15176_v36  ;;  %vm17221_vm4 = vmmov %vm17108_vm0 }
 0xfac   : > { %6582 = vadd.xlane.f32.xlu1 %v6581_v59  ;;  %v6516_v59 = vmul.f32 %v15162_v1, %v15162_v1  ;;  %v15192_v40 = vadd.f32 %v6316_v57, %v17202_v49 }
 0xfae   : > { %6419 = vadd.xlane.f32.xlu0 %v6418_v41  ;;  %v15187_v41 = vadd.f32 %v6305_v38, %v17200_v24  ;;  %v6590_v23 = vsel %vm17203_vm5, %v6516_v59, 0.0  ;;  %v6448_v50 = vsel %vm17206_vm7, %v15192_v40, 0.0  ;;  %v6324_v38 = vadd.f32 %v15104_v28, %v14928_v11  ;;  %vm17222_vm5 = vmmov %vm17108_vm0 }
 0xfaf   : > { %vm17226_vm7 = vmmov %vm17108_vm0 }
 0xfb0   : > { %6576 = vadd.xlane.f32.xlu1 %v6575_v44  ;;  %v6439_v44 = vsel %vm17204_vm6, %v15187_v41, 0.0  ;;  %v6519_v2 = vmul.f32 %v15187_v41, %v15187_v41  ;;  %vm17225_vm6 = vmmov %vm17108_vm0 }
 0xfb2   : > { %6585 = vadd.xlane.f32.xlu0 %v6584_v35  ;;  %v17205_v35 = vld [vmem:[#allocation25_spill] sm:$0xff]  ;;  %v6599_v20 = vsel %vm17210_vm10, %v6519_v2, 0.0  ;;  %vm17245_vm10 = vmmov %vm17108_vm0 }
 0xfb3   : > { %v15202_v26 = vadd.f32 %v6308_v45, %v17205_v35 }
 0xfb4   : > { %6434 = vadd.xlane.f32.xlu1 %v6433_v10  ;;  %v6605_v10 = vsel %vm17207_vm8, %v6521_v63, 0.0  ;;  %vm17235_vm8 = vmmov %vm17108_vm0 }
 0xfb5   : > { %v6442_v37 = vsel %vm17208_vm9, %v15202_v26, 0.0  ;;  %vm17236_vm9 = vmmov %vm17108_vm0 }
 0xfb6   : > { %6579 = vadd.xlane.f32.xlu0 %v6578_v60  ;;  %v6522_v60 = vmul.f32 %v15192_v40, %v15192_v40 }
 0xfb8   : > { %6428 = vadd.xlane.f32.xlu1 %v6427_v47  ;;  %v17209_v47 = vld [vmem:[#allocation29_spill] sm:$0xff]  ;;  %v6608_v34 = vsel %vm17211_vm11, %v6522_v60, 0.0  ;;  %vm17246_vm11 = vmmov %vm17108_vm0 }
 0xfb9   : > { %v15216_v31 = vadd.f32 %v6329_v7, %v17209_v47 }
 0xfba   : > { %6437 = vadd.xlane.f32.xlu0 %v6436_v21  ;;  %v6332_v21 = vadd.f32 %v15099_v32, %v14928_v11 }
 0xfbb   : > { %v6457_v0 = vsel %vm17213_vm12, %v15216_v31, 0.0  ;;  %v6525_v11 = vmul.f32 %v15216_v31, %v15216_v31  ;;  %vm17255_vm12 = vmmov %vm17108_vm0 }
 0xfbc   : > { %6594 = vadd.xlane.f32.xlu1 %v6593_v14  ;;  %v6520_v14 = vmul.f32 %v15202_v26, %v15202_v26  ;;  %v15232_v55 = vadd.f32 %v6332_v21, %v17214_v29 }
 0xfbd   : > { %v6617_v45 = vsel %vm17220_vm2, %v6525_v11, 0.0  ;;  %vm17267_vm2 = vmmov %vm17108_vm0 }
 0xfbe   : > { %6431 = vadd.xlane.f32.xlu0 %v6430_v18  ;;  %v15227_v18 = vadd.f32 %v6321_v15, %v17212_v25  ;;  %v6602_v32 = vsel %vm17215_vm13, %v6520_v14, 0.0  ;;  %v6460_v24 = vsel %vm17218_vm15, %v15232_v55, 0.0  ;;  %vm17256_vm13 = vmmov %vm17108_vm0 }
 0xfbf   : > { %vm17265_vm15 = vmmov %vm17108_vm0 }
 0xfc0   : > { %6588 = vadd.xlane.f32.xlu1 %v6587_v5  ;;  %v6451_v5 = vsel %vm17216_vm14, %v15227_v18, 0.0  ;;  %v6523_v57 = vmul.f32 %v15227_v18, %v15227_v18  ;;  %vm17264_vm14 = vmmov %vm17108_vm0 }
 0xfc2   : > { %6597 = vadd.xlane.f32.xlu0 %v6596_v43  ;;  %v17217_v43 = vld [vmem:[#allocation28_spill] sm:$0xff] }
 0xfc3   : > { %v15242_v59 = vadd.f32 %v6324_v38, %v17217_v43 }
 0xfc4   : > { %6446 = vadd.xlane.f32.xlu1 %v6445_v19  ;;  %v6611_v19 = vsel %vm17219_vm1, %v6523_v57, 0.0  ;;  %vm17266_vm1 = vmmov %vm17108_vm0 }
 0xfc5   : > { %v6454_v28 = vsel %vm17108_vm0, %v15242_v59, 0.0  ;;  %v6524_v49 = vmul.f32 %v15242_v59, %v15242_v59 }
 0xfc6   : > { %6591 = vadd.xlane.f32.xlu0 %v6590_v23 }
 0xfc7   : > { %v6614_v23 = vsel %vm17221_vm4, %v6524_v49, 0.0  ;;  %vm17268_vm4 = vmmov %vm17108_vm0 }
 0xfc8   : > { %6440 = vadd.xlane.f32.xlu1 %v6439_v44  ;;  %v6526_v44 = vmul.f32 %v15232_v55, %v15232_v55 }
 0xfca   : > { %6449 = vadd.xlane.f32.xlu0 %v6448_v50  ;;  %v6620_v63 = vsel %vm17222_vm5, %v6526_v44, 0.0  ;;  %vm17269_vm5 = vmmov %vm17108_vm0 }
 0xfcc   : > { %6606 = vadd.xlane.f32.xlu1 %v6605_v10 }
 0xfce   : > { %6443 = vadd.xlane.f32.xlu0 %v6442_v37 }
 0xfd0   : > { %6600 = vadd.xlane.f32.xlu1 %v6599_v20 }
 0xfd2   : > { %6609 = vadd.xlane.f32.xlu0 %v6608_v34 }
 0xfd4   : > { %6458 = vadd.xlane.f32.xlu1 %v6457_v0 }
 0xfd6   : > { %6603 = vadd.xlane.f32.xlu0 %v6602_v32 }
 0xfd8   : > { %6452 = vadd.xlane.f32.xlu1 %v6451_v5 }
 0xfda   : > { %6461 = vadd.xlane.f32.xlu0 %v6460_v24 }
 0xfdc   : > { %6612 = vadd.xlane.f32.xlu1 %v6611_v19 }
 0xfde   : > { %6455 = vadd.xlane.f32.xlu0 %v6454_v28 }
 0xfe0   : > { %6618 = vadd.xlane.f32.xlu1 %v6617_v45 }
 0xfe2   : > { %6615 = vadd.xlane.f32.xlu0 %v6614_v23 }
 0xfe6   : > { %6621 = vadd.xlane.f32.xlu0 %v6620_v63 }
 0xff3   : > { %v6375_v35 = vpop.xlane.xlu0 %6374 }
 0xff4   : > { %v15258_v50 = vmul.f32 0.03125, %v6375_v35 }
 0xff5   : > { %v6535_v7 = vpop.xlane.xlu1 %6534 }
 0xff6   : > { %v6657_v2 = vmul.f32 %v15258_v50, %v15258_v50  ;;  %v6625_v37 = vmul.f32 0.03125, %v6535_v7 }
 0xff7   : > { %v6369_v10 = vpop.xlane.xlu0 %6368 }
 0xff8   : > { %v15262_v47 = vmul.f32 0.03125, %v6369_v10  ;;  %v6689_v21 = vsub.f32 %v6625_v37, %v6657_v2 }
 0xff9   : > { %v6372_v60 = vpop.xlane.xlu1 %6371 }
 0xffa   : > { %v6655_v14 = vmul.f32 %v15262_v47, %v15262_v47  ;;  %v6721_v5 = vmax.f32 %v6689_v21, 0.0  ;;  %v15270_v57 = vmul.f32 0.03125, %v6372_v60 }
 0xffb   : > { %v6378_v15 = vpop.xlane.xlu0 %6377 }
 0xffc   : > { %v15264_v20 = vmul.f32 0.03125, %v6378_v15  ;;  %v6785_v45 = vadd.f32 1e-05, %v6721_v5  ;;  %v6656_v23 = vmul.f32 %v15270_v57, %v15270_v57 }
 0xffd   : > { %v6529_v34 = vpop.xlane.xlu1 %6528 }
 0xffe   : > { %v6623_v25 = vmul.f32 0.03125, %v6529_v34  ;;  %v6658_v29 = vmul.f32 %v15264_v20, %v15264_v20 }
 0xfff   : > { %v6538_v0 = vpop.xlane.xlu0 %6537 }
0x1000   : > { %v6687_v38 = vsub.f32 %v6623_v25, %v6655_v14  ;;  %v6626_v32 = vmul.f32 0.03125, %v6538_v0 }
0x1001   : > { %v6387_v43 = vpop.xlane.xlu1 %6386 }
0x1002   : > { %v6719_v24 = vmax.f32 %v6687_v38, 0.0  ;;  %v6690_v19 = vsub.f32 %v6626_v32, %v6658_v29  ;;  %v15274_v7 = vmul.f32 0.03125, %v6387_v43 }
0x1003   : > { %v6532_v11 = vpop.xlane.xlu0 %6531 }
0x1004   : > { %v6783_v28 = vadd.f32 1e-05, %v6719_v24  ;;  %v6722_v49 = vmax.f32 %v6690_v19, 0.0  ;;  %v6624_v44 = vmul.f32 0.03125, %v6532_v11  ;;  %v6661_v34 = vmul.f32 %v15274_v7, %v15274_v7  ;;  %v9952_v24 = vld [vmem:[%s16913_s17 + $0x20] sm:$0xff]   ;;  %v9953_v19 = vld [vmem:[%s16913_s17 + $0x28] sm:$0xff]  }
0x1005   : > { %v6381_v63 = vpop.xlane.xlu1 %6380  ;;  %9529 = vmatprep.subr.bf16.mxu0 %v9952_v24 }
0x1006   : > { %v6786_v35 = vadd.f32 1e-05, %v6722_v49  ;;  %10468 = vrsqrt.f32 %v6783_v28  ;;  %v6688_v10 = vsub.f32 %v6624_v44, %v6656_v23  ;;  %v15276_v15 = vmul.f32 0.03125, %v6381_v63  ;;  %9530 = vmatpush3.bf16.msra.mxu0 %v9952_v24 }
0x1007   : > { %v6390_v2 = vpop.xlane.xlu0 %6389  ;;  %9531 = vmatprep.subr.bf16.mxu0 %v9953_v19 }
0x1008   : > { %10470 = vrsqrt.f32 %v6786_v35  ;;  %v6720_v37 = vmax.f32 %v6688_v10, 0.0  ;;  %v15280_v0 = vmul.f32 0.03125, %v6390_v2  ;;  %v6659_v32 = vmul.f32 %v15276_v15, %v15276_v15 }
0x1009   : > { %10472 = vrsqrt.f32 %v6785_v45  ;;  %v6547_v60 = vpop.xlane.xlu1 %6546  ;;  %v6754_v10 = vsub.f32 %v14949_v58, %v15264_v20 }
0x100a   : > { %v6629_v21 = vmul.f32 0.03125, %v6547_v60  ;;  %v6784_v14 = vadd.f32 1e-05, %v6720_v37  ;;  %v6662_v11 = vmul.f32 %v15280_v0, %v15280_v0  ;;  %9532 = vmatpush3.bf16.msra.mxu0 %v9953_v19 }
0x100b   : > { %v6384_v25 = vpop.xlane.xlu0 %6383 }
0x100c   : > { %10474 = vrsqrt.f32 %v6784_v14  ;;  %v6693_v29 = vsub.f32 %v6629_v21, %v6661_v34  ;;  %v15292_v44 = vmul.f32 0.03125, %v6384_v25  ;;  %v6751_v21 = vsub.f32 %v14937_v39, %v15262_v47  ;;  %v9954_v14 = vld [vmem:[%s16913_s17 + $0x30] sm:$0xff]  }
0x100d   : > { %v6541_v38 = vpop.xlane.xlu1 %6540  ;;  %v6753_v25 = vsub.f32 %v14933_v13, %v15258_v50  ;;  %v17223_v39 = vsub.s32 2, %v17144_v53  ;;  %v6752_v13 = vsub.f32 %v14945_v16, %v15270_v57  ;;  %9533 = vmatprep.subr.bf16.mxu0 %v9954_v14  ;;  %v17224_v57 = vsub.s32 3, %v17144_v53 }
0x100e   : > { %v6627_v5 = vmul.f32 0.03125, %v6541_v38  ;;  %v6725_v23 = vmax.f32 %v6693_v29, 0.0  ;;  %v6660_v20 = vmul.f32 %v15292_v44, %v15292_v44  ;;  %9534 = vmatpush3.bf16.msra.mxu0 %v9954_v14 }
0x100f   : > { %v6550_v43 = vpop.xlane.xlu0 %6549  ;;  %v15308_v47 = vrot.slane %v14923_v17, %v17223_v39 }
0x1010   : > { %v6691_v28 = vsub.f32 %v6627_v5, %v6659_v32  ;;  %v6630_v49 = vmul.f32 0.03125, %v6550_v43  ;;  %v10469_v45 = vpop.eup %10468  ;;  %v6789_v58 = vadd.f32 1e-05, %v6725_v23 }
0x1011   : > { %v6399_v63 = vpop.xlane.xlu1 %6398  ;;  %v6847_v24 = vmul.f32 %v10469_v45, %v6751_v21 }
0x1012   : > { %v10471_v35 = vpop.eup %10470  ;;  %v6723_v2 = vmax.f32 %v6691_v28, 0.0  ;;  %v6694_v37 = vsub.f32 %v6630_v49, %v6662_v11  ;;  %v15312_v50 = vmul.f32 0.03125, %v6399_v63  ;;  %v15322_v63 = vrot.slane %v14923_v17, %v17224_v57 }
0x1013   : > { %v10473_v60 = vpop.eup %10472  ;;  %v6544_v34 = vpop.xlane.xlu0 %6543  ;;  %v6850_v29 = vmul.f32 %v10471_v35, %v6754_v10 }
0x1014   : > { %v6787_v38 = vadd.f32 1e-05, %v6723_v2  ;;  %v6726_v32 = vmax.f32 %v6694_v37, 0.0  ;;  %v6628_v5 = vmul.f32 0.03125, %v6544_v34  ;;  %v6849_v11 = vmul.f32 %v10473_v60, %v6753_v25 }
0x1015   : > { %v6393_v43 = vpop.xlane.xlu1 %6392  ;;  %v6886_v45 = vmul.f32 %v15308_v47, %v6850_v29  ;;  %v6883_v60 = vmul.f32 %v15308_v47, %v6847_v24  ;;  %v6665_v34 = vmul.f32 %v15312_v50, %v15312_v50 }
0x1016   : > { %v6790_v28 = vadd.f32 1e-05, %v6726_v32  ;;  %v10475_v49 = vpop.eup %10474  ;;  %10476 = vrsqrt.f32 %v6787_v38  ;;  %v6692_v23 = vsub.f32 %v6628_v5, %v6660_v20  ;;  %v6885_v19 = vmul.f32 %v15308_v47, %v6849_v11 }
0x1017   : > { %v6402_v35 = vpop.xlane.xlu0 %6401  ;;  %v6848_v37 = vmul.f32 %v10475_v49, %v6752_v13  ;;  %v15317_v21 = vmul.f32 0.03125, %v6393_v43  ;;  %v15333_v43 = vadd.f32 %v15322_v63, %v6883_v60 }
0x1018   : > { %10478 = vrsqrt.f32 %v6790_v28  ;;  %v6724_v10 = vmax.f32 %v6692_v23, 0.0  ;;  %v15327_v32 = vmul.f32 0.03125, %v6402_v35  ;;  %v15341_v39 = vadd.f32 %v15322_v63, %v6885_v19 }
0x1019   : > { %10480 = vrsqrt.f32 %v6789_v58  ;;  %v6559_v2 = vpop.xlane.xlu1 %6558  ;;  %v6884_v38 = vmul.f32 %v15308_v47, %v6848_v37  ;;  %v15330_v58 = vadd.f32 %v15322_v63, %v6886_v45  ;;  %v6663_v14 = vmul.f32 %v15317_v21, %v15317_v21 }
0x101a   : > { %v6633_v16 = vmul.f32 0.03125, %v6559_v2  ;;  %v6788_v25 = vadd.f32 1e-05, %v6724_v10  ;;  %v6666_v49 = vmul.f32 %v15327_v32, %v15327_v32  ;;  %v6758_v19 = vsub.f32 %v14977_v12, %v15280_v0 }
0x101b   : > { %v6396_v29 = vpop.xlane.xlu0 %6395  ;;  %v15336_v17 = vadd.f32 %v15322_v63, %v6884_v38  ;;  %v6952_v35 = vpack.c.bf16 %v15330_v58, %v15341_v39 }
0x101c   : > { %10482 = vrsqrt.f32 %v6788_v25  ;;  %v6697_v20 = vsub.f32 %v6633_v16, %v6665_v34  ;;  %v15349_v2 = vmul.f32 0.03125, %v6396_v29  ;;  %v6755_v25 = vsub.f32 %v14972_v8, %v15276_v15 }
0x101d   : > { %v6553_v5 = vpop.xlane.xlu1 %6552  ;;  %v6951_v28 = vpack.c.bf16 %v15336_v17, %v15333_v43  ;;  %v6757_v29 = vsub.f32 %v14963_v22, %v15274_v7 }
0x101e   : > { %v6631_v24 = vmul.f32 0.03125, %v6553_v5  ;;  %v6729_v10 = vmax.f32 %v6697_v20, 0.0  ;;  %v17227_v5 = vld [vmem:[#allocation82_spill] sm:$0xff]  ;;  %v6664_v0 = vmul.f32 %v15349_v2, %v15349_v2 }
0x101f   : > { %v6562_v11 = vpop.xlane.xlu0 %6561  ;;  %9497 = vmatprep.mubr.msk.bf16.mxu1 %vm17225_vm6, %v6951_v28  ;;  %vm17270_vm6 = vmmov %vm17108_vm0 }
0x1020   : > { %v6695_v13 = vsub.f32 %v6631_v24, %v6663_v14  ;;  %v6634_v23 = vmul.f32 0.03125, %v6562_v11  ;;  %v10477_v45 = vpop.eup %10476  ;;  %9498 = vmatmul.mubr.msk.bf16.vlgmr.msra.gmra.mrb[184].mxu1 %vm17226_vm7, %v6952_v35  ;;  %v17228_v11 = vld [vmem:[#allocation72_spill] sm:$0xff]  ;;  %v6793_v12 = vadd.f32 1e-05, %v6729_v10  ;;  %v6756_v35 = vsub.f32 %v14986_v48, %v15292_v44  ;;  %vm17273_vm7 = vmmov %vm17108_vm0 }
0x1021   : > { %v6411_v37 = vpop.xlane.xlu1 %6410  ;;  %9644 = vmatpush1.bf16.msra.mxu1 %v17227_v5 }
0x1022   : > { %v10479_v60 = vpop.eup %10478  ;;  %v6727_v16 = vmax.f32 %v6695_v13, 0.0  ;;  %v6698_v57 = vsub.f32 %v6634_v23, %v6666_v49  ;;  %9646 = vmatprep.subr.bf16.mxu1 %v17228_v11  ;;  %v6851_v13 = vmul.f32 %v10477_v45, %v6755_v25  ;;  %v15365_v22 = vmul.f32 0.03125, %v6411_v37 }
0x1023   : > { %v10481_v34 = vpop.eup %10480  ;;  %v6556_v38 = vpop.xlane.xlu0 %6555  ;;  %v6854_v24 = vmul.f32 %v10479_v60, %v6758_v19  ;;  %v17229_v19 = vld [vmem:[#allocation60_spill] sm:$0xff] }
0x1024   : > { %v6791_v20 = vadd.f32 1e-05, %v6727_v16  ;;  %v6730_v14 = vmax.f32 %v6698_v57, 0.0  ;;  %v6632_v28 = vmul.f32 0.03125, %v6556_v38  ;;  %v6853_v8 = vmul.f32 %v10481_v34, %v6757_v29  ;;  %v17230_v16 = vld [vmem:[#allocation58_spill] sm:$0xff] }
0x1025   : > { %v6405_v49 = vpop.xlane.xlu1 %6404  ;;  %9648 = vmatpush1.bf16.msra.mxu1 %v17229_v19  ;;  %v6890_v10 = vmul.f32 %v15308_v47, %v6854_v24  ;;  %v6887_v25 = vmul.f32 %v15308_v47, %v6851_v13  ;;  %v6669_v37 = vmul.f32 %v15365_v22, %v15365_v22 }
0x1026   : > { %v6794_v23 = vadd.f32 1e-05, %v6730_v14  ;;  %v10483_v15 = vpop.eup %10482  ;;  %10484 = vrsqrt.f32 %v6791_v20  ;;  %v6696_v7 = vsub.f32 %v6632_v28, %v6664_v0  ;;  %9650 = vmatprep.subr.bf16.mxu1 %v17230_v16  ;;  %v15371_v38 = vmul.f32 0.03125, %v6405_v49  ;;  %v17231_v14 = vld [vmem:[#allocation76_spill] sm:$0xff] }
0x1027   : > { %v6414_v60 = vpop.xlane.xlu0 %6413  ;;  %v6852_v34 = vmul.f32 %v10483_v15, %v6756_v35  ;;  %v6889_v44 = vmul.f32 %v15308_v47, %v6853_v8  ;;  %v15381_v11 = vadd.f32 %v15322_v63, %v6890_v10  ;;  %v15385_v49 = vadd.f32 %v15322_v63, %v6887_v25 }
0x1028   : > { %10486 = vrsqrt.f32 %v6794_v23  ;;  %v6728_v45 = vmax.f32 %v6696_v7, 0.0  ;;  %v15378_v24 = vmul.f32 0.03125, %v6414_v60  ;;  %v6667_v23 = vmul.f32 %v15371_v38, %v15371_v38  ;;  %v17233_v60 = vld [vmem:[#allocation83_spill] sm:$0xff] }
0x1029   : > { %10488 = vrsqrt.f32 %v6793_v12  ;;  %v6571_v57 = vpop.xlane.xlu1 %6570  ;;  %v6888_v20 = vmul.f32 %v15308_v47, %v6852_v34  ;;  %9652 = vmatpush1.bf16.msra.mxu1 %v17231_v14  ;;  %v17232_v12 = vld [vmem:[#allocation77_spill] sm:$0xff]  ;;  %v15393_v15 = vadd.f32 %v15322_v63, %v6889_v44 }
0x102a   : > { %v6637_v48 = vmul.f32 0.03125, %v6571_v57  ;;  %v6792_v5 = vadd.f32 1e-05, %v6728_v45  ;;  %9654 = vmatprep.subr.bf16.mxu1 %v17232_v12  ;;  %v6670_v19 = vmul.f32 %v15378_v24, %v15378_v24  ;;  %v17234_v57 = vld [vmem:[#allocation90_spill] sm:$0xff] }
0x102b   : > { %v6408_v29 = vpop.xlane.xlu0 %6407  ;;  %v15388_v13 = vadd.f32 %v15322_v63, %v6888_v20  ;;  %v6954_v45 = vpack.c.bf16 %v15381_v11, %v15393_v15 }
0x102c   : > { %10490 = vrsqrt.f32 %v6792_v5  ;;  %v6701_v0 = vsub.f32 %v6637_v48, %v6669_v37  ;;  %v15403_v48 = vmul.f32 0.03125, %v6408_v29  ;;  %v6762_v5 = vsub.f32 %v15013_v27, %v15327_v32 }
0x102d   : > { %v6565_v28 = vpop.xlane.xlu1 %6564  ;;  %v6953_v7 = vpack.c.bf16 %v15388_v13, %v15385_v49  ;;  %9656 = vmatpush1.bf16.msra.mxu1 %v17233_v60  ;;  %v6761_v29 = vsub.f32 %v14999_v46, %v15312_v50  ;;  %v17238_v60 = vld [vmem:[#allocation88_spill] sm:$0xff] }
0x102e   : > { %v6635_v8 = vmul.f32 0.03125, %v6565_v28  ;;  %9658 = vmatprep.subr.bf16.mxu1 %v17234_v57  ;;  %v6733_v25 = vmax.f32 %v6701_v0, 0.0  ;;  %v6759_v28 = vsub.f32 %v15008_v6, %v15317_v21  ;;  %v6668_v32 = vmul.f32 %v15403_v48, %v15403_v48 }
0x102f   : > { %v6574_v35 = vpop.xlane.xlu0 %6573  ;;  %9501 = vmatprep.mubr.msk.bf16.mxu1 %vm17235_vm8, %v6953_v7  ;;  %v6760_v57 = vsub.f32 %v15022_v4, %v15349_v2  ;;  %vm17274_vm8 = vmmov %vm17108_vm0 }
0x1030   : > { %v6699_v10 = vsub.f32 %v6635_v8, %v6667_v23  ;;  %v6638_v16 = vmul.f32 0.03125, %v6574_v35  ;;  %v10485_v34 = vpop.eup %10484  ;;  %9502 = vmatmul.mubr.msk.bf16.gmra.mrb[188].mxu1 %vm17236_vm9, %v6954_v45  ;;  %v17237_v8 = vld [vmem:[#allocation81_spill] sm:$0xff]  ;;  %v6797_v27 = vadd.f32 1e-05, %v6733_v25  ;;  %vm17275_vm9 = vmmov %vm17108_vm0 }
0x1031   : > { %v6423_v44 = vpop.xlane.xlu1 %6422  ;;  %9660 = vmatpush1.bf16.msra.mxu1 %v17237_v8 }
0x1032   : > { %v10487_v37 = vpop.eup %10486  ;;  %v6731_v20 = vmax.f32 %v6699_v10, 0.0  ;;  %v6702_v14 = vsub.f32 %v6638_v16, %v6670_v19  ;;  %9662 = vmatprep.subr.bf16.mxu1 %v17238_v60  ;;  %v6855_v16 = vmul.f32 %v10485_v34, %v6759_v28  ;;  %v15419_v46 = vmul.f32 0.03125, %v6423_v44 }
0x1033   : > { %v10489_v12 = vpop.eup %10488  ;;  %v6568_v23 = vpop.xlane.xlu0 %6567  ;;  %v6858_v7 = vmul.f32 %v10487_v37, %v6762_v5  ;;  %v17239_v5 = vld [vmem:[#allocation99_spill] sm:$0xff] }
0x1034   : > { %v6795_v0 = vadd.f32 1e-05, %v6731_v20  ;;  %v6734_v35 = vmax.f32 %v6702_v14, 0.0  ;;  %v6636_v19 = vmul.f32 0.03125, %v6568_v23  ;;  %v6857_v6 = vmul.f32 %v10489_v12, %v6761_v29  ;;  %v17240_v20 = vld [vmem:[#allocation97_spill] sm:$0xff] }
0x1035   : > { %v6417_v10 = vpop.xlane.xlu1 %6416  ;;  %9664 = vmatpush1.bf16.msra.mxu1 %v17239_v5  ;;  %v6894_v25 = vmul.f32 %v15308_v47, %v6858_v7  ;;  %v6891_v28 = vmul.f32 %v15308_v47, %v6855_v16  ;;  %v6673_v44 = vmul.f32 %v15419_v46, %v15419_v46 }
0x1036   : > { %v6798_v45 = vadd.f32 1e-05, %v6734_v35  ;;  %v10491_v21 = vpop.eup %10490  ;;  %10492 = vrsqrt.f32 %v6795_v0  ;;  %v6700_v50 = vsub.f32 %v6636_v19, %v6668_v32  ;;  %9666 = vmatprep.subr.bf16.mxu1 %v17240_v20  ;;  %v15425_v23 = vmul.f32 0.03125, %v6417_v10  ;;  %v17241_v35 = vld [vmem:[#allocation67_spill] sm:$0xff] }
0x1037   : > { %v6426_v37 = vpop.xlane.xlu0 %6425  ;;  %v6856_v12 = vmul.f32 %v10491_v21, %v6760_v57  ;;  %v6893_v2 = vmul.f32 %v15308_v47, %v6857_v6  ;;  %v15435_v60 = vadd.f32 %v15322_v63, %v6894_v25  ;;  %v15439_v10 = vadd.f32 %v15322_v63, %v6891_v28 }
0x1038   : > { %10494 = vrsqrt.f32 %v6798_v45  ;;  %v6732_v34 = vmax.f32 %v6700_v50, 0.0  ;;  %v15432_v7 = vmul.f32 0.03125, %v6426_v37  ;;  %v6671_v45 = vmul.f32 %v15425_v23, %v15425_v23  ;;  %v17243_v37 = vld [vmem:[#allocation71_spill] sm:$0xff] }
0x1039   : > { %10496 = vrsqrt.f32 %v6797_v27  ;;  %v6583_v14 = vpop.xlane.xlu1 %6582  ;;  %v6892_v0 = vmul.f32 %v15308_v47, %v6856_v12  ;;  %9668 = vmatpush1.bf16.msra.mxu1 %v17241_v35  ;;  %v17242_v27 = vld [vmem:[#allocation66_spill] sm:$0xff]  ;;  %v15447_v21 = vadd.f32 %v15322_v63, %v6893_v2 }
0x103a   : > { %v6641_v4 = vmul.f32 0.03125, %v6583_v14  ;;  %v6796_v8 = vadd.f32 1e-05, %v6732_v34  ;;  %9670 = vmatprep.subr.bf16.mxu1 %v17242_v27  ;;  %v6674_v5 = vmul.f32 %v15432_v7, %v15432_v7  ;;  %v17244_v14 = vld [vmem:[#allocation75_spill] sm:$0xff] }
0x103b   : > { %v6420_v29 = vpop.xlane.xlu0 %6419  ;;  %v15442_v16 = vadd.f32 %v15322_v63, %v6892_v0  ;;  %v6956_v34 = vpack.c.bf16 %v15435_v60, %v15447_v21 }
0x103c   : > { %10498 = vrsqrt.f32 %v6796_v8  ;;  %v6705_v32 = vsub.f32 %v6641_v4, %v6673_v44  ;;  %v15457_v4 = vmul.f32 0.03125, %v6420_v29  ;;  %v6766_v8 = vsub.f32 %v15059_v52, %v15378_v24 }
0x103d   : > { %v6577_v19 = vpop.xlane.xlu1 %6576  ;;  %v6955_v50 = vpack.c.bf16 %v15442_v16, %v15439_v10  ;;  %9672 = vmatpush1.bf16.msra.mxu1 %v17243_v37  ;;  %v6765_v29 = vsub.f32 %v15037_v3, %v15365_v22  ;;  %v17248_v37 = vld [vmem:[#allocation74_spill] sm:$0xff]  ;;  %v6764_v3 = vsub.f32 %v15072_v54, %v15403_v48 }
0x103e   : > { %v6639_v6 = vmul.f32 0.03125, %v6577_v19  ;;  %9674 = vmatprep.subr.bf16.mxu1 %v17244_v14  ;;  %v6737_v28 = vmax.f32 %v6705_v32, 0.0  ;;  %v6763_v19 = vsub.f32 %v15054_v33, %v15371_v38  ;;  %v6672_v24 = vmul.f32 %v15457_v4, %v15457_v4 }
0x103f   : > { %v6586_v57 = vpop.xlane.xlu0 %6585  ;;  %9505 = vmatprep.mubr.msk.bf16.mxu1 %vm17245_vm10, %v6955_v50  ;;  %vm17276_vm10 = vmmov %vm17108_vm0 }
0x1040   : > { %v6703_v25 = vsub.f32 %v6639_v6, %v6671_v45  ;;  %v6642_v20 = vmul.f32 0.03125, %v6586_v57  ;;  %v10493_v12 = vpop.eup %10492  ;;  %9506 = vmatmul.mubr.msk.bf16.gmra.mrb[192].mxu1 %vm17246_vm11, %v6956_v34  ;;  %v17247_v6 = vld [vmem:[#allocation69_spill] sm:$0xff]  ;;  %v6801_v52 = vadd.f32 1e-05, %v6737_v28  ;;  %vm17277_vm11 = vmmov %vm17108_vm0 }
0x1041   : > { %v6435_v2 = vpop.xlane.xlu1 %6434  ;;  %9676 = vmatpush1.bf16.msra.mxu1 %v17247_v6 }
0x1042   : > { %v10495_v44 = vpop.eup %10494  ;;  %v6735_v0 = vmax.f32 %v6703_v25, 0.0  ;;  %v6706_v35 = vsub.f32 %v6642_v20, %v6674_v5  ;;  %9678 = vmatprep.subr.bf16.mxu1 %v17248_v37  ;;  %v6859_v20 = vmul.f32 %v10493_v12, %v6763_v19  ;;  %v15471_v33 = vmul.f32 0.03125, %v6435_v2 }
0x1043   : > { %v10497_v27 = vpop.eup %10496  ;;  %v6580_v45 = vpop.xlane.xlu0 %6579  ;;  %v6862_v50 = vmul.f32 %v10495_v44, %v6766_v8  ;;  %v17249_v8 = vld [vmem:[#allocation91_spill] sm:$0xff] }
0x1044   : > { %v6799_v32 = vadd.f32 1e-05, %v6735_v0  ;;  %v6738_v57 = vmax.f32 %v6706_v35, 0.0  ;;  %v6640_v5 = vmul.f32 0.03125, %v6580_v45  ;;  %v6861_v38 = vmul.f32 %v10497_v27, %v6765_v29  ;;  %v17250_v0 = vld [vmem:[#allocation87_spill] sm:$0xff] }
0x1045   : > { %v6429_v25 = vpop.xlane.xlu1 %6428  ;;  %9680 = vmatpush1.bf16.msra.mxu1 %v17249_v8  ;;  %v6898_v28 = vmul.f32 %v15308_v47, %v6862_v50  ;;  %v6895_v27 = vmul.f32 %v15308_v47, %v6859_v20  ;;  %v6677_v19 = vmul.f32 %v15471_v33, %v15471_v33  ;;  %v17253_v8 = vld [vmem:[#allocation68_spill] sm:$0xff] }
0x1046   : > { %v6802_v34 = vadd.f32 1e-05, %v6738_v57  ;;  %v10499_v14 = vpop.eup %10498  ;;  %10500 = vrsqrt.f32 %v6799_v32  ;;  %v6704_v22 = vsub.f32 %v6640_v5, %v6672_v24  ;;  %9682 = vmatprep.subr.bf16.mxu1 %v17250_v0  ;;  %v15481_v54 = vmul.f32 0.03125, %v6429_v25  ;;  %v17251_v57 = vld [vmem:[#allocation94_spill] sm:$0xff] }
0x1047   : > { %v6438_v44 = vpop.xlane.xlu0 %6437  ;;  %v6860_v2 = vmul.f32 %v10499_v14, %v6764_v3  ;;  %v6897_v45 = vmul.f32 %v15308_v47, %v6861_v38  ;;  %v17252_v24 = vld [vmem:[#allocation98_spill] sm:$0xff]  ;;  %v15493_v25 = vadd.f32 %v15322_v63, %v6895_v27 }
0x1048   : > { %10502 = vrsqrt.f32 %v6802_v34  ;;  %v6736_v12 = vmax.f32 %v6704_v22, 0.0  ;;  %v15486_v50 = vmul.f32 0.03125, %v6438_v44  ;;  %v6675_v34 = vmul.f32 %v15481_v54, %v15481_v54 }
0x1049   : > { %10504 = vrsqrt.f32 %v6801_v52  ;;  %v6595_v35 = vpop.xlane.xlu1 %6594  ;;  %v6896_v32 = vmul.f32 %v15308_v47, %v6860_v2  ;;  %9684 = vmatpush1.bf16.msra.mxu1 %v17251_v57  ;;  %v15489_v52 = vadd.f32 %v15322_v63, %v6898_v28  ;;  %v15501_v3 = vadd.f32 %v15322_v63, %v6897_v45  ;;  %v17254_v2 = vld [vmem:[#allocation64_spill] sm:$0xff] }
0x104a   : > { %v6645_v48 = vmul.f32 0.03125, %v6595_v35  ;;  %v6800_v6 = vadd.f32 1e-05, %v6736_v12  ;;  %9686 = vmatprep.subr.bf16.mxu1 %v17252_v24  ;;  %v6678_v28 = vmul.f32 %v15486_v50, %v15486_v50 }
0x104b   : > { %v6432_v29 = vpop.xlane.xlu0 %6431  ;;  %v15496_v20 = vadd.f32 %v15322_v63, %v6896_v32  ;;  %v6958_v35 = vpack.c.bf16 %v15489_v52, %v15501_v3 }
0x104c   : > { %v6709_v37 = vsub.f32 %v6645_v48, %v6677_v19  ;;  %10506 = vrsqrt.f32 %v6800_v6  ;;  %v15511_v19 = vmul.f32 0.03125, %v6432_v29  ;;  %v6770_v6 = vsub.f32 %v15112_v56, %v15432_v7 }
0x104d   : > { %v6589_v5 = vpop.xlane.xlu1 %6588  ;;  %v6957_v44 = vpack.c.bf16 %v15496_v20, %v15493_v25  ;;  %9688 = vmatpush1.bf16.msra.mxu1 %v17253_v8  ;;  %v6769_v29 = vsub.f32 %v15090_v9, %v15419_v46  ;;  %v6768_v9 = vsub.f32 %v15122_v51, %v15457_v4 }
0x104e   : > { %v6741_v38 = vmax.f32 %v6709_v37, 0.0  ;;  %v6643_v14 = vmul.f32 0.03125, %v6589_v5  ;;  %9690 = vmatprep.subr.bf16.mxu1 %v17254_v2  ;;  %v6767_v5 = vsub.f32 %v15107_v62, %v15425_v23  ;;  %v17258_v2 = vld [vmem:[#allocation101_spill] sm:$0xff]  ;;  %v6676_v56 = vmul.f32 %v15511_v19, %v15511_v19 }
0x104f   : > { %v6598_v22 = vpop.xlane.xlu0 %6597  ;;  %9509 = vmatprep.mubr.msk.bf16.mxu1 %vm17255_vm12, %v6957_v44  ;;  %vm17278_vm12 = vmmov %vm17108_vm0 }
0x1050   : > { %v6707_v0 = vsub.f32 %v6643_v14, %v6675_v34  ;;  %v6646_v12 = vmul.f32 0.03125, %v6598_v22  ;;  %v10501_v27 = vpop.eup %10500  ;;  %v6805_v32 = vadd.f32 1e-05, %v6741_v38  ;;  %9510 = vmatmul.mubr.msk.bf16.gmra.mrb[196].mxu1 %vm17256_vm13, %v6958_v35  ;;  %v17257_v14 = vld [vmem:[#allocation93_spill] sm:$0xff]  ;;  %vm17279_vm13 = vmmov %vm17108_vm0 }
0x1051   : > { %v6447_v48 = vpop.xlane.xlu1 %6446  ;;  %9692 = vmatpush1.bf16.msra.mxu1 %v17257_v14 }
0x1052   : > { %v10503_v45 = vpop.eup %10502  ;;  %v6739_v57 = vmax.f32 %v6707_v0, 0.0  ;;  %v6710_v37 = vsub.f32 %v6646_v12, %v6678_v28  ;;  %9694 = vmatprep.subr.bf16.mxu1 %v17258_v2  ;;  %v6863_v28 = vmul.f32 %v10501_v27, %v6767_v5  ;;  %10508 = vrsqrt.f32 %v6805_v32 }
0x1053   : > { %v10505_v24 = vpop.eup %10504  ;;  %v6592_v34 = vpop.xlane.xlu0 %6591  ;;  %v6866_v8 = vmul.f32 %v10503_v45, %v6770_v6  ;;  %v15525_v62 = vmul.f32 0.03125, %v6447_v48  ;;  %v17259_v45 = vld [vmem:[#allocation103_spill] sm:$0xff] }
0x1054   : > { %v6803_v22 = vadd.f32 1e-05, %v6739_v57  ;;  %v6742_v44 = vmax.f32 %v6710_v37, 0.0  ;;  %v6644_v7 = vmul.f32 0.03125, %v6592_v34  ;;  %v6865_v23 = vmul.f32 %v10505_v24, %v6769_v29  ;;  %v17260_v57 = vld [vmem:[#allocation100_spill] sm:$0xff] }
0x1055   : > { %v6441_v38 = vpop.xlane.xlu1 %6440  ;;  %9696 = vmatpush1.bf16.msra.mxu1 %v17259_v45  ;;  %v6902_v6 = vmul.f32 %v15308_v47, %v6866_v8  ;;  %v6899_v48 = vmul.f32 %v15308_v47, %v6863_v28  ;;  %v6681_v24 = vmul.f32 %v15525_v62, %v15525_v62  ;;  %v17263_v45 = vld [vmem:[#allocation55_spill] sm:$0xff] }
0x1056   : > { %v6806_v0 = vadd.f32 1e-05, %v6742_v44  ;;  %v10507_v12 = vpop.eup %10506  ;;  %10510 = vrsqrt.f32 %v6803_v22  ;;  %v6708_v46 = vsub.f32 %v6644_v7, %v6676_v56  ;;  %9698 = vmatprep.subr.bf16.mxu1 %v17260_v57  ;;  %v15535_v5 = vmul.f32 0.03125, %v6441_v38  ;;  %v17261_v22 = vld [vmem:[#allocation102_spill] sm:$0xff]  ;;  %v17262_v56 = vld [vmem:[#allocation104_spill] sm:$0xff] }
0x1057   : > { %v6450_v35 = vpop.xlane.xlu0 %6449  ;;  %v6864_v37 = vmul.f32 %v10507_v12, %v6768_v9  ;;  %v6901_v4 = vmul.f32 %v15308_v47, %v6865_v23  ;;  %v15543_v2 = vadd.f32 %v15322_v63, %v6902_v6  ;;  %v15547_v38 = vadd.f32 %v15322_v63, %v6899_v48 }
0x1058   : > { %10512 = vrsqrt.f32 %v6806_v0  ;;  %v6740_v27 = vmax.f32 %v6708_v46, 0.0  ;;  %v15540_v44 = vmul.f32 0.03125, %v6450_v35  ;;  %v6679_v0 = vmul.f32 %v15535_v5, %v15535_v5 }
0x1059   : > { %v6607_v32 = vpop.xlane.xlu1 %6606  ;;  %v6900_v29 = vmul.f32 %v15308_v47, %v6864_v37  ;;  %9700 = vmatpush1.bf16.msra.mxu1 %v17261_v22  ;;  %v15555_v9 = vadd.f32 %v15322_v63, %v6901_v4 }
0x105a   : > { %v6649_v51 = vmul.f32 0.03125, %v6607_v32  ;;  %v6804_v34 = vadd.f32 1e-05, %v6740_v27  ;;  %9702 = vmatprep.subr.bf16.mxu1 %v17262_v56  ;;  %v6682_v57 = vmul.f32 %v15540_v44, %v15540_v44  ;;  %v6773_v56 = vsub.f32 %v15136_v42, %v15471_v33 }
0x105b   : > { %v6444_v14 = vpop.xlane.xlu0 %6443  ;;  %v15550_v28 = vadd.f32 %v15322_v63, %v6900_v29  ;;  %v6960_v37 = vpack.c.bf16 %v15543_v2, %v15555_v9  ;;  %v6772_v42 = vsub.f32 %v15162_v1, %v15511_v19 }
0x105c   : > { %v6713_v8 = vsub.f32 %v6649_v51, %v6681_v24  ;;  %10514 = vrsqrt.f32 %v6804_v34  ;;  %v10509_v6 = vpop.eup %10508  ;;  %v6774_v24 = vsub.f32 %v15152_v61, %v15486_v50  ;;  %v15566_v51 = vmul.f32 0.03125, %v6444_v14 }
0x105d   : > { %v6601_v7 = vpop.xlane.xlu1 %6600  ;;  %v6959_v35 = vpack.c.bf16 %v15550_v28, %v15547_v38  ;;  %9704 = vmatpush1.bf16.msra.mxu1 %v17263_v45  ;;  %v6869_v45 = vmul.f32 %v10509_v6, %v6773_v56 }
0x105e   : > { %v6745_v23 = vmax.f32 %v6713_v8, 0.0  ;;  %v6647_v12 = vmul.f32 0.03125, %v6601_v7  ;;  %v6771_v7 = vsub.f32 %v15147_v30, %v15481_v54  ;;  %v6680_v14 = vmul.f32 %v15566_v51, %v15566_v51 }
0x105f   : > { %v6610_v46 = vpop.xlane.xlu0 %6609  ;;  %9513 = vmatprep.mubr.msk.bf16.mxu1 %vm17264_vm14, %v6959_v35  ;;  %v6905_v6 = vmul.f32 %v15308_v47, %v6869_v45  ;;  %vm17280_vm14 = vmmov %vm17108_vm0 }
0x1060   : > { %v6711_v27 = vsub.f32 %v6647_v12, %v6679_v0  ;;  %v6650_v32 = vmul.f32 0.03125, %v6610_v46  ;;  %v10511_v48 = vpop.eup %10510  ;;  %v6809_v29 = vadd.f32 1e-05, %v6745_v23  ;;  %9514 = vmatmul.mubr.msk.bf16.gmra.mrb[200].mxu1 %vm17265_vm15, %v6960_v37  ;;  %vm17281_vm15 = vmmov %vm17108_vm0 }
0x1061   : > { %v6459_v4 = vpop.xlane.xlu1 %6458  ;;  %v6867_v23 = vmul.f32 %v10511_v48, %v6771_v7 }
0x1062   : > { %v10513_v34 = vpop.eup %10512  ;;  %v6743_v22 = vmax.f32 %v6711_v27, 0.0  ;;  %v6714_v8 = vsub.f32 %v6650_v32, %v6682_v57  ;;  %10516 = vrsqrt.f32 %v6809_v29  ;;  %v15583_v29 = vmul.f32 0.03125, %v6459_v4 }
0x1063   : > { %v6604_v0 = vpop.xlane.xlu0 %6603  ;;  %v6870_v12 = vmul.f32 %v10513_v34, %v6774_v24  ;;  %v6903_v48 = vmul.f32 %v15308_v47, %v6867_v23 }
0x1064   : > { %v6807_v61 = vadd.f32 1e-05, %v6743_v22  ;;  %v6746_v50 = vmax.f32 %v6714_v8, 0.0  ;;  %v6648_v46 = vmul.f32 0.03125, %v6604_v0 }
0x1065   : > { %v6453_v35 = vpop.xlane.xlu1 %6452  ;;  %v6906_v54 = vmul.f32 %v15308_v47, %v6870_v12 }
0x1066   : > { %v6810_v57 = vadd.f32 1e-05, %v6746_v50  ;;  %v15576_v27 = vmul.f32 0.03125, %v6453_v35  ;;  %v10515_v32 = vpop.eup %10514  ;;  %10518 = vrsqrt.f32 %v6807_v61  ;;  %v6712_v30 = vsub.f32 %v6648_v46, %v6680_v14 }
0x1067   : > { %v6462_v33 = vpop.xlane.xlu0 %6461  ;;  %v6868_v34 = vmul.f32 %v10515_v32, %v6772_v42  ;;  %v15589_v7 = vadd.f32 %v15322_v63, %v6906_v54  ;;  %v15594_v50 = vadd.f32 %v15322_v63, %v6903_v48  ;;  %v15600_v14 = vadd.f32 %v15322_v63, %v6905_v6 }
0x1068   : > { %10520 = vrsqrt.f32 %v6810_v57  ;;  %v6744_v37 = vmax.f32 %v6712_v30, 0.0  ;;  %v6683_v22 = vmul.f32 %v15576_v27, %v15576_v27  ;;  %v6685_v46 = vmul.f32 %v15583_v29, %v15583_v29 }
0x1069   : > { %v6613_v24 = vpop.xlane.xlu1 %6612  ;;  %v6904_v56 = vmul.f32 %v15308_v47, %v6868_v34  ;;  %v15604_v45 = vmul.f32 0.03125, %v6462_v33  ;;  %v6962_v42 = vpack.c.bf16 %v15589_v7, %v15600_v14  ;;  %v6778_v6 = vsub.f32 %v15192_v40, %v15540_v44 }
0x106a   : > { %v6651_v8 = vmul.f32 0.03125, %v6613_v24  ;;  %v6808_v1 = vadd.f32 1e-05, %v6744_v37 }
0x106b   : > { %v6456_v19 = vpop.xlane.xlu0 %6455  ;;  %v15597_v4 = vadd.f32 %v15322_v63, %v6904_v56  ;;  %v6686_v56 = vmul.f32 %v15604_v45, %v15604_v45 }
0x106c   : > { %v6715_v0 = vsub.f32 %v6651_v8, %v6683_v22  ;;  %v15591_v12 = vmul.f32 0.03125, %v6456_v19  ;;  %10522 = vrsqrt.f32 %v6808_v1  ;;  %v10517_v30 = vpop.eup %10516  ;;  %v6775_v22 = vsub.f32 %v15187_v41, %v15535_v5 }
0x106d   : > { %v6619_v61 = vpop.xlane.xlu1 %6618  ;;  %v6961_v32 = vpack.c.bf16 %v15597_v4, %v15594_v50  ;;  %v6777_v19 = vsub.f32 %v15176_v36, %v15525_v62  ;;  %v6776_v41 = vsub.f32 %v15202_v26, %v15566_v51 }
0x106e   : > { %v6747_v35 = vmax.f32 %v6715_v0, 0.0  ;;  %v6653_v23 = vmul.f32 0.03125, %v6619_v61  ;;  %v6684_v37 = vmul.f32 %v15591_v12, %v15591_v12 }
0x106f   : > { %v6616_v57 = vpop.xlane.xlu0 %6615  ;;  %9517 = vmatprep.mubr.msk.bf16.mxu1 %vm17266_vm1, %v6961_v32  ;;  %vm17282_vm1 = vmmov %vm17108_vm0 }
0x1070   : > { %v6811_v54 = vadd.f32 1e-05, %v6747_v35  ;;  %v6717_v24 = vsub.f32 %v6653_v23, %v6685_v46  ;;  %v6652_v34 = vmul.f32 0.03125, %v6616_v57  ;;  %v10519_v48 = vpop.eup %10518  ;;  %9518 = vmatmul.mubr.msk.bf16.gmra.mrb[204].mxu1 %vm17108_vm0, %v6962_v42  ;;  %v6873_v23 = vmul.f32 %v10517_v30, %v6777_v19 }
0x1071   : > { %v6871_v35 = vmul.f32 %v10519_v48, %v6775_v22  ;;  %v9955_v22 = vld [vmem:[%s16913_s17 + $0x38] sm:$0xff]  }
0x1072   : > { %v10521_v33 = vpop.eup %10520  ;;  %10524 = vrsqrt.f32 %v6811_v54  ;;  %v6749_v8 = vmax.f32 %v6717_v24, 0.0  ;;  %v6716_v1 = vsub.f32 %v6652_v34, %v6684_v37  ;;  %v6909_v37 = vmul.f32 %v15308_v47, %v6873_v23  ;;  %9535 = vmatprep.subr.bf16.mxu0 %v9955_v22 }
0x1073   : > { %v6622_v0 = vpop.xlane.xlu0 %6621  ;;  %v6874_v61 = vmul.f32 %v10521_v33, %v6778_v6  ;;  %v6907_v54 = vmul.f32 %v15308_v47, %v6871_v35  ;;  %v6779_v6 = vsub.f32 %v15227_v18, %v15576_v27  ;;  %9536 = vmatpush3.bf16.msra.mxu0 %v9955_v22  ;;  %v6781_v18 = vsub.f32 %v15216_v31, %v15583_v29 }
0x1074   : > { %v6813_v40 = vadd.f32 1e-05, %v6749_v8  ;;  %v6748_v44 = vmax.f32 %v6716_v1, 0.0  ;;  %v6654_v46 = vmul.f32 0.03125, %v6622_v0  ;;  %v15640_v33 = vadd.f32 %v15322_v63, %v6909_v37 }
0x1075   : > { %v6910_v42 = vmul.f32 %v15308_v47, %v6874_v61  ;;  %v15632_v51 = vadd.f32 %v15322_v63, %v6907_v54  ;;  %v6780_v27 = vsub.f32 %v15242_v59, %v15591_v12 }
0x1076   : > { %10526 = vrsqrt.f32 %v6813_v40  ;;  %v6812_v5 = vadd.f32 1e-05, %v6748_v44  ;;  %v6718_v57 = vsub.f32 %v6654_v46, %v6686_v56  ;;  %v10523_v32 = vpop.eup %10522  ;;  %v6782_v46 = vsub.f32 %v15232_v55, %v15604_v45 }
0x1077   : > { %v6872_v62 = vmul.f32 %v10523_v32, %v6776_v41  ;;  %v15629_v30 = vadd.f32 %v15322_v63, %v6910_v42  ;;  %v15679_v32 = vld [vmem:[#allocation10 + $0x1] ss:$0 sm:$0xff] }
0x1078   : > { %10528 = vrsqrt.f32 %v6812_v5  ;;  %v6750_v36 = vmax.f32 %v6718_v57, 0.0 }
0x1079   : > { %v6908_v34 = vmul.f32 %v15308_v47, %v6872_v62  ;;  %v6964_v1 = vpack.c.bf16 %v15629_v30, %v15640_v33 }
0x107a   : > { %v6814_v24 = vadd.f32 1e-05, %v6750_v36 }
0x107b   : > { %v15635_v48 = vadd.f32 %v15322_v63, %v6908_v34 }
0x107c   : > { %v10525_v26 = vpop.eup %10524  ;;  %10530 = vrsqrt.f32 %v6814_v24 }
0x107d   : > { %v6963_v8 = vpack.c.bf16 %v15635_v48, %v15632_v51  ;;  %v6875_v19 = vmul.f32 %v10525_v26, %v6779_v6 }
0x107f   : > { %9521 = vmatprep.mubr.msk.bf16.mxu1 %vm17267_vm2, %v6963_v8  ;;  %v6911_v40 = vmul.f32 %v15308_v47, %v6875_v19  ;;  %vm17283_vm2 = vmmov %vm17108_vm0 }
0x1080   : > { %v10527_v56 = vpop.eup %10526  ;;  %9522 = vmatmul.mubr.msk.bf16.gmra.mrb[208].mxu1 %vm17268_vm4, %v6964_v1  ;;  %vm17284_vm4 = vmmov %vm17108_vm0 }
0x1081   : > { %v6877_v44 = vmul.f32 %v10527_v56, %v6781_v18  ;;  %v15660_v41 = vadd.f32 %v15322_v63, %v6911_v40 }
0x1082   : > { %v10529_v0 = vpop.eup %10528 }
0x1083   : > { %v6876_v61 = vmul.f32 %v10529_v0, %v6780_v27  ;;  %v6913_v29 = vmul.f32 %v15308_v47, %v6877_v44 }
0x1085   : > { %v6912_v35 = vmul.f32 %v15308_v47, %v6876_v61  ;;  %v15671_v55 = vadd.f32 %v15322_v63, %v6913_v29 }
0x1086   : > { %v10531_v23 = vpop.eup %10530 }
0x1087   : > { %v15663_v31 = vadd.f32 %v15322_v63, %v6912_v35  ;;  %v6878_v59 = vmul.f32 %v10531_v23, %v6782_v46 }
0x1089   : > { %v6965_v12 = vpack.c.bf16 %v15663_v31, %v15660_v41  ;;  %v6914_v5 = vmul.f32 %v15308_v47, %v6878_v59 }
0x108b   : > { %9525 = vmatprep.mubr.msk.bf16.mxu1 %vm17269_vm5, %v6965_v12  ;;  %v15674_v45 = vadd.f32 %v15322_v63, %v6914_v5  ;;  %vm17285_vm5 = vmmov %vm17108_vm0 }
0x108d   : > { %v6966_v57 = vpack.c.bf16 %v15674_v45, %v15671_v55 }
0x108f   : > { %9526 = vmatmul.mubr.msk.bf16.gmra.mrb[212].mxu1 %vm17270_vm6, %v6966_v57  ;;  %vm17286_vm6 = vmmov %vm17108_vm0 }
0x10f3   : > { %v9499_v42 = vpop.f32.mrb[184].mxu1 }
0x10f4   : > { %v7076_v36 = vadd.f32 %v9499_v42, %v15679_v32  ;;  %v7067_v62 = vpop.f32.mrb[185].mxu1 }
0x10f5   : > { %v7068_v47 = vadd.f32 %v15679_v32, %v7067_v62  ;;  %v9500_v54 = vpop.f32.mrb[186].mxu1 }
0x10f6   : > { %v7079_v37 = vadd.f32 %v9500_v54, %v15679_v32  ;;  %v7070_v24 = vpop.f32.mrb[187].mxu1  ;;  %v7196_v34 = vmax.f32 %v7076_v36, 0.0 }
0x10f7   : > { %v7071_v63 = vadd.f32 %v15679_v32, %v7070_v24  ;;  %v7194_v6 = vmax.f32 %v7068_v47, 0.0 }
0x10f8   : > { %v7197_v26 = vmax.f32 %v7079_v37, 0.0 }
0x10f9   : > { %v7195_v22 = vmax.f32 %v7071_v63, 0.0 }
0x10fa   : > { %v7227_v8 = vpack.c.bf16 %v7197_v26, %v7196_v34 }
0x10fb   : > { %v7226_v1 = vpack.c.bf16 %v7195_v22, %v7194_v6 }
0x10fd   : > { %9537 = vmatprep.mubr.msk.bf16.mxu0 %vm3664_vm3, %v7226_v1 }
0x10fe   : > { %9538 = vmatmul.mubr.msk.bf16.vlgmr.msra.gmra.mrb[192].mxu0 %vm3664_vm3, %v7227_v8 }
0x1103   : > { %v9503_v19 = vpop.f32.mrb[188].mxu1 }
0x1104   : > { %v7092_v56 = vadd.f32 %v9503_v19, %v15679_v32  ;;  %v7083_v18 = vpop.f32.mrb[189].mxu1 }
0x1105   : > { %v7084_v27 = vadd.f32 %v15679_v32, %v7083_v18  ;;  %v9504_v0 = vpop.f32.mrb[190].mxu1 }
0x1106   : > { %v7095_v61 = vadd.f32 %v9504_v0, %v15679_v32  ;;  %v7086_v40 = vpop.f32.mrb[191].mxu1  ;;  %v7200_v46 = vmax.f32 %v7092_v56, 0.0 }
0x1107   : > { %v7087_v44 = vadd.f32 %v15679_v32, %v7086_v40  ;;  %v7198_v23 = vmax.f32 %v7084_v27, 0.0 }
0x1108   : > { %v7201_v35 = vmax.f32 %v7095_v61, 0.0 }
0x1109   : > { %v7199_v59 = vmax.f32 %v7087_v44, 0.0 }
0x110a   : > { %v7229_v29 = vpack.c.bf16 %v7201_v35, %v7200_v46 }
0x110b   : > { %v7228_v12 = vpack.c.bf16 %v7199_v59, %v7198_v23 }
0x110d   : > { %9541 = vmatprep.mubr.msk.bf16.mxu0 %vm3664_vm3, %v7228_v12 }
0x110e   : > { %9542 = vmatmul.mubr.msk.bf16.gmra.mrb[196].mxu0 %vm3664_vm3, %v7229_v29 }
0x1113   : > { %v9507_v5 = vpop.f32.mrb[192].mxu1 }
0x1114   : > { %v7108_v57 = vadd.f32 %v9507_v5, %v15679_v32  ;;  %v7099_v42 = vpop.f32.mrb[193].mxu1 }
0x1115   : > { %v7100_v36 = vadd.f32 %v15679_v32, %v7099_v42  ;;  %v9508_v62 = vpop.f32.mrb[194].mxu1 }
0x1116   : > { %v7111_v47 = vadd.f32 %v9508_v62, %v15679_v32  ;;  %v7102_v54 = vpop.f32.mrb[195].mxu1  ;;  %v7204_v24 = vmax.f32 %v7108_v57, 0.0 }
0x1117   : > { %v7103_v37 = vadd.f32 %v15679_v32, %v7102_v54  ;;  %v7202_v34 = vmax.f32 %v7100_v36, 0.0 }
0x1118   : > { %v7205_v63 = vmax.f32 %v7111_v47, 0.0 }
0x1119   : > { %v7203_v26 = vmax.f32 %v7103_v37, 0.0 }
0x111a   : > { %v7231_v6 = vpack.c.bf16 %v7205_v63, %v7204_v24 }
0x111b   : > { %v7230_v22 = vpack.c.bf16 %v7203_v26, %v7202_v34 }
0x111d   : > { %9545 = vmatprep.mubr.msk.bf16.mxu0 %vm3664_vm3, %v7230_v22 }
0x111e   : > { %9546 = vmatmul.mubr.msk.bf16.gmra.mrb[200].mxu0 %vm3664_vm3, %v7231_v6 }
0x1123   : > { %v9511_v8 = vpop.f32.mrb[196].mxu1 }
0x1124   : > { %v7124_v1 = vadd.f32 %v9511_v8, %v15679_v32  ;;  %v7115_v19 = vpop.f32.mrb[197].mxu1 }
0x1125   : > { %v7116_v56 = vadd.f32 %v15679_v32, %v7115_v19  ;;  %v9512_v18 = vpop.f32.mrb[198].mxu1 }
0x1126   : > { %v7127_v27 = vadd.f32 %v9512_v18, %v15679_v32  ;;  %v7118_v0 = vpop.f32.mrb[199].mxu1  ;;  %v7208_v40 = vmax.f32 %v7124_v1, 0.0 }
0x1127   : > { %v7119_v61 = vadd.f32 %v15679_v32, %v7118_v0  ;;  %v7206_v46 = vmax.f32 %v7116_v56, 0.0 }
0x1128   : > { %v7209_v44 = vmax.f32 %v7127_v27, 0.0 }
0x1129   : > { %v7207_v35 = vmax.f32 %v7119_v61, 0.0 }
0x112a   : > { %v7233_v23 = vpack.c.bf16 %v7209_v44, %v7208_v40 }
0x112b   : > { %v7232_v59 = vpack.c.bf16 %v7207_v35, %v7206_v46 }
0x112d   : > { %9549 = vmatprep.mubr.msk.bf16.mxu0 %vm3664_vm3, %v7232_v59 }
0x112e   : > { %9550 = vmatmul.mubr.msk.bf16.gmra.mrb[204].mxu0 %vm3664_vm3, %v7233_v23 }
0x1133   : > { %v9515_v29 = vpop.f32.mrb[200].mxu1 }
0x1134   : > { %v7140_v12 = vadd.f32 %v9515_v29, %v15679_v32  ;;  %v7131_v5 = vpop.f32.mrb[201].mxu1 }
0x1135   : > { %v7132_v57 = vadd.f32 %v15679_v32, %v7131_v5  ;;  %v9516_v42 = vpop.f32.mrb[202].mxu1 }
0x1136   : > { %v7143_v36 = vadd.f32 %v9516_v42, %v15679_v32  ;;  %v7134_v62 = vpop.f32.mrb[203].mxu1  ;;  %v7212_v54 = vmax.f32 %v7140_v12, 0.0 }
0x1137   : > { %v7135_v47 = vadd.f32 %v15679_v32, %v7134_v62  ;;  %v7210_v24 = vmax.f32 %v7132_v57, 0.0 }
0x1138   : > { %v7213_v37 = vmax.f32 %v7143_v36, 0.0 }
0x1139   : > { %v7211_v63 = vmax.f32 %v7135_v47, 0.0 }
0x113a   : > { %v7235_v34 = vpack.c.bf16 %v7213_v37, %v7212_v54 }
0x113b   : > { %v7234_v26 = vpack.c.bf16 %v7211_v63, %v7210_v24 }
0x113d   : > { %9553 = vmatprep.mubr.msk.bf16.mxu0 %vm3664_vm3, %v7234_v26 }
0x113e   : > { %9554 = vmatmul.mubr.msk.bf16.gmra.mrb[208].mxu0 %vm3664_vm3, %v7235_v34 }
0x1143   : > { %v9519_v6 = vpop.f32.mrb[204].mxu1 }
0x1144   : > { %v7156_v22 = vadd.f32 %v9519_v6, %v15679_v32  ;;  %v7147_v8 = vpop.f32.mrb[205].mxu1 }
0x1145   : > { %v7148_v1 = vadd.f32 %v15679_v32, %v7147_v8  ;;  %v9520_v19 = vpop.f32.mrb[206].mxu1 }
0x1146   : > { %v7159_v56 = vadd.f32 %v9520_v19, %v15679_v32  ;;  %v7150_v18 = vpop.f32.mrb[207].mxu1  ;;  %v7216_v0 = vmax.f32 %v7156_v22, 0.0 }
0x1147   : > { %v7151_v27 = vadd.f32 %v15679_v32, %v7150_v18  ;;  %v7214_v40 = vmax.f32 %v7148_v1, 0.0 }
0x1148   : > { %v7217_v61 = vmax.f32 %v7159_v56, 0.0 }
0x1149   : > { %v7215_v44 = vmax.f32 %v7151_v27, 0.0 }
0x114a   : > { %v7237_v46 = vpack.c.bf16 %v7217_v61, %v7216_v0 }
0x114b   : > { %v7236_v35 = vpack.c.bf16 %v7215_v44, %v7214_v40 }
0x114d   : > { %9557 = vmatprep.mubr.msk.bf16.mxu0 %vm3664_vm3, %v7236_v35  ;;  %v17271_v35 = vsub.s32 1, %v17144_v53 }
0x114e   : > { %9558 = vmatmul.mubr.msk.bf16.gmra.mrb[212].mxu0 %vm3664_vm3, %v7237_v46  ;;  %v15732_v46 = vld [vmem:[%s16820_s22 + $0x8] sm:$0x3f] }
0x1153   : > { %v9523_v23 = vpop.f32.mrb[208].mxu1 }
0x1154   : > { %v7172_v59 = vadd.f32 %v9523_v23, %v15679_v32  ;;  %v7163_v29 = vpop.f32.mrb[209].mxu1  ;;  %v15737_v23 = vrot.slane %v15732_v46, %v17271_v35 }
0x1155   : > { %v7164_v12 = vadd.f32 %v15679_v32, %v7163_v29  ;;  %v9524_v5 = vpop.f32.mrb[210].mxu1 }
0x1156   : > { %v7175_v57 = vadd.f32 %v9524_v5, %v15679_v32  ;;  %v7166_v42 = vpop.f32.mrb[211].mxu1  ;;  %v7220_v62 = vmax.f32 %v7172_v59, 0.0 }
0x1157   : > { %v7167_v36 = vadd.f32 %v15679_v32, %v7166_v42  ;;  %v7218_v54 = vmax.f32 %v7164_v12, 0.0 }
0x1158   : > { %v7221_v47 = vmax.f32 %v7175_v57, 0.0 }
0x1159   : > { %v7219_v37 = vmax.f32 %v7167_v36, 0.0 }
0x115a   : > { %v7239_v24 = vpack.c.bf16 %v7221_v47, %v7220_v62 }
0x115b   : > { %v7238_v63 = vpack.c.bf16 %v7219_v37, %v7218_v54 }
0x115d   : > { %9561 = vmatprep.mubr.msk.bf16.mxu0 %vm3664_vm3, %v7238_v63 }
0x115e   : > { %9562 = vmatmul.mubr.msk.bf16.gmra.mrb[216].mxu0 %vm3664_vm3, %v7239_v24 }
0x1162   : > { %v9527_v34 = vpop.f32.mrb[212].mxu1 }
0x1163   : > { %v7188_v26 = vadd.f32 %v9527_v34, %v15679_v32  ;;  %v7179_v6 = vpop.f32.mrb[213].mxu1 }
0x1164   : > { %v7180_v22 = vadd.f32 %v15679_v32, %v7179_v6  ;;  %v9528_v8 = vpop.f32.mrb[214].mxu1 }
0x1165   : > { %v7191_v1 = vadd.f32 %v9528_v8, %v15679_v32  ;;  %v7182_v19 = vpop.f32.mrb[215].mxu1  ;;  %v7224_v18 = vmax.f32 %v7188_v26, 0.0 }
0x1166   : > { %v7183_v56 = vadd.f32 %v15679_v32, %v7182_v19  ;;  %v7222_v0 = vmax.f32 %v7180_v22, 0.0 }
0x1167   : > { %v7225_v27 = vmax.f32 %v7191_v1, 0.0 }
0x1168   : > { %v7223_v61 = vmax.f32 %v7183_v56, 0.0 }
0x1169   : > { %v7241_v40 = vpack.c.bf16 %v7225_v27, %v7224_v18 }
0x116a   : > { %v7240_v44 = vpack.c.bf16 %v7223_v61, %v7222_v0 }
0x116c   : > { %9565 = vmatprep.mubr.msk.bf16.mxu0 %vm3664_vm3, %v7240_v44 }
0x116d   : > { %9566 = vmatmul.mubr.msk.bf16.gmra.mrb[220].mxu0 %vm3664_vm3, %v7241_v40  ;;  %vm17272_vm3 = vmmov %vm17108_vm0 }
0x11d1   : > { %v9539_v32 = vpop.f32.mrb[192].mxu0 }
0x11d2   : > { %v7361_v59 = vadd.f32 %v9539_v32, %v15737_v23  ;;  %v7352_v29 = vpop.f32.mrb[193].mxu0 }
0x11d3   : > { %v7353_v12 = vadd.f32 %v7352_v29, %v15737_v23  ;;  %v9540_v5 = vpop.f32.mrb[194].mxu0 }
0x11d4   : > { %v15742_v57 = vadd.f32 %v7361_v59, %v15341_v39  ;;  %v7364_v42 = vadd.f32 %v9540_v5, %v15737_v23  ;;  %v7355_v36 = vpop.f32.mrb[195].mxu0 }
0x11d5   : > { %v15746_v62 = vadd.f32 %v7353_v12, %v15333_v43  ;;  %v7356_v54 = vadd.f32 %v7355_v36, %v15737_v23 }
0x11d6   : > { %v15749_v47 = vadd.f32 %v7364_v42, %v15330_v58  ;;  %v7517_v37 = vsel %vm17272_vm3, %v15742_v57, 0.0  ;;  %v7641_v39 = vmul.f32 %v15742_v57, %v15742_v57  ;;  %vm17287_vm3 = vmmov %vm17108_vm0 }
0x11d7   : > { %7518 = vadd.xlane.f32.xlu1 %v7517_v37  ;;  %v7511_v24 = vsel %vm17273_vm7, %v15746_v62, 0.0  ;;  %v15759_v63 = vadd.f32 %v7356_v54, %v15336_v17  ;;  %v7639_v34 = vmul.f32 %v15746_v62, %v15746_v62  ;;  %vm17288_vm7 = vmmov %vm17108_vm0 }
0x11d8   : > { %7512 = vadd.xlane.f32.xlu0 %v7511_v24  ;;  %v7520_v58 = vsel %vm17274_vm8, %v15749_v47, 0.0  ;;  %v7677_v43 = vsel %vm17275_vm9, %v7641_v39, 0.0  ;;  %v7642_v17 = vmul.f32 %v15749_v47, %v15749_v47  ;;  %vm17289_vm8 = vmmov %vm17108_vm0 }
0x11d9   : > { %v7514_v26 = vsel %vm17276_vm10, %v15759_v63, 0.0  ;;  %v7671_v6 = vsel %vm17277_vm11, %v7639_v34, 0.0  ;;  %v7640_v27 = vmul.f32 %v15759_v63, %v15759_v63  ;;  %vm17290_vm9 = vmmov %vm17108_vm0 }
0x11da   : > { %v7680_v18 = vsel %vm17278_vm12, %v7642_v17, 0.0  ;;  %vm17291_vm10 = vmmov %vm17108_vm0 }
0x11db   : > { %7521 = vadd.xlane.f32.xlu1 %v7520_v58  ;;  %v7674_v32 = vsel %vm17280_vm14, %v7640_v27, 0.0  ;;  %vm17292_vm11 = vmmov %vm17108_vm0 }
0x11dc   : > { %7678 = vadd.xlane.f32.xlu0 %v7677_v43  ;;  %vm17293_vm12 = vmmov %vm17108_vm0 }
0x11dd   : > { %vm17296_vm14 = vmmov %vm17108_vm0 }
0x11df   : > { %7515 = vadd.xlane.f32.xlu1 %v7514_v26 }
0x11e0   : > { %7672 = vadd.xlane.f32.xlu0 %v7671_v6 }
0x11e1   : > { %v9543_v22 = vpop.f32.mrb[196].mxu0 }
0x11e2   : > { %v7377_v8 = vadd.f32 %v9543_v22, %v15737_v23  ;;  %v7368_v1 = vpop.f32.mrb[197].mxu0 }
0x11e3   : > { %v7369_v19 = vadd.f32 %v7368_v1, %v15737_v23  ;;  %v9544_v56 = vpop.f32.mrb[198].mxu0 }
0x11e4   : > { %v15777_v0 = vadd.f32 %v7377_v8, %v15393_v15  ;;  %7681 = vadd.xlane.f32.xlu0 %v7680_v18  ;;  %v7371_v61 = vpop.f32.mrb[199].mxu0  ;;  %v7380_v44 = vadd.f32 %v9544_v56, %v15737_v23 }
0x11e5   : > { %v15780_v40 = vadd.f32 %v7369_v19, %v15385_v49  ;;  %v7372_v29 = vadd.f32 %v7371_v61, %v15737_v23 }
0x11e6   : > { %v7529_v35 = vsel %vm17279_vm13, %v15777_v0, 0.0  ;;  %v7645_v59 = vmul.f32 %v15777_v0, %v15777_v0  ;;  %v15789_v15 = vadd.f32 %v7380_v44, %v15381_v11  ;;  %vm17295_vm13 = vmmov %vm17108_vm0 }
0x11e7   : > { %7530 = vadd.xlane.f32.xlu1 %v7529_v35  ;;  %v7523_v49 = vsel %vm17281_vm15, %v15780_v40, 0.0  ;;  %v7643_v5 = vmul.f32 %v15780_v40, %v15780_v40  ;;  %v15798_v42 = vadd.f32 %v7372_v29, %v15388_v13  ;;  %vm17298_vm15 = vmmov %vm17108_vm0 }
0x11e8   : > { %7675 = vadd.xlane.f32.xlu0 %v7674_v32  ;;  %v7689_v12 = vsel %vm17282_vm1, %v7645_v59, 0.0  ;;  %v7532_v36 = vsel %vm17108_vm0, %v15789_v15, 0.0  ;;  %v7646_v54 = vmul.f32 %v15789_v15, %v15789_v15  ;;  %vm17299_vm1 = vmmov %vm17108_vm0 }
0x11e9   : > { %v7683_v11 = vsel %vm17283_vm2, %v7643_v5, 0.0  ;;  %v7526_v58 = vsel %vm17284_vm4, %v15798_v42, 0.0  ;;  %v7644_v26 = vmul.f32 %v15798_v42, %v15798_v42  ;;  %vm17300_vm2 = vmmov %vm17108_vm0 }
0x11ea   : > { %v7692_v34 = vsel %vm17285_vm5, %v7646_v54, 0.0  ;;  %vm17301_vm4 = vmmov %vm17108_vm0 }
0x11eb   : > { %7524 = vadd.xlane.f32.xlu1 %v7523_v49  ;;  %v7686_v19 = vsel %vm17287_vm3, %v7644_v26, 0.0  ;;  %vm17302_vm5 = vmmov %vm17108_vm0 }
0x11ec   : > { %7690 = vadd.xlane.f32.xlu0 %v7689_v12  ;;  %vm17304_vm3 = vmmov %vm17108_vm0 }
0x11ef   : > { %7533 = vadd.xlane.f32.xlu1 %v7532_v36 }
0x11f0   : > { %7684 = vadd.xlane.f32.xlu0 %v7683_v11 }
0x11f1   : > { %v9547_v37 = vpop.f32.mrb[200].mxu0 }
0x11f2   : > { %v7393_v24 = vadd.f32 %v9547_v37, %v15737_v23  ;;  %v7384_v39 = vpop.f32.mrb[201].mxu0 }
0x11f3   : > { %v7385_v13 = vadd.f32 %v7384_v39, %v15737_v23  ;;  %7527 = vadd.xlane.f32.xlu1 %v7526_v58  ;;  %v9548_v43 = vpop.f32.mrb[202].mxu0 }
0x11f4   : > { %v15813_v6 = vadd.f32 %v7393_v24, %v15447_v21  ;;  %7693 = vadd.xlane.f32.xlu0 %v7692_v34  ;;  %v7387_v17 = vpop.f32.mrb[203].mxu0  ;;  %v7396_v8 = vadd.f32 %v9548_v43, %v15737_v23 }
0x11f5   : > { %v15816_v22 = vadd.f32 %v7385_v13, %v15439_v10  ;;  %v7388_v18 = vadd.f32 %v7387_v17, %v15737_v23 }
0x11f6   : > { %v7541_v1 = vsel %vm17286_vm6, %v15813_v6, 0.0  ;;  %v7649_v56 = vmul.f32 %v15813_v6, %v15813_v6  ;;  %v15825_v21 = vadd.f32 %v7396_v8, %v15435_v60  ;;  %vm17303_vm6 = vmmov %vm17108_vm0 }
0x11f7   : > { %7542 = vadd.xlane.f32.xlu1 %v7541_v1  ;;  %v7535_v10 = vsel %vm17288_vm7, %v15816_v22, 0.0  ;;  %v7647_v61 = vmul.f32 %v15816_v22, %v15816_v22  ;;  %v15834_v44 = vadd.f32 %v7388_v18, %v15442_v16  ;;  %vm17305_vm7 = vmmov %vm17108_vm0 }
0x11f8   : > { %7687 = vadd.xlane.f32.xlu0 %v7686_v19  ;;  %v7701_v27 = vsel %vm17289_vm8, %v7649_v56, 0.0  ;;  %v7544_v35 = vsel %vm17290_vm9, %v15825_v21, 0.0  ;;  %v7650_v32 = vmul.f32 %v15825_v21, %v15825_v21  ;;  %vm17306_vm8 = vmmov %vm17108_vm0 }
0x11f9   : > { %v7695_v60 = vsel %vm17291_vm10, %v7647_v61, 0.0  ;;  %v7538_v12 = vsel %vm17292_vm11, %v15834_v44, 0.0  ;;  %v7648_v11 = vmul.f32 %v15834_v44, %v15834_v44  ;;  %vm17307_vm9 = vmmov %vm17108_vm0 }
0x11fa   : > { %v7704_v36 = vsel %vm17293_vm12, %v7650_v32, 0.0  ;;  %vm17308_vm10 = vmmov %vm17108_vm0 }
0x11fb   : > { %7536 = vadd.xlane.f32.xlu1 %v7535_v10  ;;  %v7698_v34 = vsel %vm17296_vm14, %v7648_v11, 0.0  ;;  %vm17309_vm11 = vmmov %vm17108_vm0 }
0x11fc   : > { %7702 = vadd.xlane.f32.xlu0 %v7701_v27  ;;  %vm17310_vm12 = vmmov %vm17108_vm0 }
0x11fd   : > { %vm17312_vm14 = vmmov %vm17108_vm0 }
0x11ff   : > { %7545 = vadd.xlane.f32.xlu1 %v7544_v35 }
0x1200   : > { %7696 = vadd.xlane.f32.xlu0 %v7695_v60 }
0x1201   : > { %v9551_v59 = vpop.f32.mrb[204].mxu0 }
0x1202   : > { %v7409_v29 = vadd.f32 %v9551_v59, %v15737_v23  ;;  %v7400_v49 = vpop.f32.mrb[205].mxu0 }
0x1203   : > { %v7401_v16 = vadd.f32 %v7400_v49, %v15737_v23  ;;  %7539 = vadd.xlane.f32.xlu1 %v7538_v12  ;;  %v9552_v5 = vpop.f32.mrb[206].mxu0 }
0x1204   : > { %v15849_v54 = vadd.f32 %v7409_v29, %v15501_v3  ;;  %7705 = vadd.xlane.f32.xlu0 %v7704_v36  ;;  %v7403_v37 = vpop.f32.mrb[207].mxu0  ;;  %v7412_v58 = vadd.f32 %v9552_v5, %v15737_v23 }
0x1205   : > { %v15852_v24 = vadd.f32 %v7401_v16, %v15493_v25  ;;  %v7404_v39 = vadd.f32 %v7403_v37, %v15737_v23 }
0x1206   : > { %17294 = vst [vmem:[#allocation34_spill] sm:$0xff] %v15849_v54  ;;  %v7553_v13 = vsel %vm17295_vm13, %v15849_v54, 0.0  ;;  %v15865_v25 = vadd.f32 %v7412_v58, %v15489_v52  ;;  %vm17311_vm13 = vmmov %vm17108_vm0 }
0x1207   : > { %v15859_v43 = vadd.f32 %v7404_v39, %v15496_v20  ;;  %7554 = vadd.xlane.f32.xlu1 %v7553_v13  ;;  %v7651_v3 = vmul.f32 %v15852_v24, %v15852_v24  ;;  %v7547_v26 = vsel %vm17298_vm15, %v15852_v24, 0.0  ;;  %vm17313_vm15 = vmmov %vm17108_vm0 }
0x1208   : > { %7699 = vadd.xlane.f32.xlu0 %v7698_v34  ;;  %17297 = vst [vmem:[#allocation32_spill] sm:$0xff] %v15865_v25  ;;  %v7556_v8 = vsel %vm17108_vm0, %v15865_v25, 0.0 }
0x1209   : > { %v7707_v17 = vsel %vm17299_vm1, %v7651_v3, 0.0  ;;  %v7652_v20 = vmul.f32 %v15859_v43, %v15859_v43  ;;  %v7550_v18 = vsel %vm17301_vm4, %v15859_v43, 0.0  ;;  %vm17314_vm1 = vmmov %vm17108_vm0 }
0x120a   : > { %vm17316_vm4 = vmmov %vm17108_vm0 }
0x120b   : > { %7548 = vadd.xlane.f32.xlu1 %v7547_v26  ;;  %v7710_v1 = vsel %vm17300_vm2, %v7652_v20, 0.0  ;;  %vm17315_vm2 = vmmov %vm17108_vm0 }
0x120c   : > { %7708 = vadd.xlane.f32.xlu0 %v7707_v17 }
0x120f   : > { %7557 = vadd.xlane.f32.xlu1 %v7556_v8 }
0x1210   : > { %7711 = vadd.xlane.f32.xlu0 %v7710_v1 }
0x1211   : > { %v9555_v19 = vpop.f32.mrb[208].mxu0 }
0x1212   : > { %v7425_v52 = vadd.f32 %v9555_v19, %v15737_v23  ;;  %v7416_v56 = vpop.f32.mrb[209].mxu0 }
0x1213   : > { %v7417_v10 = vadd.f32 %v7416_v56, %v15737_v23  ;;  %7551 = vadd.xlane.f32.xlu1 %v7550_v18  ;;  %v9556_v27 = vpop.f32.mrb[210].mxu0 }
0x1214   : > { %v15880_v61 = vadd.f32 %v7425_v52, %v15555_v9  ;;  %v7428_v35 = vadd.f32 %v9556_v27, %v15737_v23  ;;  %v7419_v60 = vpop.f32.mrb[211].mxu0 }
0x1215   : > { %v15884_v32 = vadd.f32 %v7417_v10, %v15547_v38  ;;  %v7420_v12 = vadd.f32 %v7419_v60, %v15737_v23 }
0x1216   : > { %v7565_v59 = vsel %vm17302_vm5, %v15880_v61, 0.0  ;;  %v7657_v29 = vmul.f32 %v15880_v61, %v15880_v61  ;;  %v15891_v49 = vadd.f32 %v7428_v35, %v15543_v2  ;;  %vm17317_vm5 = vmmov %vm17108_vm0 }
0x1217   : > { %7566 = vadd.xlane.f32.xlu1 %v7565_v59  ;;  %v7655_v16 = vmul.f32 %v15884_v32, %v15884_v32  ;;  %v7559_v38 = vsel %vm17304_vm3, %v15884_v32, 0.0  ;;  %v15900_v5 = vadd.f32 %v7420_v12, %v15550_v28  ;;  %vm17319_vm3 = vmmov %vm17108_vm0 }
0x1218   : > { %v7725_v9 = vsel %vm17303_vm6, %v7657_v29, 0.0  ;;  %v7658_v2 = vmul.f32 %v15891_v49, %v15891_v49  ;;  %v7568_v11 = vsel %vm17306_vm8, %v15891_v49, 0.0  ;;  %vm17318_vm6 = vmmov %vm17108_vm0 }
0x1219   : > { %7726 = vadd.xlane.f32.xlu0 %v7725_v9  ;;  %v7719_v36 = vsel %vm17305_vm7, %v7655_v16, 0.0  ;;  %v7656_v39 = vmul.f32 %v15900_v5, %v15900_v5  ;;  %v7562_v34 = vsel %vm17308_vm10, %v15900_v5, 0.0  ;;  %vm17320_vm7 = vmmov %vm17108_vm0 }
0x121a   : > { %v7728_v37 = vsel %vm17307_vm9, %v7658_v2, 0.0  ;;  %vm17321_vm8 = vmmov %vm17108_vm0 }
0x121b   : > { %7560 = vadd.xlane.f32.xlu1 %v7559_v38  ;;  %v7722_v1 = vsel %vm17309_vm11, %v7656_v39, 0.0  ;;  %vm17322_vm9 = vmmov %vm17108_vm0 }
0x121c   : > { %vm17324_vm10 = vmmov %vm17108_vm0 }
0x121d   : > { %7720 = vadd.xlane.f32.xlu0 %v7719_v36  ;;  %vm17325_vm11 = vmmov %vm17108_vm0 }
0x121f   : > { %7569 = vadd.xlane.f32.xlu1 %v7568_v11 }
0x1221   : > { %7729 = vadd.xlane.f32.xlu0 %v7728_v37  ;;  %v9559_v58 = vpop.f32.mrb[212].mxu0 }
0x1222   : > { %v7441_v28 = vadd.f32 %v9559_v58, %v15737_v23  ;;  %v7432_v13 = vpop.f32.mrb[213].mxu0 }
0x1223   : > { %v7433_v3 = vadd.f32 %v7432_v13, %v15737_v23  ;;  %7563 = vadd.xlane.f32.xlu1 %v7562_v34  ;;  %v9560_v26 = vpop.f32.mrb[214].mxu0 }
0x1224   : > { %v15915_v17 = vadd.f32 %v7441_v28, %v15600_v14  ;;  %v7444_v20 = vadd.f32 %v9560_v26, %v15737_v23  ;;  %v7435_v8 = vpop.f32.mrb[215].mxu0 }
0x1225   : > { %v15920_v19 = vadd.f32 %v7433_v3, %v15594_v50  ;;  %7723 = vadd.xlane.f32.xlu0 %v7722_v1  ;;  %v7436_v14 = vadd.f32 %v7435_v8, %v15737_v23 }
0x1226   : > { %v7577_v52 = vsel %vm17310_vm12, %v15915_v17, 0.0  ;;  %v7661_v56 = vmul.f32 %v15915_v17, %v15915_v17  ;;  %v15927_v18 = vadd.f32 %v7444_v20, %v15589_v7  ;;  %vm17326_vm12 = vmmov %vm17108_vm0 }
0x1227   : > { %7578 = vadd.xlane.f32.xlu1 %v7577_v52  ;;  %v7659_v27 = vmul.f32 %v15920_v19, %v15920_v19  ;;  %v7571_v50 = vsel %vm17312_vm14, %v15920_v19, 0.0  ;;  %v15936_v35 = vadd.f32 %v7436_v14, %v15597_v4  ;;  %vm17330_vm14 = vmmov %vm17108_vm0 }
0x1228   : > { %v7737_v10 = vsel %vm17311_vm13, %v7661_v56, 0.0  ;;  %v7662_v7 = vmul.f32 %v15927_v18, %v15927_v18  ;;  %v7580_v59 = vsel %vm17314_vm1, %v15927_v18, 0.0  ;;  %vm17327_vm13 = vmmov %vm17108_vm0 }
0x1229   : > { %7738 = vadd.xlane.f32.xlu0 %v7737_v10  ;;  %v7731_v60 = vsel %vm17313_vm15, %v7659_v27, 0.0  ;;  %v7660_v9 = vmul.f32 %v15936_v35, %v15936_v35  ;;  %v7574_v36 = vsel %vm17315_vm2, %v15936_v35, 0.0  ;;  %vm17331_vm15 = vmmov %vm17108_vm0 }
0x122a   : > { %v7740_v29 = vsel %vm17108_vm0, %v7662_v7, 0.0  ;;  %vm17332_vm1 = vmmov %vm17108_vm0 }
0x122b   : > { %7572 = vadd.xlane.f32.xlu1 %v7571_v50  ;;  %v7734_v28 = vsel %vm17316_vm4, %v7660_v9, 0.0  ;;  %vm17333_vm2 = vmmov %vm17108_vm0 }
0x122c   : > { %vm17334_vm4 = vmmov %vm17108_vm0 }
0x122d   : > { %7732 = vadd.xlane.f32.xlu0 %v7731_v60 }
0x122f   : > { %7581 = vadd.xlane.f32.xlu1 %v7580_v59 }
0x1231   : > { %v9563_v12 = vpop.f32.mrb[216].mxu0  ;;  %7741 = vadd.xlane.f32.xlu0 %v7740_v29 }
0x1232   : > { %v7457_v4 = vadd.f32 %v9563_v12, %v15737_v23  ;;  %v7448_v16 = vpop.f32.mrb[217].mxu0 }
0x1233   : > { %v7449_v38 = vadd.f32 %v7448_v16, %v15737_v23  ;;  %v9564_v2 = vpop.f32.mrb[218].mxu0  ;;  %7575 = vadd.xlane.f32.xlu1 %v7574_v36 }
0x1234   : > { %v15951_v11 = vadd.f32 %v7457_v4, %v15640_v33  ;;  %v7451_v37 = vpop.f32.mrb[219].mxu0  ;;  %v7460_v58 = vadd.f32 %v9564_v2, %v15737_v23 }
0x1235   : > { %v15954_v39 = vadd.f32 %v7449_v38, %v15632_v51  ;;  %7735 = vadd.xlane.f32.xlu0 %v7734_v28  ;;  %v7452_v51 = vadd.f32 %v7451_v37, %v15737_v23 }
0x1236   : > { %v7589_v13 = vsel %vm17317_vm5, %v15951_v11, 0.0  ;;  %v7665_v34 = vmul.f32 %v15951_v11, %v15951_v11  ;;  %v15964_v3 = vadd.f32 %v7460_v58, %v15629_v30  ;;  %vm17335_vm5 = vmmov %vm17108_vm0 }
0x1237   : > { %7590 = vadd.xlane.f32.xlu1 %v7589_v13  ;;  %v7663_v26 = vmul.f32 %v15954_v39, %v15954_v39  ;;  %v7583_v20 = vsel %vm17319_vm3, %v15954_v39, 0.0  ;;  %v15972_v8 = vadd.f32 %v7452_v51, %v15635_v48 }
0x1238   : > { %v7749_v33 = vsel %vm17318_vm6, %v7665_v34, 0.0  ;;  %v7666_v52 = vmul.f32 %v15964_v3, %v15964_v3  ;;  %v7592_v30 = vsel %vm17321_vm8, %v15964_v3, 0.0  ;;  %vm17336_vm6 = vmmov %vm17108_vm0 }
0x1239   : > { %7750 = vadd.xlane.f32.xlu0 %v7749_v33  ;;  %v7743_v1 = vsel %vm17320_vm7, %v7663_v26, 0.0  ;;  %v7664_v60 = vmul.f32 %v15972_v8, %v15972_v8  ;;  %v7586_v29 = vsel %vm17324_vm10, %v15972_v8, 0.0  ;;  %v7654_v26 = vmul.f32 %v15865_v25, %v15865_v25 }
0x123a   : > { %v7752_v27 = vsel %vm17322_vm9, %v7666_v52, 0.0 }
0x123b   : > { %7584 = vadd.xlane.f32.xlu1 %v7583_v20  ;;  %v7746_v16 = vsel %vm17325_vm11, %v7664_v60, 0.0 }
0x123d   : > { %7744 = vadd.xlane.f32.xlu0 %v7743_v1  ;;  %v7716_v1 = vsel %vm17336_vm6, %v7654_v26, 0.0 }
0x123f   : > { %7593 = vadd.xlane.f32.xlu1 %v7592_v30 }
0x1240   : > { %v9567_v56 = vpop.f32.mrb[220].mxu0 }
0x1241   : > { %v7473_v14 = vadd.f32 %v9567_v56, %v15737_v23  ;;  %v7464_v10 = vpop.f32.mrb[221].mxu0  ;;  %7753 = vadd.xlane.f32.xlu0 %v7752_v27 }
0x1242   : > { %v7465_v50 = vadd.f32 %v7464_v10, %v15737_v23  ;;  %v9568_v48 = vpop.f32.mrb[222].mxu0 }
0x1243   : > { %v15985_v7 = vadd.f32 %v7473_v14, %v15671_v55  ;;  %v7467_v59 = vpop.f32.mrb[223].mxu0  ;;  %7587 = vadd.xlane.f32.xlu1 %v7586_v29  ;;  %v7476_v38 = vadd.f32 %v9568_v48, %v15737_v23 }
0x1244   : > { %v15992_v9 = vadd.f32 %v7465_v50, %v15660_v41  ;;  %v7468_v4 = vadd.f32 %v7467_v59, %v15737_v23 }
0x1245   : > { %17323 = vst [vmem:[#allocation33_spill] sm:$0xff] %v15985_v7  ;;  %v7669_v12 = vmul.f32 %v15985_v7, %v15985_v7  ;;  %v7601_v55 = vsel %vm17326_vm12, %v15985_v7, 0.0  ;;  %7747 = vadd.xlane.f32.xlu0 %v7746_v16  ;;  %v16006_v37 = vadd.f32 %v7476_v38, %v15674_v45  ;;  %v7653_v45 = vmul.f32 %v15849_v54, %v15849_v54 }
0x1246   : > { %v16001_v2 = vadd.f32 %v7468_v4, %v15663_v31  ;;  %v7667_v41 = vmul.f32 %v15992_v9, %v15992_v9  ;;  %v7595_v58 = vsel %vm17330_vm14, %v15992_v9, 0.0 }
0x1247   : > { %v7761_v36 = vsel %vm17327_vm13, %v7669_v12, 0.0  ;;  %7602 = vadd.xlane.f32.xlu1 %v7601_v55  ;;  %17329 = vst [vmem:[#allocation38_spill] sm:$0xff] %v16006_v37  ;;  %v7604_v31 = vsel %vm17332_vm1, %v16006_v37, 0.0  ;;  %v7670_v33 = vmul.f32 %v16006_v37, %v16006_v37  ;;  %v7713_v51 = vsel %vm17334_vm4, %v7653_v45, 0.0 }
0x1248   : > { %17328 = vst [vmem:[#allocation31_spill] sm:$0xff] %v16001_v2  ;;  %v7755_v28 = vsel %vm17331_vm15, %v7667_v41, 0.0  ;;  %v7668_v23 = vmul.f32 %v16001_v2, %v16001_v2  ;;  %v7598_v34 = vsel %vm17333_vm2, %v16001_v2, 0.0 }
0x1249   : > { %7762 = vadd.xlane.f32.xlu0 %v7761_v36  ;;  %v7764_v20 = vsel %vm17335_vm5, %v7670_v33, 0.0 }
0x124a   : > { %v7758_v13 = vsel %vm17108_vm0, %v7668_v23, 0.0 }
0x124b   : > { %7596 = vadd.xlane.f32.xlu1 %v7595_v58 }
0x124d   : > { %7756 = vadd.xlane.f32.xlu0 %v7755_v28 }
0x124f   : > { %7605 = vadd.xlane.f32.xlu1 %v7604_v31 }
0x1251   : > { %7759 = vadd.xlane.f32.xlu0 %v7758_v13 }
0x1253   : > { %7599 = vadd.xlane.f32.xlu1 %v7598_v34 }
0x1255   : > { %7714 = vadd.xlane.f32.xlu0 %v7713_v51 }
0x1257   : > { %7765 = vadd.xlane.f32.xlu1 %v7764_v20 }
0x1259   : > { %7717 = vadd.xlane.f32.xlu0 %v7716_v1 }
0x1264   : > { %v7519_v52 = vpop.xlane.xlu1 %7518 }
0x1265   : > { %v16027_v30 = vpop.xlane.xlu0 %7512  ;;  %v7609_v56 = vmul.f32 0.03125, %v7519_v52 }
0x1267   : > { %v7801_v10 = vmul.f32 %v7609_v56, %v7609_v56  ;;  %v7897_v51 = vsub.f32 %v15742_v57, %v7609_v56 }
0x1268   : > { %v7522_v27 = vpop.xlane.xlu1 %7521 }
0x1269   : > { %v7679_v14 = vpop.xlane.xlu0 %7678  ;;  %v7610_v59 = vmul.f32 0.03125, %v7522_v27 }
0x126a   : > { %v7769_v50 = vmul.f32 0.03125, %v7679_v14 }
0x126b   : > { %v7802_v55 = vmul.f32 %v7610_v59, %v7610_v59 }
0x126c   : > { %v7833_v48 = vsub.f32 %v7769_v50, %v7801_v10  ;;  %v16031_v4 = vpop.xlane.xlu1 %7515 }
0x126d   : > { %v16029_v60 = vpop.xlane.xlu0 %7672 }
0x126e   : > { %v7865_v29 = vmax.f32 %v7833_v48, 0.0 }
0x1270   : > { %v7929_v12 = vadd.f32 1e-05, %v7865_v29 }
0x1271   : > { %v7682_v16 = vpop.xlane.xlu0 %7681 }
0x1272   : > { %10532 = vrsqrt.f32 %v7929_v12  ;;  %v7770_v38 = vmul.f32 0.03125, %v7682_v16 }
0x1274   : > { %v7834_v36 = vsub.f32 %v7770_v38, %v7802_v55  ;;  %v7531_v41 = vpop.xlane.xlu1 %7530  ;;  %v7898_v55 = vsub.f32 %v15749_v47, %v7610_v59 }
0x1275   : > { %v16033_v58 = vpop.xlane.xlu0 %7675  ;;  %v7613_v23 = vmul.f32 0.03125, %v7531_v41 }
0x1276   : > { %v7866_v28 = vmax.f32 %v7834_v36, 0.0 }
0x1277   : > { %v7805_v34 = vmul.f32 %v7613_v23, %v7613_v23 }
0x1278   : > { %v7930_v31 = vadd.f32 1e-05, %v7866_v28  ;;  %v16035_v13 = vpop.xlane.xlu1 %7524 }
0x1279   : > { %v7691_v45 = vpop.xlane.xlu0 %7690 }
0x127a   : > { %10534 = vrsqrt.f32 %v7930_v31  ;;  %v7773_v33 = vmul.f32 0.03125, %v7691_v45 }
0x127c   : > { %v10533_v26 = vpop.eup %10532  ;;  %v7837_v20 = vsub.f32 %v7773_v33, %v7805_v34  ;;  %v7534_v1 = vpop.xlane.xlu1 %7533 }
0x127d   : > { %v16038_v52 = vpop.xlane.xlu0 %7684  ;;  %v16040_v14 = vmul.f32 %v10533_v26, %v7897_v51  ;;  %v7614_v27 = vmul.f32 0.03125, %v7534_v1 }
0x127e   : > { %v7869_v10 = vmax.f32 %v7837_v20, 0.0  ;;  %v7901_v20 = vsub.f32 %v15777_v0, %v7613_v23 }
0x127f   : > { %v7806_v12 = vmul.f32 %v7614_v27, %v7614_v27 }
0x1280   : > { %v7933_v50 = vadd.f32 1e-05, %v7869_v10  ;;  %v16042_v48 = vpop.xlane.xlu1 %7527 }
0x1281   : > { %v7694_v29 = vpop.xlane.xlu0 %7693 }
0x1282   : > { %10536 = vrsqrt.f32 %v7933_v50  ;;  %v7774_v16 = vmul.f32 0.03125, %v7694_v29 }
0x1284   : > { %v10535_v38 = vpop.eup %10534  ;;  %v7838_v57 = vsub.f32 %v7774_v16, %v7806_v12  ;;  %v7543_v56 = vpop.xlane.xlu1 %7542 }
0x1285   : > { %v16045_v36 = vpop.xlane.xlu0 %7687  ;;  %v16047_v41 = vmul.f32 %v10535_v38, %v7898_v55  ;;  %v7617_v31 = vmul.f32 0.03125, %v7543_v56 }
0x1286   : > { %v7870_v28 = vmax.f32 %v7838_v57, 0.0 }
0x1287   : > { %v7809_v51 = vmul.f32 %v7617_v31, %v7617_v31 }
0x1288   : > { %v7934_v45 = vadd.f32 1e-05, %v7870_v28  ;;  %v16049_v34 = vpop.xlane.xlu1 %7536  ;;  %v7902_v28 = vsub.f32 %v15789_v15, %v7614_v27 }
0x1289   : > { %v7703_v33 = vpop.xlane.xlu0 %7702 }
0x128a   : > { %10538 = vrsqrt.f32 %v7934_v45  ;;  %v7777_v26 = vmul.f32 0.03125, %v7703_v33 }
0x128c   : > { %v10537_v1 = vpop.eup %10536  ;;  %v7841_v47 = vsub.f32 %v7777_v26, %v7809_v51  ;;  %v7546_v59 = vpop.xlane.xlu1 %7545  ;;  %v16066_v26 = vmul.f32 0.03125, %v16027_v30 }
0x128d   : > { %v16052_v10 = vpop.xlane.xlu0 %7696  ;;  %v16054_v50 = vmul.f32 %v10537_v1, %v7901_v20  ;;  %v7618_v12 = vmul.f32 0.03125, %v7546_v59  ;;  %v7767_v1 = vmul.f32 0.03125, %v16029_v60  ;;  %v16077_v60 = vmul.f32 0.03125, %v16031_v4 }
0x128e   : > { %v7873_v29 = vmax.f32 %v7841_v47, 0.0  ;;  %v7799_v15 = vmul.f32 %v16066_v26, %v16066_v26 }
0x128f   : > { %v7810_v57 = vmul.f32 %v7618_v12, %v7618_v12 }
0x1290   : > { %v7937_v16 = vadd.f32 1e-05, %v7873_v29  ;;  %v16056_v55 = vpop.xlane.xlu1 %7539 }
0x1291   : > { %v7706_v38 = vpop.xlane.xlu0 %7705 }
0x1292   : > { %10540 = vrsqrt.f32 %v7937_v16  ;;  %v7778_v56 = vmul.f32 0.03125, %v7706_v38  ;;  %v7905_v38 = vsub.f32 %v15813_v6, %v7617_v31  ;;  %v7800_v6 = vmul.f32 %v16077_v60, %v16077_v60 }
0x1293   : > { %v7906_v31 = vsub.f32 %v15825_v21, %v7618_v12 }
0x1294   : > { %v10539_v45 = vpop.eup %10538  ;;  %v7842_v0 = vsub.f32 %v7778_v56, %v7810_v57  ;;  %v16059_v23 = vpop.xlane.xlu1 %7554 }
0x1295   : > { %v16061_v33 = vpop.xlane.xlu0 %7699  ;;  %v16063_v51 = vmul.f32 %v10539_v45, %v7902_v28  ;;  %v7831_v28 = vsub.f32 %v7767_v1, %v7799_v15 }
0x1296   : > { %v7874_v20 = vmax.f32 %v7842_v0, 0.0 }
0x1298   : > { %v7938_v47 = vadd.f32 1e-05, %v7874_v20  ;;  %v7549_v59 = vpop.xlane.xlu1 %7548 }
0x1299   : > { %v7619_v29 = vmul.f32 0.03125, %v7549_v59  ;;  %v7709_v16 = vpop.xlane.xlu0 %7708  ;;  %v7863_v59 = vmax.f32 %v7831_v28, 0.0 }
0x129a   : > { %10542 = vrsqrt.f32 %v7938_v47  ;;  %v7779_v27 = vmul.f32 0.03125, %v7709_v16  ;;  %v7768_v47 = vmul.f32 0.03125, %v16033_v58 }
0x129b   : > { %v7811_v57 = vmul.f32 %v7619_v29, %v7619_v29 }
0x129c   : > { %v10541_v56 = vpop.eup %10540  ;;  %v16072_v45 = vpop.xlane.xlu1 %7557 }
0x129d   : > { %v7843_v30 = vsub.f32 %v7779_v27, %v7811_v57  ;;  %v16074_v0 = vmul.f32 %v10541_v56, %v7905_v38  ;;  %v7712_v25 = vpop.xlane.xlu0 %7711  ;;  %v7927_v27 = vadd.f32 1e-05, %v7863_v59  ;;  %v7832_v57 = vsub.f32 %v7768_v47, %v7800_v6 }
0x129e   : > { %v7780_v1 = vmul.f32 0.03125, %v7712_v25 }
0x129f   : > { %v7875_v20 = vmax.f32 %v7843_v30, 0.0  ;;  %v7864_v12 = vmax.f32 %v7832_v57, 0.0 }
0x12a0   : > { %v7552_v37 = vpop.xlane.xlu1 %7551 }
0x12a1   : > { %v7939_v16 = vadd.f32 1e-05, %v7875_v20  ;;  %v16080_v7 = vmul.f32 0.03125, %v7552_v37 }
0x12a3   : > { %10544 = vrsqrt.f32 %v7939_v16  ;;  %v7812_v4 = vmul.f32 %v16080_v7, %v16080_v7 }
0x12a4   : > { %v10543_v15 = vpop.eup %10542  ;;  %v7567_v38 = vpop.xlane.xlu1 %7566  ;;  %10546 = vrsqrt.f32 %v7927_v27  ;;  %v16101_v27 = vmul.f32 0.03125, %v16035_v13  ;;  %v7895_v13 = vsub.f32 %v15746_v62, %v16066_v26  ;;  %v7908_v62 = vsub.f32 %v15859_v43, %v16080_v7 }
0x12a5   : > { %v7844_v56 = vsub.f32 %v7780_v1, %v7812_v4  ;;  %v16087_v28 = vmul.f32 0.03125, %v7567_v38  ;;  %v16089_v58 = vmul.f32 %v10543_v15, %v7906_v31  ;;  %v7907_v31 = vsub.f32 %v15852_v24, %v7619_v29 }
0x12a6   : > { %v7727_v37 = vpop.xlane.xlu0 %7726  ;;  %v7928_v38 = vadd.f32 1e-05, %v7864_v12  ;;  %v7771_v24 = vmul.f32 0.03125, %v16038_v52 }
0x12a7   : > { %17337 = vst [vmem:[#allocation36_spill] sm:$0xff] %v16089_v58  ;;  %v7876_v30 = vmax.f32 %v7844_v56, 0.0  ;;  %v7817_v20 = vmul.f32 %v16087_v28, %v16087_v28  ;;  %v7785_v21 = vmul.f32 0.03125, %v7727_v37 }
0x12a8   : > { %v7561_v25 = vpop.xlane.xlu1 %7560 }
0x12a9   : > { %v7940_v16 = vadd.f32 1e-05, %v7876_v30  ;;  %v16093_v54 = vmul.f32 0.03125, %v7561_v25  ;;  %v7849_v47 = vsub.f32 %v7785_v21, %v7817_v20 }
0x12aa   : > { %v7721_v59 = vpop.xlane.xlu0 %7720 }
0x12ab   : > { %10548 = vrsqrt.f32 %v7940_v16  ;;  %v7815_v6 = vmul.f32 %v16093_v54, %v16093_v54  ;;  %v7783_v1 = vmul.f32 0.03125, %v7721_v59  ;;  %v7881_v25 = vmax.f32 %v7849_v47, 0.0 }
0x12ac   : > { %v7570_v4 = vpop.xlane.xlu1 %7569  ;;  %10550 = vrsqrt.f32 %v7928_v38  ;;  %v16115_v47 = vmul.f32 0.03125, %v16042_v48 }
0x12ad   : > { %v10545_v15 = vpop.eup %10544  ;;  %v16098_v56 = vmul.f32 0.03125, %v7570_v4  ;;  %v7847_v57 = vsub.f32 %v7783_v1, %v7815_v6  ;;  %v7803_v6 = vmul.f32 %v16101_v27, %v16101_v27 }
0x12ae   : > { %v7730_v37 = vpop.xlane.xlu0 %7729  ;;  %v16103_v30 = vmul.f32 %v10545_v15, %v7907_v31  ;;  %v10547_v4 = vpop.eup %10546  ;;  %v7945_v15 = vadd.f32 1e-05, %v7881_v25  ;;  %v7804_v25 = vmul.f32 %v16115_v47, %v16115_v47 }
0x12af   : > { %v7818_v20 = vmul.f32 %v16098_v56, %v16098_v56  ;;  %v7786_v21 = vmul.f32 0.03125, %v7730_v37  ;;  %v7879_v29 = vmax.f32 %v7847_v57, 0.0  ;;  %v7835_v37 = vsub.f32 %v7771_v24, %v7803_v6 }
0x12b0   : > { %17338 = vst [vmem:[#allocation37_spill] sm:$0xff] %v16103_v30  ;;  %v7564_v16 = vpop.xlane.xlu1 %7563  ;;  %v17340_v24 = vsub.s32 4, %v17144_v53 }
0x12b1   : > { %v7850_v12 = vsub.f32 %v7786_v21, %v7818_v20  ;;  %v16108_v59 = vmul.f32 0.03125, %v7564_v16  ;;  %v7943_v31 = vadd.f32 1e-05, %v7879_v29  ;;  %v7772_v20 = vmul.f32 0.03125, %v16045_v36 }
0x12b2   : > { %v7724_v1 = vpop.xlane.xlu0 %7723  ;;  %v7991_v29 = vmul.f32 %v10547_v4, %v7895_v13  ;;  %v16131_v36 = vrot.slane %v15732_v46, %v17340_v24  ;;  %v7867_v6 = vmax.f32 %v7835_v37, 0.0  ;;  %v7775_v24 = vmul.f32 0.03125, %v16052_v10 }
0x12b3   : > { %v7882_v52 = vmax.f32 %v7850_v12, 0.0  ;;  %v7816_v38 = vmul.f32 %v16108_v59, %v16108_v59  ;;  %v7784_v57 = vmul.f32 0.03125, %v7724_v1  ;;  %10552 = vrsqrt.f32 %v7943_v31 }
0x12b4   : > { %v7579_v26 = vpop.xlane.xlu1 %7578  ;;  %10554 = vrsqrt.f32 %v7945_v15  ;;  %v7836_v31 = vsub.f32 %v7772_v20, %v7804_v25 }
0x12b5   : > { %v10549_v21 = vpop.eup %10548  ;;  %v7848_v16 = vsub.f32 %v7784_v57, %v7816_v38  ;;  %v16122_v48 = vmul.f32 0.03125, %v7579_v26  ;;  %v7946_v2 = vadd.f32 1e-05, %v7882_v52  ;;  %v8027_v52 = vmul.f32 %v16131_v36, %v7991_v29 }
0x12b6   : > { %v16126_v12 = vmul.f32 %v10549_v21, %v7908_v62  ;;  %v7739_v1 = vpop.xlane.xlu0 %7738  ;;  %v16139_v62 = vmul.f32 0.03125, %v16049_v34  ;;  %v17341_v26 = vsub.s32 5, %v17144_v53  ;;  %v7896_v29 = vsub.f32 %v15759_v63, %v16077_v60 }
0x12b7   : > { %v7880_v43 = vmax.f32 %v7848_v16, 0.0  ;;  %v7821_v7 = vmul.f32 %v16122_v48, %v16122_v48  ;;  %v7789_v4 = vmul.f32 0.03125, %v7739_v1  ;;  %10556 = vrsqrt.f32 %v7946_v2  ;;  %v10551_v16 = vpop.eup %10550 }
0x12b8   : > { %17339 = vst [vmem:[#allocation35_spill] sm:$0xff] %v16126_v12  ;;  %v7573_v13 = vpop.xlane.xlu1 %7572  ;;  %v16144_v15 = vrot.slane %v15732_v46, %v17341_v26  ;;  %v7931_v1 = vadd.f32 1e-05, %v7867_v6  ;;  %v7868_v34 = vmax.f32 %v7836_v31, 0.0  ;;  %v7911_v63 = vsub.f32 %v15884_v32, %v16093_v54 }
0x12b9   : > { %v7944_v38 = vadd.f32 1e-05, %v7880_v43  ;;  %v16135_v57 = vmul.f32 0.03125, %v7573_v13  ;;  %v7853_v37 = vsub.f32 %v7789_v4, %v7821_v7  ;;  %v7807_v13 = vmul.f32 %v16139_v62, %v16139_v62 }
0x12ba   : > { %v7733_v21 = vpop.xlane.xlu0 %7732  ;;  %v8063_v7 = vadd.f32 %v16144_v15, %v8027_v52  ;;  %v7992_v60 = vmul.f32 %v10551_v16, %v7896_v29  ;;  %v7932_v52 = vadd.f32 1e-05, %v7868_v34  ;;  %v7913_v32 = vsub.f32 %v15880_v61, %v16087_v28 }
0x12bb   : > { %10558 = vrsqrt.f32 %v7944_v38  ;;  %v7819_v20 = vmul.f32 %v16135_v57, %v16135_v57  ;;  %v7787_v25 = vmul.f32 0.03125, %v7733_v21  ;;  %v16159_v38 = vmul.f32 0.03125, %v16056_v55 }
0x12bc   : > { %v7582_v53 = vpop.xlane.xlu1 %7581  ;;  %v7885_v6 = vmax.f32 %v7853_v37, 0.0  ;;  %10560 = vrsqrt.f32 %v7931_v1  ;;  %v7776_v55 = vmul.f32 0.03125, %v16061_v33  ;;  %v8028_v29 = vmul.f32 %v16131_v36, %v7992_v60 }
0x12bd   : > { %v7851_v2 = vsub.f32 %v7787_v25, %v7819_v20  ;;  %v16153_v43 = vmul.f32 0.03125, %v7582_v53  ;;  %v10553_v4 = vpop.eup %10552  ;;  %v7839_v20 = vsub.f32 %v7775_v24, %v7807_v13  ;;  %v7808_v54 = vmul.f32 %v16159_v38, %v16159_v38 }
0x12be   : > { %v7742_v10 = vpop.xlane.xlu0 %7741  ;;  %v8007_v53 = vmul.f32 %v10553_v4, %v7911_v63  ;;  %v10555_v46 = vpop.eup %10554  ;;  %v7949_v1 = vadd.f32 1e-05, %v7885_v6 }
0x12bf   : > { %v7883_v31 = vmax.f32 %v7851_v2, 0.0  ;;  %v7822_v26 = vmul.f32 %v16153_v43, %v16153_v43  ;;  %v7790_v21 = vmul.f32 0.03125, %v7742_v10  ;;  %v7912_v2 = vsub.f32 %v15900_v5, %v16108_v59 }
0x12c0   : > { %v7576_v25 = vpop.xlane.xlu1 %7575  ;;  %v8043_v37 = vmul.f32 %v16131_v36, %v8007_v53  ;;  %v8009_v61 = vmul.f32 %v10555_v46, %v7913_v32  ;;  %v7871_v10 = vmax.f32 %v7839_v20, 0.0 }
0x12c1   : > { %v7947_v12 = vadd.f32 1e-05, %v7883_v31  ;;  %v7854_v30 = vsub.f32 %v7790_v21, %v7822_v26  ;;  %v16166_v58 = vmul.f32 0.03125, %v7576_v25  ;;  %v10557_v24 = vpop.eup %10556  ;;  %v7840_v31 = vsub.f32 %v7776_v55, %v7808_v54 }
0x12c2   : > { %v7736_v16 = vpop.xlane.xlu0 %7735  ;;  %v8079_v63 = vadd.f32 %v16144_v15, %v8043_v37  ;;  %v8045_v53 = vmul.f32 %v16131_v36, %v8009_v61  ;;  %v7935_v54 = vadd.f32 1e-05, %v7871_v10  ;;  %v7915_v37 = vsub.f32 %v15920_v19, %v16135_v57 }
0x12c3   : > { %10562 = vrsqrt.f32 %v7947_v12  ;;  %v7886_v34 = vmax.f32 %v7854_v30, 0.0  ;;  %v7820_v33 = vmul.f32 %v16166_v58, %v16166_v58  ;;  %v7788_v4 = vmul.f32 0.03125, %v7736_v16 }
0x12c4   : > { %v7591_v13 = vpop.xlane.xlu1 %7590  ;;  %10564 = vrsqrt.f32 %v7932_v52  ;;  %v7914_v30 = vsub.f32 %v15891_v49, %v16098_v56  ;;  %v9880_v26 = vpack.i.bf16 %v8063_v7, %v8079_v63  ;;  %v8064_v56 = vadd.f32 %v16144_v15, %v8028_v29 }
0x12c5   : > { %v10559_v28 = vpop.eup %10558  ;;  %v16179_v60 = vmul.f32 0.03125, %v7591_v13  ;;  %v7852_v12 = vsub.f32 %v7788_v4, %v7820_v33  ;;  %10566 = vrsqrt.f32 %v7949_v1  ;;  %v7950_v5 = vadd.f32 1e-05, %v7886_v34 }
0x12c6   : > { %v7751_v6 = vpop.xlane.xlu0 %7750  ;;  %v8008_v21 = vmul.f32 %v10559_v28, %v7912_v2  ;;  %9881 = vxpose.xlu1.b32.start [1/16] (narrow) %v9880_v26, 32  ;;  %v8010_v55 = vmul.f32 %v10557_v24, %v7914_v30  ;;  %v8029_v7 = vmul.f32 %v16131_v36, %v16040_v14  ;;  %v10561_v32 = vpop.eup %10560  ;;  %v7872_v16 = vmax.f32 %v7840_v31, 0.0 }
0x12c7   : > { %v7825_v59 = vmul.f32 %v16179_v60, %v16179_v60  ;;  %v7793_v25 = vmul.f32 0.03125, %v7751_v6  ;;  %v7884_v46 = vmax.f32 %v7852_v12, 0.0  ;;  %10568 = vrsqrt.f32 %v7950_v5 }
0x12c8   : > { %v7585_v52 = vpop.xlane.xlu1 %7584  ;;  %v8044_v20 = vmul.f32 %v16131_v36, %v8008_v21  ;;  %v8081_v14 = vadd.f32 %v16144_v15, %v8045_v53  ;;  %v8046_v63 = vmul.f32 %v16131_v36, %v8010_v55  ;;  %v8065_v57 = vadd.f32 %v16144_v15, %v8029_v7 }
0x12c9   : > { %v16187_v49 = vmul.f32 0.03125, %v7585_v52  ;;  %v7948_v1 = vadd.f32 1e-05, %v7884_v46  ;;  %v7857_v2 = vsub.f32 %v7793_v25, %v7825_v59  ;;  %v8030_v10 = vmul.f32 %v16131_v36, %v16047_v41 }
0x12ca   : > { %v7745_v34 = vpop.xlane.xlu0 %7744  ;;  %v8080_v33 = vadd.f32 %v16144_v15, %v8044_v20  ;;  %v7936_v31 = vadd.f32 1e-05, %v7872_v16  ;;  %v17342_v12 = vsub.f32 %v15780_v40, %v16101_v27  ;;  %v9884_v20 = vpack.i.bf16 %v8065_v57, %v8081_v14 }
0x12cb   : > { %v7823_v24 = vmul.f32 %v16187_v49, %v16187_v49  ;;  %v7791_v4 = vmul.f32 0.03125, %v7745_v34  ;;  %10570 = vrsqrt.f32 %v7948_v1  ;;  %v7889_v5 = vmax.f32 %v7857_v2, 0.0 }
0x12cc   : > { %v7594_v29 = vpop.xlane.xlu1 %7593  ;;  %v9882_v13 = vpack.i.bf16 %v8064_v56, %v8080_v33  ;;  %10572 = vrsqrt.f32 %v7935_v54  ;;  %v7995_v6 = vmul.f32 %v10561_v32, %v17342_v12  ;;  %v8082_v41 = vadd.f32 %v16144_v15, %v8046_v63 }
0x12cd   : > { %v10563_v61 = vpop.eup %10562  ;;  %v7855_v28 = vsub.f32 %v7791_v4, %v7823_v24  ;;  %v16199_v19 = vmul.f32 0.03125, %v7594_v29  ;;  %v7900_v54 = vsub.f32 %v15798_v42, %v16115_v47  ;;  %v8066_v56 = vadd.f32 %v16144_v15, %v8030_v10 }
0x12ce   : > { %v7754_v30 = vpop.xlane.xlu0 %7753  ;;  %9883 = vxpose.xlu1.b32.cont [2/16] (narrow) %v9882_v13, 32  ;;  %v8011_v26 = vmul.f32 %v10563_v61, %v7915_v37  ;;  %v10565_v21 = vpop.eup %10564  ;;  %10574 = vrsqrt.f32 %v7936_v31  ;;  %v7917_v7 = vsub.f32 %v15915_v17, %v16122_v48  ;;  %v8031_v37 = vmul.f32 %v16131_v36, %v7995_v6 }
0x12cf   : > { %v7887_v59 = vmax.f32 %v7855_v28, 0.0  ;;  %v7826_v25 = vmul.f32 %v16199_v19, %v16199_v19  ;;  %v7794_v46 = vmul.f32 0.03125, %v7754_v30  ;;  %v10567_v55 = vpop.eup %10566  ;;  %v7953_v1 = vadd.f32 1e-05, %v7889_v5 }
0x12d0   : > { %v7588_v52 = vpop.xlane.xlu1 %7587  ;;  %v8047_v53 = vmul.f32 %v16131_v36, %v8011_v26  ;;  %v9886_v33 = vpack.i.bf16 %v8066_v56, %v8082_v41  ;;  %v7996_v24 = vmul.f32 %v10565_v21, %v7900_v54  ;;  %v8013_v4 = vmul.f32 %v10567_v55, %v7917_v7 }
0x12d1   : > { %v7951_v40 = vadd.f32 1e-05, %v7887_v59  ;;  %v16213_v27 = vmul.f32 0.03125, %v7588_v52  ;;  %v7858_v32 = vsub.f32 %v7794_v46, %v7826_v25  ;;  %v10569_v29 = vpop.eup %10568  ;;  %v7903_v17 = vsub.f32 %v15816_v22, %v16139_v62 }
0x12d2   : > { %v7748_v16 = vpop.xlane.xlu0 %7747  ;;  %9885 = vxpose.xlu1.b32.cont [3/16] (narrow) %v9884_v20, 32  ;;  %v8083_v2 = vadd.f32 %v16144_v15, %v8047_v53  ;;  %v7916_v63 = vsub.f32 %v15936_v35, %v16166_v58  ;;  %v8067_v57 = vadd.f32 %v16144_v15, %v8031_v37  ;;  %v8033_v10 = vmul.f32 %v16131_v36, %v16054_v50 }
0x12d3   : > { %10576 = vrsqrt.f32 %v7951_v40  ;;  %v7824_v34 = vmul.f32 %v16213_v27, %v16213_v27  ;;  %v7792_v42 = vmul.f32 0.03125, %v7748_v16  ;;  %v7890_v48 = vmax.f32 %v7858_v32, 0.0 }
0x12d4   : > { %v7603_v47 = vpop.xlane.xlu1 %7602  ;;  %v16232_v31 = vmul.f32 0.03125, %v16059_v23  ;;  %v7918_v22 = vsub.f32 %v15927_v18, %v16153_v43  ;;  %10578 = vrsqrt.f32 %v7953_v1  ;;  %v9888_v35 = vpack.i.bf16 %v8067_v57, %v8083_v2 }
0x12d5   : > { %v7856_v13 = vsub.f32 %v7792_v42, %v7824_v34  ;;  %v10571_v14 = vpop.eup %10570  ;;  %v16226_v61 = vmul.f32 0.03125, %v7603_v47  ;;  %v8032_v6 = vmul.f32 %v16131_v36, %v7996_v24  ;;  %v8049_v26 = vmul.f32 %v16131_v36, %v8013_v4 }
0x12d6   : > { %v7763_v28 = vpop.xlane.xlu0 %7762  ;;  %9887 = vxpose.xlu1.b32.cont [4/16] (narrow) %v9886_v33, 32  ;;  %v10573_v30 = vpop.eup %10572  ;;  %v8012_v58 = vmul.f32 %v10571_v14, %v7916_v63  ;;  %v7954_v21 = vadd.f32 1e-05, %v7890_v48  ;;  %v8014_v50 = vmul.f32 %v10569_v29, %v7918_v22  ;;  %v8034_v46 = vmul.f32 %v16131_v36, %v16063_v51 }
0x12d7   : > { %v7888_v62 = vmax.f32 %v7856_v13, 0.0  ;;  %v7829_v23 = vmul.f32 %v16226_v61, %v16226_v61  ;;  %v7797_v25 = vmul.f32 0.03125, %v7763_v28  ;;  %v16246_v52 = vmul.f32 0.03125, %v16072_v45 }
0x12d8   : > { %v7597_v12 = vpop.xlane.xlu1 %7596  ;;  %v8048_v43 = vmul.f32 %v16131_v36, %v8012_v58  ;;  %v7999_v41 = vmul.f32 %v10573_v30, %v7903_v17  ;;  %v10575_v53 = vpop.eup %10574  ;;  %v7919_v55 = vsub.f32 %v15954_v39, %v16187_v49  ;;  %v8068_v56 = vadd.f32 %v16144_v15, %v8032_v6 }
0x12d9   : > { %v7952_v5 = vadd.f32 1e-05, %v7888_v62  ;;  %v16238_v59 = vmul.f32 0.03125, %v7597_v12  ;;  %v7904_v51 = vsub.f32 %v15834_v44, %v16159_v38  ;;  %v8085_v45 = vadd.f32 %v16144_v15, %v8049_v26 }
0x12da   : > { %v7757_v18 = vpop.xlane.xlu0 %7756  ;;  %9889 = vxpose.xlu1.b32.cont [5/16] (narrow) %v9888_v35, 32  ;;  %v8084_v7 = vadd.f32 %v16144_v15, %v8048_v43  ;;  %v8050_v16 = vmul.f32 %v16131_v36, %v8014_v50  ;;  %v7861_v37 = vsub.f32 %v7797_v25, %v7829_v23  ;;  %v7813_v49 = vmul.f32 %v16232_v31, %v16232_v31 }
0x12db   : > { %10580 = vrsqrt.f32 %v7952_v5  ;;  %v7827_v20 = vmul.f32 %v16238_v59, %v16238_v59  ;;  %v7795_v54 = vmul.f32 0.03125, %v7757_v18  ;;  %v8069_v47 = vadd.f32 %v16144_v15, %v8033_v10 }
0x12dc   : > { %v7606_v40 = vpop.xlane.xlu1 %7605  ;;  %10582 = vrsqrt.f32 %v7954_v21  ;;  %v9890_v42 = vpack.i.bf16 %v8068_v56, %v8084_v7  ;;  %v8035_v33 = vmul.f32 %v16131_v36, %v7999_v41  ;;  %v7814_v44 = vmul.f32 %v16246_v52, %v16246_v52 }
0x12dd   : > { %v10577_v32 = vpop.eup %10576  ;;  %v7859_v1 = vsub.f32 %v7795_v54, %v7827_v20  ;;  %v8070_v24 = vadd.f32 %v16144_v15, %v8034_v46  ;;  %v8000_v4 = vmul.f32 %v10575_v53, %v7904_v51  ;;  %v7921_v17 = vsub.f32 %v15951_v11, %v16179_v60 }
0x12de   : > { %v7760_v34 = vpop.xlane.xlu0 %7759  ;;  %v8015_v39 = vmul.f32 %v10577_v32, %v7919_v55  ;;  %9891 = vxpose.xlu1.b32.cont [6/16] (narrow) %v9890_v42, 32  ;;  %v10579_v29 = vpop.eup %10578  ;;  %v16267_v48 = vmul.f32 0.03125, %v7606_v40  ;;  %v9892_v14 = vpack.i.bf16 %v8069_v47, %v8085_v45  ;;  %v7893_v63 = vmax.f32 %v7861_v37, 0.0 }
0x12df   : > { %v7891_v38 = vmax.f32 %v7859_v1, 0.0  ;;  %v8086_v10 = vadd.f32 %v16144_v15, %v8050_v16  ;;  %v7796_v62 = vmul.f32 0.03125, %v7760_v34  ;;  %v8071_v35 = vadd.f32 %v16144_v15, %v8035_v33 }
0x12e0   : > { %v7600_v2 = vpop.xlane.xlu1 %7599  ;;  %v8051_v22 = vmul.f32 %v16131_v36, %v8015_v39  ;;  %v7920_v11 = vsub.f32 %v15972_v8, %v16213_v27  ;;  %v8036_v58 = vmul.f32 %v16131_v36, %v8000_v4  ;;  %v8017_v6 = vmul.f32 %v10579_v29, %v7921_v17  ;;  %v17343_v4 = vld [vmem:[#allocation36_spill] sm:$0xff] }
0x12e1   : > { %v16269_v13 = vmul.f32 0.03125, %v7600_v2  ;;  %v7955_v28 = vadd.f32 1e-05, %v7891_v38  ;;  %v7830_v21 = vmul.f32 %v16267_v48, %v16267_v48  ;;  %v7957_v25 = vadd.f32 1e-05, %v7893_v63 }
0x12e2   : > { %v7715_v57 = vpop.xlane.xlu0 %7714  ;;  %9893 = vxpose.xlu1.b32.cont [7/16] (narrow) %v9892_v14, 32  ;;  %v9894_v43 = vpack.i.bf16 %v8070_v24, %v8086_v10  ;;  %v8087_v46 = vadd.f32 %v16144_v15, %v8051_v22  ;;  %v7922_v54 = vsub.f32 %v15964_v3, %v16199_v19  ;;  %v8072_v56 = vadd.f32 %v16144_v15, %v8036_v58  ;;  %v17348_v58 = vld [vmem:[#allocation33_spill] sm:$0xff] }
0x12e3   : > { %v7828_v30 = vmul.f32 %v16269_v13, %v16269_v13  ;;  %v7781_v12 = vmul.f32 0.03125, %v7715_v57  ;;  %10584 = vrsqrt.f32 %v7955_v28  ;;  %v8053_v7 = vmul.f32 %v16131_v36, %v8017_v6  ;;  %v17345_v28 = vld [vmem:[#allocation31_spill] sm:$0xff] }
0x12e4   : > { %v7766_v60 = vpop.xlane.xlu1 %7765  ;;  %10586 = vrsqrt.f32 %v7957_v25  ;;  %v9896_v37 = vpack.i.bf16 %v8071_v35, %v8087_v46  ;;  %v8037_v19 = vmul.f32 %v16131_v36, %v16074_v0  ;;  %v8038_v29 = vmul.f32 %v16131_v36, %v17343_v4 }
0x12e5   : > { %v10581_v26 = vpop.eup %10580  ;;  %v7860_v5 = vsub.f32 %v7796_v62, %v7828_v30  ;;  %v7845_v50 = vsub.f32 %v7781_v12, %v7813_v49  ;;  %v7798_v23 = vmul.f32 0.03125, %v7766_v60  ;;  %v7923_v49 = vsub.f32 %v15992_v9, %v16238_v59  ;;  %v17344_v59 = vld [vmem:[#allocation37_spill] sm:$0xff]  ;;  %v17346_v62 = vld [vmem:[#allocation34_spill] sm:$0xff]  ;;  %v17347_v12 = vld [vmem:[#allocation35_spill] sm:$0xff] }
0x12e6   : > { %v7718_v18 = vpop.xlane.xlu0 %7717  ;;  %v8016_v20 = vmul.f32 %v10581_v26, %v7920_v11  ;;  %v10583_v8 = vpop.eup %10582  ;;  %9895 = vxpose.xlu1.b32.cont [8/16] (narrow) %v9894_v43, 32  ;;  %v8073_v24 = vadd.f32 %v16144_v15, %v8037_v19  ;;  %v8039_v14 = vmul.f32 %v16131_v36, %v17344_v59  ;;  %v7924_v57 = vsub.f32 %v17345_v28, %v16269_v13  ;;  %v17349_v26 = vld [vmem:[#allocation38_spill] sm:$0xff] }
0x12e7   : > { %v7892_v27 = vmax.f32 %v7860_v5, 0.0  ;;  %v7877_v41 = vmax.f32 %v7845_v50, 0.0  ;;  %v7862_v53 = vsub.f32 %v7798_v23, %v7830_v21  ;;  %v7782_v55 = vmul.f32 0.03125, %v7718_v18 }
0x12e8   : > { %v8052_v40 = vmul.f32 %v16131_v36, %v8016_v20  ;;  %v8018_v34 = vmul.f32 %v10583_v8, %v7922_v54  ;;  %v8074_v10 = vadd.f32 %v16144_v15, %v8038_v29  ;;  %v7909_v30 = vsub.f32 %v17346_v62, %v16232_v31  ;;  %v17350_v31 = vld [vmem:[#allocation32_spill] sm:$0xff] }
0x12e9   : > { %v7956_v32 = vadd.f32 1e-05, %v7892_v27  ;;  %v7941_v51 = vadd.f32 1e-05, %v7877_v41  ;;  %v7894_v45 = vmax.f32 %v7862_v53, 0.0  ;;  %v7846_v16 = vsub.f32 %v7782_v55, %v7814_v44 }
0x12ea   : > { %v8088_v1 = vadd.f32 %v16144_v15, %v8052_v40  ;;  %9897 = vxpose.xlu1.b32.cont [9/16] (narrow) %v9896_v37, 32  ;;  %v8089_v44 = vadd.f32 %v16144_v15, %v8053_v7  ;;  %v8054_v38 = vmul.f32 %v16131_v36, %v8018_v34  ;;  %v8040_v35 = vmul.f32 %v16131_v36, %v17347_v12 }
0x12eb   : > { %10588 = vrsqrt.f32 %v7956_v32  ;;  %v7958_v42 = vadd.f32 1e-05, %v7894_v45  ;;  %v7878_v39 = vmax.f32 %v7846_v16, 0.0  ;;  %v7925_v6 = vsub.f32 %v17348_v58, %v16226_v61 }
0x12ec   : > { %10590 = vrsqrt.f32 %v7941_v51  ;;  %v9898_v3 = vpack.i.bf16 %v8072_v56, %v8088_v1  ;;  %v9900_v17 = vpack.i.bf16 %v8073_v24, %v8089_v44  ;;  %v8090_v9 = vadd.f32 %v16144_v15, %v8054_v38 }
0x12ed   : > { %10592 = vrsqrt.f32 %v7958_v42  ;;  %v7942_v47 = vadd.f32 1e-05, %v7878_v39  ;;  %v10585_v33 = vpop.eup %10584  ;;  %v7926_v21 = vsub.f32 %v17349_v26, %v16267_v48  ;;  %v8075_v23 = vadd.f32 %v16144_v15, %v8039_v14 }
0x12ee   : > { %v8019_v2 = vmul.f32 %v10585_v33, %v7923_v49  ;;  %9899 = vxpose.xlu1.b32.cont [10/16] (narrow) %v9898_v3, 32  ;;  %v10587_v63 = vpop.eup %10586  ;;  %v9902_v5 = vpack.i.bf16 %v8074_v10, %v8090_v9  ;;  %v7910_v18 = vsub.f32 %v17350_v31, %v16246_v52  ;;  %v8076_v61 = vadd.f32 %v16144_v15, %v8040_v35 }
0x12ef   : > { %10594 = vrsqrt.f32 %v7942_v47  ;;  %v8021_v46 = vmul.f32 %v10587_v63, %v7925_v6 }
0x12f0   : > { %v8055_v0 = vmul.f32 %v16131_v36, %v8019_v2 }
0x12f1   : > { %v8057_v52 = vmul.f32 %v16131_v36, %v8021_v46 }
0x12f2   : > { %9901 = vxpose.xlu1.b32.cont [11/16] (narrow) %v9900_v17, 32  ;;  %v8091_v11 = vadd.f32 %v16144_v15, %v8055_v0 }
0x12f3   : > { %v8093_v51 = vadd.f32 %v16144_v15, %v8057_v52 }
0x12f4   : > { %v9904_v27 = vpack.i.bf16 %v8075_v23, %v8091_v11 }
0x12f5   : > { %v10589_v22 = vpop.eup %10588 }
0x12f6   : > { %v10591_v60 = vpop.eup %10590  ;;  %v8020_v13 = vmul.f32 %v10589_v22, %v7924_v57  ;;  %9903 = vxpose.xlu1.b32.cont [12/16] (narrow) %v9902_v5, 32 }
0x12f7   : > { %v10593_v50 = vpop.eup %10592  ;;  %v8005_v25 = vmul.f32 %v10591_v60, %v7909_v30 }
0x12f8   : > { %v8056_v43 = vmul.f32 %v16131_v36, %v8020_v13  ;;  %v8022_v20 = vmul.f32 %v10593_v50, %v7926_v21 }
0x12f9   : > { %v10595_v8 = vpop.eup %10594  ;;  %v8041_v41 = vmul.f32 %v16131_v36, %v8005_v25 }
0x12fa   : > { %v8092_v48 = vadd.f32 %v16144_v15, %v8056_v43  ;;  %v8006_v53 = vmul.f32 %v10595_v8, %v7910_v18  ;;  %v8058_v55 = vmul.f32 %v16131_v36, %v8022_v20  ;;  %9905 = vxpose.xlu1.b32.cont [13/16] (narrow) %v9904_v27, 32 }
0x12fb   : > { %v8077_v7 = vadd.f32 %v16144_v15, %v8041_v41 }
0x12fc   : > { %v9906_v54 = vpack.i.bf16 %v8076_v61, %v8092_v48  ;;  %v8042_v40 = vmul.f32 %v16131_v36, %v8006_v53  ;;  %v8094_v56 = vadd.f32 %v16144_v15, %v8058_v55 }
0x12fd   : > { %v9908_v16 = vpack.i.bf16 %v8077_v7, %v8093_v51 }
0x12fe   : > { %v8078_v32 = vadd.f32 %v16144_v15, %v8042_v40  ;;  %9907 = vxpose.xlu1.b32.cont [14/16] (narrow) %v9906_v54, 32 }
0x1300   : > { %v9910_v45 = vpack.i.bf16 %v8078_v32, %v8094_v56 }
0x1302   : > { %9909 = vxpose.xlu1.b32.cont [15/16] (narrow) %v9908_v16, 32 }
0x1306   : > { %9911 = vxpose.xlu1.b32.end [16/16] (narrow) %v9910_v45, 32 }
0x134a   : > { %v9912_v37 = vpop.trf.xlu1 }
0x134b   : > { %v9916_v1 = vunpack.i.h.bf16 %v9912_v37  ;;  %v9913_v34 = vunpack.i.l.bf16 %v9912_v37 }
0x134d   : > { %8223 = vmatprep.mubr.f32.mxu1 %v9913_v34 }
0x134e   : > { %v9917_v42 = vpop.trf.xlu1  ;;  %8224 = vmatmul.mubr.f32.vlgmr.msra.gmra.mrb[216].mxu1 %v9916_v1 }
0x134f   : > { %v9918_v36 = vunpack.i.l.bf16 %v9917_v42  ;;  %v9921_v39 = vunpack.i.h.bf16 %v9917_v42 }
0x1351   : > { %8229 = vmatprep.mubr.f32.mxu1 %v9918_v36 }
0x1352   : > { %v9922_v3 = vpop.trf.xlu1  ;;  %8230 = vmatmul.mubr.f32.gmra.mrb[218].mxu1 %v9921_v39 }
0x1353   : > { %v9923_v15 = vunpack.i.l.bf16 %v9922_v3  ;;  %v9926_v19 = vunpack.i.h.bf16 %v9922_v3 }
0x1355   : > { %8235 = vmatprep.mubr.f32.mxu1 %v9923_v15 }
0x1356   : > { %v9927_v49 = vpop.trf.xlu1  ;;  %8236 = vmatmul.mubr.f32.gmra.mrb[220].mxu1 %v9926_v19 }
0x1357   : > { %v9931_v47 = vunpack.i.h.bf16 %v9927_v49  ;;  %v9928_v33 = vunpack.i.l.bf16 %v9927_v49 }
0x1359   : > { %8241 = vmatprep.mubr.f32.mxu1 %v9928_v33 }
0x135a   : > { %8242 = vmatmul.mubr.f32.gmra.mrb[222].mxu1 %v9931_v47 }
0x135b   : > { %10813 = shalt.err (!%p10810_p8)
}
0x135c   : > { %s10814_s14 = scalar_lea.hbm %s16336_s13, 1024  ;;  %s10818_s0 = scalar_lea.hbm %s17351_s5, 2048 }
0x135d   : > { %p10815_p6 = scmp.ne.s32.totalorder %s16336_s13, %s10814_s14  ;;  %p10819_p3 = scmp.lt.u32.totalorder %s16336_s13, %s17351_s5 }
0x135e   : > { %p10820_p0 = scmp.lt.u32.totalorder %s10818_s0, %s10814_s14  ;;  %p10822_p2 = scmp.lt.u32.totalorder %s10814_s14, %s16336_s13 }
0x135f   : > { %p10816_p9 = pnand %p10815_p6, %p17352_p7 }
0x1360   : > { %p10821_p5 = por %p10820_p0, %p10819_p3 }
0x1361   : > { %p10817_p4 = pneg %p10816_p9 }
0x1362   : > { %p10823_p10 = por %p10822_p2, %p10821_p5 }
0x1364   : > { %p10824_p1 = pnand %p10823_p10, %p10817_p4 }
0x1366   : > { %10827 = shalt.err (!%p10824_p1)
}
0x1367   : > { %s16587_s1 = smov 256   ;;  %s16588_s27 = smov 16  }
0x1368   : > { %s17353_s24 = scalar_lea.sflag [#allocation4], %s11266_s9  ;;  %s583_s6 = scalar_lea.vmem [#allocation15], %s11269_s28 }
0x1369   : > { %9731 = dma.vmem_to_hbm [thread:$0]  (%p17352_p7), %s16328_s10, 1024, %s16336_s13, %s17353_s24, %s16587_s1, %s16587_s1, %s16588_s27  }
0x136a   : > { %s8291_s14 = sshll.u32 %s583_s6, 4  ;;  %s17354_s28 = sshll.u32 %s11027_s19, 10  ;;  %s16366_s14 = int_to_ptr.vmem [resolvable:$true] %s8291_s14 }
0x136b   : > { %s17355_s20 = sld [smem:[#allocation116_spill]]  ;;  %s8262_s18 = scalar_lea.sflag [#allocation16], %s11266_s9 }
0x136c   : > { %s10828_s24 = scalar_lea.vmem %s16366_s14, 1024  ;;  %s10930_s1 = smov [#allocation15]  }
0x136d   : > { %p10829_p11 = scmp.ne.s32.totalorder %s16366_s14, %s10828_s24  ;;  %s10832_s27 = sshll.u32 %s10930_s1, 4  ;;  %s10833_s27 = int_to_ptr.vmem [resolvable:$false] %s10832_s27 }
0x136e   : > { %s10834_s3 = scalar_lea.vmem %s10833_s27, 2048  ;;  %p10835_p8 = scmp.lt.s32.totalorder %s16366_s14, %s10833_s27 }
0x136f   : > { %p10830_p12 = pnand %p10829_p11, %p17352_p7  ;;  %p10836_p6 = scmp.lt.s32.totalorder %s10834_s3, %s10828_s24 }
0x1371   : > { %s16373_s0 = scalar_lea.hbm %s17355_s20, %s17354_s28  ;;  %p10831_p13 = pneg %p10830_p12 }
0x1372   : > { %p10837_p9 = por %p10836_p6, %p10835_p8 }
0x1374   : > { %p10838_p4 = pnand %p10837_p9, %p10831_p13 }
0x1421   : > { %v8225_v44 = vpop.f32.mrb[216].mxu1 }
0x1422   : > { %8248 = vst [vmem:[%s583_s6] sm:$0xff] %v8225_v44  ;;  %v8227_v38 = vpop.f32.mrb[217].mxu1 }
0x1423   : > { %8249 = vst [vmem:[%s583_s6 + $0x8] sm:$0xff] %v8227_v38 }
0x1425   : > { %v8231_v2 = vpop.f32.mrb[218].mxu1 }
0x1426   : > { %8250 = vst [vmem:[%s583_s6 + $0x10] sm:$0xff] %v8231_v2  ;;  %v8233_v24 = vpop.f32.mrb[219].mxu1 }
0x1427   : > { %8251 = vst [vmem:[%s583_s6 + $0x18] sm:$0xff] %v8233_v24 }
0x1429   : > { %v8237_v4 = vpop.f32.mrb[220].mxu1 }
0x142a   : > { %8252 = vst [vmem:[%s583_s6 + $0x20] sm:$0xff] %v8237_v4  ;;  %v8239_v29 = vpop.f32.mrb[221].mxu1 }
0x142b   : > { %8253 = vst [vmem:[%s583_s6 + $0x28] sm:$0xff] %v8239_v29 }
0x142d   : > { %v8243_v0 = vpop.f32.mrb[222].mxu1 }
0x142e   : > { %8254 = vst [vmem:[%s583_s6 + $0x30] sm:$0xff] %v8243_v0  ;;  %v8245_v17 = vpop.f32.mrb[223].mxu1 }
0x142f   : > { %8255 = vst [vmem:[%s583_s6 + $0x38] sm:$0xff] %v8245_v17 }
0x1430   : > { %10841 = shalt.err (!%p10838_p4)
}
0x1431   : > { %s10842_s19 = scalar_lea.hbm %s16373_s0, 1024  ;;  %s10846_s1 = scalar_lea.hbm %s17355_s20, 2048 }
0x1432   : > { %p10843_p3 = scmp.ne.s32.totalorder %s16373_s0, %s10842_s19  ;;  %p10847_p2 = scmp.lt.u32.totalorder %s16373_s0, %s17355_s20 }
0x1433   : > { %p10848_p10 = scmp.lt.u32.totalorder %s10846_s1, %s10842_s19  ;;  %p10850_p11 = scmp.lt.u32.totalorder %s10842_s19, %s16373_s0 }
0x1434   : > { %p10844_p0 = pnand %p10843_p3, %p17352_p7 }
0x1435   : > { %p10849_p1 = por %p10848_p10, %p10847_p2 }
0x1436   : > { %p10845_p5 = pneg %p10844_p0 }
0x1437   : > { %p10851_p12 = por %p10850_p11, %p10849_p1 }
0x1439   : > { %p10852_p13 = pnand %p10851_p12, %p10845_p5 }
0x143b   : > { %10855 = shalt.err (!%p10852_p13)
}
0x143c   : > { %s17356_s3 = smov 16   ;;  %s17357_s13 = smov 256  }
0x143d   : > { %9732 = dma.vmem_to_hbm [thread:$0]  (%p17352_p7), %s16366_s14, 1024, %s16373_s0, %s8262_s18, %s17357_s13, %s17357_s13, %s17356_s3  }
0x143e PF: > { %s8306_s24 = sand.u32 1, %s10898_s29   ;;  %p17358_p8 = scmp.ne.s32.totalorder %s16610_s26, 0 }
0x143f   : > { %p17359_p6 = scmp.ge.s32.totalorder %s10910_s16, 2  ;;  %s8307_s19 = scalar_lea.sflag [#allocation4], %s8306_s24 }
0x1441   : > { %p9759_p9 = pnand %p17359_p6, %p17358_p8 }
0x1443   : > { %10889 = dma.done.wait (!%p9759_p9), %s8307_s19, 1024  }
0x1444   : > { %10891 = vsyncadd (!%p9759_p9), %s8307_s19, 4294966272  ;;  %s8316_s2 = scalar_lea.sflag [#allocation16], %s8306_s24 }
0x1445   : > { %10893 = dma.done.wait (!%p9759_p9), %s8316_s2, 1024  }
0x1446   : > { %10895 = vsyncadd (!%p9759_p9), %s8316_s2, 4294966272  ;;  %p34_p7 = scmp.ge.s32.totalorder %s11190_s21, 4   ;;  %s17360_s29 = smov %s10902_s30 }
0x1447   : > { %s17361_s30 = smov %s10906_s15  ;;  %s17362_s15 = smov %s11202_s25 }
0x1448   : > { %s17363_s16 = smov %s11190_s21  ;;  %36 = sbr.rel (!%p34_p7) target bundleno = 22 (0x16), region = 167 }
0x144f   :  { %8321 = vsyncpa [#allocation3], 1 }
0x1450   :  { %8323 = vsyncpa [#allocation3 + $0x1], 1 }
0x1451   :  { %8324 = vsyncpa [#allocation6], 1 }
0x1452   :  { %8325 = vsyncpa [#allocation9], 1 }
0x1453   :  { %8326 = vsyncpa [#allocation12], 1 }
0x1454   :  { %8327 = vsyncpa [#allocation4], 1 }
0x1455   :  { %8329 = vsyncpa [#allocation4 + $0x1], 1 }
0x1456   :  { %8330 = vsyncpa [#allocation16], 1 }
0x1457   :  { %8332 = vsyncpa [#allocation16 + $0x1], 1 }

</bundles_post_ra>
